<compile_context>
chip_gen: v7x
topology: tpu7x:2x2x1
jax: 0.10.0
libtpu: 0.0.40
codegen_flags: <defaults>
</compile_context>

<pallas_src>
import functools
import math

import jax
import jax.numpy as jnp
from jax import lax
from jax.experimental import pallas as pl
from jax.experimental.pallas import tpu as pltpu


# ------------------------- parameter layout / packing -------------------------

def _build_layout(depth, emb_dim, mlp_dim, id_self, id_cross):
    """Deterministic ordering of every weight matrix / bias+LN vector."""
    w_entries = []   # (name, din, dout)
    v_entries = []   # (name, dim)

    def add_attn(prefix, d_model, d_internal):
        for nm in ("wq", "wk", "wv"):
            w_entries.append((f"{prefix}/{nm}", d_model, d_internal))
            v_entries.append((f"{prefix}/b{nm[1]}", d_internal))
        w_entries.append((f"{prefix}/wo", d_internal, d_model))
        v_entries.append((f"{prefix}/bo", d_model))

    def add_norm(prefix):
        v_entries.append((f"{prefix}/g", emb_dim))
        v_entries.append((f"{prefix}/b", emb_dim))

    for l in range(depth):
        add_attn(f"l{l}/self", emb_dim, id_self)
        add_norm(f"l{l}/norm1")
        add_attn(f"l{l}/t2i", emb_dim, id_cross)
        add_norm(f"l{l}/norm2")
        w_entries.append((f"l{l}/mlp/w1", emb_dim, mlp_dim))
        v_entries.append((f"l{l}/mlp/b1", mlp_dim))
        w_entries.append((f"l{l}/mlp/w2", mlp_dim, emb_dim))
        v_entries.append((f"l{l}/mlp/b2", emb_dim))
        add_norm(f"l{l}/norm3")
        add_attn(f"l{l}/i2t", emb_dim, id_cross)
        add_norm(f"l{l}/norm4")
    add_attn("final", emb_dim, id_cross)
    add_norm("normf")

    w_index = {nm: (i, din, dout) for i, (nm, din, dout) in enumerate(w_entries)}
    v_index = {nm: (i, d) for i, (nm, d) in enumerate(v_entries)}
    wmax_in = max(din for _, din, _ in w_entries)
    wmax_out = max(dout for _, _, dout in w_entries)
    vmax = max(d for _, d in v_entries)
    return w_entries, v_entries, w_index, v_index, wmax_in, wmax_out, vmax


def _named_params(params, depth):
    named = {}

    def add_attn(prefix, p):
        for nm in ("wq", "bq", "wk", "bk", "wv", "bv", "wo", "bo"):
            named[f"{prefix}/{nm}"] = p[nm]

    def add_norm(prefix, n):
        named[f"{prefix}/g"] = n[0]
        named[f"{prefix}/b"] = n[1]

    for l in range(depth):
        lp = params["layers"][l]
        add_attn(f"l{l}/self", lp["self_attn"])
        add_norm(f"l{l}/norm1", lp["norm1"])
        add_attn(f"l{l}/t2i", lp["cross_t2i"])
        add_norm(f"l{l}/norm2", lp["norm2"])
        w1, b1, w2, b2 = lp["mlp"]
        named[f"l{l}/mlp/w1"] = w1
        named[f"l{l}/mlp/b1"] = b1
        named[f"l{l}/mlp/w2"] = w2
        named[f"l{l}/mlp/b2"] = b2
        add_norm(f"l{l}/norm3", lp["norm3"])
        add_attn(f"l{l}/i2t", lp["cross_i2t"])
        add_norm(f"l{l}/norm4", lp["norm4"])
    add_attn("final", params["final_attn"])
    add_norm("normf", params["norm_final"])
    return named


def _pack_params(params, depth, emb_dim, mlp_dim, id_self, id_cross):
    (w_entries, v_entries, w_index, v_index,
     wmax_in, wmax_out, vmax) = _build_layout(depth, emb_dim, mlp_dim,
                                              id_self, id_cross)
    named = _named_params(params, depth)

    w_rows = []
    for nm, din, dout in w_entries:
        w = named[nm].astype(jnp.float32)
        w_rows.append(jnp.pad(w, ((0, wmax_in - din), (0, wmax_out - dout))))
    w_stack = jnp.stack(w_rows, axis=0)                      # (n_w, WMAX_IN, WMAX_OUT)

    v_rows = []
    for nm, d in v_entries:
        v = named[nm].astype(jnp.float32)
        v_rows.append(jnp.pad(v, (0, vmax - d)))
    v_stack = jnp.stack(v_rows, axis=0)                      # (n_v, VMAX)

    return w_stack, v_stack, w_index, v_index, wmax_in, wmax_out, vmax


# --------------------------------- fused kernel ---------------------------------

def _make_kernel(depth, emb_dim, num_heads, w_index, v_index):
    """One fused kernel = full DN_TwoWayTransformer forward for one batch element."""
    eps = 1e-5

    def kernel(pt_ref, img_ref, imgpe_ref, w_ref, v_ref, oq_ref, ok_ref):
        # ---- lazy parameter accessors (static slices of the packed stacks) ----
        def get_w(name):
            i, din, dout = w_index[name]
            return w_ref[i][:din, :dout]                     # (din, dout)

        def get_v(name):
            i, d = v_index[name]
            return v_ref[pl.ds(i, 1), :][:, :d]              # (1, d)

        def layer_norm(x, prefix):
            g = get_v(f"{prefix}/g")
            b = get_v(f"{prefix}/b")
            mean = jnp.mean(x, axis=-1, keepdims=True)
            xc = x - mean
            var = jnp.mean(xc * xc, axis=-1, keepdims=True)
            return xc * lax.rsqrt(var + eps) * g + b

        def attention(prefix, q_in, k_in, v_in):
            wq = get_w(f"{prefix}/wq")
            wk = get_w(f"{prefix}/wk")
            wv = get_w(f"{prefix}/wv")
            wo = get_w(f"{prefix}/wo")
            q = jnp.dot(q_in, wq, preferred_element_type=jnp.float32) + get_v(f"{prefix}/bq")
            k = jnp.dot(k_in, wk, preferred_element_type=jnp.float32) + get_v(f"{prefix}/bk")
            v = jnp.dot(v_in, wv, preferred_element_type=jnp.float32) + get_v(f"{prefix}/bv")
            internal = wq.shape[1]
            d = internal // num_heads
            scale = 1.0 / math.sqrt(d)
            # accumulate each head through its slice of Wo -> no lane-dim concat
            out = get_v(f"{prefix}/bo")                      # (1, D), broadcasts
            for h in range(num_heads):                       # static unroll
                qh = q[:, h * d:(h + 1) * d]
                kh = k[:, h * d:(h + 1) * d]
                vh = v[:, h * d:(h + 1) * d]
                # q @ k^T without materializing a transpose (contract last dims)
                s = lax.dot_general(qh, kh, (((1,), (1,)), ((), ())),
                                    preferred_element_type=jnp.float32) * scale
                s = s - jnp.max(s, axis=-1, keepdims=True)
                p = jnp.exp(s)
                p = p * pl.reciprocal(jnp.sum(p, axis=-1, keepdims=True),
                                      approx=True)
                oh = jnp.dot(p, vh, preferred_element_type=jnp.float32)
                out = out + jnp.dot(oh, wo[h * d:(h + 1) * d, :],
                                    preferred_element_type=jnp.float32)
            return out

        def mlp(prefix, x):
            h = jnp.dot(x, get_w(f"{prefix}/w1"),
                        preferred_element_type=jnp.float32) + get_v(f"{prefix}/b1")
            h = jnp.maximum(h, 0.0)                          # ReLU of MLPBlock
            return jnp.dot(h, get_w(f"{prefix}/w2"),
                           preferred_element_type=jnp.float32) + get_v(f"{prefix}/b2")

        # ---- activations (one batch element, resident in VMEM for all layers) ----
        qpe = pt_ref[0]                                      # query_pe == initial queries
        queries = qpe
        keys = img_ref[0]
        kpe = imgpe_ref[0]

        for l in range(depth):                               # static unroll over layers
            # (1) self-attention on sparse inputs
            if l == 0:                                       # skip_first_layer_pe
                queries = attention(f"l{l}/self", queries, queries, queries)
            else:
                q = queries + qpe
                queries = queries + attention(f"l{l}/self", q, q, queries)
            queries = layer_norm(queries, f"l{l}/norm1")

            # (2) cross attention: tokens -> image
            q = queries + qpe
            k = keys + kpe
            queries = queries + attention(f"l{l}/t2i", q, k, keys)
            queries = layer_norm(queries, f"l{l}/norm2")

            # (3) MLP on sparse inputs
            queries = queries + mlp(f"l{l}/mlp", queries)
            queries = layer_norm(queries, f"l{l}/norm3")

            # (4) cross attention: image -> tokens
            q = queries + qpe
            k = keys + kpe
            keys = keys + attention(f"l{l}/i2t", k, q, queries)
            keys = layer_norm(keys, f"l{l}/norm4")

            # per-layer outputs: raw keys, and queries after the (shared)
            # final token->image attention + norm_final_attn.
            ok_ref[l, 0] = keys
            qf = queries + attention("final", queries + qpe, keys + kpe, keys)
            qf = layer_norm(qf, "normf")
            oq_ref[l, 0] = qf

    return kernel


# ------------------------------------ wrapper ------------------------------------

@functools.partial(jax.jit, static_argnames=("num_heads",))
def dn_two_way_transformer_forward(params, image_embedding, image_pe,
                                   point_embedding, num_heads):
    depth = len(params["layers"])
    B, C, H, W = image_embedding.shape
    emb_dim = C
    Nq = point_embedding.shape[1]
    Nk = H * W
    mlp_dim = params["layers"][0]["mlp"][0].shape[1]
    id_self = params["layers"][0]["self_attn"]["wq"].shape[1]
    id_cross = params["final_attn"]["wq"].shape[1]

    # flatten(2).permute(0, 2, 1): NCHW -> (B, H*W, C)   (compiled once under jit)
    image_embedding = image_embedding.reshape(B, C, Nk).transpose(0, 2, 1)
    image_pe = image_pe.reshape(B, C, Nk).transpose(0, 2, 1)

    (w_stack, v_stack, w_index, v_index,
     wmax_in, wmax_out, vmax) = _pack_params(params, depth, emb_dim, mlp_dim,
                                             id_self, id_cross)
    n_w, n_v = w_stack.shape[0], v_stack.shape[0]

    kernel = _make_kernel(depth, emb_dim, num_heads, w_index, v_index)

    out_q, out_k = pl.pallas_call(
        kernel,
        grid=(B,),
        in_specs=[
            pl.BlockSpec((1, Nq, emb_dim), lambda b: (b, 0, 0)),      # point_embedding
            pl.BlockSpec((1, Nk, emb_dim), lambda b: (b, 0, 0)),      # image_embedding
            pl.BlockSpec((1, Nk, emb_dim), lambda b: (b, 0, 0)),      # image_pe
            pl.BlockSpec((n_w, wmax_in, wmax_out), lambda b: (0, 0, 0)),
            pl.BlockSpec((n_v, vmax), lambda b: (0, 0)),
        ],
        out_specs=(
            pl.BlockSpec((depth, 1, Nq, emb_dim), lambda b: (0, b, 0, 0)),
            pl.BlockSpec((depth, 1, Nk, emb_dim), lambda b: (0, b, 0, 0)),
        ),
        out_shape=(
            jax.ShapeDtypeStruct((depth, B, Nq, emb_dim), jnp.float32),
            jax.ShapeDtypeStruct((depth, B, Nk, emb_dim), jnp.float32),
        ),
        compiler_params=pltpu.CompilerParams(
            dimension_semantics=("parallel",)),
    )(point_embedding, image_embedding, image_pe, w_stack, v_stack)

    out_queries = [out_q[i] for i in range(depth)]
    out_keys = [out_k[i] for i in range(depth)]
    return out_queries, out_keys


# ------------------------------ parameter init ------------------------------

def init_linear(key, din, dout):
    k1, k2 = jax.random.split(key)
    bound = 1.0 / math.sqrt(din)
    w = jax.random.uniform(k1, (din, dout), jnp.float32, -bound, bound)
    b = jax.random.uniform(k2, (dout,), jnp.float32, -bound, bound)
    return w, b


def init_attention(key, embedding_dim, downsample_rate):
    internal = embedding_dim // downsample_rate
    ks = jax.random.split(key, 4)
    wq, bq = init_linear(ks[0], embedding_dim, internal)
    wk, bk = init_linear(ks[1], embedding_dim, internal)
    wv, bv = init_linear(ks[2], embedding_dim, internal)
    wo, bo = init_linear(ks[3], internal, embedding_dim)
    return dict(wq=wq, bq=bq, wk=wk, bk=bk, wv=wv, bv=bv, wo=wo, bo=bo)


def init_layernorm(dim):
    return (jnp.ones((dim,), jnp.float32), jnp.zeros((dim,), jnp.float32))


def init_block(key, embedding_dim, mlp_dim, attention_downsample_rate):
    ks = jax.random.split(key, 5)
    w1, b1 = init_linear(ks[3], embedding_dim, mlp_dim)
    w2, b2 = init_linear(ks[4], mlp_dim, embedding_dim)
    return dict(
        self_attn=init_attention(ks[0], embedding_dim, 1),
        cross_t2i=init_attention(ks[1], embedding_dim,
                                 attention_downsample_rate),
        cross_i2t=init_attention(ks[2], embedding_dim,
                                 attention_downsample_rate),
        mlp=(w1, b1, w2, b2),
        norm1=init_layernorm(embedding_dim),
        norm2=init_layernorm(embedding_dim),
        norm3=init_layernorm(embedding_dim),
        norm4=init_layernorm(embedding_dim),
    )


def init_model(key, depth, embedding_dim, mlp_dim, attention_downsample_rate):
    ks = jax.random.split(key, depth + 1)
    layers = [init_block(ks[i], embedding_dim, mlp_dim,
                         attention_downsample_rate) for i in range(depth)]
    return dict(
        layers=layers,
        final_attn=init_attention(ks[depth], embedding_dim,
                                  attention_downsample_rate),
        norm_final=init_layernorm(embedding_dim),
    )


# ------------------------------------ main ------------------------------------

if __name__ == "__main__":
    depth = 2
    embedding_dim = 32
    num_heads = 4
    mlp_dim = 64
    attention_downsample_rate = 2

    B, H, W = 2, 8, 8
    n_points = 8

    key = jax.random.PRNGKey(0)
    kparam, kimg, kpe, kpt = jax.random.split(key, 4)

    params = init_model(kparam, depth, embedding_dim, mlp_dim,
                        attention_downsample_rate)

    image_embedding = jax.random.normal(
        kimg, (B, embedding_dim, H, W), jnp.float32)           # NCHW
    image_pe = jax.random.normal(
        kpe, (B, embedding_dim, H, W), jnp.float32)            # NCHW
    point_embedding = jax.random.normal(
        kpt, (B, n_points, embedding_dim), jnp.float32)        # (B, N, C)

    out_queries, out_keys = dn_two_way_transformer_forward(
        params, image_embedding, image_pe, point_embedding, num_heads=num_heads)

    jax.block_until_ready((out_queries, out_keys))
    assert len(out_queries) == depth and len(out_keys) == depth
    assert out_queries[0].shape == (B, n_points, embedding_dim)
    assert out_keys[0].shape == (B, H * W, embedding_dim)
    print("KERNEL_OK")
</pallas_src>

<mosaic_0001>
module attributes {stable_mosaic.version = 11 : i64} {
  func.func @kernel(%arg0: i32, %arg1: memref<1x8x32xf32, #tpu.memory_space<vmem>>, %arg2: memref<1x64x32xf32, #tpu.memory_space<vmem>>, %arg3: memref<1x64x32xf32, #tpu.memory_space<vmem>>, %arg4: memref<32x64x64xf32, #tpu.memory_space<vmem>>, %arg5: memref<50x64xf32, #tpu.memory_space<vmem>>, %arg6: memref<2x1x8x32xf32, #tpu.memory_space<vmem>>, %arg7: memref<2x1x64x32xf32, #tpu.memory_space<vmem>>) attributes {dimension_semantics = [#tpu.dimension_semantics<parallel>], iteration_bounds = array<i64: 2>, scalar_prefetch = 0 : i64, scratch_operands = 0 : i64, tpu.core_type = #tpu.core_type<tc>, window_params = [{transform_indices = @transform_0, window_bounds = array<i64: 1, 8, 32>}, {transform_indices = @transform_1, window_bounds = array<i64: 1, 64, 32>}, {transform_indices = @transform_2, window_bounds = array<i64: 1, 64, 32>}, {pipeline_mode = #tpu.pipeline_mode<synchronous>, transform_indices = @transform_3, window_bounds = array<i64: 32, 64, 64>}, {pipeline_mode = #tpu.pipeline_mode<synchronous>, transform_indices = @transform_4, window_bounds = array<i64: 50, 64>}, {transform_indices = @transform_5, window_bounds = array<i64: 2, 1, 8, 32>}, {transform_indices = @transform_6, window_bounds = array<i64: 2, 1, 64, 32>}]} {
    %c0 = arith.constant 0 : index
    %c0_0 = arith.constant 0 : index
    %c0_1 = arith.constant 0 : index
    %0 = vector.load %arg1[%c0, %c0_0, %c0_1] : memref<1x8x32xf32, #tpu.memory_space<vmem>>, vector<1x8x32xf32>
    %1 = vector.shape_cast %0 : vector<1x8x32xf32> to vector<8x32xf32>
    %c0_2 = arith.constant 0 : index
    %c0_3 = arith.constant 0 : index
    %c0_4 = arith.constant 0 : index
    %2 = vector.load %arg2[%c0_2, %c0_3, %c0_4] : memref<1x64x32xf32, #tpu.memory_space<vmem>>, vector<1x64x32xf32>
    %3 = vector.shape_cast %2 : vector<1x64x32xf32> to vector<64x32xf32>
    %c0_5 = arith.constant 0 : index
    %c0_6 = arith.constant 0 : index
    %c0_7 = arith.constant 0 : index
    %4 = vector.load %arg3[%c0_5, %c0_6, %c0_7] : memref<1x64x32xf32, #tpu.memory_space<vmem>>, vector<1x64x32xf32>
    %5 = vector.shape_cast %4 : vector<1x64x32xf32> to vector<64x32xf32>
    %c0_8 = arith.constant 0 : index
    %c0_9 = arith.constant 0 : index
    %c0_10 = arith.constant 0 : index
    %6 = vector.load %arg4[%c0_8, %c0_9, %c0_10] : memref<32x64x64xf32, #tpu.memory_space<vmem>>, vector<1x64x64xf32>
    %7 = vector.shape_cast %6 : vector<1x64x64xf32> to vector<64x64xf32>
    %8 = vector.extract_strided_slice %7 {offsets = [0, 0], sizes = [32, 32], strides = [1, 1]} : vector<64x64xf32> to vector<32x32xf32>
    %c1 = arith.constant 1 : index
    %c0_11 = arith.constant 0 : index
    %c0_12 = arith.constant 0 : index
    %9 = vector.load %arg4[%c1, %c0_11, %c0_12] : memref<32x64x64xf32, #tpu.memory_space<vmem>>, vector<1x64x64xf32>
    %10 = vector.shape_cast %9 : vector<1x64x64xf32> to vector<64x64xf32>
    %11 = vector.extract_strided_slice %10 {offsets = [0, 0], sizes = [32, 32], strides = [1, 1]} : vector<64x64xf32> to vector<32x32xf32>
    %c2 = arith.constant 2 : index
    %c0_13 = arith.constant 0 : index
    %c0_14 = arith.constant 0 : index
    %12 = vector.load %arg4[%c2, %c0_13, %c0_14] : memref<32x64x64xf32, #tpu.memory_space<vmem>>, vector<1x64x64xf32>
    %13 = vector.shape_cast %12 : vector<1x64x64xf32> to vector<64x64xf32>
    %14 = vector.extract_strided_slice %13 {offsets = [0, 0], sizes = [32, 32], strides = [1, 1]} : vector<64x64xf32> to vector<32x32xf32>
    %c3 = arith.constant 3 : index
    %c0_15 = arith.constant 0 : index
    %c0_16 = arith.constant 0 : index
    %15 = vector.load %arg4[%c3, %c0_15, %c0_16] : memref<32x64x64xf32, #tpu.memory_space<vmem>>, vector<1x64x64xf32>
    %16 = vector.shape_cast %15 : vector<1x64x64xf32> to vector<64x64xf32>
    %17 = vector.extract_strided_slice %16 {offsets = [0, 0], sizes = [32, 32], strides = [1, 1]} : vector<64x64xf32> to vector<32x32xf32>
    %cst = arith.constant dense<0.000000e+00> : vector<8x32xf32>
    %18 = tpu.matmul %1, %8, %cst {dimension_numbers = #tpu.dot_dimension_numbers<[1], [0], [0], [1], [0, 0, 1, 1], [], []>} : vector<8x32xf32>, vector<32x32xf32>, vector<8x32xf32> -> vector<8x32xf32>
    %c0_17 = arith.constant 0 : index
    %c0_18 = arith.constant 0 : index
    %19 = vector.load %arg5[%c0_17, %c0_18] : memref<50x64xf32, #tpu.memory_space<vmem>>, vector<1x64xf32>
    %20 = vector.extract_strided_slice %19 {offsets = [0, 0], sizes = [1, 32], strides = [1, 1]} : vector<1x64xf32> to vector<1x32xf32>
    %21 = vector.broadcast %20 : vector<1x32xf32> to vector<8x32xf32>
    %22 = arith.addf %18, %21 : vector<8x32xf32>
    %cst_19 = arith.constant dense<0.000000e+00> : vector<8x32xf32>
    %23 = tpu.matmul %1, %11, %cst_19 {dimension_numbers = #tpu.dot_dimension_numbers<[1], [0], [0], [1], [0, 0, 1, 1], [], []>} : vector<8x32xf32>, vector<32x32xf32>, vector<8x32xf32> -> vector<8x32xf32>
    %c1_20 = arith.constant 1 : index
    %c0_21 = arith.constant 0 : index
    %24 = vector.load %arg5[%c1_20, %c0_21] : memref<50x64xf32, #tpu.memory_space<vmem>>, vector<1x64xf32>
    %25 = vector.extract_strided_slice %24 {offsets = [0, 0], sizes = [1, 32], strides = [1, 1]} : vector<1x64xf32> to vector<1x32xf32>
    %26 = vector.broadcast %25 : vector<1x32xf32> to vector<8x32xf32>
    %27 = arith.addf %23, %26 : vector<8x32xf32>
    %cst_22 = arith.constant dense<0.000000e+00> : vector<8x32xf32>
    %28 = tpu.matmul %1, %14, %cst_22 {dimension_numbers = #tpu.dot_dimension_numbers<[1], [0], [0], [1], [0, 0, 1, 1], [], []>} : vector<8x32xf32>, vector<32x32xf32>, vector<8x32xf32> -> vector<8x32xf32>
    %c2_23 = arith.constant 2 : index
    %c0_24 = arith.constant 0 : index
    %29 = vector.load %arg5[%c2_23, %c0_24] : memref<50x64xf32, #tpu.memory_space<vmem>>, vector<1x64xf32>
    %30 = vector.extract_strided_slice %29 {offsets = [0, 0], sizes = [1, 32], strides = [1, 1]} : vector<1x64xf32> to vector<1x32xf32>
    %31 = vector.broadcast %30 : vector<1x32xf32> to vector<8x32xf32>
    %32 = arith.addf %28, %31 : vector<8x32xf32>
    %c3_25 = arith.constant 3 : index
    %c0_26 = arith.constant 0 : index
    %33 = vector.load %arg5[%c3_25, %c0_26] : memref<50x64xf32, #tpu.memory_space<vmem>>, vector<1x64xf32>
    %34 = vector.extract_strided_slice %33 {offsets = [0, 0], sizes = [1, 32], strides = [1, 1]} : vector<1x64xf32> to vector<1x32xf32>
    %35 = vector.extract_strided_slice %22 {offsets = [0, 0], sizes = [8, 8], strides = [1, 1]} : vector<8x32xf32> to vector<8x8xf32>
    %36 = vector.extract_strided_slice %27 {offsets = [0, 0], sizes = [8, 8], strides = [1, 1]} : vector<8x32xf32> to vector<8x8xf32>
    %37 = vector.extract_strided_slice %32 {offsets = [0, 0], sizes = [8, 8], strides = [1, 1]} : vector<8x32xf32> to vector<8x8xf32>
    %cst_27 = arith.constant dense<0.000000e+00> : vector<8x8xf32>
    %38 = tpu.matmul %35, %36, %cst_27 {dimension_numbers = #tpu.dot_dimension_numbers<[1], [1], [0], [0], [0, 0, 1, 0], [], []>} : vector<8x8xf32>, vector<8x8xf32>, vector<8x8xf32> -> vector<8x8xf32>
    %cst_28 = arith.constant 0.353553385 : f32
    %39 = vector.broadcast %cst_28 : f32 to vector<8x8xf32>
    %40 = arith.mulf %38, %39 : vector<8x8xf32>
    %cst_29 = arith.constant dense<0xFF800000> : vector<8xf32>
    %41 = vector.multi_reduction <maximumf>, %40, %cst_29 [1] : vector<8x8xf32> to vector<8xf32>
    %42 = vector.shape_cast %41 : vector<8xf32> to vector<8x1xf32>
    %43 = vector.broadcast %42 : vector<8x1xf32> to vector<8x8xf32>
    %44 = arith.subf %40, %43 : vector<8x8xf32>
    %45 = math.exp %44 : vector<8x8xf32>
    %cst_30 = arith.constant dense<0.000000e+00> : vector<8xf32>
    %46 = vector.multi_reduction <add>, %45, %cst_30 [1] : vector<8x8xf32> to vector<8xf32>
    %47 = vector.shape_cast %46 : vector<8xf32> to vector<8x1xf32>
    %48 = tpu.reciprocal %47 {approx = true} : vector<8x1xf32> -> vector<8x1xf32>
    %49 = vector.broadcast %48 : vector<8x1xf32> to vector<8x8xf32>
    %50 = arith.mulf %45, %49 : vector<8x8xf32>
    %cst_31 = arith.constant dense<0.000000e+00> : vector<8x8xf32>
    %51 = tpu.matmul %50, %37, %cst_31 {dimension_numbers = #tpu.dot_dimension_numbers<[1], [0], [0], [1], [0, 0, 1, 1], [], []>} : vector<8x8xf32>, vector<8x8xf32>, vector<8x8xf32> -> vector<8x8xf32>
    %52 = vector.extract_strided_slice %17 {offsets = [0, 0], sizes = [8, 32], strides = [1, 1]} : vector<32x32xf32> to vector<8x32xf32>
    %cst_32 = arith.constant dense<0.000000e+00> : vector<8x32xf32>
    %53 = tpu.matmul %51, %52, %cst_32 {dimension_numbers = #tpu.dot_dimension_numbers<[1], [0], [0], [1], [0, 0, 1, 1], [], []>} : vector<8x8xf32>, vector<8x32xf32>, vector<8x32xf32> -> vector<8x32xf32>
    %54 = vector.broadcast %34 : vector<1x32xf32> to vector<8x32xf32>
    %55 = arith.addf %54, %53 : vector<8x32xf32>
    %56 = vector.extract_strided_slice %22 {offsets = [0, 8], sizes = [8, 8], strides = [1, 1]} : vector<8x32xf32> to vector<8x8xf32>
    %57 = vector.extract_strided_slice %27 {offsets = [0, 8], sizes = [8, 8], strides = [1, 1]} : vector<8x32xf32> to vector<8x8xf32>
    %58 = vector.extract_strided_slice %32 {offsets = [0, 8], sizes = [8, 8], strides = [1, 1]} : vector<8x32xf32> to vector<8x8xf32>
    %cst_33 = arith.constant dense<0.000000e+00> : vector<8x8xf32>
    %59 = tpu.matmul %56, %57, %cst_33 {dimension_numbers = #tpu.dot_dimension_numbers<[1], [1], [0], [0], [0, 0, 1, 0], [], []>} : vector<8x8xf32>, vector<8x8xf32>, vector<8x8xf32> -> vector<8x8xf32>
    %cst_34 = arith.constant 0.353553385 : f32
    %60 = vector.broadcast %cst_34 : f32 to vector<8x8xf32>
    %61 = arith.mulf %59, %60 : vector<8x8xf32>
    %cst_35 = arith.constant dense<0xFF800000> : vector<8xf32>
    %62 = vector.multi_reduction <maximumf>, %61, %cst_35 [1] : vector<8x8xf32> to vector<8xf32>
    %63 = vector.shape_cast %62 : vector<8xf32> to vector<8x1xf32>
    %64 = vector.broadcast %63 : vector<8x1xf32> to vector<8x8xf32>
    %65 = arith.subf %61, %64 : vector<8x8xf32>
    %66 = math.exp %65 : vector<8x8xf32>
    %cst_36 = arith.constant dense<0.000000e+00> : vector<8xf32>
    %67 = vector.multi_reduction <add>, %66, %cst_36 [1] : vector<8x8xf32> to vector<8xf32>
    %68 = vector.shape_cast %67 : vector<8xf32> to vector<8x1xf32>
    %69 = tpu.reciprocal %68 {approx = true} : vector<8x1xf32> -> vector<8x1xf32>
    %70 = vector.broadcast %69 : vector<8x1xf32> to vector<8x8xf32>
    %71 = arith.mulf %66, %70 : vector<8x8xf32>
    %cst_37 = arith.constant dense<0.000000e+00> : vector<8x8xf32>
    %72 = tpu.matmul %71, %58, %cst_37 {dimension_numbers = #tpu.dot_dimension_numbers<[1], [0], [0], [1], [0, 0, 1, 1], [], []>} : vector<8x8xf32>, vector<8x8xf32>, vector<8x8xf32> -> vector<8x8xf32>
    %73 = vector.extract_strided_slice %17 {offsets = [8, 0], sizes = [8, 32], strides = [1, 1]} : vector<32x32xf32> to vector<8x32xf32>
    %cst_38 = arith.constant dense<0.000000e+00> : vector<8x32xf32>
    %74 = tpu.matmul %72, %73, %cst_38 {dimension_numbers = #tpu.dot_dimension_numbers<[1], [0], [0], [1], [0, 0, 1, 1], [], []>} : vector<8x8xf32>, vector<8x32xf32>, vector<8x32xf32> -> vector<8x32xf32>
    %75 = arith.addf %55, %74 : vector<8x32xf32>
    %76 = vector.extract_strided_slice %22 {offsets = [0, 16], sizes = [8, 8], strides = [1, 1]} : vector<8x32xf32> to vector<8x8xf32>
    %77 = vector.extract_strided_slice %27 {offsets = [0, 16], sizes = [8, 8], strides = [1, 1]} : vector<8x32xf32> to vector<8x8xf32>
    %78 = vector.extract_strided_slice %32 {offsets = [0, 16], sizes = [8, 8], strides = [1, 1]} : vector<8x32xf32> to vector<8x8xf32>
    %cst_39 = arith.constant dense<0.000000e+00> : vector<8x8xf32>
    %79 = tpu.matmul %76, %77, %cst_39 {dimension_numbers = #tpu.dot_dimension_numbers<[1], [1], [0], [0], [0, 0, 1, 0], [], []>} : vector<8x8xf32>, vector<8x8xf32>, vector<8x8xf32> -> vector<8x8xf32>
    %cst_40 = arith.constant 0.353553385 : f32
    %80 = vector.broadcast %cst_40 : f32 to vector<8x8xf32>
    %81 = arith.mulf %79, %80 : vector<8x8xf32>
    %cst_41 = arith.constant dense<0xFF800000> : vector<8xf32>
    %82 = vector.multi_reduction <maximumf>, %81, %cst_41 [1] : vector<8x8xf32> to vector<8xf32>
    %83 = vector.shape_cast %82 : vector<8xf32> to vector<8x1xf32>
    %84 = vector.broadcast %83 : vector<8x1xf32> to vector<8x8xf32>
    %85 = arith.subf %81, %84 : vector<8x8xf32>
    %86 = math.exp %85 : vector<8x8xf32>
    %cst_42 = arith.constant dense<0.000000e+00> : vector<8xf32>
    %87 = vector.multi_reduction <add>, %86, %cst_42 [1] : vector<8x8xf32> to vector<8xf32>
    %88 = vector.shape_cast %87 : vector<8xf32> to vector<8x1xf32>
    %89 = tpu.reciprocal %88 {approx = true} : vector<8x1xf32> -> vector<8x1xf32>
    %90 = vector.broadcast %89 : vector<8x1xf32> to vector<8x8xf32>
    %91 = arith.mulf %86, %90 : vector<8x8xf32>
    %cst_43 = arith.constant dense<0.000000e+00> : vector<8x8xf32>
    %92 = tpu.matmul %91, %78, %cst_43 {dimension_numbers = #tpu.dot_dimension_numbers<[1], [0], [0], [1], [0, 0, 1, 1], [], []>} : vector<8x8xf32>, vector<8x8xf32>, vector<8x8xf32> -> vector<8x8xf32>
    %93 = vector.extract_strided_slice %17 {offsets = [16, 0], sizes = [8, 32], strides = [1, 1]} : vector<32x32xf32> to vector<8x32xf32>
    %cst_44 = arith.constant dense<0.000000e+00> : vector<8x32xf32>
    %94 = tpu.matmul %92, %93, %cst_44 {dimension_numbers = #tpu.dot_dimension_numbers<[1], [0], [0], [1], [0, 0, 1, 1], [], []>} : vector<8x8xf32>, vector<8x32xf32>, vector<8x32xf32> -> vector<8x32xf32>
    %95 = arith.addf %75, %94 : vector<8x32xf32>
    %96 = vector.extract_strided_slice %22 {offsets = [0, 24], sizes = [8, 8], strides = [1, 1]} : vector<8x32xf32> to vector<8x8xf32>
    %97 = vector.extract_strided_slice %27 {offsets = [0, 24], sizes = [8, 8], strides = [1, 1]} : vector<8x32xf32> to vector<8x8xf32>
    %98 = vector.extract_strided_slice %32 {offsets = [0, 24], sizes = [8, 8], strides = [1, 1]} : vector<8x32xf32> to vector<8x8xf32>
    %cst_45 = arith.constant dense<0.000000e+00> : vector<8x8xf32>
    %99 = tpu.matmul %96, %97, %cst_45 {dimension_numbers = #tpu.dot_dimension_numbers<[1], [1], [0], [0], [0, 0, 1, 0], [], []>} : vector<8x8xf32>, vector<8x8xf32>, vector<8x8xf32> -> vector<8x8xf32>
    %cst_46 = arith.constant 0.353553385 : f32
    %100 = vector.broadcast %cst_46 : f32 to vector<8x8xf32>
    %101 = arith.mulf %99, %100 : vector<8x8xf32>
    %cst_47 = arith.constant dense<0xFF800000> : vector<8xf32>
    %102 = vector.multi_reduction <maximumf>, %101, %cst_47 [1] : vector<8x8xf32> to vector<8xf32>
    %103 = vector.shape_cast %102 : vector<8xf32> to vector<8x1xf32>
    %104 = vector.broadcast %103 : vector<8x1xf32> to vector<8x8xf32>
    %105 = arith.subf %101, %104 : vector<8x8xf32>
    %106 = math.exp %105 : vector<8x8xf32>
    %cst_48 = arith.constant dense<0.000000e+00> : vector<8xf32>
    %107 = vector.multi_reduction <add>, %106, %cst_48 [1] : vector<8x8xf32> to vector<8xf32>
    %108 = vector.shape_cast %107 : vector<8xf32> to vector<8x1xf32>
    %109 = tpu.reciprocal %108 {approx = true} : vector<8x1xf32> -> vector<8x1xf32>
    %110 = vector.broadcast %109 : vector<8x1xf32> to vector<8x8xf32>
    %111 = arith.mulf %106, %110 : vector<8x8xf32>
    %cst_49 = arith.constant dense<0.000000e+00> : vector<8x8xf32>
    %112 = tpu.matmul %111, %98, %cst_49 {dimension_numbers = #tpu.dot_dimension_numbers<[1], [0], [0], [1], [0, 0, 1, 1], [], []>} : vector<8x8xf32>, vector<8x8xf32>, vector<8x8xf32> -> vector<8x8xf32>
    %113 = vector.extract_strided_slice %17 {offsets = [24, 0], sizes = [8, 32], strides = [1, 1]} : vector<32x32xf32> to vector<8x32xf32>
    %cst_50 = arith.constant dense<0.000000e+00> : vector<8x32xf32>
    %114 = tpu.matmul %112, %113, %cst_50 {dimension_numbers = #tpu.dot_dimension_numbers<[1], [0], [0], [1], [0, 0, 1, 1], [], []>} : vector<8x8xf32>, vector<8x32xf32>, vector<8x32xf32> -> vector<8x32xf32>
    %115 = arith.addf %95, %114 : vector<8x32xf32>
    %c4 = arith.constant 4 : index
    %c0_51 = arith.constant 0 : index
    %116 = vector.load %arg5[%c4, %c0_51] : memref<50x64xf32, #tpu.memory_space<vmem>>, vector<1x64xf32>
    %117 = vector.extract_strided_slice %116 {offsets = [0, 0], sizes = [1, 32], strides = [1, 1]} : vector<1x64xf32> to vector<1x32xf32>
    %c5 = arith.constant 5 : index
    %c0_52 = arith.constant 0 : index
    %118 = vector.load %arg5[%c5, %c0_52] : memref<50x64xf32, #tpu.memory_space<vmem>>, vector<1x64xf32>
    %119 = vector.extract_strided_slice %118 {offsets = [0, 0], sizes = [1, 32], strides = [1, 1]} : vector<1x64xf32> to vector<1x32xf32>
    %cst_53 = arith.constant dense<0.000000e+00> : vector<8xf32>
    %120 = vector.multi_reduction <add>, %115, %cst_53 [1] : vector<8x32xf32> to vector<8xf32>
    %121 = vector.shape_cast %120 : vector<8xf32> to vector<8x1xf32>
    %cst_54 = arith.constant 3.200000e+01 : f32
    %122 = vector.broadcast %cst_54 : f32 to vector<8x1xf32>
    %123 = arith.divf %121, %122 : vector<8x1xf32>
    %124 = vector.broadcast %123 : vector<8x1xf32> to vector<8x32xf32>
    %125 = arith.subf %115, %124 : vector<8x32xf32>
    %126 = arith.mulf %125, %125 : vector<8x32xf32>
    %cst_55 = arith.constant dense<0.000000e+00> : vector<8xf32>
    %127 = vector.multi_reduction <add>, %126, %cst_55 [1] : vector<8x32xf32> to vector<8xf32>
    %128 = vector.shape_cast %127 : vector<8xf32> to vector<8x1xf32>
    %cst_56 = arith.constant 3.200000e+01 : f32
    %129 = vector.broadcast %cst_56 : f32 to vector<8x1xf32>
    %130 = arith.divf %128, %129 : vector<8x1xf32>
    %cst_57 = arith.constant 9.99999974E-6 : f32
    %131 = vector.broadcast %cst_57 : f32 to vector<8x1xf32>
    %132 = arith.addf %130, %131 : vector<8x1xf32>
    %133 = math.rsqrt %132 : vector<8x1xf32>
    %134 = vector.broadcast %133 : vector<8x1xf32> to vector<8x32xf32>
    %135 = arith.mulf %125, %134 : vector<8x32xf32>
    %136 = vector.broadcast %117 : vector<1x32xf32> to vector<8x32xf32>
    %137 = arith.mulf %135, %136 : vector<8x32xf32>
    %138 = vector.broadcast %119 : vector<1x32xf32> to vector<8x32xf32>
    %139 = arith.addf %137, %138 : vector<8x32xf32>
    %140 = arith.addf %139, %1 : vector<8x32xf32>
    %141 = arith.addf %3, %5 : vector<64x32xf32>
    %c4_58 = arith.constant 4 : index
    %c0_59 = arith.constant 0 : index
    %c0_60 = arith.constant 0 : index
    %142 = vector.load %arg4[%c4_58, %c0_59, %c0_60] : memref<32x64x64xf32, #tpu.memory_space<vmem>>, vector<1x64x64xf32>
    %143 = vector.shape_cast %142 : vector<1x64x64xf32> to vector<64x64xf32>
    %144 = vector.extract_strided_slice %143 {offsets = [0, 0], sizes = [32, 16], strides = [1, 1]} : vector<64x64xf32> to vector<32x16xf32>
    %c5_61 = arith.constant 5 : index
    %c0_62 = arith.constant 0 : index
    %c0_63 = arith.constant 0 : index
    %145 = vector.load %arg4[%c5_61, %c0_62, %c0_63] : memref<32x64x64xf32, #tpu.memory_space<vmem>>, vector<1x64x64xf32>
    %146 = vector.shape_cast %145 : vector<1x64x64xf32> to vector<64x64xf32>
    %147 = vector.extract_strided_slice %146 {offsets = [0, 0], sizes = [32, 16], strides = [1, 1]} : vector<64x64xf32> to vector<32x16xf32>
    %c6 = arith.constant 6 : index
    %c0_64 = arith.constant 0 : index
    %c0_65 = arith.constant 0 : index
    %148 = vector.load %arg4[%c6, %c0_64, %c0_65] : memref<32x64x64xf32, #tpu.memory_space<vmem>>, vector<1x64x64xf32>
    %149 = vector.shape_cast %148 : vector<1x64x64xf32> to vector<64x64xf32>
    %150 = vector.extract_strided_slice %149 {offsets = [0, 0], sizes = [32, 16], strides = [1, 1]} : vector<64x64xf32> to vector<32x16xf32>
    %c7 = arith.constant 7 : index
    %c0_66 = arith.constant 0 : index
    %c0_67 = arith.constant 0 : index
    %151 = vector.load %arg4[%c7, %c0_66, %c0_67] : memref<32x64x64xf32, #tpu.memory_space<vmem>>, vector<1x64x64xf32>
    %152 = vector.shape_cast %151 : vector<1x64x64xf32> to vector<64x64xf32>
    %153 = vector.extract_strided_slice %152 {offsets = [0, 0], sizes = [16, 32], strides = [1, 1]} : vector<64x64xf32> to vector<16x32xf32>
    %cst_68 = arith.constant dense<0.000000e+00> : vector<8x16xf32>
    %154 = tpu.matmul %140, %144, %cst_68 {dimension_numbers = #tpu.dot_dimension_numbers<[1], [0], [0], [1], [0, 0, 1, 1], [], []>} : vector<8x32xf32>, vector<32x16xf32>, vector<8x16xf32> -> vector<8x16xf32>
    %c6_69 = arith.constant 6 : index
    %c0_70 = arith.constant 0 : index
    %155 = vector.load %arg5[%c6_69, %c0_70] : memref<50x64xf32, #tpu.memory_space<vmem>>, vector<1x64xf32>
    %156 = vector.extract_strided_slice %155 {offsets = [0, 0], sizes = [1, 16], strides = [1, 1]} : vector<1x64xf32> to vector<1x16xf32>
    %157 = vector.broadcast %156 : vector<1x16xf32> to vector<8x16xf32>
    %158 = arith.addf %154, %157 : vector<8x16xf32>
    %cst_71 = arith.constant dense<0.000000e+00> : vector<64x16xf32>
    %159 = tpu.matmul %141, %147, %cst_71 {dimension_numbers = #tpu.dot_dimension_numbers<[1], [0], [0], [1], [0, 0, 1, 1], [], []>} : vector<64x32xf32>, vector<32x16xf32>, vector<64x16xf32> -> vector<64x16xf32>
    %c7_72 = arith.constant 7 : index
    %c0_73 = arith.constant 0 : index
    %160 = vector.load %arg5[%c7_72, %c0_73] : memref<50x64xf32, #tpu.memory_space<vmem>>, vector<1x64xf32>
    %161 = vector.extract_strided_slice %160 {offsets = [0, 0], sizes = [1, 16], strides = [1, 1]} : vector<1x64xf32> to vector<1x16xf32>
    %162 = vector.broadcast %161 : vector<1x16xf32> to vector<64x16xf32>
    %163 = arith.addf %159, %162 : vector<64x16xf32>
    %cst_74 = arith.constant dense<0.000000e+00> : vector<64x16xf32>
    %164 = tpu.matmul %3, %150, %cst_74 {dimension_numbers = #tpu.dot_dimension_numbers<[1], [0], [0], [1], [0, 0, 1, 1], [], []>} : vector<64x32xf32>, vector<32x16xf32>, vector<64x16xf32> -> vector<64x16xf32>
    %c8 = arith.constant 8 : index
    %c0_75 = arith.constant 0 : index
    %165 = vector.load %arg5[%c8, %c0_75] : memref<50x64xf32, #tpu.memory_space<vmem>>, vector<1x64xf32>
    %166 = vector.extract_strided_slice %165 {offsets = [0, 0], sizes = [1, 16], strides = [1, 1]} : vector<1x64xf32> to vector<1x16xf32>
    %167 = vector.broadcast %166 : vector<1x16xf32> to vector<64x16xf32>
    %168 = arith.addf %164, %167 : vector<64x16xf32>
    %c9 = arith.constant 9 : index
    %c0_76 = arith.constant 0 : index
    %169 = vector.load %arg5[%c9, %c0_76] : memref<50x64xf32, #tpu.memory_space<vmem>>, vector<1x64xf32>
    %170 = vector.extract_strided_slice %169 {offsets = [0, 0], sizes = [1, 32], strides = [1, 1]} : vector<1x64xf32> to vector<1x32xf32>
    %171 = vector.extract_strided_slice %158 {offsets = [0, 0], sizes = [8, 4], strides = [1, 1]} : vector<8x16xf32> to vector<8x4xf32>
    %172 = vector.extract_strided_slice %163 {offsets = [0, 0], sizes = [64, 4], strides = [1, 1]} : vector<64x16xf32> to vector<64x4xf32>
    %173 = vector.extract_strided_slice %168 {offsets = [0, 0], sizes = [64, 4], strides = [1, 1]} : vector<64x16xf32> to vector<64x4xf32>
    %cst_77 = arith.constant dense<0.000000e+00> : vector<8x64xf32>
    %174 = tpu.matmul %171, %172, %cst_77 {dimension_numbers = #tpu.dot_dimension_numbers<[1], [1], [0], [0], [0, 0, 1, 0], [], []>} : vector<8x4xf32>, vector<64x4xf32>, vector<8x64xf32> -> vector<8x64xf32>
    %cst_78 = arith.constant 5.000000e-01 : f32
    %175 = vector.broadcast %cst_78 : f32 to vector<8x64xf32>
    %176 = arith.mulf %174, %175 : vector<8x64xf32>
    %cst_79 = arith.constant dense<0xFF800000> : vector<8xf32>
    %177 = vector.multi_reduction <maximumf>, %176, %cst_79 [1] : vector<8x64xf32> to vector<8xf32>
    %178 = vector.shape_cast %177 : vector<8xf32> to vector<8x1xf32>
    %179 = vector.broadcast %178 : vector<8x1xf32> to vector<8x64xf32>
    %180 = arith.subf %176, %179 : vector<8x64xf32>
    %181 = math.exp %180 : vector<8x64xf32>
    %cst_80 = arith.constant dense<0.000000e+00> : vector<8xf32>
    %182 = vector.multi_reduction <add>, %181, %cst_80 [1] : vector<8x64xf32> to vector<8xf32>
    %183 = vector.shape_cast %182 : vector<8xf32> to vector<8x1xf32>
    %184 = tpu.reciprocal %183 {approx = true} : vector<8x1xf32> -> vector<8x1xf32>
    %185 = vector.broadcast %184 : vector<8x1xf32> to vector<8x64xf32>
    %186 = arith.mulf %181, %185 : vector<8x64xf32>
    %cst_81 = arith.constant dense<0.000000e+00> : vector<8x4xf32>
    %187 = tpu.matmul %186, %173, %cst_81 {dimension_numbers = #tpu.dot_dimension_numbers<[1], [0], [0], [1], [0, 0, 1, 1], [], []>} : vector<8x64xf32>, vector<64x4xf32>, vector<8x4xf32> -> vector<8x4xf32>
    %188 = vector.extract_strided_slice %153 {offsets = [0, 0], sizes = [4, 32], strides = [1, 1]} : vector<16x32xf32> to vector<4x32xf32>
    %cst_82 = arith.constant dense<0.000000e+00> : vector<8x32xf32>
    %189 = tpu.matmul %187, %188, %cst_82 {dimension_numbers = #tpu.dot_dimension_numbers<[1], [0], [0], [1], [0, 0, 1, 1], [], []>} : vector<8x4xf32>, vector<4x32xf32>, vector<8x32xf32> -> vector<8x32xf32>
    %190 = vector.broadcast %170 : vector<1x32xf32> to vector<8x32xf32>
    %191 = arith.addf %190, %189 : vector<8x32xf32>
    %192 = vector.extract_strided_slice %158 {offsets = [0, 4], sizes = [8, 4], strides = [1, 1]} : vector<8x16xf32> to vector<8x4xf32>
    %193 = vector.extract_strided_slice %163 {offsets = [0, 4], sizes = [64, 4], strides = [1, 1]} : vector<64x16xf32> to vector<64x4xf32>
    %194 = vector.extract_strided_slice %168 {offsets = [0, 4], sizes = [64, 4], strides = [1, 1]} : vector<64x16xf32> to vector<64x4xf32>
    %cst_83 = arith.constant dense<0.000000e+00> : vector<8x64xf32>
    %195 = tpu.matmul %192, %193, %cst_83 {dimension_numbers = #tpu.dot_dimension_numbers<[1], [1], [0], [0], [0, 0, 1, 0], [], []>} : vector<8x4xf32>, vector<64x4xf32>, vector<8x64xf32> -> vector<8x64xf32>
    %cst_84 = arith.constant 5.000000e-01 : f32
    %196 = vector.broadcast %cst_84 : f32 to vector<8x64xf32>
    %197 = arith.mulf %195, %196 : vector<8x64xf32>
    %cst_85 = arith.constant dense<0xFF800000> : vector<8xf32>
    %198 = vector.multi_reduction <maximumf>, %197, %cst_85 [1] : vector<8x64xf32> to vector<8xf32>
    %199 = vector.shape_cast %198 : vector<8xf32> to vector<8x1xf32>
    %200 = vector.broadcast %199 : vector<8x1xf32> to vector<8x64xf32>
    %201 = arith.subf %197, %200 : vector<8x64xf32>
    %202 = math.exp %201 : vector<8x64xf32>
    %cst_86 = arith.constant dense<0.000000e+00> : vector<8xf32>
    %203 = vector.multi_reduction <add>, %202, %cst_86 [1] : vector<8x64xf32> to vector<8xf32>
    %204 = vector.shape_cast %203 : vector<8xf32> to vector<8x1xf32>
    %205 = tpu.reciprocal %204 {approx = true} : vector<8x1xf32> -> vector<8x1xf32>
    %206 = vector.broadcast %205 : vector<8x1xf32> to vector<8x64xf32>
    %207 = arith.mulf %202, %206 : vector<8x64xf32>
    %cst_87 = arith.constant dense<0.000000e+00> : vector<8x4xf32>
    %208 = tpu.matmul %207, %194, %cst_87 {dimension_numbers = #tpu.dot_dimension_numbers<[1], [0], [0], [1], [0, 0, 1, 1], [], []>} : vector<8x64xf32>, vector<64x4xf32>, vector<8x4xf32> -> vector<8x4xf32>
    %209 = vector.extract_strided_slice %153 {offsets = [4, 0], sizes = [4, 32], strides = [1, 1]} : vector<16x32xf32> to vector<4x32xf32>
    %cst_88 = arith.constant dense<0.000000e+00> : vector<8x32xf32>
    %210 = tpu.matmul %208, %209, %cst_88 {dimension_numbers = #tpu.dot_dimension_numbers<[1], [0], [0], [1], [0, 0, 1, 1], [], []>} : vector<8x4xf32>, vector<4x32xf32>, vector<8x32xf32> -> vector<8x32xf32>
    %211 = arith.addf %191, %210 : vector<8x32xf32>
    %212 = vector.extract_strided_slice %158 {offsets = [0, 8], sizes = [8, 4], strides = [1, 1]} : vector<8x16xf32> to vector<8x4xf32>
    %213 = vector.extract_strided_slice %163 {offsets = [0, 8], sizes = [64, 4], strides = [1, 1]} : vector<64x16xf32> to vector<64x4xf32>
    %214 = vector.extract_strided_slice %168 {offsets = [0, 8], sizes = [64, 4], strides = [1, 1]} : vector<64x16xf32> to vector<64x4xf32>
    %cst_89 = arith.constant dense<0.000000e+00> : vector<8x64xf32>
    %215 = tpu.matmul %212, %213, %cst_89 {dimension_numbers = #tpu.dot_dimension_numbers<[1], [1], [0], [0], [0, 0, 1, 0], [], []>} : vector<8x4xf32>, vector<64x4xf32>, vector<8x64xf32> -> vector<8x64xf32>
    %cst_90 = arith.constant 5.000000e-01 : f32
    %216 = vector.broadcast %cst_90 : f32 to vector<8x64xf32>
    %217 = arith.mulf %215, %216 : vector<8x64xf32>
    %cst_91 = arith.constant dense<0xFF800000> : vector<8xf32>
    %218 = vector.multi_reduction <maximumf>, %217, %cst_91 [1] : vector<8x64xf32> to vector<8xf32>
    %219 = vector.shape_cast %218 : vector<8xf32> to vector<8x1xf32>
    %220 = vector.broadcast %219 : vector<8x1xf32> to vector<8x64xf32>
    %221 = arith.subf %217, %220 : vector<8x64xf32>
    %222 = math.exp %221 : vector<8x64xf32>
    %cst_92 = arith.constant dense<0.000000e+00> : vector<8xf32>
    %223 = vector.multi_reduction <add>, %222, %cst_92 [1] : vector<8x64xf32> to vector<8xf32>
    %224 = vector.shape_cast %223 : vector<8xf32> to vector<8x1xf32>
    %225 = tpu.reciprocal %224 {approx = true} : vector<8x1xf32> -> vector<8x1xf32>
    %226 = vector.broadcast %225 : vector<8x1xf32> to vector<8x64xf32>
    %227 = arith.mulf %222, %226 : vector<8x64xf32>
    %cst_93 = arith.constant dense<0.000000e+00> : vector<8x4xf32>
    %228 = tpu.matmul %227, %214, %cst_93 {dimension_numbers = #tpu.dot_dimension_numbers<[1], [0], [0], [1], [0, 0, 1, 1], [], []>} : vector<8x64xf32>, vector<64x4xf32>, vector<8x4xf32> -> vector<8x4xf32>
    %229 = vector.extract_strided_slice %153 {offsets = [8, 0], sizes = [4, 32], strides = [1, 1]} : vector<16x32xf32> to vector<4x32xf32>
    %cst_94 = arith.constant dense<0.000000e+00> : vector<8x32xf32>
    %230 = tpu.matmul %228, %229, %cst_94 {dimension_numbers = #tpu.dot_dimension_numbers<[1], [0], [0], [1], [0, 0, 1, 1], [], []>} : vector<8x4xf32>, vector<4x32xf32>, vector<8x32xf32> -> vector<8x32xf32>
    %231 = arith.addf %211, %230 : vector<8x32xf32>
    %232 = vector.extract_strided_slice %158 {offsets = [0, 12], sizes = [8, 4], strides = [1, 1]} : vector<8x16xf32> to vector<8x4xf32>
    %233 = vector.extract_strided_slice %163 {offsets = [0, 12], sizes = [64, 4], strides = [1, 1]} : vector<64x16xf32> to vector<64x4xf32>
    %234 = vector.extract_strided_slice %168 {offsets = [0, 12], sizes = [64, 4], strides = [1, 1]} : vector<64x16xf32> to vector<64x4xf32>
    %cst_95 = arith.constant dense<0.000000e+00> : vector<8x64xf32>
    %235 = tpu.matmul %232, %233, %cst_95 {dimension_numbers = #tpu.dot_dimension_numbers<[1], [1], [0], [0], [0, 0, 1, 0], [], []>} : vector<8x4xf32>, vector<64x4xf32>, vector<8x64xf32> -> vector<8x64xf32>
    %cst_96 = arith.constant 5.000000e-01 : f32
    %236 = vector.broadcast %cst_96 : f32 to vector<8x64xf32>
    %237 = arith.mulf %235, %236 : vector<8x64xf32>
    %cst_97 = arith.constant dense<0xFF800000> : vector<8xf32>
    %238 = vector.multi_reduction <maximumf>, %237, %cst_97 [1] : vector<8x64xf32> to vector<8xf32>
    %239 = vector.shape_cast %238 : vector<8xf32> to vector<8x1xf32>
    %240 = vector.broadcast %239 : vector<8x1xf32> to vector<8x64xf32>
    %241 = arith.subf %237, %240 : vector<8x64xf32>
    %242 = math.exp %241 : vector<8x64xf32>
    %cst_98 = arith.constant dense<0.000000e+00> : vector<8xf32>
    %243 = vector.multi_reduction <add>, %242, %cst_98 [1] : vector<8x64xf32> to vector<8xf32>
    %244 = vector.shape_cast %243 : vector<8xf32> to vector<8x1xf32>
    %245 = tpu.reciprocal %244 {approx = true} : vector<8x1xf32> -> vector<8x1xf32>
    %246 = vector.broadcast %245 : vector<8x1xf32> to vector<8x64xf32>
    %247 = arith.mulf %242, %246 : vector<8x64xf32>
    %cst_99 = arith.constant dense<0.000000e+00> : vector<8x4xf32>
    %248 = tpu.matmul %247, %234, %cst_99 {dimension_numbers = #tpu.dot_dimension_numbers<[1], [0], [0], [1], [0, 0, 1, 1], [], []>} : vector<8x64xf32>, vector<64x4xf32>, vector<8x4xf32> -> vector<8x4xf32>
    %249 = vector.extract_strided_slice %153 {offsets = [12, 0], sizes = [4, 32], strides = [1, 1]} : vector<16x32xf32> to vector<4x32xf32>
    %cst_100 = arith.constant dense<0.000000e+00> : vector<8x32xf32>
    %250 = tpu.matmul %248, %249, %cst_100 {dimension_numbers = #tpu.dot_dimension_numbers<[1], [0], [0], [1], [0, 0, 1, 1], [], []>} : vector<8x4xf32>, vector<4x32xf32>, vector<8x32xf32> -> vector<8x32xf32>
    %251 = arith.addf %231, %250 : vector<8x32xf32>
    %252 = arith.addf %139, %251 : vector<8x32xf32>
    %c10 = arith.constant 10 : index
    %c0_101 = arith.constant 0 : index
    %253 = vector.load %arg5[%c10, %c0_101] : memref<50x64xf32, #tpu.memory_space<vmem>>, vector<1x64xf32>
    %254 = vector.extract_strided_slice %253 {offsets = [0, 0], sizes = [1, 32], strides = [1, 1]} : vector<1x64xf32> to vector<1x32xf32>
    %c11 = arith.constant 11 : index
    %c0_102 = arith.constant 0 : index
    %255 = vector.load %arg5[%c11, %c0_102] : memref<50x64xf32, #tpu.memory_space<vmem>>, vector<1x64xf32>
    %256 = vector.extract_strided_slice %255 {offsets = [0, 0], sizes = [1, 32], strides = [1, 1]} : vector<1x64xf32> to vector<1x32xf32>
    %cst_103 = arith.constant dense<0.000000e+00> : vector<8xf32>
    %257 = vector.multi_reduction <add>, %252, %cst_103 [1] : vector<8x32xf32> to vector<8xf32>
    %258 = vector.shape_cast %257 : vector<8xf32> to vector<8x1xf32>
    %cst_104 = arith.constant 3.200000e+01 : f32
    %259 = vector.broadcast %cst_104 : f32 to vector<8x1xf32>
    %260 = arith.divf %258, %259 : vector<8x1xf32>
    %261 = vector.broadcast %260 : vector<8x1xf32> to vector<8x32xf32>
    %262 = arith.subf %252, %261 : vector<8x32xf32>
    %263 = arith.mulf %262, %262 : vector<8x32xf32>
    %cst_105 = arith.constant dense<0.000000e+00> : vector<8xf32>
    %264 = vector.multi_reduction <add>, %263, %cst_105 [1] : vector<8x32xf32> to vector<8xf32>
    %265 = vector.shape_cast %264 : vector<8xf32> to vector<8x1xf32>
    %cst_106 = arith.constant 3.200000e+01 : f32
    %266 = vector.broadcast %cst_106 : f32 to vector<8x1xf32>
    %267 = arith.divf %265, %266 : vector<8x1xf32>
    %cst_107 = arith.constant 9.99999974E-6 : f32
    %268 = vector.broadcast %cst_107 : f32 to vector<8x1xf32>
    %269 = arith.addf %267, %268 : vector<8x1xf32>
    %270 = math.rsqrt %269 : vector<8x1xf32>
    %271 = vector.broadcast %270 : vector<8x1xf32> to vector<8x32xf32>
    %272 = arith.mulf %262, %271 : vector<8x32xf32>
    %273 = vector.broadcast %254 : vector<1x32xf32> to vector<8x32xf32>
    %274 = arith.mulf %272, %273 : vector<8x32xf32>
    %275 = vector.broadcast %256 : vector<1x32xf32> to vector<8x32xf32>
    %276 = arith.addf %274, %275 : vector<8x32xf32>
    %c8_108 = arith.constant 8 : index
    %c0_109 = arith.constant 0 : index
    %c0_110 = arith.constant 0 : index
    %277 = vector.load %arg4[%c8_108, %c0_109, %c0_110] : memref<32x64x64xf32, #tpu.memory_space<vmem>>, vector<1x64x64xf32>
    %278 = vector.shape_cast %277 : vector<1x64x64xf32> to vector<64x64xf32>
    %279 = vector.extract_strided_slice %278 {offsets = [0, 0], sizes = [32, 64], strides = [1, 1]} : vector<64x64xf32> to vector<32x64xf32>
    %cst_111 = arith.constant dense<0.000000e+00> : vector<8x64xf32>
    %280 = tpu.matmul %276, %279, %cst_111 {dimension_numbers = #tpu.dot_dimension_numbers<[1], [0], [0], [1], [0, 0, 1, 1], [], []>} : vector<8x32xf32>, vector<32x64xf32>, vector<8x64xf32> -> vector<8x64xf32>
    %c12 = arith.constant 12 : index
    %c0_112 = arith.constant 0 : index
    %281 = vector.load %arg5[%c12, %c0_112] : memref<50x64xf32, #tpu.memory_space<vmem>>, vector<1x64xf32>
    %282 = vector.broadcast %281 : vector<1x64xf32> to vector<8x64xf32>
    %283 = arith.addf %280, %282 : vector<8x64xf32>
    %cst_113 = arith.constant 0.000000e+00 : f32
    %284 = vector.broadcast %cst_113 : f32 to vector<8x64xf32>
    %285 = arith.maximumf %283, %284 : vector<8x64xf32>
    %c9_114 = arith.constant 9 : index
    %c0_115 = arith.constant 0 : index
    %c0_116 = arith.constant 0 : index
    %286 = vector.load %arg4[%c9_114, %c0_115, %c0_116] : memref<32x64x64xf32, #tpu.memory_space<vmem>>, vector<1x64x64xf32>
    %287 = vector.shape_cast %286 : vector<1x64x64xf32> to vector<64x64xf32>
    %288 = vector.extract_strided_slice %287 {offsets = [0, 0], sizes = [64, 32], strides = [1, 1]} : vector<64x64xf32> to vector<64x32xf32>
    %cst_117 = arith.constant dense<0.000000e+00> : vector<8x32xf32>
    %289 = tpu.matmul %285, %288, %cst_117 {dimension_numbers = #tpu.dot_dimension_numbers<[1], [0], [0], [1], [0, 0, 1, 1], [], []>} : vector<8x64xf32>, vector<64x32xf32>, vector<8x32xf32> -> vector<8x32xf32>
    %c13 = arith.constant 13 : index
    %c0_118 = arith.constant 0 : index
    %290 = vector.load %arg5[%c13, %c0_118] : memref<50x64xf32, #tpu.memory_space<vmem>>, vector<1x64xf32>
    %291 = vector.extract_strided_slice %290 {offsets = [0, 0], sizes = [1, 32], strides = [1, 1]} : vector<1x64xf32> to vector<1x32xf32>
    %292 = vector.broadcast %291 : vector<1x32xf32> to vector<8x32xf32>
    %293 = arith.addf %289, %292 : vector<8x32xf32>
    %294 = arith.addf %276, %293 : vector<8x32xf32>
    %c14 = arith.constant 14 : index
    %c0_119 = arith.constant 0 : index
    %295 = vector.load %arg5[%c14, %c0_119] : memref<50x64xf32, #tpu.memory_space<vmem>>, vector<1x64xf32>
    %296 = vector.extract_strided_slice %295 {offsets = [0, 0], sizes = [1, 32], strides = [1, 1]} : vector<1x64xf32> to vector<1x32xf32>
    %c15 = arith.constant 15 : index
    %c0_120 = arith.constant 0 : index
    %297 = vector.load %arg5[%c15, %c0_120] : memref<50x64xf32, #tpu.memory_space<vmem>>, vector<1x64xf32>
    %298 = vector.extract_strided_slice %297 {offsets = [0, 0], sizes = [1, 32], strides = [1, 1]} : vector<1x64xf32> to vector<1x32xf32>
    %cst_121 = arith.constant dense<0.000000e+00> : vector<8xf32>
    %299 = vector.multi_reduction <add>, %294, %cst_121 [1] : vector<8x32xf32> to vector<8xf32>
    %300 = vector.shape_cast %299 : vector<8xf32> to vector<8x1xf32>
    %cst_122 = arith.constant 3.200000e+01 : f32
    %301 = vector.broadcast %cst_122 : f32 to vector<8x1xf32>
    %302 = arith.divf %300, %301 : vector<8x1xf32>
    %303 = vector.broadcast %302 : vector<8x1xf32> to vector<8x32xf32>
    %304 = arith.subf %294, %303 : vector<8x32xf32>
    %305 = arith.mulf %304, %304 : vector<8x32xf32>
    %cst_123 = arith.constant dense<0.000000e+00> : vector<8xf32>
    %306 = vector.multi_reduction <add>, %305, %cst_123 [1] : vector<8x32xf32> to vector<8xf32>
    %307 = vector.shape_cast %306 : vector<8xf32> to vector<8x1xf32>
    %cst_124 = arith.constant 3.200000e+01 : f32
    %308 = vector.broadcast %cst_124 : f32 to vector<8x1xf32>
    %309 = arith.divf %307, %308 : vector<8x1xf32>
    %cst_125 = arith.constant 9.99999974E-6 : f32
    %310 = vector.broadcast %cst_125 : f32 to vector<8x1xf32>
    %311 = arith.addf %309, %310 : vector<8x1xf32>
    %312 = math.rsqrt %311 : vector<8x1xf32>
    %313 = vector.broadcast %312 : vector<8x1xf32> to vector<8x32xf32>
    %314 = arith.mulf %304, %313 : vector<8x32xf32>
    %315 = vector.broadcast %296 : vector<1x32xf32> to vector<8x32xf32>
    %316 = arith.mulf %314, %315 : vector<8x32xf32>
    %317 = vector.broadcast %298 : vector<1x32xf32> to vector<8x32xf32>
    %318 = arith.addf %316, %317 : vector<8x32xf32>
    %319 = arith.addf %318, %1 : vector<8x32xf32>
    %320 = arith.addf %3, %5 : vector<64x32xf32>
    %c10_126 = arith.constant 10 : index
    %c0_127 = arith.constant 0 : index
    %c0_128 = arith.constant 0 : index
    %321 = vector.load %arg4[%c10_126, %c0_127, %c0_128] : memref<32x64x64xf32, #tpu.memory_space<vmem>>, vector<1x64x64xf32>
    %322 = vector.shape_cast %321 : vector<1x64x64xf32> to vector<64x64xf32>
    %323 = vector.extract_strided_slice %322 {offsets = [0, 0], sizes = [32, 16], strides = [1, 1]} : vector<64x64xf32> to vector<32x16xf32>
    %c11_129 = arith.constant 11 : index
    %c0_130 = arith.constant 0 : index
    %c0_131 = arith.constant 0 : index
    %324 = vector.load %arg4[%c11_129, %c0_130, %c0_131] : memref<32x64x64xf32, #tpu.memory_space<vmem>>, vector<1x64x64xf32>
    %325 = vector.shape_cast %324 : vector<1x64x64xf32> to vector<64x64xf32>
    %326 = vector.extract_strided_slice %325 {offsets = [0, 0], sizes = [32, 16], strides = [1, 1]} : vector<64x64xf32> to vector<32x16xf32>
    %c12_132 = arith.constant 12 : index
    %c0_133 = arith.constant 0 : index
    %c0_134 = arith.constant 0 : index
    %327 = vector.load %arg4[%c12_132, %c0_133, %c0_134] : memref<32x64x64xf32, #tpu.memory_space<vmem>>, vector<1x64x64xf32>
    %328 = vector.shape_cast %327 : vector<1x64x64xf32> to vector<64x64xf32>
    %329 = vector.extract_strided_slice %328 {offsets = [0, 0], sizes = [32, 16], strides = [1, 1]} : vector<64x64xf32> to vector<32x16xf32>
    %c13_135 = arith.constant 13 : index
    %c0_136 = arith.constant 0 : index
    %c0_137 = arith.constant 0 : index
    %330 = vector.load %arg4[%c13_135, %c0_136, %c0_137] : memref<32x64x64xf32, #tpu.memory_space<vmem>>, vector<1x64x64xf32>
    %331 = vector.shape_cast %330 : vector<1x64x64xf32> to vector<64x64xf32>
    %332 = vector.extract_strided_slice %331 {offsets = [0, 0], sizes = [16, 32], strides = [1, 1]} : vector<64x64xf32> to vector<16x32xf32>
    %cst_138 = arith.constant dense<0.000000e+00> : vector<64x16xf32>
    %333 = tpu.matmul %320, %323, %cst_138 {dimension_numbers = #tpu.dot_dimension_numbers<[1], [0], [0], [1], [0, 0, 1, 1], [], []>} : vector<64x32xf32>, vector<32x16xf32>, vector<64x16xf32> -> vector<64x16xf32>
    %c16 = arith.constant 16 : index
    %c0_139 = arith.constant 0 : index
    %334 = vector.load %arg5[%c16, %c0_139] : memref<50x64xf32, #tpu.memory_space<vmem>>, vector<1x64xf32>
    %335 = vector.extract_strided_slice %334 {offsets = [0, 0], sizes = [1, 16], strides = [1, 1]} : vector<1x64xf32> to vector<1x16xf32>
    %336 = vector.broadcast %335 : vector<1x16xf32> to vector<64x16xf32>
    %337 = arith.addf %333, %336 : vector<64x16xf32>
    %cst_140 = arith.constant dense<0.000000e+00> : vector<8x16xf32>
    %338 = tpu.matmul %319, %326, %cst_140 {dimension_numbers = #tpu.dot_dimension_numbers<[1], [0], [0], [1], [0, 0, 1, 1], [], []>} : vector<8x32xf32>, vector<32x16xf32>, vector<8x16xf32> -> vector<8x16xf32>
    %c17 = arith.constant 17 : index
    %c0_141 = arith.constant 0 : index
    %339 = vector.load %arg5[%c17, %c0_141] : memref<50x64xf32, #tpu.memory_space<vmem>>, vector<1x64xf32>
    %340 = vector.extract_strided_slice %339 {offsets = [0, 0], sizes = [1, 16], strides = [1, 1]} : vector<1x64xf32> to vector<1x16xf32>
    %341 = vector.broadcast %340 : vector<1x16xf32> to vector<8x16xf32>
    %342 = arith.addf %338, %341 : vector<8x16xf32>
    %cst_142 = arith.constant dense<0.000000e+00> : vector<8x16xf32>
    %343 = tpu.matmul %318, %329, %cst_142 {dimension_numbers = #tpu.dot_dimension_numbers<[1], [0], [0], [1], [0, 0, 1, 1], [], []>} : vector<8x32xf32>, vector<32x16xf32>, vector<8x16xf32> -> vector<8x16xf32>
    %c18 = arith.constant 18 : index
    %c0_143 = arith.constant 0 : index
    %344 = vector.load %arg5[%c18, %c0_143] : memref<50x64xf32, #tpu.memory_space<vmem>>, vector<1x64xf32>
    %345 = vector.extract_strided_slice %344 {offsets = [0, 0], sizes = [1, 16], strides = [1, 1]} : vector<1x64xf32> to vector<1x16xf32>
    %346 = vector.broadcast %345 : vector<1x16xf32> to vector<8x16xf32>
    %347 = arith.addf %343, %346 : vector<8x16xf32>
    %c19 = arith.constant 19 : index
    %c0_144 = arith.constant 0 : index
    %348 = vector.load %arg5[%c19, %c0_144] : memref<50x64xf32, #tpu.memory_space<vmem>>, vector<1x64xf32>
    %349 = vector.extract_strided_slice %348 {offsets = [0, 0], sizes = [1, 32], strides = [1, 1]} : vector<1x64xf32> to vector<1x32xf32>
    %350 = vector.extract_strided_slice %337 {offsets = [0, 0], sizes = [64, 4], strides = [1, 1]} : vector<64x16xf32> to vector<64x4xf32>
    %351 = vector.extract_strided_slice %342 {offsets = [0, 0], sizes = [8, 4], strides = [1, 1]} : vector<8x16xf32> to vector<8x4xf32>
    %352 = vector.extract_strided_slice %347 {offsets = [0, 0], sizes = [8, 4], strides = [1, 1]} : vector<8x16xf32> to vector<8x4xf32>
    %cst_145 = arith.constant dense<0.000000e+00> : vector<64x8xf32>
    %353 = tpu.matmul %350, %351, %cst_145 {dimension_numbers = #tpu.dot_dimension_numbers<[1], [1], [0], [0], [0, 0, 1, 0], [], []>} : vector<64x4xf32>, vector<8x4xf32>, vector<64x8xf32> -> vector<64x8xf32>
    %cst_146 = arith.constant 5.000000e-01 : f32
    %354 = vector.broadcast %cst_146 : f32 to vector<64x8xf32>
    %355 = arith.mulf %353, %354 : vector<64x8xf32>
    %cst_147 = arith.constant dense<0xFF800000> : vector<64xf32>
    %356 = vector.multi_reduction <maximumf>, %355, %cst_147 [1] : vector<64x8xf32> to vector<64xf32>
    %357 = vector.shape_cast %356 : vector<64xf32> to vector<64x1xf32>
    %358 = vector.broadcast %357 : vector<64x1xf32> to vector<64x8xf32>
    %359 = arith.subf %355, %358 : vector<64x8xf32>
    %360 = math.exp %359 : vector<64x8xf32>
    %cst_148 = arith.constant dense<0.000000e+00> : vector<64xf32>
    %361 = vector.multi_reduction <add>, %360, %cst_148 [1] : vector<64x8xf32> to vector<64xf32>
    %362 = vector.shape_cast %361 : vector<64xf32> to vector<64x1xf32>
    %363 = tpu.reciprocal %362 {approx = true} : vector<64x1xf32> -> vector<64x1xf32>
    %364 = vector.broadcast %363 : vector<64x1xf32> to vector<64x8xf32>
    %365 = arith.mulf %360, %364 : vector<64x8xf32>
    %cst_149 = arith.constant dense<0.000000e+00> : vector<64x4xf32>
    %366 = tpu.matmul %365, %352, %cst_149 {dimension_numbers = #tpu.dot_dimension_numbers<[1], [0], [0], [1], [0, 0, 1, 1], [], []>} : vector<64x8xf32>, vector<8x4xf32>, vector<64x4xf32> -> vector<64x4xf32>
    %367 = vector.extract_strided_slice %332 {offsets = [0, 0], sizes = [4, 32], strides = [1, 1]} : vector<16x32xf32> to vector<4x32xf32>
    %cst_150 = arith.constant dense<0.000000e+00> : vector<64x32xf32>
    %368 = tpu.matmul %366, %367, %cst_150 {dimension_numbers = #tpu.dot_dimension_numbers<[1], [0], [0], [1], [0, 0, 1, 1], [], []>} : vector<64x4xf32>, vector<4x32xf32>, vector<64x32xf32> -> vector<64x32xf32>
    %369 = vector.broadcast %349 : vector<1x32xf32> to vector<64x32xf32>
    %370 = arith.addf %369, %368 : vector<64x32xf32>
    %371 = vector.extract_strided_slice %337 {offsets = [0, 4], sizes = [64, 4], strides = [1, 1]} : vector<64x16xf32> to vector<64x4xf32>
    %372 = vector.extract_strided_slice %342 {offsets = [0, 4], sizes = [8, 4], strides = [1, 1]} : vector<8x16xf32> to vector<8x4xf32>
    %373 = vector.extract_strided_slice %347 {offsets = [0, 4], sizes = [8, 4], strides = [1, 1]} : vector<8x16xf32> to vector<8x4xf32>
    %cst_151 = arith.constant dense<0.000000e+00> : vector<64x8xf32>
    %374 = tpu.matmul %371, %372, %cst_151 {dimension_numbers = #tpu.dot_dimension_numbers<[1], [1], [0], [0], [0, 0, 1, 0], [], []>} : vector<64x4xf32>, vector<8x4xf32>, vector<64x8xf32> -> vector<64x8xf32>
    %cst_152 = arith.constant 5.000000e-01 : f32
    %375 = vector.broadcast %cst_152 : f32 to vector<64x8xf32>
    %376 = arith.mulf %374, %375 : vector<64x8xf32>
    %cst_153 = arith.constant dense<0xFF800000> : vector<64xf32>
    %377 = vector.multi_reduction <maximumf>, %376, %cst_153 [1] : vector<64x8xf32> to vector<64xf32>
    %378 = vector.shape_cast %377 : vector<64xf32> to vector<64x1xf32>
    %379 = vector.broadcast %378 : vector<64x1xf32> to vector<64x8xf32>
    %380 = arith.subf %376, %379 : vector<64x8xf32>
    %381 = math.exp %380 : vector<64x8xf32>
    %cst_154 = arith.constant dense<0.000000e+00> : vector<64xf32>
    %382 = vector.multi_reduction <add>, %381, %cst_154 [1] : vector<64x8xf32> to vector<64xf32>
    %383 = vector.shape_cast %382 : vector<64xf32> to vector<64x1xf32>
    %384 = tpu.reciprocal %383 {approx = true} : vector<64x1xf32> -> vector<64x1xf32>
    %385 = vector.broadcast %384 : vector<64x1xf32> to vector<64x8xf32>
    %386 = arith.mulf %381, %385 : vector<64x8xf32>
    %cst_155 = arith.constant dense<0.000000e+00> : vector<64x4xf32>
    %387 = tpu.matmul %386, %373, %cst_155 {dimension_numbers = #tpu.dot_dimension_numbers<[1], [0], [0], [1], [0, 0, 1, 1], [], []>} : vector<64x8xf32>, vector<8x4xf32>, vector<64x4xf32> -> vector<64x4xf32>
    %388 = vector.extract_strided_slice %332 {offsets = [4, 0], sizes = [4, 32], strides = [1, 1]} : vector<16x32xf32> to vector<4x32xf32>
    %cst_156 = arith.constant dense<0.000000e+00> : vector<64x32xf32>
    %389 = tpu.matmul %387, %388, %cst_156 {dimension_numbers = #tpu.dot_dimension_numbers<[1], [0], [0], [1], [0, 0, 1, 1], [], []>} : vector<64x4xf32>, vector<4x32xf32>, vector<64x32xf32> -> vector<64x32xf32>
    %390 = arith.addf %370, %389 : vector<64x32xf32>
    %391 = vector.extract_strided_slice %337 {offsets = [0, 8], sizes = [64, 4], strides = [1, 1]} : vector<64x16xf32> to vector<64x4xf32>
    %392 = vector.extract_strided_slice %342 {offsets = [0, 8], sizes = [8, 4], strides = [1, 1]} : vector<8x16xf32> to vector<8x4xf32>
    %393 = vector.extract_strided_slice %347 {offsets = [0, 8], sizes = [8, 4], strides = [1, 1]} : vector<8x16xf32> to vector<8x4xf32>
    %cst_157 = arith.constant dense<0.000000e+00> : vector<64x8xf32>
    %394 = tpu.matmul %391, %392, %cst_157 {dimension_numbers = #tpu.dot_dimension_numbers<[1], [1], [0], [0], [0, 0, 1, 0], [], []>} : vector<64x4xf32>, vector<8x4xf32>, vector<64x8xf32> -> vector<64x8xf32>
    %cst_158 = arith.constant 5.000000e-01 : f32
    %395 = vector.broadcast %cst_158 : f32 to vector<64x8xf32>
    %396 = arith.mulf %394, %395 : vector<64x8xf32>
    %cst_159 = arith.constant dense<0xFF800000> : vector<64xf32>
    %397 = vector.multi_reduction <maximumf>, %396, %cst_159 [1] : vector<64x8xf32> to vector<64xf32>
    %398 = vector.shape_cast %397 : vector<64xf32> to vector<64x1xf32>
    %399 = vector.broadcast %398 : vector<64x1xf32> to vector<64x8xf32>
    %400 = arith.subf %396, %399 : vector<64x8xf32>
    %401 = math.exp %400 : vector<64x8xf32>
    %cst_160 = arith.constant dense<0.000000e+00> : vector<64xf32>
    %402 = vector.multi_reduction <add>, %401, %cst_160 [1] : vector<64x8xf32> to vector<64xf32>
    %403 = vector.shape_cast %402 : vector<64xf32> to vector<64x1xf32>
    %404 = tpu.reciprocal %403 {approx = true} : vector<64x1xf32> -> vector<64x1xf32>
    %405 = vector.broadcast %404 : vector<64x1xf32> to vector<64x8xf32>
    %406 = arith.mulf %401, %405 : vector<64x8xf32>
    %cst_161 = arith.constant dense<0.000000e+00> : vector<64x4xf32>
    %407 = tpu.matmul %406, %393, %cst_161 {dimension_numbers = #tpu.dot_dimension_numbers<[1], [0], [0], [1], [0, 0, 1, 1], [], []>} : vector<64x8xf32>, vector<8x4xf32>, vector<64x4xf32> -> vector<64x4xf32>
    %408 = vector.extract_strided_slice %332 {offsets = [8, 0], sizes = [4, 32], strides = [1, 1]} : vector<16x32xf32> to vector<4x32xf32>
    %cst_162 = arith.constant dense<0.000000e+00> : vector<64x32xf32>
    %409 = tpu.matmul %407, %408, %cst_162 {dimension_numbers = #tpu.dot_dimension_numbers<[1], [0], [0], [1], [0, 0, 1, 1], [], []>} : vector<64x4xf32>, vector<4x32xf32>, vector<64x32xf32> -> vector<64x32xf32>
    %410 = arith.addf %390, %409 : vector<64x32xf32>
    %411 = vector.extract_strided_slice %337 {offsets = [0, 12], sizes = [64, 4], strides = [1, 1]} : vector<64x16xf32> to vector<64x4xf32>
    %412 = vector.extract_strided_slice %342 {offsets = [0, 12], sizes = [8, 4], strides = [1, 1]} : vector<8x16xf32> to vector<8x4xf32>
    %413 = vector.extract_strided_slice %347 {offsets = [0, 12], sizes = [8, 4], strides = [1, 1]} : vector<8x16xf32> to vector<8x4xf32>
    %cst_163 = arith.constant dense<0.000000e+00> : vector<64x8xf32>
    %414 = tpu.matmul %411, %412, %cst_163 {dimension_numbers = #tpu.dot_dimension_numbers<[1], [1], [0], [0], [0, 0, 1, 0], [], []>} : vector<64x4xf32>, vector<8x4xf32>, vector<64x8xf32> -> vector<64x8xf32>
    %cst_164 = arith.constant 5.000000e-01 : f32
    %415 = vector.broadcast %cst_164 : f32 to vector<64x8xf32>
    %416 = arith.mulf %414, %415 : vector<64x8xf32>
    %cst_165 = arith.constant dense<0xFF800000> : vector<64xf32>
    %417 = vector.multi_reduction <maximumf>, %416, %cst_165 [1] : vector<64x8xf32> to vector<64xf32>
    %418 = vector.shape_cast %417 : vector<64xf32> to vector<64x1xf32>
    %419 = vector.broadcast %418 : vector<64x1xf32> to vector<64x8xf32>
    %420 = arith.subf %416, %419 : vector<64x8xf32>
    %421 = math.exp %420 : vector<64x8xf32>
    %cst_166 = arith.constant dense<0.000000e+00> : vector<64xf32>
    %422 = vector.multi_reduction <add>, %421, %cst_166 [1] : vector<64x8xf32> to vector<64xf32>
    %423 = vector.shape_cast %422 : vector<64xf32> to vector<64x1xf32>
    %424 = tpu.reciprocal %423 {approx = true} : vector<64x1xf32> -> vector<64x1xf32>
    %425 = vector.broadcast %424 : vector<64x1xf32> to vector<64x8xf32>
    %426 = arith.mulf %421, %425 : vector<64x8xf32>
    %cst_167 = arith.constant dense<0.000000e+00> : vector<64x4xf32>
    %427 = tpu.matmul %426, %413, %cst_167 {dimension_numbers = #tpu.dot_dimension_numbers<[1], [0], [0], [1], [0, 0, 1, 1], [], []>} : vector<64x8xf32>, vector<8x4xf32>, vector<64x4xf32> -> vector<64x4xf32>
    %428 = vector.extract_strided_slice %332 {offsets = [12, 0], sizes = [4, 32], strides = [1, 1]} : vector<16x32xf32> to vector<4x32xf32>
    %cst_168 = arith.constant dense<0.000000e+00> : vector<64x32xf32>
    %429 = tpu.matmul %427, %428, %cst_168 {dimension_numbers = #tpu.dot_dimension_numbers<[1], [0], [0], [1], [0, 0, 1, 1], [], []>} : vector<64x4xf32>, vector<4x32xf32>, vector<64x32xf32> -> vector<64x32xf32>
    %430 = arith.addf %410, %429 : vector<64x32xf32>
    %431 = arith.addf %3, %430 : vector<64x32xf32>
    %c20 = arith.constant 20 : index
    %c0_169 = arith.constant 0 : index
    %432 = vector.load %arg5[%c20, %c0_169] : memref<50x64xf32, #tpu.memory_space<vmem>>, vector<1x64xf32>
    %433 = vector.extract_strided_slice %432 {offsets = [0, 0], sizes = [1, 32], strides = [1, 1]} : vector<1x64xf32> to vector<1x32xf32>
    %c21 = arith.constant 21 : index
    %c0_170 = arith.constant 0 : index
    %434 = vector.load %arg5[%c21, %c0_170] : memref<50x64xf32, #tpu.memory_space<vmem>>, vector<1x64xf32>
    %435 = vector.extract_strided_slice %434 {offsets = [0, 0], sizes = [1, 32], strides = [1, 1]} : vector<1x64xf32> to vector<1x32xf32>
    %cst_171 = arith.constant dense<0.000000e+00> : vector<64xf32>
    %436 = vector.multi_reduction <add>, %431, %cst_171 [1] : vector<64x32xf32> to vector<64xf32>
    %437 = vector.shape_cast %436 : vector<64xf32> to vector<64x1xf32>
    %cst_172 = arith.constant 3.200000e+01 : f32
    %438 = vector.broadcast %cst_172 : f32 to vector<64x1xf32>
    %439 = arith.divf %437, %438 : vector<64x1xf32>
    %440 = vector.broadcast %439 : vector<64x1xf32> to vector<64x32xf32>
    %441 = arith.subf %431, %440 : vector<64x32xf32>
    %442 = arith.mulf %441, %441 : vector<64x32xf32>
    %cst_173 = arith.constant dense<0.000000e+00> : vector<64xf32>
    %443 = vector.multi_reduction <add>, %442, %cst_173 [1] : vector<64x32xf32> to vector<64xf32>
    %444 = vector.shape_cast %443 : vector<64xf32> to vector<64x1xf32>
    %cst_174 = arith.constant 3.200000e+01 : f32
    %445 = vector.broadcast %cst_174 : f32 to vector<64x1xf32>
    %446 = arith.divf %444, %445 : vector<64x1xf32>
    %cst_175 = arith.constant 9.99999974E-6 : f32
    %447 = vector.broadcast %cst_175 : f32 to vector<64x1xf32>
    %448 = arith.addf %446, %447 : vector<64x1xf32>
    %449 = math.rsqrt %448 : vector<64x1xf32>
    %450 = vector.broadcast %449 : vector<64x1xf32> to vector<64x32xf32>
    %451 = arith.mulf %441, %450 : vector<64x32xf32>
    %452 = vector.broadcast %433 : vector<1x32xf32> to vector<64x32xf32>
    %453 = arith.mulf %451, %452 : vector<64x32xf32>
    %454 = vector.broadcast %435 : vector<1x32xf32> to vector<64x32xf32>
    %455 = arith.addf %453, %454 : vector<64x32xf32>
    %c0_176 = arith.constant 0 : index
    %c0_177 = arith.constant 0 : index
    %c0_178 = arith.constant 0 : index
    %c0_179 = arith.constant 0 : index
    %456 = vector.load %arg7[%c0_176, %c0_177, %c0_178, %c0_179] : memref<2x1x64x32xf32, #tpu.memory_space<vmem>>, vector<1x1x64x32xf32>
    %457 = vector.shape_cast %456 : vector<1x1x64x32xf32> to vector<64x32xf32>
    %458 = vector.shape_cast %455 : vector<64x32xf32> to vector<1x1x64x32xf32>
    tpu.vector_store %arg7[%c0_176, %c0_177, %c0_178, %c0_179], %458 {strides = array<i32>} : memref<2x1x64x32xf32, #tpu.memory_space<vmem>>, vector<1x1x64x32xf32>,
    %459 = arith.addf %318, %1 : vector<8x32xf32>
    %460 = arith.addf %455, %5 : vector<64x32xf32>
    %c28 = arith.constant 28 : index
    %c0_180 = arith.constant 0 : index
    %c0_181 = arith.constant 0 : index
    %461 = vector.load %arg4[%c28, %c0_180, %c0_181] : memref<32x64x64xf32, #tpu.memory_space<vmem>>, vector<1x64x64xf32>
    %462 = vector.shape_cast %461 : vector<1x64x64xf32> to vector<64x64xf32>
    %463 = vector.extract_strided_slice %462 {offsets = [0, 0], sizes = [32, 16], strides = [1, 1]} : vector<64x64xf32> to vector<32x16xf32>
    %c29 = arith.constant 29 : index
    %c0_182 = arith.constant 0 : index
    %c0_183 = arith.constant 0 : index
    %464 = vector.load %arg4[%c29, %c0_182, %c0_183] : memref<32x64x64xf32, #tpu.memory_space<vmem>>, vector<1x64x64xf32>
    %465 = vector.shape_cast %464 : vector<1x64x64xf32> to vector<64x64xf32>
    %466 = vector.extract_strided_slice %465 {offsets = [0, 0], sizes = [32, 16], strides = [1, 1]} : vector<64x64xf32> to vector<32x16xf32>
    %c30 = arith.constant 30 : index
    %c0_184 = arith.constant 0 : index
    %c0_185 = arith.constant 0 : index
    %467 = vector.load %arg4[%c30, %c0_184, %c0_185] : memref<32x64x64xf32, #tpu.memory_space<vmem>>, vector<1x64x64xf32>
    %468 = vector.shape_cast %467 : vector<1x64x64xf32> to vector<64x64xf32>
    %469 = vector.extract_strided_slice %468 {offsets = [0, 0], sizes = [32, 16], strides = [1, 1]} : vector<64x64xf32> to vector<32x16xf32>
    %c31 = arith.constant 31 : index
    %c0_186 = arith.constant 0 : index
    %c0_187 = arith.constant 0 : index
    %470 = vector.load %arg4[%c31, %c0_186, %c0_187] : memref<32x64x64xf32, #tpu.memory_space<vmem>>, vector<1x64x64xf32>
    %471 = vector.shape_cast %470 : vector<1x64x64xf32> to vector<64x64xf32>
    %472 = vector.extract_strided_slice %471 {offsets = [0, 0], sizes = [16, 32], strides = [1, 1]} : vector<64x64xf32> to vector<16x32xf32>
    %cst_188 = arith.constant dense<0.000000e+00> : vector<8x16xf32>
    %473 = tpu.matmul %459, %463, %cst_188 {dimension_numbers = #tpu.dot_dimension_numbers<[1], [0], [0], [1], [0, 0, 1, 1], [], []>} : vector<8x32xf32>, vector<32x16xf32>, vector<8x16xf32> -> vector<8x16xf32>
    %c44 = arith.constant 44 : index
    %c0_189 = arith.constant 0 : index
    %474 = vector.load %arg5[%c44, %c0_189] : memref<50x64xf32, #tpu.memory_space<vmem>>, vector<1x64xf32>
    %475 = vector.extract_strided_slice %474 {offsets = [0, 0], sizes = [1, 16], strides = [1, 1]} : vector<1x64xf32> to vector<1x16xf32>
    %476 = vector.broadcast %475 : vector<1x16xf32> to vector<8x16xf32>
    %477 = arith.addf %473, %476 : vector<8x16xf32>
    %cst_190 = arith.constant dense<0.000000e+00> : vector<64x16xf32>
    %478 = tpu.matmul %460, %466, %cst_190 {dimension_numbers = #tpu.dot_dimension_numbers<[1], [0], [0], [1], [0, 0, 1, 1], [], []>} : vector<64x32xf32>, vector<32x16xf32>, vector<64x16xf32> -> vector<64x16xf32>
    %c45 = arith.constant 45 : index
    %c0_191 = arith.constant 0 : index
    %479 = vector.load %arg5[%c45, %c0_191] : memref<50x64xf32, #tpu.memory_space<vmem>>, vector<1x64xf32>
    %480 = vector.extract_strided_slice %479 {offsets = [0, 0], sizes = [1, 16], strides = [1, 1]} : vector<1x64xf32> to vector<1x16xf32>
    %481 = vector.broadcast %480 : vector<1x16xf32> to vector<64x16xf32>
    %482 = arith.addf %478, %481 : vector<64x16xf32>
    %cst_192 = arith.constant dense<0.000000e+00> : vector<64x16xf32>
    %483 = tpu.matmul %455, %469, %cst_192 {dimension_numbers = #tpu.dot_dimension_numbers<[1], [0], [0], [1], [0, 0, 1, 1], [], []>} : vector<64x32xf32>, vector<32x16xf32>, vector<64x16xf32> -> vector<64x16xf32>
    %c46 = arith.constant 46 : index
    %c0_193 = arith.constant 0 : index
    %484 = vector.load %arg5[%c46, %c0_193] : memref<50x64xf32, #tpu.memory_space<vmem>>, vector<1x64xf32>
    %485 = vector.extract_strided_slice %484 {offsets = [0, 0], sizes = [1, 16], strides = [1, 1]} : vector<1x64xf32> to vector<1x16xf32>
    %486 = vector.broadcast %485 : vector<1x16xf32> to vector<64x16xf32>
    %487 = arith.addf %483, %486 : vector<64x16xf32>
    %c47 = arith.constant 47 : index
    %c0_194 = arith.constant 0 : index
    %488 = vector.load %arg5[%c47, %c0_194] : memref<50x64xf32, #tpu.memory_space<vmem>>, vector<1x64xf32>
    %489 = vector.extract_strided_slice %488 {offsets = [0, 0], sizes = [1, 32], strides = [1, 1]} : vector<1x64xf32> to vector<1x32xf32>
    %490 = vector.extract_strided_slice %477 {offsets = [0, 0], sizes = [8, 4], strides = [1, 1]} : vector<8x16xf32> to vector<8x4xf32>
    %491 = vector.extract_strided_slice %482 {offsets = [0, 0], sizes = [64, 4], strides = [1, 1]} : vector<64x16xf32> to vector<64x4xf32>
    %492 = vector.extract_strided_slice %487 {offsets = [0, 0], sizes = [64, 4], strides = [1, 1]} : vector<64x16xf32> to vector<64x4xf32>
    %cst_195 = arith.constant dense<0.000000e+00> : vector<8x64xf32>
    %493 = tpu.matmul %490, %491, %cst_195 {dimension_numbers = #tpu.dot_dimension_numbers<[1], [1], [0], [0], [0, 0, 1, 0], [], []>} : vector<8x4xf32>, vector<64x4xf32>, vector<8x64xf32> -> vector<8x64xf32>
    %cst_196 = arith.constant 5.000000e-01 : f32
    %494 = vector.broadcast %cst_196 : f32 to vector<8x64xf32>
    %495 = arith.mulf %493, %494 : vector<8x64xf32>
    %cst_197 = arith.constant dense<0xFF800000> : vector<8xf32>
    %496 = vector.multi_reduction <maximumf>, %495, %cst_197 [1] : vector<8x64xf32> to vector<8xf32>
    %497 = vector.shape_cast %496 : vector<8xf32> to vector<8x1xf32>
    %498 = vector.broadcast %497 : vector<8x1xf32> to vector<8x64xf32>
    %499 = arith.subf %495, %498 : vector<8x64xf32>
    %500 = math.exp %499 : vector<8x64xf32>
    %cst_198 = arith.constant dense<0.000000e+00> : vector<8xf32>
    %501 = vector.multi_reduction <add>, %500, %cst_198 [1] : vector<8x64xf32> to vector<8xf32>
    %502 = vector.shape_cast %501 : vector<8xf32> to vector<8x1xf32>
    %503 = tpu.reciprocal %502 {approx = true} : vector<8x1xf32> -> vector<8x1xf32>
    %504 = vector.broadcast %503 : vector<8x1xf32> to vector<8x64xf32>
    %505 = arith.mulf %500, %504 : vector<8x64xf32>
    %cst_199 = arith.constant dense<0.000000e+00> : vector<8x4xf32>
    %506 = tpu.matmul %505, %492, %cst_199 {dimension_numbers = #tpu.dot_dimension_numbers<[1], [0], [0], [1], [0, 0, 1, 1], [], []>} : vector<8x64xf32>, vector<64x4xf32>, vector<8x4xf32> -> vector<8x4xf32>
    %507 = vector.extract_strided_slice %472 {offsets = [0, 0], sizes = [4, 32], strides = [1, 1]} : vector<16x32xf32> to vector<4x32xf32>
    %cst_200 = arith.constant dense<0.000000e+00> : vector<8x32xf32>
    %508 = tpu.matmul %506, %507, %cst_200 {dimension_numbers = #tpu.dot_dimension_numbers<[1], [0], [0], [1], [0, 0, 1, 1], [], []>} : vector<8x4xf32>, vector<4x32xf32>, vector<8x32xf32> -> vector<8x32xf32>
    %509 = vector.broadcast %489 : vector<1x32xf32> to vector<8x32xf32>
    %510 = arith.addf %509, %508 : vector<8x32xf32>
    %511 = vector.extract_strided_slice %477 {offsets = [0, 4], sizes = [8, 4], strides = [1, 1]} : vector<8x16xf32> to vector<8x4xf32>
    %512 = vector.extract_strided_slice %482 {offsets = [0, 4], sizes = [64, 4], strides = [1, 1]} : vector<64x16xf32> to vector<64x4xf32>
    %513 = vector.extract_strided_slice %487 {offsets = [0, 4], sizes = [64, 4], strides = [1, 1]} : vector<64x16xf32> to vector<64x4xf32>
    %cst_201 = arith.constant dense<0.000000e+00> : vector<8x64xf32>
    %514 = tpu.matmul %511, %512, %cst_201 {dimension_numbers = #tpu.dot_dimension_numbers<[1], [1], [0], [0], [0, 0, 1, 0], [], []>} : vector<8x4xf32>, vector<64x4xf32>, vector<8x64xf32> -> vector<8x64xf32>
    %cst_202 = arith.constant 5.000000e-01 : f32
    %515 = vector.broadcast %cst_202 : f32 to vector<8x64xf32>
    %516 = arith.mulf %514, %515 : vector<8x64xf32>
    %cst_203 = arith.constant dense<0xFF800000> : vector<8xf32>
    %517 = vector.multi_reduction <maximumf>, %516, %cst_203 [1] : vector<8x64xf32> to vector<8xf32>
    %518 = vector.shape_cast %517 : vector<8xf32> to vector<8x1xf32>
    %519 = vector.broadcast %518 : vector<8x1xf32> to vector<8x64xf32>
    %520 = arith.subf %516, %519 : vector<8x64xf32>
    %521 = math.exp %520 : vector<8x64xf32>
    %cst_204 = arith.constant dense<0.000000e+00> : vector<8xf32>
    %522 = vector.multi_reduction <add>, %521, %cst_204 [1] : vector<8x64xf32> to vector<8xf32>
    %523 = vector.shape_cast %522 : vector<8xf32> to vector<8x1xf32>
    %524 = tpu.reciprocal %523 {approx = true} : vector<8x1xf32> -> vector<8x1xf32>
    %525 = vector.broadcast %524 : vector<8x1xf32> to vector<8x64xf32>
    %526 = arith.mulf %521, %525 : vector<8x64xf32>
    %cst_205 = arith.constant dense<0.000000e+00> : vector<8x4xf32>
    %527 = tpu.matmul %526, %513, %cst_205 {dimension_numbers = #tpu.dot_dimension_numbers<[1], [0], [0], [1], [0, 0, 1, 1], [], []>} : vector<8x64xf32>, vector<64x4xf32>, vector<8x4xf32> -> vector<8x4xf32>
    %528 = vector.extract_strided_slice %472 {offsets = [4, 0], sizes = [4, 32], strides = [1, 1]} : vector<16x32xf32> to vector<4x32xf32>
    %cst_206 = arith.constant dense<0.000000e+00> : vector<8x32xf32>
    %529 = tpu.matmul %527, %528, %cst_206 {dimension_numbers = #tpu.dot_dimension_numbers<[1], [0], [0], [1], [0, 0, 1, 1], [], []>} : vector<8x4xf32>, vector<4x32xf32>, vector<8x32xf32> -> vector<8x32xf32>
    %530 = arith.addf %510, %529 : vector<8x32xf32>
    %531 = vector.extract_strided_slice %477 {offsets = [0, 8], sizes = [8, 4], strides = [1, 1]} : vector<8x16xf32> to vector<8x4xf32>
    %532 = vector.extract_strided_slice %482 {offsets = [0, 8], sizes = [64, 4], strides = [1, 1]} : vector<64x16xf32> to vector<64x4xf32>
    %533 = vector.extract_strided_slice %487 {offsets = [0, 8], sizes = [64, 4], strides = [1, 1]} : vector<64x16xf32> to vector<64x4xf32>
    %cst_207 = arith.constant dense<0.000000e+00> : vector<8x64xf32>
    %534 = tpu.matmul %531, %532, %cst_207 {dimension_numbers = #tpu.dot_dimension_numbers<[1], [1], [0], [0], [0, 0, 1, 0], [], []>} : vector<8x4xf32>, vector<64x4xf32>, vector<8x64xf32> -> vector<8x64xf32>
    %cst_208 = arith.constant 5.000000e-01 : f32
    %535 = vector.broadcast %cst_208 : f32 to vector<8x64xf32>
    %536 = arith.mulf %534, %535 : vector<8x64xf32>
    %cst_209 = arith.constant dense<0xFF800000> : vector<8xf32>
    %537 = vector.multi_reduction <maximumf>, %536, %cst_209 [1] : vector<8x64xf32> to vector<8xf32>
    %538 = vector.shape_cast %537 : vector<8xf32> to vector<8x1xf32>
    %539 = vector.broadcast %538 : vector<8x1xf32> to vector<8x64xf32>
    %540 = arith.subf %536, %539 : vector<8x64xf32>
    %541 = math.exp %540 : vector<8x64xf32>
    %cst_210 = arith.constant dense<0.000000e+00> : vector<8xf32>
    %542 = vector.multi_reduction <add>, %541, %cst_210 [1] : vector<8x64xf32> to vector<8xf32>
    %543 = vector.shape_cast %542 : vector<8xf32> to vector<8x1xf32>
    %544 = tpu.reciprocal %543 {approx = true} : vector<8x1xf32> -> vector<8x1xf32>
    %545 = vector.broadcast %544 : vector<8x1xf32> to vector<8x64xf32>
    %546 = arith.mulf %541, %545 : vector<8x64xf32>
    %cst_211 = arith.constant dense<0.000000e+00> : vector<8x4xf32>
    %547 = tpu.matmul %546, %533, %cst_211 {dimension_numbers = #tpu.dot_dimension_numbers<[1], [0], [0], [1], [0, 0, 1, 1], [], []>} : vector<8x64xf32>, vector<64x4xf32>, vector<8x4xf32> -> vector<8x4xf32>
    %548 = vector.extract_strided_slice %472 {offsets = [8, 0], sizes = [4, 32], strides = [1, 1]} : vector<16x32xf32> to vector<4x32xf32>
    %cst_212 = arith.constant dense<0.000000e+00> : vector<8x32xf32>
    %549 = tpu.matmul %547, %548, %cst_212 {dimension_numbers = #tpu.dot_dimension_numbers<[1], [0], [0], [1], [0, 0, 1, 1], [], []>} : vector<8x4xf32>, vector<4x32xf32>, vector<8x32xf32> -> vector<8x32xf32>
    %550 = arith.addf %530, %549 : vector<8x32xf32>
    %551 = vector.extract_strided_slice %477 {offsets = [0, 12], sizes = [8, 4], strides = [1, 1]} : vector<8x16xf32> to vector<8x4xf32>
    %552 = vector.extract_strided_slice %482 {offsets = [0, 12], sizes = [64, 4], strides = [1, 1]} : vector<64x16xf32> to vector<64x4xf32>
    %553 = vector.extract_strided_slice %487 {offsets = [0, 12], sizes = [64, 4], strides = [1, 1]} : vector<64x16xf32> to vector<64x4xf32>
    %cst_213 = arith.constant dense<0.000000e+00> : vector<8x64xf32>
    %554 = tpu.matmul %551, %552, %cst_213 {dimension_numbers = #tpu.dot_dimension_numbers<[1], [1], [0], [0], [0, 0, 1, 0], [], []>} : vector<8x4xf32>, vector<64x4xf32>, vector<8x64xf32> -> vector<8x64xf32>
    %cst_214 = arith.constant 5.000000e-01 : f32
    %555 = vector.broadcast %cst_214 : f32 to vector<8x64xf32>
    %556 = arith.mulf %554, %555 : vector<8x64xf32>
    %cst_215 = arith.constant dense<0xFF800000> : vector<8xf32>
    %557 = vector.multi_reduction <maximumf>, %556, %cst_215 [1] : vector<8x64xf32> to vector<8xf32>
    %558 = vector.shape_cast %557 : vector<8xf32> to vector<8x1xf32>
    %559 = vector.broadcast %558 : vector<8x1xf32> to vector<8x64xf32>
    %560 = arith.subf %556, %559 : vector<8x64xf32>
    %561 = math.exp %560 : vector<8x64xf32>
    %cst_216 = arith.constant dense<0.000000e+00> : vector<8xf32>
    %562 = vector.multi_reduction <add>, %561, %cst_216 [1] : vector<8x64xf32> to vector<8xf32>
    %563 = vector.shape_cast %562 : vector<8xf32> to vector<8x1xf32>
    %564 = tpu.reciprocal %563 {approx = true} : vector<8x1xf32> -> vector<8x1xf32>
    %565 = vector.broadcast %564 : vector<8x1xf32> to vector<8x64xf32>
    %566 = arith.mulf %561, %565 : vector<8x64xf32>
    %cst_217 = arith.constant dense<0.000000e+00> : vector<8x4xf32>
    %567 = tpu.matmul %566, %553, %cst_217 {dimension_numbers = #tpu.dot_dimension_numbers<[1], [0], [0], [1], [0, 0, 1, 1], [], []>} : vector<8x64xf32>, vector<64x4xf32>, vector<8x4xf32> -> vector<8x4xf32>
    %568 = vector.extract_strided_slice %472 {offsets = [12, 0], sizes = [4, 32], strides = [1, 1]} : vector<16x32xf32> to vector<4x32xf32>
    %cst_218 = arith.constant dense<0.000000e+00> : vector<8x32xf32>
    %569 = tpu.matmul %567, %568, %cst_218 {dimension_numbers = #tpu.dot_dimension_numbers<[1], [0], [0], [1], [0, 0, 1, 1], [], []>} : vector<8x4xf32>, vector<4x32xf32>, vector<8x32xf32> -> vector<8x32xf32>
    %570 = arith.addf %550, %569 : vector<8x32xf32>
    %571 = arith.addf %318, %570 : vector<8x32xf32>
    %c48 = arith.constant 48 : index
    %c0_219 = arith.constant 0 : index
    %572 = vector.load %arg5[%c48, %c0_219] : memref<50x64xf32, #tpu.memory_space<vmem>>, vector<1x64xf32>
    %573 = vector.extract_strided_slice %572 {offsets = [0, 0], sizes = [1, 32], strides = [1, 1]} : vector<1x64xf32> to vector<1x32xf32>
    %c49 = arith.constant 49 : index
    %c0_220 = arith.constant 0 : index
    %574 = vector.load %arg5[%c49, %c0_220] : memref<50x64xf32, #tpu.memory_space<vmem>>, vector<1x64xf32>
    %575 = vector.extract_strided_slice %574 {offsets = [0, 0], sizes = [1, 32], strides = [1, 1]} : vector<1x64xf32> to vector<1x32xf32>
    %cst_221 = arith.constant dense<0.000000e+00> : vector<8xf32>
    %576 = vector.multi_reduction <add>, %571, %cst_221 [1] : vector<8x32xf32> to vector<8xf32>
    %577 = vector.shape_cast %576 : vector<8xf32> to vector<8x1xf32>
    %cst_222 = arith.constant 3.200000e+01 : f32
    %578 = vector.broadcast %cst_222 : f32 to vector<8x1xf32>
    %579 = arith.divf %577, %578 : vector<8x1xf32>
    %580 = vector.broadcast %579 : vector<8x1xf32> to vector<8x32xf32>
    %581 = arith.subf %571, %580 : vector<8x32xf32>
    %582 = arith.mulf %581, %581 : vector<8x32xf32>
    %cst_223 = arith.constant dense<0.000000e+00> : vector<8xf32>
    %583 = vector.multi_reduction <add>, %582, %cst_223 [1] : vector<8x32xf32> to vector<8xf32>
    %584 = vector.shape_cast %583 : vector<8xf32> to vector<8x1xf32>
    %cst_224 = arith.constant 3.200000e+01 : f32
    %585 = vector.broadcast %cst_224 : f32 to vector<8x1xf32>
    %586 = arith.divf %584, %585 : vector<8x1xf32>
    %cst_225 = arith.constant 9.99999974E-6 : f32
    %587 = vector.broadcast %cst_225 : f32 to vector<8x1xf32>
    %588 = arith.addf %586, %587 : vector<8x1xf32>
    %589 = math.rsqrt %588 : vector<8x1xf32>
    %590 = vector.broadcast %589 : vector<8x1xf32> to vector<8x32xf32>
    %591 = arith.mulf %581, %590 : vector<8x32xf32>
    %592 = vector.broadcast %573 : vector<1x32xf32> to vector<8x32xf32>
    %593 = arith.mulf %591, %592 : vector<8x32xf32>
    %594 = vector.broadcast %575 : vector<1x32xf32> to vector<8x32xf32>
    %595 = arith.addf %593, %594 : vector<8x32xf32>
    %c0_226 = arith.constant 0 : index
    %c0_227 = arith.constant 0 : index
    %c0_228 = arith.constant 0 : index
    %c0_229 = arith.constant 0 : index
    %596 = vector.load %arg6[%c0_226, %c0_227, %c0_228, %c0_229] : memref<2x1x8x32xf32, #tpu.memory_space<vmem>>, vector<1x1x8x32xf32>
    %597 = vector.shape_cast %596 : vector<1x1x8x32xf32> to vector<8x32xf32>
    %598 = vector.shape_cast %595 : vector<8x32xf32> to vector<1x1x8x32xf32>
    tpu.vector_store %arg6[%c0_226, %c0_227, %c0_228, %c0_229], %598 {strides = array<i32>} : memref<2x1x8x32xf32, #tpu.memory_space<vmem>>, vector<1x1x8x32xf32>,
    %599 = arith.addf %318, %1 : vector<8x32xf32>
    %c14_230 = arith.constant 14 : index
    %c0_231 = arith.constant 0 : index
    %c0_232 = arith.constant 0 : index
    %600 = vector.load %arg4[%c14_230, %c0_231, %c0_232] : memref<32x64x64xf32, #tpu.memory_space<vmem>>, vector<1x64x64xf32>
    %601 = vector.shape_cast %600 : vector<1x64x64xf32> to vector<64x64xf32>
    %602 = vector.extract_strided_slice %601 {offsets = [0, 0], sizes = [32, 32], strides = [1, 1]} : vector<64x64xf32> to vector<32x32xf32>
    %c15_233 = arith.constant 15 : index
    %c0_234 = arith.constant 0 : index
    %c0_235 = arith.constant 0 : index
    %603 = vector.load %arg4[%c15_233, %c0_234, %c0_235] : memref<32x64x64xf32, #tpu.memory_space<vmem>>, vector<1x64x64xf32>
    %604 = vector.shape_cast %603 : vector<1x64x64xf32> to vector<64x64xf32>
    %605 = vector.extract_strided_slice %604 {offsets = [0, 0], sizes = [32, 32], strides = [1, 1]} : vector<64x64xf32> to vector<32x32xf32>
    %c16_236 = arith.constant 16 : index
    %c0_237 = arith.constant 0 : index
    %c0_238 = arith.constant 0 : index
    %606 = vector.load %arg4[%c16_236, %c0_237, %c0_238] : memref<32x64x64xf32, #tpu.memory_space<vmem>>, vector<1x64x64xf32>
    %607 = vector.shape_cast %606 : vector<1x64x64xf32> to vector<64x64xf32>
    %608 = vector.extract_strided_slice %607 {offsets = [0, 0], sizes = [32, 32], strides = [1, 1]} : vector<64x64xf32> to vector<32x32xf32>
    %c17_239 = arith.constant 17 : index
    %c0_240 = arith.constant 0 : index
    %c0_241 = arith.constant 0 : index
    %609 = vector.load %arg4[%c17_239, %c0_240, %c0_241] : memref<32x64x64xf32, #tpu.memory_space<vmem>>, vector<1x64x64xf32>
    %610 = vector.shape_cast %609 : vector<1x64x64xf32> to vector<64x64xf32>
    %611 = vector.extract_strided_slice %610 {offsets = [0, 0], sizes = [32, 32], strides = [1, 1]} : vector<64x64xf32> to vector<32x32xf32>
    %cst_242 = arith.constant dense<0.000000e+00> : vector<8x32xf32>
    %612 = tpu.matmul %599, %602, %cst_242 {dimension_numbers = #tpu.dot_dimension_numbers<[1], [0], [0], [1], [0, 0, 1, 1], [], []>} : vector<8x32xf32>, vector<32x32xf32>, vector<8x32xf32> -> vector<8x32xf32>
    %c22 = arith.constant 22 : index
    %c0_243 = arith.constant 0 : index
    %613 = vector.load %arg5[%c22, %c0_243] : memref<50x64xf32, #tpu.memory_space<vmem>>, vector<1x64xf32>
    %614 = vector.extract_strided_slice %613 {offsets = [0, 0], sizes = [1, 32], strides = [1, 1]} : vector<1x64xf32> to vector<1x32xf32>
    %615 = vector.broadcast %614 : vector<1x32xf32> to vector<8x32xf32>
    %616 = arith.addf %612, %615 : vector<8x32xf32>
    %cst_244 = arith.constant dense<0.000000e+00> : vector<8x32xf32>
    %617 = tpu.matmul %599, %605, %cst_244 {dimension_numbers = #tpu.dot_dimension_numbers<[1], [0], [0], [1], [0, 0, 1, 1], [], []>} : vector<8x32xf32>, vector<32x32xf32>, vector<8x32xf32> -> vector<8x32xf32>
    %c23 = arith.constant 23 : index
    %c0_245 = arith.constant 0 : index
    %618 = vector.load %arg5[%c23, %c0_245] : memref<50x64xf32, #tpu.memory_space<vmem>>, vector<1x64xf32>
    %619 = vector.extract_strided_slice %618 {offsets = [0, 0], sizes = [1, 32], strides = [1, 1]} : vector<1x64xf32> to vector<1x32xf32>
    %620 = vector.broadcast %619 : vector<1x32xf32> to vector<8x32xf32>
    %621 = arith.addf %617, %620 : vector<8x32xf32>
    %cst_246 = arith.constant dense<0.000000e+00> : vector<8x32xf32>
    %622 = tpu.matmul %318, %608, %cst_246 {dimension_numbers = #tpu.dot_dimension_numbers<[1], [0], [0], [1], [0, 0, 1, 1], [], []>} : vector<8x32xf32>, vector<32x32xf32>, vector<8x32xf32> -> vector<8x32xf32>
    %c24 = arith.constant 24 : index
    %c0_247 = arith.constant 0 : index
    %623 = vector.load %arg5[%c24, %c0_247] : memref<50x64xf32, #tpu.memory_space<vmem>>, vector<1x64xf32>
    %624 = vector.extract_strided_slice %623 {offsets = [0, 0], sizes = [1, 32], strides = [1, 1]} : vector<1x64xf32> to vector<1x32xf32>
    %625 = vector.broadcast %624 : vector<1x32xf32> to vector<8x32xf32>
    %626 = arith.addf %622, %625 : vector<8x32xf32>
    %c25 = arith.constant 25 : index
    %c0_248 = arith.constant 0 : index
    %627 = vector.load %arg5[%c25, %c0_248] : memref<50x64xf32, #tpu.memory_space<vmem>>, vector<1x64xf32>
    %628 = vector.extract_strided_slice %627 {offsets = [0, 0], sizes = [1, 32], strides = [1, 1]} : vector<1x64xf32> to vector<1x32xf32>
    %629 = vector.extract_strided_slice %616 {offsets = [0, 0], sizes = [8, 8], strides = [1, 1]} : vector<8x32xf32> to vector<8x8xf32>
    %630 = vector.extract_strided_slice %621 {offsets = [0, 0], sizes = [8, 8], strides = [1, 1]} : vector<8x32xf32> to vector<8x8xf32>
    %631 = vector.extract_strided_slice %626 {offsets = [0, 0], sizes = [8, 8], strides = [1, 1]} : vector<8x32xf32> to vector<8x8xf32>
    %cst_249 = arith.constant dense<0.000000e+00> : vector<8x8xf32>
    %632 = tpu.matmul %629, %630, %cst_249 {dimension_numbers = #tpu.dot_dimension_numbers<[1], [1], [0], [0], [0, 0, 1, 0], [], []>} : vector<8x8xf32>, vector<8x8xf32>, vector<8x8xf32> -> vector<8x8xf32>
    %cst_250 = arith.constant 0.353553385 : f32
    %633 = vector.broadcast %cst_250 : f32 to vector<8x8xf32>
    %634 = arith.mulf %632, %633 : vector<8x8xf32>
    %cst_251 = arith.constant dense<0xFF800000> : vector<8xf32>
    %635 = vector.multi_reduction <maximumf>, %634, %cst_251 [1] : vector<8x8xf32> to vector<8xf32>
    %636 = vector.shape_cast %635 : vector<8xf32> to vector<8x1xf32>
    %637 = vector.broadcast %636 : vector<8x1xf32> to vector<8x8xf32>
    %638 = arith.subf %634, %637 : vector<8x8xf32>
    %639 = math.exp %638 : vector<8x8xf32>
    %cst_252 = arith.constant dense<0.000000e+00> : vector<8xf32>
    %640 = vector.multi_reduction <add>, %639, %cst_252 [1] : vector<8x8xf32> to vector<8xf32>
    %641 = vector.shape_cast %640 : vector<8xf32> to vector<8x1xf32>
    %642 = tpu.reciprocal %641 {approx = true} : vector<8x1xf32> -> vector<8x1xf32>
    %643 = vector.broadcast %642 : vector<8x1xf32> to vector<8x8xf32>
    %644 = arith.mulf %639, %643 : vector<8x8xf32>
    %cst_253 = arith.constant dense<0.000000e+00> : vector<8x8xf32>
    %645 = tpu.matmul %644, %631, %cst_253 {dimension_numbers = #tpu.dot_dimension_numbers<[1], [0], [0], [1], [0, 0, 1, 1], [], []>} : vector<8x8xf32>, vector<8x8xf32>, vector<8x8xf32> -> vector<8x8xf32>
    %646 = vector.extract_strided_slice %611 {offsets = [0, 0], sizes = [8, 32], strides = [1, 1]} : vector<32x32xf32> to vector<8x32xf32>
    %cst_254 = arith.constant dense<0.000000e+00> : vector<8x32xf32>
    %647 = tpu.matmul %645, %646, %cst_254 {dimension_numbers = #tpu.dot_dimension_numbers<[1], [0], [0], [1], [0, 0, 1, 1], [], []>} : vector<8x8xf32>, vector<8x32xf32>, vector<8x32xf32> -> vector<8x32xf32>
    %648 = vector.broadcast %628 : vector<1x32xf32> to vector<8x32xf32>
    %649 = arith.addf %648, %647 : vector<8x32xf32>
    %650 = vector.extract_strided_slice %616 {offsets = [0, 8], sizes = [8, 8], strides = [1, 1]} : vector<8x32xf32> to vector<8x8xf32>
    %651 = vector.extract_strided_slice %621 {offsets = [0, 8], sizes = [8, 8], strides = [1, 1]} : vector<8x32xf32> to vector<8x8xf32>
    %652 = vector.extract_strided_slice %626 {offsets = [0, 8], sizes = [8, 8], strides = [1, 1]} : vector<8x32xf32> to vector<8x8xf32>
    %cst_255 = arith.constant dense<0.000000e+00> : vector<8x8xf32>
    %653 = tpu.matmul %650, %651, %cst_255 {dimension_numbers = #tpu.dot_dimension_numbers<[1], [1], [0], [0], [0, 0, 1, 0], [], []>} : vector<8x8xf32>, vector<8x8xf32>, vector<8x8xf32> -> vector<8x8xf32>
    %cst_256 = arith.constant 0.353553385 : f32
    %654 = vector.broadcast %cst_256 : f32 to vector<8x8xf32>
    %655 = arith.mulf %653, %654 : vector<8x8xf32>
    %cst_257 = arith.constant dense<0xFF800000> : vector<8xf32>
    %656 = vector.multi_reduction <maximumf>, %655, %cst_257 [1] : vector<8x8xf32> to vector<8xf32>
    %657 = vector.shape_cast %656 : vector<8xf32> to vector<8x1xf32>
    %658 = vector.broadcast %657 : vector<8x1xf32> to vector<8x8xf32>
    %659 = arith.subf %655, %658 : vector<8x8xf32>
    %660 = math.exp %659 : vector<8x8xf32>
    %cst_258 = arith.constant dense<0.000000e+00> : vector<8xf32>
    %661 = vector.multi_reduction <add>, %660, %cst_258 [1] : vector<8x8xf32> to vector<8xf32>
    %662 = vector.shape_cast %661 : vector<8xf32> to vector<8x1xf32>
    %663 = tpu.reciprocal %662 {approx = true} : vector<8x1xf32> -> vector<8x1xf32>
    %664 = vector.broadcast %663 : vector<8x1xf32> to vector<8x8xf32>
    %665 = arith.mulf %660, %664 : vector<8x8xf32>
    %cst_259 = arith.constant dense<0.000000e+00> : vector<8x8xf32>
    %666 = tpu.matmul %665, %652, %cst_259 {dimension_numbers = #tpu.dot_dimension_numbers<[1], [0], [0], [1], [0, 0, 1, 1], [], []>} : vector<8x8xf32>, vector<8x8xf32>, vector<8x8xf32> -> vector<8x8xf32>
    %667 = vector.extract_strided_slice %611 {offsets = [8, 0], sizes = [8, 32], strides = [1, 1]} : vector<32x32xf32> to vector<8x32xf32>
    %cst_260 = arith.constant dense<0.000000e+00> : vector<8x32xf32>
    %668 = tpu.matmul %666, %667, %cst_260 {dimension_numbers = #tpu.dot_dimension_numbers<[1], [0], [0], [1], [0, 0, 1, 1], [], []>} : vector<8x8xf32>, vector<8x32xf32>, vector<8x32xf32> -> vector<8x32xf32>
    %669 = arith.addf %649, %668 : vector<8x32xf32>
    %670 = vector.extract_strided_slice %616 {offsets = [0, 16], sizes = [8, 8], strides = [1, 1]} : vector<8x32xf32> to vector<8x8xf32>
    %671 = vector.extract_strided_slice %621 {offsets = [0, 16], sizes = [8, 8], strides = [1, 1]} : vector<8x32xf32> to vector<8x8xf32>
    %672 = vector.extract_strided_slice %626 {offsets = [0, 16], sizes = [8, 8], strides = [1, 1]} : vector<8x32xf32> to vector<8x8xf32>
    %cst_261 = arith.constant dense<0.000000e+00> : vector<8x8xf32>
    %673 = tpu.matmul %670, %671, %cst_261 {dimension_numbers = #tpu.dot_dimension_numbers<[1], [1], [0], [0], [0, 0, 1, 0], [], []>} : vector<8x8xf32>, vector<8x8xf32>, vector<8x8xf32> -> vector<8x8xf32>
    %cst_262 = arith.constant 0.353553385 : f32
    %674 = vector.broadcast %cst_262 : f32 to vector<8x8xf32>
    %675 = arith.mulf %673, %674 : vector<8x8xf32>
    %cst_263 = arith.constant dense<0xFF800000> : vector<8xf32>
    %676 = vector.multi_reduction <maximumf>, %675, %cst_263 [1] : vector<8x8xf32> to vector<8xf32>
    %677 = vector.shape_cast %676 : vector<8xf32> to vector<8x1xf32>
    %678 = vector.broadcast %677 : vector<8x1xf32> to vector<8x8xf32>
    %679 = arith.subf %675, %678 : vector<8x8xf32>
    %680 = math.exp %679 : vector<8x8xf32>
    %cst_264 = arith.constant dense<0.000000e+00> : vector<8xf32>
    %681 = vector.multi_reduction <add>, %680, %cst_264 [1] : vector<8x8xf32> to vector<8xf32>
    %682 = vector.shape_cast %681 : vector<8xf32> to vector<8x1xf32>
    %683 = tpu.reciprocal %682 {approx = true} : vector<8x1xf32> -> vector<8x1xf32>
    %684 = vector.broadcast %683 : vector<8x1xf32> to vector<8x8xf32>
    %685 = arith.mulf %680, %684 : vector<8x8xf32>
    %cst_265 = arith.constant dense<0.000000e+00> : vector<8x8xf32>
    %686 = tpu.matmul %685, %672, %cst_265 {dimension_numbers = #tpu.dot_dimension_numbers<[1], [0], [0], [1], [0, 0, 1, 1], [], []>} : vector<8x8xf32>, vector<8x8xf32>, vector<8x8xf32> -> vector<8x8xf32>
    %687 = vector.extract_strided_slice %611 {offsets = [16, 0], sizes = [8, 32], strides = [1, 1]} : vector<32x32xf32> to vector<8x32xf32>
    %cst_266 = arith.constant dense<0.000000e+00> : vector<8x32xf32>
    %688 = tpu.matmul %686, %687, %cst_266 {dimension_numbers = #tpu.dot_dimension_numbers<[1], [0], [0], [1], [0, 0, 1, 1], [], []>} : vector<8x8xf32>, vector<8x32xf32>, vector<8x32xf32> -> vector<8x32xf32>
    %689 = arith.addf %669, %688 : vector<8x32xf32>
    %690 = vector.extract_strided_slice %616 {offsets = [0, 24], sizes = [8, 8], strides = [1, 1]} : vector<8x32xf32> to vector<8x8xf32>
    %691 = vector.extract_strided_slice %621 {offsets = [0, 24], sizes = [8, 8], strides = [1, 1]} : vector<8x32xf32> to vector<8x8xf32>
    %692 = vector.extract_strided_slice %626 {offsets = [0, 24], sizes = [8, 8], strides = [1, 1]} : vector<8x32xf32> to vector<8x8xf32>
    %cst_267 = arith.constant dense<0.000000e+00> : vector<8x8xf32>
    %693 = tpu.matmul %690, %691, %cst_267 {dimension_numbers = #tpu.dot_dimension_numbers<[1], [1], [0], [0], [0, 0, 1, 0], [], []>} : vector<8x8xf32>, vector<8x8xf32>, vector<8x8xf32> -> vector<8x8xf32>
    %cst_268 = arith.constant 0.353553385 : f32
    %694 = vector.broadcast %cst_268 : f32 to vector<8x8xf32>
    %695 = arith.mulf %693, %694 : vector<8x8xf32>
    %cst_269 = arith.constant dense<0xFF800000> : vector<8xf32>
    %696 = vector.multi_reduction <maximumf>, %695, %cst_269 [1] : vector<8x8xf32> to vector<8xf32>
    %697 = vector.shape_cast %696 : vector<8xf32> to vector<8x1xf32>
    %698 = vector.broadcast %697 : vector<8x1xf32> to vector<8x8xf32>
    %699 = arith.subf %695, %698 : vector<8x8xf32>
    %700 = math.exp %699 : vector<8x8xf32>
    %cst_270 = arith.constant dense<0.000000e+00> : vector<8xf32>
    %701 = vector.multi_reduction <add>, %700, %cst_270 [1] : vector<8x8xf32> to vector<8xf32>
    %702 = vector.shape_cast %701 : vector<8xf32> to vector<8x1xf32>
    %703 = tpu.reciprocal %702 {approx = true} : vector<8x1xf32> -> vector<8x1xf32>
    %704 = vector.broadcast %703 : vector<8x1xf32> to vector<8x8xf32>
    %705 = arith.mulf %700, %704 : vector<8x8xf32>
    %cst_271 = arith.constant dense<0.000000e+00> : vector<8x8xf32>
    %706 = tpu.matmul %705, %692, %cst_271 {dimension_numbers = #tpu.dot_dimension_numbers<[1], [0], [0], [1], [0, 0, 1, 1], [], []>} : vector<8x8xf32>, vector<8x8xf32>, vector<8x8xf32> -> vector<8x8xf32>
    %707 = vector.extract_strided_slice %611 {offsets = [24, 0], sizes = [8, 32], strides = [1, 1]} : vector<32x32xf32> to vector<8x32xf32>
    %cst_272 = arith.constant dense<0.000000e+00> : vector<8x32xf32>
    %708 = tpu.matmul %706, %707, %cst_272 {dimension_numbers = #tpu.dot_dimension_numbers<[1], [0], [0], [1], [0, 0, 1, 1], [], []>} : vector<8x8xf32>, vector<8x32xf32>, vector<8x32xf32> -> vector<8x32xf32>
    %709 = arith.addf %689, %708 : vector<8x32xf32>
    %710 = arith.addf %318, %709 : vector<8x32xf32>
    %c26 = arith.constant 26 : index
    %c0_273 = arith.constant 0 : index
    %711 = vector.load %arg5[%c26, %c0_273] : memref<50x64xf32, #tpu.memory_space<vmem>>, vector<1x64xf32>
    %712 = vector.extract_strided_slice %711 {offsets = [0, 0], sizes = [1, 32], strides = [1, 1]} : vector<1x64xf32> to vector<1x32xf32>
    %c27 = arith.constant 27 : index
    %c0_274 = arith.constant 0 : index
    %713 = vector.load %arg5[%c27, %c0_274] : memref<50x64xf32, #tpu.memory_space<vmem>>, vector<1x64xf32>
    %714 = vector.extract_strided_slice %713 {offsets = [0, 0], sizes = [1, 32], strides = [1, 1]} : vector<1x64xf32> to vector<1x32xf32>
    %cst_275 = arith.constant dense<0.000000e+00> : vector<8xf32>
    %715 = vector.multi_reduction <add>, %710, %cst_275 [1] : vector<8x32xf32> to vector<8xf32>
    %716 = vector.shape_cast %715 : vector<8xf32> to vector<8x1xf32>
    %cst_276 = arith.constant 3.200000e+01 : f32
    %717 = vector.broadcast %cst_276 : f32 to vector<8x1xf32>
    %718 = arith.divf %716, %717 : vector<8x1xf32>
    %719 = vector.broadcast %718 : vector<8x1xf32> to vector<8x32xf32>
    %720 = arith.subf %710, %719 : vector<8x32xf32>
    %721 = arith.mulf %720, %720 : vector<8x32xf32>
    %cst_277 = arith.constant dense<0.000000e+00> : vector<8xf32>
    %722 = vector.multi_reduction <add>, %721, %cst_277 [1] : vector<8x32xf32> to vector<8xf32>
    %723 = vector.shape_cast %722 : vector<8xf32> to vector<8x1xf32>
    %cst_278 = arith.constant 3.200000e+01 : f32
    %724 = vector.broadcast %cst_278 : f32 to vector<8x1xf32>
    %725 = arith.divf %723, %724 : vector<8x1xf32>
    %cst_279 = arith.constant 9.99999974E-6 : f32
    %726 = vector.broadcast %cst_279 : f32 to vector<8x1xf32>
    %727 = arith.addf %725, %726 : vector<8x1xf32>
    %728 = math.rsqrt %727 : vector<8x1xf32>
    %729 = vector.broadcast %728 : vector<8x1xf32> to vector<8x32xf32>
    %730 = arith.mulf %720, %729 : vector<8x32xf32>
    %731 = vector.broadcast %712 : vector<1x32xf32> to vector<8x32xf32>
    %732 = arith.mulf %730, %731 : vector<8x32xf32>
    %733 = vector.broadcast %714 : vector<1x32xf32> to vector<8x32xf32>
    %734 = arith.addf %732, %733 : vector<8x32xf32>
    %735 = arith.addf %734, %1 : vector<8x32xf32>
    %736 = arith.addf %455, %5 : vector<64x32xf32>
    %c18_280 = arith.constant 18 : index
    %c0_281 = arith.constant 0 : index
    %c0_282 = arith.constant 0 : index
    %737 = vector.load %arg4[%c18_280, %c0_281, %c0_282] : memref<32x64x64xf32, #tpu.memory_space<vmem>>, vector<1x64x64xf32>
    %738 = vector.shape_cast %737 : vector<1x64x64xf32> to vector<64x64xf32>
    %739 = vector.extract_strided_slice %738 {offsets = [0, 0], sizes = [32, 16], strides = [1, 1]} : vector<64x64xf32> to vector<32x16xf32>
    %c19_283 = arith.constant 19 : index
    %c0_284 = arith.constant 0 : index
    %c0_285 = arith.constant 0 : index
    %740 = vector.load %arg4[%c19_283, %c0_284, %c0_285] : memref<32x64x64xf32, #tpu.memory_space<vmem>>, vector<1x64x64xf32>
    %741 = vector.shape_cast %740 : vector<1x64x64xf32> to vector<64x64xf32>
    %742 = vector.extract_strided_slice %741 {offsets = [0, 0], sizes = [32, 16], strides = [1, 1]} : vector<64x64xf32> to vector<32x16xf32>
    %c20_286 = arith.constant 20 : index
    %c0_287 = arith.constant 0 : index
    %c0_288 = arith.constant 0 : index
    %743 = vector.load %arg4[%c20_286, %c0_287, %c0_288] : memref<32x64x64xf32, #tpu.memory_space<vmem>>, vector<1x64x64xf32>
    %744 = vector.shape_cast %743 : vector<1x64x64xf32> to vector<64x64xf32>
    %745 = vector.extract_strided_slice %744 {offsets = [0, 0], sizes = [32, 16], strides = [1, 1]} : vector<64x64xf32> to vector<32x16xf32>
    %c21_289 = arith.constant 21 : index
    %c0_290 = arith.constant 0 : index
    %c0_291 = arith.constant 0 : index
    %746 = vector.load %arg4[%c21_289, %c0_290, %c0_291] : memref<32x64x64xf32, #tpu.memory_space<vmem>>, vector<1x64x64xf32>
    %747 = vector.shape_cast %746 : vector<1x64x64xf32> to vector<64x64xf32>
    %748 = vector.extract_strided_slice %747 {offsets = [0, 0], sizes = [16, 32], strides = [1, 1]} : vector<64x64xf32> to vector<16x32xf32>
    %cst_292 = arith.constant dense<0.000000e+00> : vector<8x16xf32>
    %749 = tpu.matmul %735, %739, %cst_292 {dimension_numbers = #tpu.dot_dimension_numbers<[1], [0], [0], [1], [0, 0, 1, 1], [], []>} : vector<8x32xf32>, vector<32x16xf32>, vector<8x16xf32> -> vector<8x16xf32>
    %c28_293 = arith.constant 28 : index
    %c0_294 = arith.constant 0 : index
    %750 = vector.load %arg5[%c28_293, %c0_294] : memref<50x64xf32, #tpu.memory_space<vmem>>, vector<1x64xf32>
    %751 = vector.extract_strided_slice %750 {offsets = [0, 0], sizes = [1, 16], strides = [1, 1]} : vector<1x64xf32> to vector<1x16xf32>
    %752 = vector.broadcast %751 : vector<1x16xf32> to vector<8x16xf32>
    %753 = arith.addf %749, %752 : vector<8x16xf32>
    %cst_295 = arith.constant dense<0.000000e+00> : vector<64x16xf32>
    %754 = tpu.matmul %736, %742, %cst_295 {dimension_numbers = #tpu.dot_dimension_numbers<[1], [0], [0], [1], [0, 0, 1, 1], [], []>} : vector<64x32xf32>, vector<32x16xf32>, vector<64x16xf32> -> vector<64x16xf32>
    %c29_296 = arith.constant 29 : index
    %c0_297 = arith.constant 0 : index
    %755 = vector.load %arg5[%c29_296, %c0_297] : memref<50x64xf32, #tpu.memory_space<vmem>>, vector<1x64xf32>
    %756 = vector.extract_strided_slice %755 {offsets = [0, 0], sizes = [1, 16], strides = [1, 1]} : vector<1x64xf32> to vector<1x16xf32>
    %757 = vector.broadcast %756 : vector<1x16xf32> to vector<64x16xf32>
    %758 = arith.addf %754, %757 : vector<64x16xf32>
    %cst_298 = arith.constant dense<0.000000e+00> : vector<64x16xf32>
    %759 = tpu.matmul %455, %745, %cst_298 {dimension_numbers = #tpu.dot_dimension_numbers<[1], [0], [0], [1], [0, 0, 1, 1], [], []>} : vector<64x32xf32>, vector<32x16xf32>, vector<64x16xf32> -> vector<64x16xf32>
    %c30_299 = arith.constant 30 : index
    %c0_300 = arith.constant 0 : index
    %760 = vector.load %arg5[%c30_299, %c0_300] : memref<50x64xf32, #tpu.memory_space<vmem>>, vector<1x64xf32>
    %761 = vector.extract_strided_slice %760 {offsets = [0, 0], sizes = [1, 16], strides = [1, 1]} : vector<1x64xf32> to vector<1x16xf32>
    %762 = vector.broadcast %761 : vector<1x16xf32> to vector<64x16xf32>
    %763 = arith.addf %759, %762 : vector<64x16xf32>
    %c31_301 = arith.constant 31 : index
    %c0_302 = arith.constant 0 : index
    %764 = vector.load %arg5[%c31_301, %c0_302] : memref<50x64xf32, #tpu.memory_space<vmem>>, vector<1x64xf32>
    %765 = vector.extract_strided_slice %764 {offsets = [0, 0], sizes = [1, 32], strides = [1, 1]} : vector<1x64xf32> to vector<1x32xf32>
    %766 = vector.extract_strided_slice %753 {offsets = [0, 0], sizes = [8, 4], strides = [1, 1]} : vector<8x16xf32> to vector<8x4xf32>
    %767 = vector.extract_strided_slice %758 {offsets = [0, 0], sizes = [64, 4], strides = [1, 1]} : vector<64x16xf32> to vector<64x4xf32>
    %768 = vector.extract_strided_slice %763 {offsets = [0, 0], sizes = [64, 4], strides = [1, 1]} : vector<64x16xf32> to vector<64x4xf32>
    %cst_303 = arith.constant dense<0.000000e+00> : vector<8x64xf32>
    %769 = tpu.matmul %766, %767, %cst_303 {dimension_numbers = #tpu.dot_dimension_numbers<[1], [1], [0], [0], [0, 0, 1, 0], [], []>} : vector<8x4xf32>, vector<64x4xf32>, vector<8x64xf32> -> vector<8x64xf32>
    %cst_304 = arith.constant 5.000000e-01 : f32
    %770 = vector.broadcast %cst_304 : f32 to vector<8x64xf32>
    %771 = arith.mulf %769, %770 : vector<8x64xf32>
    %cst_305 = arith.constant dense<0xFF800000> : vector<8xf32>
    %772 = vector.multi_reduction <maximumf>, %771, %cst_305 [1] : vector<8x64xf32> to vector<8xf32>
    %773 = vector.shape_cast %772 : vector<8xf32> to vector<8x1xf32>
    %774 = vector.broadcast %773 : vector<8x1xf32> to vector<8x64xf32>
    %775 = arith.subf %771, %774 : vector<8x64xf32>
    %776 = math.exp %775 : vector<8x64xf32>
    %cst_306 = arith.constant dense<0.000000e+00> : vector<8xf32>
    %777 = vector.multi_reduction <add>, %776, %cst_306 [1] : vector<8x64xf32> to vector<8xf32>
    %778 = vector.shape_cast %777 : vector<8xf32> to vector<8x1xf32>
    %779 = tpu.reciprocal %778 {approx = true} : vector<8x1xf32> -> vector<8x1xf32>
    %780 = vector.broadcast %779 : vector<8x1xf32> to vector<8x64xf32>
    %781 = arith.mulf %776, %780 : vector<8x64xf32>
    %cst_307 = arith.constant dense<0.000000e+00> : vector<8x4xf32>
    %782 = tpu.matmul %781, %768, %cst_307 {dimension_numbers = #tpu.dot_dimension_numbers<[1], [0], [0], [1], [0, 0, 1, 1], [], []>} : vector<8x64xf32>, vector<64x4xf32>, vector<8x4xf32> -> vector<8x4xf32>
    %783 = vector.extract_strided_slice %748 {offsets = [0, 0], sizes = [4, 32], strides = [1, 1]} : vector<16x32xf32> to vector<4x32xf32>
    %cst_308 = arith.constant dense<0.000000e+00> : vector<8x32xf32>
    %784 = tpu.matmul %782, %783, %cst_308 {dimension_numbers = #tpu.dot_dimension_numbers<[1], [0], [0], [1], [0, 0, 1, 1], [], []>} : vector<8x4xf32>, vector<4x32xf32>, vector<8x32xf32> -> vector<8x32xf32>
    %785 = vector.broadcast %765 : vector<1x32xf32> to vector<8x32xf32>
    %786 = arith.addf %785, %784 : vector<8x32xf32>
    %787 = vector.extract_strided_slice %753 {offsets = [0, 4], sizes = [8, 4], strides = [1, 1]} : vector<8x16xf32> to vector<8x4xf32>
    %788 = vector.extract_strided_slice %758 {offsets = [0, 4], sizes = [64, 4], strides = [1, 1]} : vector<64x16xf32> to vector<64x4xf32>
    %789 = vector.extract_strided_slice %763 {offsets = [0, 4], sizes = [64, 4], strides = [1, 1]} : vector<64x16xf32> to vector<64x4xf32>
    %cst_309 = arith.constant dense<0.000000e+00> : vector<8x64xf32>
    %790 = tpu.matmul %787, %788, %cst_309 {dimension_numbers = #tpu.dot_dimension_numbers<[1], [1], [0], [0], [0, 0, 1, 0], [], []>} : vector<8x4xf32>, vector<64x4xf32>, vector<8x64xf32> -> vector<8x64xf32>
    %cst_310 = arith.constant 5.000000e-01 : f32
    %791 = vector.broadcast %cst_310 : f32 to vector<8x64xf32>
    %792 = arith.mulf %790, %791 : vector<8x64xf32>
    %cst_311 = arith.constant dense<0xFF800000> : vector<8xf32>
    %793 = vector.multi_reduction <maximumf>, %792, %cst_311 [1] : vector<8x64xf32> to vector<8xf32>
    %794 = vector.shape_cast %793 : vector<8xf32> to vector<8x1xf32>
    %795 = vector.broadcast %794 : vector<8x1xf32> to vector<8x64xf32>
    %796 = arith.subf %792, %795 : vector<8x64xf32>
    %797 = math.exp %796 : vector<8x64xf32>
    %cst_312 = arith.constant dense<0.000000e+00> : vector<8xf32>
    %798 = vector.multi_reduction <add>, %797, %cst_312 [1] : vector<8x64xf32> to vector<8xf32>
    %799 = vector.shape_cast %798 : vector<8xf32> to vector<8x1xf32>
    %800 = tpu.reciprocal %799 {approx = true} : vector<8x1xf32> -> vector<8x1xf32>
    %801 = vector.broadcast %800 : vector<8x1xf32> to vector<8x64xf32>
    %802 = arith.mulf %797, %801 : vector<8x64xf32>
    %cst_313 = arith.constant dense<0.000000e+00> : vector<8x4xf32>
    %803 = tpu.matmul %802, %789, %cst_313 {dimension_numbers = #tpu.dot_dimension_numbers<[1], [0], [0], [1], [0, 0, 1, 1], [], []>} : vector<8x64xf32>, vector<64x4xf32>, vector<8x4xf32> -> vector<8x4xf32>
    %804 = vector.extract_strided_slice %748 {offsets = [4, 0], sizes = [4, 32], strides = [1, 1]} : vector<16x32xf32> to vector<4x32xf32>
    %cst_314 = arith.constant dense<0.000000e+00> : vector<8x32xf32>
    %805 = tpu.matmul %803, %804, %cst_314 {dimension_numbers = #tpu.dot_dimension_numbers<[1], [0], [0], [1], [0, 0, 1, 1], [], []>} : vector<8x4xf32>, vector<4x32xf32>, vector<8x32xf32> -> vector<8x32xf32>
    %806 = arith.addf %786, %805 : vector<8x32xf32>
    %807 = vector.extract_strided_slice %753 {offsets = [0, 8], sizes = [8, 4], strides = [1, 1]} : vector<8x16xf32> to vector<8x4xf32>
    %808 = vector.extract_strided_slice %758 {offsets = [0, 8], sizes = [64, 4], strides = [1, 1]} : vector<64x16xf32> to vector<64x4xf32>
    %809 = vector.extract_strided_slice %763 {offsets = [0, 8], sizes = [64, 4], strides = [1, 1]} : vector<64x16xf32> to vector<64x4xf32>
    %cst_315 = arith.constant dense<0.000000e+00> : vector<8x64xf32>
    %810 = tpu.matmul %807, %808, %cst_315 {dimension_numbers = #tpu.dot_dimension_numbers<[1], [1], [0], [0], [0, 0, 1, 0], [], []>} : vector<8x4xf32>, vector<64x4xf32>, vector<8x64xf32> -> vector<8x64xf32>
    %cst_316 = arith.constant 5.000000e-01 : f32
    %811 = vector.broadcast %cst_316 : f32 to vector<8x64xf32>
    %812 = arith.mulf %810, %811 : vector<8x64xf32>
    %cst_317 = arith.constant dense<0xFF800000> : vector<8xf32>
    %813 = vector.multi_reduction <maximumf>, %812, %cst_317 [1] : vector<8x64xf32> to vector<8xf32>
    %814 = vector.shape_cast %813 : vector<8xf32> to vector<8x1xf32>
    %815 = vector.broadcast %814 : vector<8x1xf32> to vector<8x64xf32>
    %816 = arith.subf %812, %815 : vector<8x64xf32>
    %817 = math.exp %816 : vector<8x64xf32>
    %cst_318 = arith.constant dense<0.000000e+00> : vector<8xf32>
    %818 = vector.multi_reduction <add>, %817, %cst_318 [1] : vector<8x64xf32> to vector<8xf32>
    %819 = vector.shape_cast %818 : vector<8xf32> to vector<8x1xf32>
    %820 = tpu.reciprocal %819 {approx = true} : vector<8x1xf32> -> vector<8x1xf32>
    %821 = vector.broadcast %820 : vector<8x1xf32> to vector<8x64xf32>
    %822 = arith.mulf %817, %821 : vector<8x64xf32>
    %cst_319 = arith.constant dense<0.000000e+00> : vector<8x4xf32>
    %823 = tpu.matmul %822, %809, %cst_319 {dimension_numbers = #tpu.dot_dimension_numbers<[1], [0], [0], [1], [0, 0, 1, 1], [], []>} : vector<8x64xf32>, vector<64x4xf32>, vector<8x4xf32> -> vector<8x4xf32>
    %824 = vector.extract_strided_slice %748 {offsets = [8, 0], sizes = [4, 32], strides = [1, 1]} : vector<16x32xf32> to vector<4x32xf32>
    %cst_320 = arith.constant dense<0.000000e+00> : vector<8x32xf32>
    %825 = tpu.matmul %823, %824, %cst_320 {dimension_numbers = #tpu.dot_dimension_numbers<[1], [0], [0], [1], [0, 0, 1, 1], [], []>} : vector<8x4xf32>, vector<4x32xf32>, vector<8x32xf32> -> vector<8x32xf32>
    %826 = arith.addf %806, %825 : vector<8x32xf32>
    %827 = vector.extract_strided_slice %753 {offsets = [0, 12], sizes = [8, 4], strides = [1, 1]} : vector<8x16xf32> to vector<8x4xf32>
    %828 = vector.extract_strided_slice %758 {offsets = [0, 12], sizes = [64, 4], strides = [1, 1]} : vector<64x16xf32> to vector<64x4xf32>
    %829 = vector.extract_strided_slice %763 {offsets = [0, 12], sizes = [64, 4], strides = [1, 1]} : vector<64x16xf32> to vector<64x4xf32>
    %cst_321 = arith.constant dense<0.000000e+00> : vector<8x64xf32>
    %830 = tpu.matmul %827, %828, %cst_321 {dimension_numbers = #tpu.dot_dimension_numbers<[1], [1], [0], [0], [0, 0, 1, 0], [], []>} : vector<8x4xf32>, vector<64x4xf32>, vector<8x64xf32> -> vector<8x64xf32>
    %cst_322 = arith.constant 5.000000e-01 : f32
    %831 = vector.broadcast %cst_322 : f32 to vector<8x64xf32>
    %832 = arith.mulf %830, %831 : vector<8x64xf32>
    %cst_323 = arith.constant dense<0xFF800000> : vector<8xf32>
    %833 = vector.multi_reduction <maximumf>, %832, %cst_323 [1] : vector<8x64xf32> to vector<8xf32>
    %834 = vector.shape_cast %833 : vector<8xf32> to vector<8x1xf32>
    %835 = vector.broadcast %834 : vector<8x1xf32> to vector<8x64xf32>
    %836 = arith.subf %832, %835 : vector<8x64xf32>
    %837 = math.exp %836 : vector<8x64xf32>
    %cst_324 = arith.constant dense<0.000000e+00> : vector<8xf32>
    %838 = vector.multi_reduction <add>, %837, %cst_324 [1] : vector<8x64xf32> to vector<8xf32>
    %839 = vector.shape_cast %838 : vector<8xf32> to vector<8x1xf32>
    %840 = tpu.reciprocal %839 {approx = true} : vector<8x1xf32> -> vector<8x1xf32>
    %841 = vector.broadcast %840 : vector<8x1xf32> to vector<8x64xf32>
    %842 = arith.mulf %837, %841 : vector<8x64xf32>
    %cst_325 = arith.constant dense<0.000000e+00> : vector<8x4xf32>
    %843 = tpu.matmul %842, %829, %cst_325 {dimension_numbers = #tpu.dot_dimension_numbers<[1], [0], [0], [1], [0, 0, 1, 1], [], []>} : vector<8x64xf32>, vector<64x4xf32>, vector<8x4xf32> -> vector<8x4xf32>
    %844 = vector.extract_strided_slice %748 {offsets = [12, 0], sizes = [4, 32], strides = [1, 1]} : vector<16x32xf32> to vector<4x32xf32>
    %cst_326 = arith.constant dense<0.000000e+00> : vector<8x32xf32>
    %845 = tpu.matmul %843, %844, %cst_326 {dimension_numbers = #tpu.dot_dimension_numbers<[1], [0], [0], [1], [0, 0, 1, 1], [], []>} : vector<8x4xf32>, vector<4x32xf32>, vector<8x32xf32> -> vector<8x32xf32>
    %846 = arith.addf %826, %845 : vector<8x32xf32>
    %847 = arith.addf %734, %846 : vector<8x32xf32>
    %c32 = arith.constant 32 : index
    %c0_327 = arith.constant 0 : index
    %848 = vector.load %arg5[%c32, %c0_327] : memref<50x64xf32, #tpu.memory_space<vmem>>, vector<1x64xf32>
    %849 = vector.extract_strided_slice %848 {offsets = [0, 0], sizes = [1, 32], strides = [1, 1]} : vector<1x64xf32> to vector<1x32xf32>
    %c33 = arith.constant 33 : index
    %c0_328 = arith.constant 0 : index
    %850 = vector.load %arg5[%c33, %c0_328] : memref<50x64xf32, #tpu.memory_space<vmem>>, vector<1x64xf32>
    %851 = vector.extract_strided_slice %850 {offsets = [0, 0], sizes = [1, 32], strides = [1, 1]} : vector<1x64xf32> to vector<1x32xf32>
    %cst_329 = arith.constant dense<0.000000e+00> : vector<8xf32>
    %852 = vector.multi_reduction <add>, %847, %cst_329 [1] : vector<8x32xf32> to vector<8xf32>
    %853 = vector.shape_cast %852 : vector<8xf32> to vector<8x1xf32>
    %cst_330 = arith.constant 3.200000e+01 : f32
    %854 = vector.broadcast %cst_330 : f32 to vector<8x1xf32>
    %855 = arith.divf %853, %854 : vector<8x1xf32>
    %856 = vector.broadcast %855 : vector<8x1xf32> to vector<8x32xf32>
    %857 = arith.subf %847, %856 : vector<8x32xf32>
    %858 = arith.mulf %857, %857 : vector<8x32xf32>
    %cst_331 = arith.constant dense<0.000000e+00> : vector<8xf32>
    %859 = vector.multi_reduction <add>, %858, %cst_331 [1] : vector<8x32xf32> to vector<8xf32>
    %860 = vector.shape_cast %859 : vector<8xf32> to vector<8x1xf32>
    %cst_332 = arith.constant 3.200000e+01 : f32
    %861 = vector.broadcast %cst_332 : f32 to vector<8x1xf32>
    %862 = arith.divf %860, %861 : vector<8x1xf32>
    %cst_333 = arith.constant 9.99999974E-6 : f32
    %863 = vector.broadcast %cst_333 : f32 to vector<8x1xf32>
    %864 = arith.addf %862, %863 : vector<8x1xf32>
    %865 = math.rsqrt %864 : vector<8x1xf32>
    %866 = vector.broadcast %865 : vector<8x1xf32> to vector<8x32xf32>
    %867 = arith.mulf %857, %866 : vector<8x32xf32>
    %868 = vector.broadcast %849 : vector<1x32xf32> to vector<8x32xf32>
    %869 = arith.mulf %867, %868 : vector<8x32xf32>
    %870 = vector.broadcast %851 : vector<1x32xf32> to vector<8x32xf32>
    %871 = arith.addf %869, %870 : vector<8x32xf32>
    %c22_334 = arith.constant 22 : index
    %c0_335 = arith.constant 0 : index
    %c0_336 = arith.constant 0 : index
    %872 = vector.load %arg4[%c22_334, %c0_335, %c0_336] : memref<32x64x64xf32, #tpu.memory_space<vmem>>, vector<1x64x64xf32>
    %873 = vector.shape_cast %872 : vector<1x64x64xf32> to vector<64x64xf32>
    %874 = vector.extract_strided_slice %873 {offsets = [0, 0], sizes = [32, 64], strides = [1, 1]} : vector<64x64xf32> to vector<32x64xf32>
    %cst_337 = arith.constant dense<0.000000e+00> : vector<8x64xf32>
    %875 = tpu.matmul %871, %874, %cst_337 {dimension_numbers = #tpu.dot_dimension_numbers<[1], [0], [0], [1], [0, 0, 1, 1], [], []>} : vector<8x32xf32>, vector<32x64xf32>, vector<8x64xf32> -> vector<8x64xf32>
    %c34 = arith.constant 34 : index
    %c0_338 = arith.constant 0 : index
    %876 = vector.load %arg5[%c34, %c0_338] : memref<50x64xf32, #tpu.memory_space<vmem>>, vector<1x64xf32>
    %877 = vector.broadcast %876 : vector<1x64xf32> to vector<8x64xf32>
    %878 = arith.addf %875, %877 : vector<8x64xf32>
    %cst_339 = arith.constant 0.000000e+00 : f32
    %879 = vector.broadcast %cst_339 : f32 to vector<8x64xf32>
    %880 = arith.maximumf %878, %879 : vector<8x64xf32>
    %c23_340 = arith.constant 23 : index
    %c0_341 = arith.constant 0 : index
    %c0_342 = arith.constant 0 : index
    %881 = vector.load %arg4[%c23_340, %c0_341, %c0_342] : memref<32x64x64xf32, #tpu.memory_space<vmem>>, vector<1x64x64xf32>
    %882 = vector.shape_cast %881 : vector<1x64x64xf32> to vector<64x64xf32>
    %883 = vector.extract_strided_slice %882 {offsets = [0, 0], sizes = [64, 32], strides = [1, 1]} : vector<64x64xf32> to vector<64x32xf32>
    %cst_343 = arith.constant dense<0.000000e+00> : vector<8x32xf32>
    %884 = tpu.matmul %880, %883, %cst_343 {dimension_numbers = #tpu.dot_dimension_numbers<[1], [0], [0], [1], [0, 0, 1, 1], [], []>} : vector<8x64xf32>, vector<64x32xf32>, vector<8x32xf32> -> vector<8x32xf32>
    %c35 = arith.constant 35 : index
    %c0_344 = arith.constant 0 : index
    %885 = vector.load %arg5[%c35, %c0_344] : memref<50x64xf32, #tpu.memory_space<vmem>>, vector<1x64xf32>
    %886 = vector.extract_strided_slice %885 {offsets = [0, 0], sizes = [1, 32], strides = [1, 1]} : vector<1x64xf32> to vector<1x32xf32>
    %887 = vector.broadcast %886 : vector<1x32xf32> to vector<8x32xf32>
    %888 = arith.addf %884, %887 : vector<8x32xf32>
    %889 = arith.addf %871, %888 : vector<8x32xf32>
    %c36 = arith.constant 36 : index
    %c0_345 = arith.constant 0 : index
    %890 = vector.load %arg5[%c36, %c0_345] : memref<50x64xf32, #tpu.memory_space<vmem>>, vector<1x64xf32>
    %891 = vector.extract_strided_slice %890 {offsets = [0, 0], sizes = [1, 32], strides = [1, 1]} : vector<1x64xf32> to vector<1x32xf32>
    %c37 = arith.constant 37 : index
    %c0_346 = arith.constant 0 : index
    %892 = vector.load %arg5[%c37, %c0_346] : memref<50x64xf32, #tpu.memory_space<vmem>>, vector<1x64xf32>
    %893 = vector.extract_strided_slice %892 {offsets = [0, 0], sizes = [1, 32], strides = [1, 1]} : vector<1x64xf32> to vector<1x32xf32>
    %cst_347 = arith.constant dense<0.000000e+00> : vector<8xf32>
    %894 = vector.multi_reduction <add>, %889, %cst_347 [1] : vector<8x32xf32> to vector<8xf32>
    %895 = vector.shape_cast %894 : vector<8xf32> to vector<8x1xf32>
    %cst_348 = arith.constant 3.200000e+01 : f32
    %896 = vector.broadcast %cst_348 : f32 to vector<8x1xf32>
    %897 = arith.divf %895, %896 : vector<8x1xf32>
    %898 = vector.broadcast %897 : vector<8x1xf32> to vector<8x32xf32>
    %899 = arith.subf %889, %898 : vector<8x32xf32>
    %900 = arith.mulf %899, %899 : vector<8x32xf32>
    %cst_349 = arith.constant dense<0.000000e+00> : vector<8xf32>
    %901 = vector.multi_reduction <add>, %900, %cst_349 [1] : vector<8x32xf32> to vector<8xf32>
    %902 = vector.shape_cast %901 : vector<8xf32> to vector<8x1xf32>
    %cst_350 = arith.constant 3.200000e+01 : f32
    %903 = vector.broadcast %cst_350 : f32 to vector<8x1xf32>
    %904 = arith.divf %902, %903 : vector<8x1xf32>
    %cst_351 = arith.constant 9.99999974E-6 : f32
    %905 = vector.broadcast %cst_351 : f32 to vector<8x1xf32>
    %906 = arith.addf %904, %905 : vector<8x1xf32>
    %907 = math.rsqrt %906 : vector<8x1xf32>
    %908 = vector.broadcast %907 : vector<8x1xf32> to vector<8x32xf32>
    %909 = arith.mulf %899, %908 : vector<8x32xf32>
    %910 = vector.broadcast %891 : vector<1x32xf32> to vector<8x32xf32>
    %911 = arith.mulf %909, %910 : vector<8x32xf32>
    %912 = vector.broadcast %893 : vector<1x32xf32> to vector<8x32xf32>
    %913 = arith.addf %911, %912 : vector<8x32xf32>
    %914 = arith.addf %913, %1 : vector<8x32xf32>
    %915 = arith.addf %455, %5 : vector<64x32xf32>
    %c24_352 = arith.constant 24 : index
    %c0_353 = arith.constant 0 : index
    %c0_354 = arith.constant 0 : index
    %916 = vector.load %arg4[%c24_352, %c0_353, %c0_354] : memref<32x64x64xf32, #tpu.memory_space<vmem>>, vector<1x64x64xf32>
    %917 = vector.shape_cast %916 : vector<1x64x64xf32> to vector<64x64xf32>
    %918 = vector.extract_strided_slice %917 {offsets = [0, 0], sizes = [32, 16], strides = [1, 1]} : vector<64x64xf32> to vector<32x16xf32>
    %c25_355 = arith.constant 25 : index
    %c0_356 = arith.constant 0 : index
    %c0_357 = arith.constant 0 : index
    %919 = vector.load %arg4[%c25_355, %c0_356, %c0_357] : memref<32x64x64xf32, #tpu.memory_space<vmem>>, vector<1x64x64xf32>
    %920 = vector.shape_cast %919 : vector<1x64x64xf32> to vector<64x64xf32>
    %921 = vector.extract_strided_slice %920 {offsets = [0, 0], sizes = [32, 16], strides = [1, 1]} : vector<64x64xf32> to vector<32x16xf32>
    %c26_358 = arith.constant 26 : index
    %c0_359 = arith.constant 0 : index
    %c0_360 = arith.constant 0 : index
    %922 = vector.load %arg4[%c26_358, %c0_359, %c0_360] : memref<32x64x64xf32, #tpu.memory_space<vmem>>, vector<1x64x64xf32>
    %923 = vector.shape_cast %922 : vector<1x64x64xf32> to vector<64x64xf32>
    %924 = vector.extract_strided_slice %923 {offsets = [0, 0], sizes = [32, 16], strides = [1, 1]} : vector<64x64xf32> to vector<32x16xf32>
    %c27_361 = arith.constant 27 : index
    %c0_362 = arith.constant 0 : index
    %c0_363 = arith.constant 0 : index
    %925 = vector.load %arg4[%c27_361, %c0_362, %c0_363] : memref<32x64x64xf32, #tpu.memory_space<vmem>>, vector<1x64x64xf32>
    %926 = vector.shape_cast %925 : vector<1x64x64xf32> to vector<64x64xf32>
    %927 = vector.extract_strided_slice %926 {offsets = [0, 0], sizes = [16, 32], strides = [1, 1]} : vector<64x64xf32> to vector<16x32xf32>
    %cst_364 = arith.constant dense<0.000000e+00> : vector<64x16xf32>
    %928 = tpu.matmul %915, %918, %cst_364 {dimension_numbers = #tpu.dot_dimension_numbers<[1], [0], [0], [1], [0, 0, 1, 1], [], []>} : vector<64x32xf32>, vector<32x16xf32>, vector<64x16xf32> -> vector<64x16xf32>
    %c38 = arith.constant 38 : index
    %c0_365 = arith.constant 0 : index
    %929 = vector.load %arg5[%c38, %c0_365] : memref<50x64xf32, #tpu.memory_space<vmem>>, vector<1x64xf32>
    %930 = vector.extract_strided_slice %929 {offsets = [0, 0], sizes = [1, 16], strides = [1, 1]} : vector<1x64xf32> to vector<1x16xf32>
    %931 = vector.broadcast %930 : vector<1x16xf32> to vector<64x16xf32>
    %932 = arith.addf %928, %931 : vector<64x16xf32>
    %cst_366 = arith.constant dense<0.000000e+00> : vector<8x16xf32>
    %933 = tpu.matmul %914, %921, %cst_366 {dimension_numbers = #tpu.dot_dimension_numbers<[1], [0], [0], [1], [0, 0, 1, 1], [], []>} : vector<8x32xf32>, vector<32x16xf32>, vector<8x16xf32> -> vector<8x16xf32>
    %c39 = arith.constant 39 : index
    %c0_367 = arith.constant 0 : index
    %934 = vector.load %arg5[%c39, %c0_367] : memref<50x64xf32, #tpu.memory_space<vmem>>, vector<1x64xf32>
    %935 = vector.extract_strided_slice %934 {offsets = [0, 0], sizes = [1, 16], strides = [1, 1]} : vector<1x64xf32> to vector<1x16xf32>
    %936 = vector.broadcast %935 : vector<1x16xf32> to vector<8x16xf32>
    %937 = arith.addf %933, %936 : vector<8x16xf32>
    %cst_368 = arith.constant dense<0.000000e+00> : vector<8x16xf32>
    %938 = tpu.matmul %913, %924, %cst_368 {dimension_numbers = #tpu.dot_dimension_numbers<[1], [0], [0], [1], [0, 0, 1, 1], [], []>} : vector<8x32xf32>, vector<32x16xf32>, vector<8x16xf32> -> vector<8x16xf32>
    %c40 = arith.constant 40 : index
    %c0_369 = arith.constant 0 : index
    %939 = vector.load %arg5[%c40, %c0_369] : memref<50x64xf32, #tpu.memory_space<vmem>>, vector<1x64xf32>
    %940 = vector.extract_strided_slice %939 {offsets = [0, 0], sizes = [1, 16], strides = [1, 1]} : vector<1x64xf32> to vector<1x16xf32>
    %941 = vector.broadcast %940 : vector<1x16xf32> to vector<8x16xf32>
    %942 = arith.addf %938, %941 : vector<8x16xf32>
    %c41 = arith.constant 41 : index
    %c0_370 = arith.constant 0 : index
    %943 = vector.load %arg5[%c41, %c0_370] : memref<50x64xf32, #tpu.memory_space<vmem>>, vector<1x64xf32>
    %944 = vector.extract_strided_slice %943 {offsets = [0, 0], sizes = [1, 32], strides = [1, 1]} : vector<1x64xf32> to vector<1x32xf32>
    %945 = vector.extract_strided_slice %932 {offsets = [0, 0], sizes = [64, 4], strides = [1, 1]} : vector<64x16xf32> to vector<64x4xf32>
    %946 = vector.extract_strided_slice %937 {offsets = [0, 0], sizes = [8, 4], strides = [1, 1]} : vector<8x16xf32> to vector<8x4xf32>
    %947 = vector.extract_strided_slice %942 {offsets = [0, 0], sizes = [8, 4], strides = [1, 1]} : vector<8x16xf32> to vector<8x4xf32>
    %cst_371 = arith.constant dense<0.000000e+00> : vector<64x8xf32>
    %948 = tpu.matmul %945, %946, %cst_371 {dimension_numbers = #tpu.dot_dimension_numbers<[1], [1], [0], [0], [0, 0, 1, 0], [], []>} : vector<64x4xf32>, vector<8x4xf32>, vector<64x8xf32> -> vector<64x8xf32>
    %cst_372 = arith.constant 5.000000e-01 : f32
    %949 = vector.broadcast %cst_372 : f32 to vector<64x8xf32>
    %950 = arith.mulf %948, %949 : vector<64x8xf32>
    %cst_373 = arith.constant dense<0xFF800000> : vector<64xf32>
    %951 = vector.multi_reduction <maximumf>, %950, %cst_373 [1] : vector<64x8xf32> to vector<64xf32>
    %952 = vector.shape_cast %951 : vector<64xf32> to vector<64x1xf32>
    %953 = vector.broadcast %952 : vector<64x1xf32> to vector<64x8xf32>
    %954 = arith.subf %950, %953 : vector<64x8xf32>
    %955 = math.exp %954 : vector<64x8xf32>
    %cst_374 = arith.constant dense<0.000000e+00> : vector<64xf32>
    %956 = vector.multi_reduction <add>, %955, %cst_374 [1] : vector<64x8xf32> to vector<64xf32>
    %957 = vector.shape_cast %956 : vector<64xf32> to vector<64x1xf32>
    %958 = tpu.reciprocal %957 {approx = true} : vector<64x1xf32> -> vector<64x1xf32>
    %959 = vector.broadcast %958 : vector<64x1xf32> to vector<64x8xf32>
    %960 = arith.mulf %955, %959 : vector<64x8xf32>
    %cst_375 = arith.constant dense<0.000000e+00> : vector<64x4xf32>
    %961 = tpu.matmul %960, %947, %cst_375 {dimension_numbers = #tpu.dot_dimension_numbers<[1], [0], [0], [1], [0, 0, 1, 1], [], []>} : vector<64x8xf32>, vector<8x4xf32>, vector<64x4xf32> -> vector<64x4xf32>
    %962 = vector.extract_strided_slice %927 {offsets = [0, 0], sizes = [4, 32], strides = [1, 1]} : vector<16x32xf32> to vector<4x32xf32>
    %cst_376 = arith.constant dense<0.000000e+00> : vector<64x32xf32>
    %963 = tpu.matmul %961, %962, %cst_376 {dimension_numbers = #tpu.dot_dimension_numbers<[1], [0], [0], [1], [0, 0, 1, 1], [], []>} : vector<64x4xf32>, vector<4x32xf32>, vector<64x32xf32> -> vector<64x32xf32>
    %964 = vector.broadcast %944 : vector<1x32xf32> to vector<64x32xf32>
    %965 = arith.addf %964, %963 : vector<64x32xf32>
    %966 = vector.extract_strided_slice %932 {offsets = [0, 4], sizes = [64, 4], strides = [1, 1]} : vector<64x16xf32> to vector<64x4xf32>
    %967 = vector.extract_strided_slice %937 {offsets = [0, 4], sizes = [8, 4], strides = [1, 1]} : vector<8x16xf32> to vector<8x4xf32>
    %968 = vector.extract_strided_slice %942 {offsets = [0, 4], sizes = [8, 4], strides = [1, 1]} : vector<8x16xf32> to vector<8x4xf32>
    %cst_377 = arith.constant dense<0.000000e+00> : vector<64x8xf32>
    %969 = tpu.matmul %966, %967, %cst_377 {dimension_numbers = #tpu.dot_dimension_numbers<[1], [1], [0], [0], [0, 0, 1, 0], [], []>} : vector<64x4xf32>, vector<8x4xf32>, vector<64x8xf32> -> vector<64x8xf32>
    %cst_378 = arith.constant 5.000000e-01 : f32
    %970 = vector.broadcast %cst_378 : f32 to vector<64x8xf32>
    %971 = arith.mulf %969, %970 : vector<64x8xf32>
    %cst_379 = arith.constant dense<0xFF800000> : vector<64xf32>
    %972 = vector.multi_reduction <maximumf>, %971, %cst_379 [1] : vector<64x8xf32> to vector<64xf32>
    %973 = vector.shape_cast %972 : vector<64xf32> to vector<64x1xf32>
    %974 = vector.broadcast %973 : vector<64x1xf32> to vector<64x8xf32>
    %975 = arith.subf %971, %974 : vector<64x8xf32>
    %976 = math.exp %975 : vector<64x8xf32>
    %cst_380 = arith.constant dense<0.000000e+00> : vector<64xf32>
    %977 = vector.multi_reduction <add>, %976, %cst_380 [1] : vector<64x8xf32> to vector<64xf32>
    %978 = vector.shape_cast %977 : vector<64xf32> to vector<64x1xf32>
    %979 = tpu.reciprocal %978 {approx = true} : vector<64x1xf32> -> vector<64x1xf32>
    %980 = vector.broadcast %979 : vector<64x1xf32> to vector<64x8xf32>
    %981 = arith.mulf %976, %980 : vector<64x8xf32>
    %cst_381 = arith.constant dense<0.000000e+00> : vector<64x4xf32>
    %982 = tpu.matmul %981, %968, %cst_381 {dimension_numbers = #tpu.dot_dimension_numbers<[1], [0], [0], [1], [0, 0, 1, 1], [], []>} : vector<64x8xf32>, vector<8x4xf32>, vector<64x4xf32> -> vector<64x4xf32>
    %983 = vector.extract_strided_slice %927 {offsets = [4, 0], sizes = [4, 32], strides = [1, 1]} : vector<16x32xf32> to vector<4x32xf32>
    %cst_382 = arith.constant dense<0.000000e+00> : vector<64x32xf32>
    %984 = tpu.matmul %982, %983, %cst_382 {dimension_numbers = #tpu.dot_dimension_numbers<[1], [0], [0], [1], [0, 0, 1, 1], [], []>} : vector<64x4xf32>, vector<4x32xf32>, vector<64x32xf32> -> vector<64x32xf32>
    %985 = arith.addf %965, %984 : vector<64x32xf32>
    %986 = vector.extract_strided_slice %932 {offsets = [0, 8], sizes = [64, 4], strides = [1, 1]} : vector<64x16xf32> to vector<64x4xf32>
    %987 = vector.extract_strided_slice %937 {offsets = [0, 8], sizes = [8, 4], strides = [1, 1]} : vector<8x16xf32> to vector<8x4xf32>
    %988 = vector.extract_strided_slice %942 {offsets = [0, 8], sizes = [8, 4], strides = [1, 1]} : vector<8x16xf32> to vector<8x4xf32>
    %cst_383 = arith.constant dense<0.000000e+00> : vector<64x8xf32>
    %989 = tpu.matmul %986, %987, %cst_383 {dimension_numbers = #tpu.dot_dimension_numbers<[1], [1], [0], [0], [0, 0, 1, 0], [], []>} : vector<64x4xf32>, vector<8x4xf32>, vector<64x8xf32> -> vector<64x8xf32>
    %cst_384 = arith.constant 5.000000e-01 : f32
    %990 = vector.broadcast %cst_384 : f32 to vector<64x8xf32>
    %991 = arith.mulf %989, %990 : vector<64x8xf32>
    %cst_385 = arith.constant dense<0xFF800000> : vector<64xf32>
    %992 = vector.multi_reduction <maximumf>, %991, %cst_385 [1] : vector<64x8xf32> to vector<64xf32>
    %993 = vector.shape_cast %992 : vector<64xf32> to vector<64x1xf32>
    %994 = vector.broadcast %993 : vector<64x1xf32> to vector<64x8xf32>
    %995 = arith.subf %991, %994 : vector<64x8xf32>
    %996 = math.exp %995 : vector<64x8xf32>
    %cst_386 = arith.constant dense<0.000000e+00> : vector<64xf32>
    %997 = vector.multi_reduction <add>, %996, %cst_386 [1] : vector<64x8xf32> to vector<64xf32>
    %998 = vector.shape_cast %997 : vector<64xf32> to vector<64x1xf32>
    %999 = tpu.reciprocal %998 {approx = true} : vector<64x1xf32> -> vector<64x1xf32>
    %1000 = vector.broadcast %999 : vector<64x1xf32> to vector<64x8xf32>
    %1001 = arith.mulf %996, %1000 : vector<64x8xf32>
    %cst_387 = arith.constant dense<0.000000e+00> : vector<64x4xf32>
    %1002 = tpu.matmul %1001, %988, %cst_387 {dimension_numbers = #tpu.dot_dimension_numbers<[1], [0], [0], [1], [0, 0, 1, 1], [], []>} : vector<64x8xf32>, vector<8x4xf32>, vector<64x4xf32> -> vector<64x4xf32>
    %1003 = vector.extract_strided_slice %927 {offsets = [8, 0], sizes = [4, 32], strides = [1, 1]} : vector<16x32xf32> to vector<4x32xf32>
    %cst_388 = arith.constant dense<0.000000e+00> : vector<64x32xf32>
    %1004 = tpu.matmul %1002, %1003, %cst_388 {dimension_numbers = #tpu.dot_dimension_numbers<[1], [0], [0], [1], [0, 0, 1, 1], [], []>} : vector<64x4xf32>, vector<4x32xf32>, vector<64x32xf32> -> vector<64x32xf32>
    %1005 = arith.addf %985, %1004 : vector<64x32xf32>
    %1006 = vector.extract_strided_slice %932 {offsets = [0, 12], sizes = [64, 4], strides = [1, 1]} : vector<64x16xf32> to vector<64x4xf32>
    %1007 = vector.extract_strided_slice %937 {offsets = [0, 12], sizes = [8, 4], strides = [1, 1]} : vector<8x16xf32> to vector<8x4xf32>
    %1008 = vector.extract_strided_slice %942 {offsets = [0, 12], sizes = [8, 4], strides = [1, 1]} : vector<8x16xf32> to vector<8x4xf32>
    %cst_389 = arith.constant dense<0.000000e+00> : vector<64x8xf32>
    %1009 = tpu.matmul %1006, %1007, %cst_389 {dimension_numbers = #tpu.dot_dimension_numbers<[1], [1], [0], [0], [0, 0, 1, 0], [], []>} : vector<64x4xf32>, vector<8x4xf32>, vector<64x8xf32> -> vector<64x8xf32>
    %cst_390 = arith.constant 5.000000e-01 : f32
    %1010 = vector.broadcast %cst_390 : f32 to vector<64x8xf32>
    %1011 = arith.mulf %1009, %1010 : vector<64x8xf32>
    %cst_391 = arith.constant dense<0xFF800000> : vector<64xf32>
    %1012 = vector.multi_reduction <maximumf>, %1011, %cst_391 [1] : vector<64x8xf32> to vector<64xf32>
    %1013 = vector.shape_cast %1012 : vector<64xf32> to vector<64x1xf32>
    %1014 = vector.broadcast %1013 : vector<64x1xf32> to vector<64x8xf32>
    %1015 = arith.subf %1011, %1014 : vector<64x8xf32>
    %1016 = math.exp %1015 : vector<64x8xf32>
    %cst_392 = arith.constant dense<0.000000e+00> : vector<64xf32>
    %1017 = vector.multi_reduction <add>, %1016, %cst_392 [1] : vector<64x8xf32> to vector<64xf32>
    %1018 = vector.shape_cast %1017 : vector<64xf32> to vector<64x1xf32>
    %1019 = tpu.reciprocal %1018 {approx = true} : vector<64x1xf32> -> vector<64x1xf32>
    %1020 = vector.broadcast %1019 : vector<64x1xf32> to vector<64x8xf32>
    %1021 = arith.mulf %1016, %1020 : vector<64x8xf32>
    %cst_393 = arith.constant dense<0.000000e+00> : vector<64x4xf32>
    %1022 = tpu.matmul %1021, %1008, %cst_393 {dimension_numbers = #tpu.dot_dimension_numbers<[1], [0], [0], [1], [0, 0, 1, 1], [], []>} : vector<64x8xf32>, vector<8x4xf32>, vector<64x4xf32> -> vector<64x4xf32>
    %1023 = vector.extract_strided_slice %927 {offsets = [12, 0], sizes = [4, 32], strides = [1, 1]} : vector<16x32xf32> to vector<4x32xf32>
    %cst_394 = arith.constant dense<0.000000e+00> : vector<64x32xf32>
    %1024 = tpu.matmul %1022, %1023, %cst_394 {dimension_numbers = #tpu.dot_dimension_numbers<[1], [0], [0], [1], [0, 0, 1, 1], [], []>} : vector<64x4xf32>, vector<4x32xf32>, vector<64x32xf32> -> vector<64x32xf32>
    %1025 = arith.addf %1005, %1024 : vector<64x32xf32>
    %1026 = arith.addf %455, %1025 : vector<64x32xf32>
    %c42 = arith.constant 42 : index
    %c0_395 = arith.constant 0 : index
    %1027 = vector.load %arg5[%c42, %c0_395] : memref<50x64xf32, #tpu.memory_space<vmem>>, vector<1x64xf32>
    %1028 = vector.extract_strided_slice %1027 {offsets = [0, 0], sizes = [1, 32], strides = [1, 1]} : vector<1x64xf32> to vector<1x32xf32>
    %c43 = arith.constant 43 : index
    %c0_396 = arith.constant 0 : index
    %1029 = vector.load %arg5[%c43, %c0_396] : memref<50x64xf32, #tpu.memory_space<vmem>>, vector<1x64xf32>
    %1030 = vector.extract_strided_slice %1029 {offsets = [0, 0], sizes = [1, 32], strides = [1, 1]} : vector<1x64xf32> to vector<1x32xf32>
    %cst_397 = arith.constant dense<0.000000e+00> : vector<64xf32>
    %1031 = vector.multi_reduction <add>, %1026, %cst_397 [1] : vector<64x32xf32> to vector<64xf32>
    %1032 = vector.shape_cast %1031 : vector<64xf32> to vector<64x1xf32>
    %cst_398 = arith.constant 3.200000e+01 : f32
    %1033 = vector.broadcast %cst_398 : f32 to vector<64x1xf32>
    %1034 = arith.divf %1032, %1033 : vector<64x1xf32>
    %1035 = vector.broadcast %1034 : vector<64x1xf32> to vector<64x32xf32>
    %1036 = arith.subf %1026, %1035 : vector<64x32xf32>
    %1037 = arith.mulf %1036, %1036 : vector<64x32xf32>
    %cst_399 = arith.constant dense<0.000000e+00> : vector<64xf32>
    %1038 = vector.multi_reduction <add>, %1037, %cst_399 [1] : vector<64x32xf32> to vector<64xf32>
    %1039 = vector.shape_cast %1038 : vector<64xf32> to vector<64x1xf32>
    %cst_400 = arith.constant 3.200000e+01 : f32
    %1040 = vector.broadcast %cst_400 : f32 to vector<64x1xf32>
    %1041 = arith.divf %1039, %1040 : vector<64x1xf32>
    %cst_401 = arith.constant 9.99999974E-6 : f32
    %1042 = vector.broadcast %cst_401 : f32 to vector<64x1xf32>
    %1043 = arith.addf %1041, %1042 : vector<64x1xf32>
    %1044 = math.rsqrt %1043 : vector<64x1xf32>
    %1045 = vector.broadcast %1044 : vector<64x1xf32> to vector<64x32xf32>
    %1046 = arith.mulf %1036, %1045 : vector<64x32xf32>
    %1047 = vector.broadcast %1028 : vector<1x32xf32> to vector<64x32xf32>
    %1048 = arith.mulf %1046, %1047 : vector<64x32xf32>
    %1049 = vector.broadcast %1030 : vector<1x32xf32> to vector<64x32xf32>
    %1050 = arith.addf %1048, %1049 : vector<64x32xf32>
    %c1_402 = arith.constant 1 : index
    %c0_403 = arith.constant 0 : index
    %c0_404 = arith.constant 0 : index
    %c0_405 = arith.constant 0 : index
    %1051 = vector.load %arg7[%c1_402, %c0_403, %c0_404, %c0_405] : memref<2x1x64x32xf32, #tpu.memory_space<vmem>>, vector<1x1x64x32xf32>
    %1052 = vector.shape_cast %1051 : vector<1x1x64x32xf32> to vector<64x32xf32>
    %1053 = vector.shape_cast %1050 : vector<64x32xf32> to vector<1x1x64x32xf32>
    tpu.vector_store %arg7[%c1_402, %c0_403, %c0_404, %c0_405], %1053 {strides = array<i32>} : memref<2x1x64x32xf32, #tpu.memory_space<vmem>>, vector<1x1x64x32xf32>,
    %1054 = arith.addf %913, %1 : vector<8x32xf32>
    %1055 = arith.addf %1050, %5 : vector<64x32xf32>
    %c28_406 = arith.constant 28 : index
    %c0_407 = arith.constant 0 : index
    %c0_408 = arith.constant 0 : index
    %1056 = vector.load %arg4[%c28_406, %c0_407, %c0_408] : memref<32x64x64xf32, #tpu.memory_space<vmem>>, vector<1x64x64xf32>
    %1057 = vector.shape_cast %1056 : vector<1x64x64xf32> to vector<64x64xf32>
    %1058 = vector.extract_strided_slice %1057 {offsets = [0, 0], sizes = [32, 16], strides = [1, 1]} : vector<64x64xf32> to vector<32x16xf32>
    %c29_409 = arith.constant 29 : index
    %c0_410 = arith.constant 0 : index
    %c0_411 = arith.constant 0 : index
    %1059 = vector.load %arg4[%c29_409, %c0_410, %c0_411] : memref<32x64x64xf32, #tpu.memory_space<vmem>>, vector<1x64x64xf32>
    %1060 = vector.shape_cast %1059 : vector<1x64x64xf32> to vector<64x64xf32>
    %1061 = vector.extract_strided_slice %1060 {offsets = [0, 0], sizes = [32, 16], strides = [1, 1]} : vector<64x64xf32> to vector<32x16xf32>
    %c30_412 = arith.constant 30 : index
    %c0_413 = arith.constant 0 : index
    %c0_414 = arith.constant 0 : index
    %1062 = vector.load %arg4[%c30_412, %c0_413, %c0_414] : memref<32x64x64xf32, #tpu.memory_space<vmem>>, vector<1x64x64xf32>
    %1063 = vector.shape_cast %1062 : vector<1x64x64xf32> to vector<64x64xf32>
    %1064 = vector.extract_strided_slice %1063 {offsets = [0, 0], sizes = [32, 16], strides = [1, 1]} : vector<64x64xf32> to vector<32x16xf32>
    %c31_415 = arith.constant 31 : index
    %c0_416 = arith.constant 0 : index
    %c0_417 = arith.constant 0 : index
    %1065 = vector.load %arg4[%c31_415, %c0_416, %c0_417] : memref<32x64x64xf32, #tpu.memory_space<vmem>>, vector<1x64x64xf32>
    %1066 = vector.shape_cast %1065 : vector<1x64x64xf32> to vector<64x64xf32>
    %1067 = vector.extract_strided_slice %1066 {offsets = [0, 0], sizes = [16, 32], strides = [1, 1]} : vector<64x64xf32> to vector<16x32xf32>
    %cst_418 = arith.constant dense<0.000000e+00> : vector<8x16xf32>
    %1068 = tpu.matmul %1054, %1058, %cst_418 {dimension_numbers = #tpu.dot_dimension_numbers<[1], [0], [0], [1], [0, 0, 1, 1], [], []>} : vector<8x32xf32>, vector<32x16xf32>, vector<8x16xf32> -> vector<8x16xf32>
    %c44_419 = arith.constant 44 : index
    %c0_420 = arith.constant 0 : index
    %1069 = vector.load %arg5[%c44_419, %c0_420] : memref<50x64xf32, #tpu.memory_space<vmem>>, vector<1x64xf32>
    %1070 = vector.extract_strided_slice %1069 {offsets = [0, 0], sizes = [1, 16], strides = [1, 1]} : vector<1x64xf32> to vector<1x16xf32>
    %1071 = vector.broadcast %1070 : vector<1x16xf32> to vector<8x16xf32>
    %1072 = arith.addf %1068, %1071 : vector<8x16xf32>
    %cst_421 = arith.constant dense<0.000000e+00> : vector<64x16xf32>
    %1073 = tpu.matmul %1055, %1061, %cst_421 {dimension_numbers = #tpu.dot_dimension_numbers<[1], [0], [0], [1], [0, 0, 1, 1], [], []>} : vector<64x32xf32>, vector<32x16xf32>, vector<64x16xf32> -> vector<64x16xf32>
    %c45_422 = arith.constant 45 : index
    %c0_423 = arith.constant 0 : index
    %1074 = vector.load %arg5[%c45_422, %c0_423] : memref<50x64xf32, #tpu.memory_space<vmem>>, vector<1x64xf32>
    %1075 = vector.extract_strided_slice %1074 {offsets = [0, 0], sizes = [1, 16], strides = [1, 1]} : vector<1x64xf32> to vector<1x16xf32>
    %1076 = vector.broadcast %1075 : vector<1x16xf32> to vector<64x16xf32>
    %1077 = arith.addf %1073, %1076 : vector<64x16xf32>
    %cst_424 = arith.constant dense<0.000000e+00> : vector<64x16xf32>
    %1078 = tpu.matmul %1050, %1064, %cst_424 {dimension_numbers = #tpu.dot_dimension_numbers<[1], [0], [0], [1], [0, 0, 1, 1], [], []>} : vector<64x32xf32>, vector<32x16xf32>, vector<64x16xf32> -> vector<64x16xf32>
    %c46_425 = arith.constant 46 : index
    %c0_426 = arith.constant 0 : index
    %1079 = vector.load %arg5[%c46_425, %c0_426] : memref<50x64xf32, #tpu.memory_space<vmem>>, vector<1x64xf32>
    %1080 = vector.extract_strided_slice %1079 {offsets = [0, 0], sizes = [1, 16], strides = [1, 1]} : vector<1x64xf32> to vector<1x16xf32>
    %1081 = vector.broadcast %1080 : vector<1x16xf32> to vector<64x16xf32>
    %1082 = arith.addf %1078, %1081 : vector<64x16xf32>
    %c47_427 = arith.constant 47 : index
    %c0_428 = arith.constant 0 : index
    %1083 = vector.load %arg5[%c47_427, %c0_428] : memref<50x64xf32, #tpu.memory_space<vmem>>, vector<1x64xf32>
    %1084 = vector.extract_strided_slice %1083 {offsets = [0, 0], sizes = [1, 32], strides = [1, 1]} : vector<1x64xf32> to vector<1x32xf32>
    %1085 = vector.extract_strided_slice %1072 {offsets = [0, 0], sizes = [8, 4], strides = [1, 1]} : vector<8x16xf32> to vector<8x4xf32>
    %1086 = vector.extract_strided_slice %1077 {offsets = [0, 0], sizes = [64, 4], strides = [1, 1]} : vector<64x16xf32> to vector<64x4xf32>
    %1087 = vector.extract_strided_slice %1082 {offsets = [0, 0], sizes = [64, 4], strides = [1, 1]} : vector<64x16xf32> to vector<64x4xf32>
    %cst_429 = arith.constant dense<0.000000e+00> : vector<8x64xf32>
    %1088 = tpu.matmul %1085, %1086, %cst_429 {dimension_numbers = #tpu.dot_dimension_numbers<[1], [1], [0], [0], [0, 0, 1, 0], [], []>} : vector<8x4xf32>, vector<64x4xf32>, vector<8x64xf32> -> vector<8x64xf32>
    %cst_430 = arith.constant 5.000000e-01 : f32
    %1089 = vector.broadcast %cst_430 : f32 to vector<8x64xf32>
    %1090 = arith.mulf %1088, %1089 : vector<8x64xf32>
    %cst_431 = arith.constant dense<0xFF800000> : vector<8xf32>
    %1091 = vector.multi_reduction <maximumf>, %1090, %cst_431 [1] : vector<8x64xf32> to vector<8xf32>
    %1092 = vector.shape_cast %1091 : vector<8xf32> to vector<8x1xf32>
    %1093 = vector.broadcast %1092 : vector<8x1xf32> to vector<8x64xf32>
    %1094 = arith.subf %1090, %1093 : vector<8x64xf32>
    %1095 = math.exp %1094 : vector<8x64xf32>
    %cst_432 = arith.constant dense<0.000000e+00> : vector<8xf32>
    %1096 = vector.multi_reduction <add>, %1095, %cst_432 [1] : vector<8x64xf32> to vector<8xf32>
    %1097 = vector.shape_cast %1096 : vector<8xf32> to vector<8x1xf32>
    %1098 = tpu.reciprocal %1097 {approx = true} : vector<8x1xf32> -> vector<8x1xf32>
    %1099 = vector.broadcast %1098 : vector<8x1xf32> to vector<8x64xf32>
    %1100 = arith.mulf %1095, %1099 : vector<8x64xf32>
    %cst_433 = arith.constant dense<0.000000e+00> : vector<8x4xf32>
    %1101 = tpu.matmul %1100, %1087, %cst_433 {dimension_numbers = #tpu.dot_dimension_numbers<[1], [0], [0], [1], [0, 0, 1, 1], [], []>} : vector<8x64xf32>, vector<64x4xf32>, vector<8x4xf32> -> vector<8x4xf32>
    %1102 = vector.extract_strided_slice %1067 {offsets = [0, 0], sizes = [4, 32], strides = [1, 1]} : vector<16x32xf32> to vector<4x32xf32>
    %cst_434 = arith.constant dense<0.000000e+00> : vector<8x32xf32>
    %1103 = tpu.matmul %1101, %1102, %cst_434 {dimension_numbers = #tpu.dot_dimension_numbers<[1], [0], [0], [1], [0, 0, 1, 1], [], []>} : vector<8x4xf32>, vector<4x32xf32>, vector<8x32xf32> -> vector<8x32xf32>
    %1104 = vector.broadcast %1084 : vector<1x32xf32> to vector<8x32xf32>
    %1105 = arith.addf %1104, %1103 : vector<8x32xf32>
    %1106 = vector.extract_strided_slice %1072 {offsets = [0, 4], sizes = [8, 4], strides = [1, 1]} : vector<8x16xf32> to vector<8x4xf32>
    %1107 = vector.extract_strided_slice %1077 {offsets = [0, 4], sizes = [64, 4], strides = [1, 1]} : vector<64x16xf32> to vector<64x4xf32>
    %1108 = vector.extract_strided_slice %1082 {offsets = [0, 4], sizes = [64, 4], strides = [1, 1]} : vector<64x16xf32> to vector<64x4xf32>
    %cst_435 = arith.constant dense<0.000000e+00> : vector<8x64xf32>
    %1109 = tpu.matmul %1106, %1107, %cst_435 {dimension_numbers = #tpu.dot_dimension_numbers<[1], [1], [0], [0], [0, 0, 1, 0], [], []>} : vector<8x4xf32>, vector<64x4xf32>, vector<8x64xf32> -> vector<8x64xf32>
    %cst_436 = arith.constant 5.000000e-01 : f32
    %1110 = vector.broadcast %cst_436 : f32 to vector<8x64xf32>
    %1111 = arith.mulf %1109, %1110 : vector<8x64xf32>
    %cst_437 = arith.constant dense<0xFF800000> : vector<8xf32>
    %1112 = vector.multi_reduction <maximumf>, %1111, %cst_437 [1] : vector<8x64xf32> to vector<8xf32>
    %1113 = vector.shape_cast %1112 : vector<8xf32> to vector<8x1xf32>
    %1114 = vector.broadcast %1113 : vector<8x1xf32> to vector<8x64xf32>
    %1115 = arith.subf %1111, %1114 : vector<8x64xf32>
    %1116 = math.exp %1115 : vector<8x64xf32>
    %cst_438 = arith.constant dense<0.000000e+00> : vector<8xf32>
    %1117 = vector.multi_reduction <add>, %1116, %cst_438 [1] : vector<8x64xf32> to vector<8xf32>
    %1118 = vector.shape_cast %1117 : vector<8xf32> to vector<8x1xf32>
    %1119 = tpu.reciprocal %1118 {approx = true} : vector<8x1xf32> -> vector<8x1xf32>
    %1120 = vector.broadcast %1119 : vector<8x1xf32> to vector<8x64xf32>
    %1121 = arith.mulf %1116, %1120 : vector<8x64xf32>
    %cst_439 = arith.constant dense<0.000000e+00> : vector<8x4xf32>
    %1122 = tpu.matmul %1121, %1108, %cst_439 {dimension_numbers = #tpu.dot_dimension_numbers<[1], [0], [0], [1], [0, 0, 1, 1], [], []>} : vector<8x64xf32>, vector<64x4xf32>, vector<8x4xf32> -> vector<8x4xf32>
    %1123 = vector.extract_strided_slice %1067 {offsets = [4, 0], sizes = [4, 32], strides = [1, 1]} : vector<16x32xf32> to vector<4x32xf32>
    %cst_440 = arith.constant dense<0.000000e+00> : vector<8x32xf32>
    %1124 = tpu.matmul %1122, %1123, %cst_440 {dimension_numbers = #tpu.dot_dimension_numbers<[1], [0], [0], [1], [0, 0, 1, 1], [], []>} : vector<8x4xf32>, vector<4x32xf32>, vector<8x32xf32> -> vector<8x32xf32>
    %1125 = arith.addf %1105, %1124 : vector<8x32xf32>
    %1126 = vector.extract_strided_slice %1072 {offsets = [0, 8], sizes = [8, 4], strides = [1, 1]} : vector<8x16xf32> to vector<8x4xf32>
    %1127 = vector.extract_strided_slice %1077 {offsets = [0, 8], sizes = [64, 4], strides = [1, 1]} : vector<64x16xf32> to vector<64x4xf32>
    %1128 = vector.extract_strided_slice %1082 {offsets = [0, 8], sizes = [64, 4], strides = [1, 1]} : vector<64x16xf32> to vector<64x4xf32>
    %cst_441 = arith.constant dense<0.000000e+00> : vector<8x64xf32>
    %1129 = tpu.matmul %1126, %1127, %cst_441 {dimension_numbers = #tpu.dot_dimension_numbers<[1], [1], [0], [0], [0, 0, 1, 0], [], []>} : vector<8x4xf32>, vector<64x4xf32>, vector<8x64xf32> -> vector<8x64xf32>
    %cst_442 = arith.constant 5.000000e-01 : f32
    %1130 = vector.broadcast %cst_442 : f32 to vector<8x64xf32>
    %1131 = arith.mulf %1129, %1130 : vector<8x64xf32>
    %cst_443 = arith.constant dense<0xFF800000> : vector<8xf32>
    %1132 = vector.multi_reduction <maximumf>, %1131, %cst_443 [1] : vector<8x64xf32> to vector<8xf32>
    %1133 = vector.shape_cast %1132 : vector<8xf32> to vector<8x1xf32>
    %1134 = vector.broadcast %1133 : vector<8x1xf32> to vector<8x64xf32>
    %1135 = arith.subf %1131, %1134 : vector<8x64xf32>
    %1136 = math.exp %1135 : vector<8x64xf32>
    %cst_444 = arith.constant dense<0.000000e+00> : vector<8xf32>
    %1137 = vector.multi_reduction <add>, %1136, %cst_444 [1] : vector<8x64xf32> to vector<8xf32>
    %1138 = vector.shape_cast %1137 : vector<8xf32> to vector<8x1xf32>
    %1139 = tpu.reciprocal %1138 {approx = true} : vector<8x1xf32> -> vector<8x1xf32>
    %1140 = vector.broadcast %1139 : vector<8x1xf32> to vector<8x64xf32>
    %1141 = arith.mulf %1136, %1140 : vector<8x64xf32>
    %cst_445 = arith.constant dense<0.000000e+00> : vector<8x4xf32>
    %1142 = tpu.matmul %1141, %1128, %cst_445 {dimension_numbers = #tpu.dot_dimension_numbers<[1], [0], [0], [1], [0, 0, 1, 1], [], []>} : vector<8x64xf32>, vector<64x4xf32>, vector<8x4xf32> -> vector<8x4xf32>
    %1143 = vector.extract_strided_slice %1067 {offsets = [8, 0], sizes = [4, 32], strides = [1, 1]} : vector<16x32xf32> to vector<4x32xf32>
    %cst_446 = arith.constant dense<0.000000e+00> : vector<8x32xf32>
    %1144 = tpu.matmul %1142, %1143, %cst_446 {dimension_numbers = #tpu.dot_dimension_numbers<[1], [0], [0], [1], [0, 0, 1, 1], [], []>} : vector<8x4xf32>, vector<4x32xf32>, vector<8x32xf32> -> vector<8x32xf32>
    %1145 = arith.addf %1125, %1144 : vector<8x32xf32>
    %1146 = vector.extract_strided_slice %1072 {offsets = [0, 12], sizes = [8, 4], strides = [1, 1]} : vector<8x16xf32> to vector<8x4xf32>
    %1147 = vector.extract_strided_slice %1077 {offsets = [0, 12], sizes = [64, 4], strides = [1, 1]} : vector<64x16xf32> to vector<64x4xf32>
    %1148 = vector.extract_strided_slice %1082 {offsets = [0, 12], sizes = [64, 4], strides = [1, 1]} : vector<64x16xf32> to vector<64x4xf32>
    %cst_447 = arith.constant dense<0.000000e+00> : vector<8x64xf32>
    %1149 = tpu.matmul %1146, %1147, %cst_447 {dimension_numbers = #tpu.dot_dimension_numbers<[1], [1], [0], [0], [0, 0, 1, 0], [], []>} : vector<8x4xf32>, vector<64x4xf32>, vector<8x64xf32> -> vector<8x64xf32>
    %cst_448 = arith.constant 5.000000e-01 : f32
    %1150 = vector.broadcast %cst_448 : f32 to vector<8x64xf32>
    %1151 = arith.mulf %1149, %1150 : vector<8x64xf32>
    %cst_449 = arith.constant dense<0xFF800000> : vector<8xf32>
    %1152 = vector.multi_reduction <maximumf>, %1151, %cst_449 [1] : vector<8x64xf32> to vector<8xf32>
    %1153 = vector.shape_cast %1152 : vector<8xf32> to vector<8x1xf32>
    %1154 = vector.broadcast %1153 : vector<8x1xf32> to vector<8x64xf32>
    %1155 = arith.subf %1151, %1154 : vector<8x64xf32>
    %1156 = math.exp %1155 : vector<8x64xf32>
    %cst_450 = arith.constant dense<0.000000e+00> : vector<8xf32>
    %1157 = vector.multi_reduction <add>, %1156, %cst_450 [1] : vector<8x64xf32> to vector<8xf32>
    %1158 = vector.shape_cast %1157 : vector<8xf32> to vector<8x1xf32>
    %1159 = tpu.reciprocal %1158 {approx = true} : vector<8x1xf32> -> vector<8x1xf32>
    %1160 = vector.broadcast %1159 : vector<8x1xf32> to vector<8x64xf32>
    %1161 = arith.mulf %1156, %1160 : vector<8x64xf32>
    %cst_451 = arith.constant dense<0.000000e+00> : vector<8x4xf32>
    %1162 = tpu.matmul %1161, %1148, %cst_451 {dimension_numbers = #tpu.dot_dimension_numbers<[1], [0], [0], [1], [0, 0, 1, 1], [], []>} : vector<8x64xf32>, vector<64x4xf32>, vector<8x4xf32> -> vector<8x4xf32>
    %1163 = vector.extract_strided_slice %1067 {offsets = [12, 0], sizes = [4, 32], strides = [1, 1]} : vector<16x32xf32> to vector<4x32xf32>
    %cst_452 = arith.constant dense<0.000000e+00> : vector<8x32xf32>
    %1164 = tpu.matmul %1162, %1163, %cst_452 {dimension_numbers = #tpu.dot_dimension_numbers<[1], [0], [0], [1], [0, 0, 1, 1], [], []>} : vector<8x4xf32>, vector<4x32xf32>, vector<8x32xf32> -> vector<8x32xf32>
    %1165 = arith.addf %1145, %1164 : vector<8x32xf32>
    %1166 = arith.addf %913, %1165 : vector<8x32xf32>
    %c48_453 = arith.constant 48 : index
    %c0_454 = arith.constant 0 : index
    %1167 = vector.load %arg5[%c48_453, %c0_454] : memref<50x64xf32, #tpu.memory_space<vmem>>, vector<1x64xf32>
    %1168 = vector.extract_strided_slice %1167 {offsets = [0, 0], sizes = [1, 32], strides = [1, 1]} : vector<1x64xf32> to vector<1x32xf32>
    %c49_455 = arith.constant 49 : index
    %c0_456 = arith.constant 0 : index
    %1169 = vector.load %arg5[%c49_455, %c0_456] : memref<50x64xf32, #tpu.memory_space<vmem>>, vector<1x64xf32>
    %1170 = vector.extract_strided_slice %1169 {offsets = [0, 0], sizes = [1, 32], strides = [1, 1]} : vector<1x64xf32> to vector<1x32xf32>
    %cst_457 = arith.constant dense<0.000000e+00> : vector<8xf32>
    %1171 = vector.multi_reduction <add>, %1166, %cst_457 [1] : vector<8x32xf32> to vector<8xf32>
    %1172 = vector.shape_cast %1171 : vector<8xf32> to vector<8x1xf32>
    %cst_458 = arith.constant 3.200000e+01 : f32
    %1173 = vector.broadcast %cst_458 : f32 to vector<8x1xf32>
    %1174 = arith.divf %1172, %1173 : vector<8x1xf32>
    %1175 = vector.broadcast %1174 : vector<8x1xf32> to vector<8x32xf32>
    %1176 = arith.subf %1166, %1175 : vector<8x32xf32>
    %1177 = arith.mulf %1176, %1176 : vector<8x32xf32>
    %cst_459 = arith.constant dense<0.000000e+00> : vector<8xf32>
    %1178 = vector.multi_reduction <add>, %1177, %cst_459 [1] : vector<8x32xf32> to vector<8xf32>
    %1179 = vector.shape_cast %1178 : vector<8xf32> to vector<8x1xf32>
    %cst_460 = arith.constant 3.200000e+01 : f32
    %1180 = vector.broadcast %cst_460 : f32 to vector<8x1xf32>
    %1181 = arith.divf %1179, %1180 : vector<8x1xf32>
    %cst_461 = arith.constant 9.99999974E-6 : f32
    %1182 = vector.broadcast %cst_461 : f32 to vector<8x1xf32>
    %1183 = arith.addf %1181, %1182 : vector<8x1xf32>
    %1184 = math.rsqrt %1183 : vector<8x1xf32>
    %1185 = vector.broadcast %1184 : vector<8x1xf32> to vector<8x32xf32>
    %1186 = arith.mulf %1176, %1185 : vector<8x32xf32>
    %1187 = vector.broadcast %1168 : vector<1x32xf32> to vector<8x32xf32>
    %1188 = arith.mulf %1186, %1187 : vector<8x32xf32>
    %1189 = vector.broadcast %1170 : vector<1x32xf32> to vector<8x32xf32>
    %1190 = arith.addf %1188, %1189 : vector<8x32xf32>
    %c1_462 = arith.constant 1 : index
    %c0_463 = arith.constant 0 : index
    %c0_464 = arith.constant 0 : index
    %c0_465 = arith.constant 0 : index
    %1191 = vector.load %arg6[%c1_462, %c0_463, %c0_464, %c0_465] : memref<2x1x8x32xf32, #tpu.memory_space<vmem>>, vector<1x1x8x32xf32>
    %1192 = vector.shape_cast %1191 : vector<1x1x8x32xf32> to vector<8x32xf32>
    %1193 = vector.shape_cast %1190 : vector<8x32xf32> to vector<1x1x8x32xf32>
    tpu.vector_store %arg6[%c1_462, %c0_463, %c0_464, %c0_465], %1193 {strides = array<i32>} : memref<2x1x8x32xf32, #tpu.memory_space<vmem>>, vector<1x1x8x32xf32>,
    return
  }
  func.func @transform_0(%arg0: i32) -> (i32, i32, i32) {
    %c0_i32 = arith.constant 0 : i32
    %c0_i32_0 = arith.constant 0 : i32
    %c0_i32_1 = arith.constant 0 : i32
    return %arg0, %c0_i32, %c0_i32_0 : i32, i32, i32
  }
  func.func @transform_1(%arg0: i32) -> (i32, i32, i32) {
    %c0_i32 = arith.constant 0 : i32
    %c0_i32_0 = arith.constant 0 : i32
    %c0_i32_1 = arith.constant 0 : i32
    return %arg0, %c0_i32, %c0_i32_0 : i32, i32, i32
  }
  func.func @transform_2(%arg0: i32) -> (i32, i32, i32) {
    %c0_i32 = arith.constant 0 : i32
    %c0_i32_0 = arith.constant 0 : i32
    %c0_i32_1 = arith.constant 0 : i32
    return %arg0, %c0_i32, %c0_i32_0 : i32, i32, i32
  }
  func.func @transform_3(%arg0: i32) -> (i32, i32, i32) {
    %c0_i32 = arith.constant 0 : i32
    %c0_i32_0 = arith.constant 0 : i32
    %c0_i32_1 = arith.constant 0 : i32
    %c0_i32_2 = arith.constant 0 : i32
    return %c0_i32, %c0_i32_0, %c0_i32_1 : i32, i32, i32
  }
  func.func @transform_4(%arg0: i32) -> (i32, i32) {
    %c0_i32 = arith.constant 0 : i32
    %c0_i32_0 = arith.constant 0 : i32
    %c0_i32_1 = arith.constant 0 : i32
    return %c0_i32, %c0_i32_0 : i32, i32
  }
  func.func @transform_5(%arg0: i32) -> (i32, i32, i32, i32) {
    %c0_i32 = arith.constant 0 : i32
    %c0_i32_0 = arith.constant 0 : i32
    %c0_i32_1 = arith.constant 0 : i32
    %c0_i32_2 = arith.constant 0 : i32
    return %c0_i32, %arg0, %c0_i32_0, %c0_i32_1 : i32, i32, i32, i32
  }
  func.func @transform_6(%arg0: i32) -> (i32, i32, i32, i32) {
    %c0_i32 = arith.constant 0 : i32
    %c0_i32_0 = arith.constant 0 : i32
    %c0_i32_1 = arith.constant 0 : i32
    %c0_i32_2 = arith.constant 0 : i32
    return %c0_i32, %arg0, %c0_i32_0, %c0_i32_1 : i32, i32, i32, i32
  }
}

</mosaic_0001>

<bundles_post_ra>
// kernel: dn_two_way_transformer_forward.1
= control target key start
LH: loop header
LB: loop body
LE: loop exit
PB: predicated region body
PF: predicated region fallthrough
CT: control target
= control target key end

     0   :  { %s19304_s21 = smov 0   ;;  %s19306_s22 = smov 0   ;;  %s22565_s0 = inlined_call_operand.vmem [shape: f32[2,8,32], index: 0, kind: input, shape index: {}]   ;;  %s22566_s1 = inlined_call_operand.vmem [shape: f32[2,64,32], index: 1, kind: input, shape index: {}]   ;;  %s22567_s2 = inlined_call_operand.vmem [shape: f32[2,64,32], index: 2, kind: input, shape index: {}]   ;;  %s22568_s3 = inlined_call_operand.vmem [shape: f32[32,64,64], index: 3, kind: input, shape index: {}]   ;;  %s22569_s4 = inlined_call_operand.vmem [shape: f32[50,64], index: 4, kind: input, shape index: {}]   ;;  %s22570_s5 = inlined_call_operand.vmem [shape: f32[2,2,8,32], index: 5, kind: output, shape index: {0}]   ;;  %s22571_s6 = inlined_call_operand.vmem [shape: f32[2,2,64,32], index: 6, kind: output, shape index: {1}]  }
   0x1   :  { %s19308_s23 = smov 0  }
   0x2 LB: > { %s19317_s24 = sadd.s32 4294967295, %s19259_s23   ;;  %s19319_s25 = sadd.s32 1, %s19259_s23   ;;  %s19259_s23 = sphi %s19308_s23, %s22577_s23   ;;  %s19255_s22 = sphi %s19306_s22, %s22576_s22   ;;  %s19251_s21 = sphi %s19304_s21, %s22575_s21  }
   0x3   : > { %s141_s26 = ssub.s32 %s19259_s23, %s19319_s25  ;;  %s144_s27 = sadd.s32 1, %s19255_s22 }
   0x4   : > { %p142_p0 = scmp.eq.s32.totalorder %s141_s26, 0  ;;  %p154_p1 = scmp.ne.s32.totalorder %s19255_s22, %s19251_s21 }
   0x5   : > { %p155_p2 = scmp.eq.s32.totalorder %s19317_s24, 1  ;;  %p14471_p3 = scmp.ge.s32.totalorder %s19259_s23, 1 }
   0x6   : > { %s19327_s28 = scalar_select %p142_p0, %s19255_s22, %s144_s27  }
   0x7   : > { %p19329_p4 = por %p155_p2, %p154_p1  ;;  %p234_p5 = scmp.lt.s32.totalorder %s19259_s23, 3 }
   0x9   : > { %p235_p6 = pnand %p14471_p3, %p234_p5 }
   0xa   : > { %v14479_v0 = vld [vmem:[%s22568_s3 + $0x40] sm:$0xff] (!%p235_p6)  ;;  %v14480_v1 = vld [vmem:[%s22568_s3 + $0x48] sm:$0xff] (!%p235_p6)  ;;  %v19261_v3 = vmov (!%p235_p6), 0.0|0.0   ;;  %v14481_v6 = vld [vmem:[%s22568_s3 + $0x50] sm:$0xff] (!%p235_p6)  ;;  %p276_p7 = scmp.lt.s32.totalorder (!%p235_p6), %s19317_s24, 1  ;;  %vm19262_vm0 = vmmov (!%p235_p6), 0  }
   0xb   : > { %238 = sbr.rel (%p235_p6) target bundleno = 26676 (0x6834), region = 40  ;;  %v307_v2 = vld [vmem:[%s22568_s3] sm:$0xff] (!%p235_p6)  ;;  %17586 = vmatprep.subr.bf16.mxu1 (!%p235_p6), %v19261_v3  ;;  %v17587_v4 = vpack.c.bf16 (!%p235_p6), %v14480_v1, %v14479_v0  ;;  %17580 = vmatprep.subr.bf16.mxu0 (!%p235_p6), %v19261_v3  ;;  %v308_v5 = vld [vmem:[%s22568_s3 + $0x8] sm:$0xff] (!%p235_p6)  ;;  %v14482_v7 = vld [vmem:[%s22568_s3 + $0x58] sm:$0xff] (!%p235_p6)  ;;  %v19263_v11 = vmov (!%p235_p6), 0.0   ;;  %vm331_vm1 = vcmask (!%p235_p6), 261120  }
   0xc   : > { %v17581_v8 = vpack.c.bf16 (!%p235_p6), %v308_v5, %v307_v2  ;;  %v309_v9 = vld [vmem:[%s22568_s3 + $0x10] sm:$0xff] (!%p235_p6)  ;;  %v310_v10 = vld [vmem:[%s22568_s3 + $0x18] sm:$0xff] (!%p235_p6)  ;;  %16041 = vmatprep.mubr.msk.f32.mxu1 (!%p235_p6), %vm19262_vm0, %v19263_v11  ;;  %16030 = vmatprep.mubr.msk.f32.mxu0 (!%p235_p6), %vm19262_vm0, %v19263_v11  ;;  %v17590_v12 = vpack.c.bf16 (!%p235_p6), %v14482_v7, %v14481_v6  ;;  %v14483_v14 = vld [vmem:[%s22568_s3 + $0x80] sm:$0xff] (!%p235_p6)  ;;  %vm556_vm2 = vcmask (!%p235_p6), 64512   ;;  %s19264_s23 = smov (!%p235_p6), 120   ;;  %s19265_s7 = smov (!%p235_p6), 112  }
   0xd   : > { %17588 = vmatpush3.bf16.msra.mxu1 (!%p235_p6), %v17587_v4  ;;  %v17584_v13 = vpack.c.bf16 (!%p235_p6), %v310_v10, %v309_v9  ;;  %v14484_v15 = vld [vmem:[%s22568_s3 + $0x88] sm:$0xff] (!%p235_p6)  ;;  %v14485_v18 = vld [vmem:[%s22568_s3 + $0x90] sm:$0xff] (!%p235_p6)  ;;  %v14486_v19 = vld [vmem:[%s22568_s3 + $0x98] sm:$0xff] (!%p235_p6)  ;;  %s19266_s10 = smov (!%p235_p6), 104   ;;  %vm1917_vm3 = vcmask (!%p235_p6), 31744   ;;  %s19267_s19 = smov (!%p235_p6), 124  }
   0xe   : > { %17582 = vmatpush3.bf16.msra.mxu0 (!%p235_p6), %v17581_v8  ;;  %17589 = vmatprep.subr.bf16.mxu1 (!%p235_p6), %v19261_v3  ;;  %v17593_v17 = vpack.c.bf16 (!%p235_p6), %v14484_v15, %v14483_v14  ;;  %v17596_v20 = vpack.c.bf16 (!%p235_p6), %v14486_v19, %v14485_v18  ;;  %v14493_v21 = vld [vmem:[%s22569_s4 + $0x1] ss:$0 sm:$0xff] (!%p235_p6)  ;;  %v14491_v22 = vld [vmem:[%s22569_s4] ss:$0 sm:$0xff] (!%p235_p6)  ;;  %v14495_v29 = vld [vmem:[%s22569_s4 + $0x2] ss:$0 sm:$0xff] (!%p235_p6) }
   0xf   : > { %17583 = vmatprep.subr.bf16.mxu0 (!%p235_p6), %v19261_v3  ;;  %v14487_v49 = vld [vmem:[%s22568_s3 + $0xc0] sm:$0xff] (!%p235_p6)  ;;  %v14488_v19 = vld [vmem:[%s22568_s3 + $0xc8] sm:$0xff] (!%p235_p6)  ;;  %vm19636_vm4 = vmpackc.low (!%p235_p6), %vm1917_vm3, %vm1917_vm3  ;;  %vm2016_vm5 = vcmask (!%p235_p6), 523264   ;;  %vm2104_vm6 = vcmask (!%p235_p6), 1043456   ;;  %s19268_s17 = smov (!%p235_p6), 116  }
  0x11   : > { %17591 = vmatpush3.bf16.msra.mxu1 (!%p235_p6), %v17590_v12 }
  0x12   : > { %s19365_s26 = scalar_select %p276_p7, %s19317_s24, 1  ;;  %17585 = vmatpush3.bf16.msra.mxu0 %v17584_v13  ;;  %16060 = vmatprep.subr.mxu1 %v19263_v11 }
  0x13   : > { %17592 = vmatprep.subr.bf16.mxu0 %v19261_v3 }
  0x14   : > { %s14474_s27 = sshll.u32 %s19365_s26, 3  ;;  %s15217_s20 = sshll.u32 %s19365_s26, 6 }
  0x15   : > { %s19379_s12 = scalar_lea.vmem %s22565_s0, %s14474_s27  ;;  %s19519_s8 = scalar_lea.vmem %s22566_s1, %s15217_s20 }
  0x16   : > { %v19382_v16 = vld [vmem:[%s19379_s12] sm:$0xff]  ;;  %s19524_s13 = scalar_lea.vmem %s22567_s2, %s15217_s20  ;;  %s267_s27 = sand.u32 1, %s19251_s21  }
  0x17   : > { %16042 = vmatmul.mubr.msk.f32.vlgmr.msra.gmra.mrb[0].mxu1 %vm331_vm1, %v19382_v16  ;;  %16031 = vmatmul.mubr.msk.f32.vlgmr.msra.gmra.mrb[0].mxu0 %vm331_vm1, %v19382_v16  ;;  %s14473_s11 = sshll.u32 %s267_s27, 7  ;;  %s15212_s21 = sshll.u32 (%p19329_p4), %s19317_s24, 3 }
  0x18   : > { %16062 = vmatprep.mubr.msk.f32.mxu1 %vm19262_vm0, %v19263_v11  ;;  %17594 = vmatpush3.bf16.msra.mxu0 %v17593_v17  ;;  %s20666_s26 = scalar_lea.vmem [#allocation3], %s14473_s11 }
  0x19   : > { %16052 = vmatprep.mubr.msk.f32.mxu0 %vm19262_vm0, %v19263_v11  ;;  %17595 = vmatprep.subr.bf16.mxu0 %v19261_v3 }
  0x1c   : > { %17597 = vmatpush3.bf16.msra.mxu0 %v17596_v20 }
  0x1d   : > { %16055 = vmatprep.subr.mxu0 %v19263_v11 }
  0x1f   : > { %16053 = vmatmul.mubr.msk.f32.vlgmr.msra.gmra.mrb[2].mxu0 %vm331_vm1, %v19382_v16 }
  0x20   : > { %16057 = vmatprep.mubr.msk.f32.mxu0 %vm19262_vm0, %v19263_v11 }
  0xea   : > { %v476_v23 = vpop.f32.mrb[0].mxu1  ;;  %v401_v26 = vpop.f32.mrb[0].mxu0 }
  0xeb   : > { %v19412_v24 = vadd.f32 %v14493_v21, %v476_v23  ;;  %v16043_v25 = vpop.f32.mrb[1].mxu1  ;;  %v19414_v27 = vadd.f32 %v14491_v22, %v401_v26  ;;  %v16032_v28 = vpop.f32.mrb[1].mxu0  ;;  %v14489_v26 = vld [vmem:[%s22568_s3 + $0xd0] sm:$0xff] }
  0xed   : > { %798 = vrot.lane.b32.xlu1 %v19412_v24, %s19264_s23  ;;  %16056 = vmatpush3.xpose.msk.msra.mxu0 %vm556_vm2, %v19412_v24 }
  0xee   : > { %16065 = vmatprep.subr.mxu0 %v19263_v11 }
  0xf0   : > { %16058 = vmatmul.mubr.msk.f32.vlgmr.msra.gmra.mrb[4].mxu0 %vm556_vm2, %v19414_v27 }
  0xf1   : > { %796 = vrot.lane.b32.xlu1 %v19414_v27, %s19264_s23  ;;  %16067 = vmatprep.mubr.msk.f32.mxu0 %vm19262_vm0, %v19263_v11 }
  0xf2   : > { %v551_v30 = vpop.f32.mrb[2].mxu0  ;;  %16066 = vmatpush3.msra.mxu0 %v14487_v49 }
  0xf3   : > { %v19430_v31 = vadd.f32 %v14495_v29, %v551_v30  ;;  %v16054_v32 = vpop.f32.mrb[3].mxu0  ;;  %16075 = vmatprep.subr.mxu0 %v19263_v11 }
  0xf5   : > { %1037 = vrot.lane.b32.xlu1 %v19414_v27, %s19265_s7  ;;  %16061 = vmatpush3.msra.mxu1 %v19430_v31 }
  0xf6   : > { %16070 = vmatprep.subr.mxu1 %v19263_v11 }
 0x15f   : > { %v799_v43 = vpop.permute.xlu1 %798 }
 0x163   : > { %v797_v46 = vpop.permute.xlu1 %796 }
 0x167   : > { %v1038_v48 = vpop.permute.xlu1 %1037 }
 0x1c3   : > { %v629_v33 = vpop.f32.mrb[4].mxu0 }
 0x1c4   : > { %v633_v34 = vmul.f32 0.35355338, %v629_v33  ;;  %v16059_v35 = vpop.f32.mrb[5].mxu0 }
 0x1c6   : > { %v634_v36 = vsel %vm556_vm2, %v633_v34, -inf }
 0x1c7   : > { %635 = vmax.xlane.f32.xlu0 %v634_v36 }
 0x254   : > { %v636_v37 = vpop.xlane.xlu0 %635 }
 0x255   : > { %v637_v38 = vsub.f32 %v633_v34, %v636_v37 }
 0x257   : > { %v638_v39 = vmul.f32 1.442695, %v637_v38 }
 0x259   : > { %18811 = vpow2.f32 %v638_v39  ;;  %v14490_v39 = vld [vmem:[%s22568_s3 + $0xd8] sm:$0xff] }
 0x263   : > { %v18812_v40 = vpop.eup %18811 }
 0x264   : > { %v640_v41 = vsel %vm556_vm2, %v18812_v40, 0.0 }
 0x265   : > { %641 = vadd.xlane.f32.xlu0 %v640_v41  ;;  %v14501_v41 = vld [vmem:[%s22569_s4 + $0x3] ss:$0 sm:$0xff] }
 0x27b   : > { %1039 = vrot.lane.b32.xlu0 %v19412_v24, %s19265_s7 }
 0x2f2   : > { %v642_v42 = vpop.xlane.xlu0 %641 }
 0x2f3   : > { %18813 = vrcp.f32 %v642_v42 }
 0x2f6   : > { %v1040_v47 = vpop.permute.xlu0 %1039 }
 0x2fd   : > { %v18814_v44 = vpop.eup %18813 }
 0x2fe   : > { %v644_v45 = vmul.f32 %v18814_v44, %v18812_v40 }
 0x300   : > { %16063 = vmatmul.mubr.msk.f32.vlgmr.msra.gmra.mrb[2].mxu1 %vm556_vm2, %v644_v45 }
 0x301   : > { %16071 = vmatpush3.xpose.msk.msra.mxu1 %vm556_vm2, %v799_v43  ;;  %16072 = vmatprep.mubr.msk.f32.mxu1 %vm19262_vm0, %v19263_v11 }
 0x302   : > { %16085 = vmatprep.subr.mxu1 %v19263_v11 }
 0x304   : > { %16073 = vmatmul.mubr.msk.f32.vlgmr.msra.gmra.mrb[4].mxu1 %vm556_vm2, %v797_v46  ;;  %v14520_v46 = vld [vmem:[%s22568_s3 + $0x140] sm:$0xff] }
 0x305   : > { %16086 = vmatpush3.xpose.msk.msra.mxu1 %vm556_vm2, %v1040_v47  ;;  %16087 = vmatprep.mubr.msk.f32.mxu1 %vm19262_vm0, %v19263_v11  ;;  %v14521_v47 = vld [vmem:[%s22568_s3 + $0x148] sm:$0xff] }
 0x306   : > { %16090 = vmatprep.subr.mxu1 %v19263_v11  ;;  %v17604_v49 = vpack.c.bf16 %v14521_v47, %v14520_v46 }
 0x308   : > { %16088 = vmatmul.mubr.msk.f32.vlgmr.msra.gmra.mrb[6].mxu1 %vm556_vm2, %v1038_v48  ;;  %v14522_v48 = vld [vmem:[%s22568_s3 + $0x150] sm:$0xff] }
 0x309   : > { %16092 = vmatprep.mubr.msk.f32.mxu1 %vm19262_vm0, %v19263_v11 }
 0x3d3   : > { %v714_v50 = vpop.f32.mrb[2].mxu1 }
 0x3d4   : > { %v16064_v51 = vpop.f32.mrb[3].mxu1  ;;  %16068 = vmatmul.mubr.msk.f32.vlgmr.msra.gmra.mrb[6].mxu0 %vm556_vm2, %v714_v50  ;;  %v14523_v50 = vld [vmem:[%s22568_s3 + $0x158] sm:$0xff] }
 0x3d5   : > { %16077 = vmatprep.mubr.msk.f32.mxu0 %vm19262_vm0, %v19263_v11  ;;  %v19539_v51 = vld [vmem:[%s19519_s8] sm:$0xff] }
 0x3d7   : > { %v870_v52 = vpop.f32.mrb[4].mxu1 }
 0x3d8   : > { %v16074_v53 = vpop.f32.mrb[5].mxu1  ;;  %v874_v58 = vmul.f32 0.35355338, %v870_v52  ;;  %v299_v52 = vld [vmem:[%s19524_s13] sm:$0xff] }
 0x3d9   : > { %v17608_v53 = vpack.c.bf16 %v14523_v50, %v14522_v48 }
 0x3da   : > { %v875_v59 = vsel %vm556_vm2, %v874_v58, -inf }
 0x3db   : > { %v1111_v54 = vpop.f32.mrb[6].mxu1 }
 0x3dc   : > { %v1115_v55 = vmul.f32 0.35355338, %v1111_v54  ;;  %v16089_v56 = vpop.f32.mrb[7].mxu1  ;;  %v19543_v54 = vadd.f32 %v299_v52, %v19539_v51 }
 0x3dd   : > { %v300_v56 = vld [vmem:[%s19524_s13 + $0x8] sm:$0xff] }
 0x3de   : > { %v1116_v57 = vsel %vm556_vm2, %v1115_v55, -inf }
 0x3df   : > { %1117 = vmax.xlane.f32.xlu1 %v1116_v57  ;;  %v19552_v57 = vld [vmem:[%s19519_s8 + $0x10] sm:$0xff] }
 0x3f0   : > { %1127 = vrot.lane.b32.xlu1 %v19430_v31, %s19265_s7 }
 0x3f4   : > { %1277 = vrot.lane.b32.xlu1 %v19414_v27, %s19266_s10 }
 0x418   : > { %876 = vmax.xlane.f32.xlu1 %v875_v59 }
 0x429   : > { %887 = vrot.lane.b32.xlu1 %v19430_v31, %s19264_s23 }
 0x46c   : > { %v1118_v60 = vpop.xlane.xlu1 %1117 }
 0x46d   : > { %v1119_v61 = vsub.f32 %v1115_v55, %v1118_v60  ;;  %v19548_v55 = vld [vmem:[%s19519_s8 + $0x8] sm:$0xff] }
 0x46e   : > { %v19556_v59 = vadd.f32 %v300_v56, %v19548_v55 }
 0x46f   : > { %v1120_v62 = vmul.f32 1.442695, %v1119_v61  ;;  %v19562_v61 = vld [vmem:[%s19519_s8 + $0x18] sm:$0xff] }
 0x470   : > { %v1128_v63 = vpop.permute.xlu1 %1127 }
 0x471   : > { %18815 = vpow2.f32 %v1120_v62  ;;  %16091 = vmatpush3.msra.mxu1 %v1128_v63  ;;  %v302_v62 = vld [vmem:[%s19524_s13 + $0x18] sm:$0xff] }
 0x472   : > { %16100 = vmatprep.subr.mxu1 %v19263_v11  ;;  %v19569_v63 = vadd.f32 %v302_v62, %v19562_v61 }
 0x474   : > { %v1278_v2 = vpop.permute.xlu1 %1277 }
 0x47b   : > { %v18816_v0 = vpop.eup %18815 }
 0x47c   : > { %v1122_v1 = vsel %vm556_vm2, %v18816_v0, 0.0 }
 0x47d   : > { %1123 = vadd.xlane.f32.xlu0 %v1122_v1 }
 0x493   : > { %1279 = vrot.lane.b32.xlu0 %v19412_v24, %s19266_s10 }
 0x4a5   : > { %v877_v4 = vpop.xlane.xlu1 %876 }
 0x4a6   : > { %v878_v5 = vsub.f32 %v874_v58, %v877_v4  ;;  %v301_v58 = vld [vmem:[%s19524_s13 + $0x10] sm:$0xff] }
 0x4a7   : > { %v19559_v60 = vadd.f32 %v301_v58, %v19552_v57 }
 0x4a8   : > { %v879_v6 = vmul.f32 1.442695, %v878_v5 }
 0x4a9   : > { %v888_v7 = vpop.permute.xlu1 %887 }
 0x4aa   : > { %18817 = vpow2.f32 %v879_v6  ;;  %16076 = vmatpush3.msra.mxu0 %v888_v7  ;;  %v19577_v6 = vld [vmem:[%s19519_s8 + $0x20] sm:$0xff] }
 0x4ab   : > { %16080 = vmatprep.subr.mxu0 %v19263_v11  ;;  %v303_v7 = vld [vmem:[%s19524_s13 + $0x20] sm:$0xff] }
 0x4b4   : > { %v18818_v8 = vpop.eup %18817 }
 0x4b5   : > { %v881_v9 = vsel %vm556_vm2, %v18818_v8, 0.0 }
 0x4b6   : > { %882 = vadd.xlane.f32.xlu0 %v881_v9  ;;  %v19584_v9 = vld [vmem:[%s19519_s8 + $0x28] sm:$0xff] }
 0x50a   : > { %v1124_v10 = vpop.xlane.xlu0 %1123 }
 0x50b   : > { %18819 = vrcp.f32 %v1124_v10  ;;  %v304_v10 = vld [vmem:[%s19524_s13 + $0x28] sm:$0xff] }
 0x50e   : > { %v1280_v14 = vpop.permute.xlu0 %1279 }
 0x515   : > { %v18820_v12 = vpop.eup %18819 }
 0x516   : > { %v1126_v13 = vmul.f32 %v18820_v12, %v18816_v0  ;;  %v19588_v12 = vadd.f32 %v304_v10, %v19584_v9 }
 0x518   : > { %16093 = vmatmul.mubr.msk.f32.vlgmr.msra.gmra.mrb[8].mxu1 %vm556_vm2, %v1126_v13  ;;  %v19595_v13 = vld [vmem:[%s19519_s8 + $0x30] sm:$0xff] }
 0x519   : > { %16101 = vmatpush3.xpose.msk.msra.mxu1 %vm556_vm2, %v1280_v14  ;;  %16102 = vmatprep.mubr.msk.f32.mxu1 %vm19262_vm0, %v19263_v11  ;;  %v305_v14 = vld [vmem:[%s19524_s13 + $0x30] sm:$0xff] }
 0x51a   : > { %17598 = vmatprep.subr.bf16.mxu1 %v19261_v3 }
 0x51c   : > { %16103 = vmatmul.mubr.msk.f32.vlgmr.msra.gmra.mrb[10].mxu1 %vm556_vm2, %v1278_v2 }
 0x51d   : > { %16123 = vmatprep.mubr.msk.f32.mxu1 %vm19262_vm0, %v19263_v11 }
 0x543   : > { %v883_v15 = vpop.xlane.xlu0 %882 }
 0x544   : > { %18821 = vrcp.f32 %v883_v15  ;;  %v19599_v15 = vadd.f32 %v305_v14, %v19595_v13  ;;  %v14524_v14 = vld [vmem:[%s22568_s3 + $0x180] sm:$0xff] }
 0x54e   : > { %v18822_v17 = vpop.eup %18821 }
 0x54f   : > { %v885_v18 = vmul.f32 %v18822_v17, %v18818_v8  ;;  %v19581_v8 = vadd.f32 %v303_v7, %v19577_v6  ;;  %v19602_v17 = vld [vmem:[%s19519_s8 + $0x38] sm:$0xff] }
 0x551   : > { %16078 = vmatmul.mubr.msk.f32.vlgmr.msra.gmra.mrb[8].mxu0 %vm556_vm2, %v885_v18  ;;  %v306_v18 = vld [vmem:[%s19524_s13 + $0x38] sm:$0xff] }
 0x552   : > { %16082 = vmatprep.mubr.msk.f32.mxu0 %vm19262_vm0, %v19263_v11  ;;  %16081 = vmatpush3.msra.mxu0 %v14488_v19  ;;  %v19606_v19 = vadd.f32 %v306_v18, %v19602_v17  ;;  %v14525_v18 = vld [vmem:[%s22568_s3 + $0x188] sm:$0xff] }
 0x553   : > { %16095 = vmatprep.subr.mxu0 %v19263_v11 }
 0x5eb   : > { %v1199_v20 = vpop.f32.mrb[8].mxu1 }
 0x5ec   : > { %v16094_v21 = vpop.f32.mrb[9].mxu1 }
 0x5ed   : > { %v14517_v21 = vld [vmem:[%s22568_s3 + $0x108] sm:$0xff] }
 0x5ef   : > { %v1351_v22 = vpop.f32.mrb[10].mxu1 }
 0x5f0   : > { %v1355_v23 = vmul.f32 0.35355338, %v1351_v22  ;;  %v16104_v24 = vpop.f32.mrb[11].mxu1 }
 0x5f1   : > { %v14519_v24 = vld [vmem:[%s22568_s3 + $0x118] sm:$0xff] }
 0x5f2   : > { %v1356_v25 = vsel %vm556_vm2, %v1355_v23, -inf }
 0x5f3   : > { %1357 = vmax.xlane.f32.xlu0 %v1356_v25 }
 0x624   : > { %v959_v27 = vpop.f32.mrb[8].mxu0 }
 0x625   : > { %v16079_v28 = vpop.f32.mrb[9].mxu0  ;;  %16083 = vmatmul.mubr.msk.f32.vlgmr.msra.gmra.mrb[6].mxu0 %vm556_vm2, %v959_v27 }
 0x626   : > { %16096 = vmatpush3.msra.mxu0 %v14489_v26  ;;  %16097 = vmatprep.mubr.msk.f32.mxu0 %vm19262_vm0, %v19263_v11  ;;  %v14532_v26 = vld [vmem:[%s22569_s4 + $0x7] ss:$0 sm:$0xff] }
 0x627   : > { %16105 = vmatprep.subr.mxu0 %v19263_v11 }
 0x62d   : > { %16098 = vmatmul.mubr.msk.f32.vlgmr.msra.gmra.mrb[6].mxu0 %vm556_vm2, %v1199_v20  ;;  %v14516_v20 = vld [vmem:[%s22568_s3 + $0x100] sm:$0xff] }
 0x62e   : > { %16107 = vmatprep.mubr.msk.f32.mxu0 %vm19262_vm0, %v19263_v11  ;;  %v17599_v22 = vpack.c.bf16 %v14517_v21, %v14516_v20  ;;  %v14526_v20 = vld [vmem:[%s22568_s3 + $0x190] sm:$0xff]  ;;  %v17612_v21 = vpack.c.bf16 %v14525_v18, %v14524_v14  ;;  %v19748_v18 = vld [vmem:[%s22568_s3 + $0x1c0] sm:$0xff] }
 0x630   : > { %17600 = vmatpush3.bf16.msra.mxu1 %v17599_v22  ;;  %v14527_v22 = vld [vmem:[%s22568_s3 + $0x198] sm:$0xff] }
 0x631   : > { %17601 = vmatprep.subr.bf16.mxu1 %v19261_v3 }
 0x680   : > { %v1358_v29 = vpop.xlane.xlu0 %1357 }
 0x681   : > { %v1359_v30 = vsub.f32 %v1355_v23, %v1358_v29  ;;  %v14518_v23 = vld [vmem:[%s22568_s3 + $0x110] sm:$0xff] }
 0x682   : > { %v17602_v25 = vpack.c.bf16 %v14519_v24, %v14518_v23  ;;  %v17616_v23 = vpack.c.bf16 %v14527_v22, %v14526_v20 }
 0x683   : > { %v1360_v32 = vmul.f32 1.442695, %v1359_v30 }
 0x684   : > { %17603 = vmatpush3.bf16.msra.mxu1 %v17602_v25 }
 0x685   : > { %18823 = vpow2.f32 %v1360_v32  ;;  %17613 = vmatprep.subr.bf16.mxu1 %v17612_v21 }
 0x68f   : > { %v18824_v33 = vpop.eup %18823 }
 0x690   : > { %v1362_v34 = vsel %vm556_vm2, %v18824_v33, 0.0 }
 0x691   : > { %1363 = vadd.xlane.f32.xlu0 %v1362_v34 }
 0x6a7   : > { %1367 = vrot.lane.b32.xlu0 %v19430_v31, %s19266_s10 }
 0x71e   : > { %v1364_v35 = vpop.xlane.xlu0 %1363 }
 0x71f   : > { %18825 = vrcp.f32 %v1364_v35 }
 0x722   : > { %v1368_v36 = vpop.permute.xlu0 %1367 }
 0x723   : > { %16106 = vmatpush3.msra.mxu0 %v1368_v36 }
 0x724   : > { %16110 = vmatprep.subr.mxu0 %v19263_v11 }
 0x729   : > { %v18826_v37 = vpop.eup %18825 }
 0x72a   : > { %v1366_v38 = vmul.f32 %v18826_v37, %v18824_v33 }
 0x72c   : > { %16108 = vmatmul.mubr.msk.f32.vlgmr.msra.gmra.mrb[10].mxu0 %vm556_vm2, %v1366_v38 }
 0x72d   : > { %16112 = vmatprep.mubr.msk.f32.mxu0 %vm19262_vm0, %v19263_v11  ;;  %16111 = vmatpush3.msra.mxu0 %v14490_v39 }
 0x72e   : > { %17605 = vmatprep.subr.bf16.mxu0 %v17604_v49 }
 0x7ff   : > { %v1439_v31 = vpop.f32.mrb[10].mxu0 }
 0x800   : > { %v16109_v40 = vpop.f32.mrb[11].mxu0  ;;  %16113 = vmatmul.mubr.msk.f32.vlgmr.msra.gmra.mrb[6].mxu0 %vm556_vm2, %v1439_v31 }
 0x801   : > { %17607 = vmatpush3.bf16.msra.mxu0 %v17604_v49  ;;  %16134 = vmatprep.mubr.msk.f32.mxu0 %vm331_vm1, %v19543_v54 }
 0x802   : > { %17609 = vmatprep.subr.bf16.mxu0 %v17608_v53 }
 0x805   : > { %17611 = vmatpush3.bf16.msra.mxu0 %v17608_v53 }
 0x806   : > { %17620 = vmatprep.subr.bf16.mxu0 %v19261_v3 }
 0x808   : > { %16135 = vmatmul.mubr.msk.f32.vlgmr.msra.gmra.mrb[12].mxu0 %vm331_vm1, %v19556_v59 }
 0x809   : > { %16137 = vmatprep.mubr.msk.f32.mxu0 %vm331_vm1, %v19559_v60 }
 0x80c   : > { %16138 = vmatmul.mubr.msk.f32.gmra.mrb[14].mxu0 %vm331_vm1, %v19569_v63 }
 0x80d   : > { %16140 = vmatprep.mubr.msk.f32.mxu0 %vm331_vm1, %v19581_v8 }
 0x810   : > { %16141 = vmatmul.mubr.msk.f32.gmra.mrb[16].mxu0 %vm331_vm1, %v19588_v12 }
 0x811   : > { %16143 = vmatprep.mubr.msk.f32.mxu0 %vm331_vm1, %v19599_v15 }
 0x814   : > { %16144 = vmatmul.mubr.msk.f32.gmra.mrb[18].mxu0 %vm331_vm1, %v19606_v19 }
 0x815   : > { %16182 = vmatprep.mubr.msk.f32.mxu0 %vm19262_vm0, %v19263_v11 }
 0x8d3   : > { %v1512_v42 = vpop.f32.mrb[6].mxu0 }
 0x8d4   : > { %v18228_v43 = vadd.f32 %v14501_v41, %v1512_v42  ;;  %v16114_v44 = vpop.f32.mrb[7].mxu0 }
 0x8d6   : > { %v1519_v45 = vsel %vm331_vm1, %v18228_v43, 0.0 }
 0x8d7   : > { %1520 = vadd.xlane.f32.xlu1 %v1519_v45  ;;  %v14515_v45 = vld [vmem:[%s22569_s4 + $0x5] ss:$0 sm:$0xff] }
 0x8db   : > { %v16136_v27 = vpop.f32.mrb[12].mxu0 }
 0x8dc   : > { %v19630_v28 = vadd.f32 %v16136_v27, %v14532_v26  ;;  %v1743_v29 = vpop.f32.mrb[13].mxu0 }
 0x8dd   : > { %v19632_v30 = vadd.f32 %v14532_v26, %v1743_v29 }
 0x8df   : > { %v17621_v33 = vpack.c.bf16 %v19630_v28, %v19632_v30  ;;  %v16139_v34 = vpop.f32.mrb[14].mxu0 }
 0x8e0   : > { %v1759_v35 = vadd.f32 %v16139_v34, %v14532_v26  ;;  %v1753_v36 = vpop.f32.mrb[15].mxu0 }
 0x8e1   : > { %17623 = vmatpush3.bf16.xpose.msk.msra.mxu0 %vm19636_vm4, %v17621_v33  ;;  %v1754_v37 = vadd.f32 %v14532_v26, %v1753_v36 }
 0x8e2   : > { %17624 = vmatprep.subr.bf16.mxu0 %v19261_v3 }
 0x8e3   : > { %v19645_v38 = vpack.i.bf16 %v1759_v35, %v1754_v37  ;;  %v17625_v39 = vpack.c.bf16 %v1759_v35, %v1754_v37  ;;  %v16142_v49 = vpop.f32.mrb[16].mxu0 }
 0x8e4   : > { %v1769_v50 = vadd.f32 %v16142_v49, %v14532_v26  ;;  %v1763_v52 = vpop.f32.mrb[17].mxu0 }
 0x8e5   : > { %v1764_v53 = vadd.f32 %v14532_v26, %v1763_v52 }
 0x8e7   : > { %v17629_v56 = vpack.c.bf16 %v1769_v50, %v1764_v53  ;;  %v19665_v58 = vpack.i.bf16 %v1769_v50, %v1764_v53  ;;  %v16145_v62 = vpop.f32.mrb[18].mxu0 }
 0x8e9   : > { %17627 = vmatpush3.bf16.xpose.msk.msra.mxu0 %vm19636_vm4, %v17625_v39 }
 0x8ea   : > { %17628 = vmatprep.subr.bf16.mxu0 %v19261_v3 }
 0x8f1   : > { %17631 = vmatpush3.bf16.xpose.msk.msra.mxu0 %vm19636_vm4, %v17629_v56 }
 0x8f2   : > { %17632 = vmatprep.subr.bf16.mxu0 %v19261_v3 }
 0x964   : > { %v1521_v0 = vpop.xlane.xlu1 %1520 }
 0x965   : > { %v1523_v1 = vmul.f32 0.03125, %v1521_v0  ;;  %v1779_v0 = vadd.f32 %v16145_v62, %v14532_v26 }
 0x967   : > { %v1524_v2 = vsub.f32 %v18228_v43, %v1523_v1  ;;  %v14514_v43 = vld [vmem:[%s22569_s4 + $0x4] ss:$0 sm:$0xff] }
 0x969   : > { %v1525_v4 = vmul.f32 %v1524_v2, %v1524_v2 }
 0x96b   : > { %v1526_v5 = vsel %vm331_vm1, %v1525_v4, 0.0 }
 0x96c   : > { %1527 = vadd.xlane.f32.xlu0 %v1526_v5 }
 0x982   : > { %18337 = vrot.lane.b32.xlu0 %v19645_v38, %s19267_s19 }
 0x9f9   : > { %v1528_v31 = vpop.xlane.xlu0 %1527 }
 0x9fa   : > { %v1529_v40 = vmul.f32 0.03125, %v1528_v31 }
 0x9fc   : > { %v1530_v41 = vadd.f32 1e-05, %v1529_v40 }
 0x9fe   : > { %18827 = vrsqrt.f32 %v1530_v41 }
 0xa08   : > { %v18828_v42 = vpop.eup %18827 }
 0xa09   : > { %v1532_v44 = vmul.f32 %v18828_v42, %v1524_v2 }
 0xa0b   : > { %v1537_v46 = vmul.f32 %v14514_v43, %v1532_v44 }
 0xa0d   : > { %v19658_v47 = vadd.f32 %v14515_v45, %v1537_v46  ;;  %v19727_v45 = vpack.i.bf16 %v19630_v28, %v19632_v30 }
 0xa0f   : > { %v1543_v48 = vadd.f32 %v19658_v47, %v19382_v16  ;;  %v1773_v16 = vpop.f32.mrb[19].mxu0 }
 0xa10   : > { %v1774_v1 = vadd.f32 %v14532_v26, %v1773_v16 }
 0xa11   : > { %16124 = vmatmul.mubr.msk.f32.vlgmr.msra.gmra.mrb[12].mxu1 %vm331_vm1, %v1543_v48 }
 0xa12   : > { %16154 = vmatprep.mubr.msk.f32.mxu1 %vm331_vm1, %v19539_v51  ;;  %v17633_v2 = vpack.c.bf16 %v1779_v0, %v1774_v1  ;;  %v19670_v4 = vpack.i.bf16 %v1779_v0, %v1774_v1  ;;  %v14530_v51 = vld [vmem:[%s22569_s4 + $0x6] ss:$0 sm:$0xff]  ;;  %17615 = vmatpush3.bf16.msra.mxu1 %v17612_v21  ;;  %v18338_v0 = vpop.permute.xlu0 %18337 }
 0xa13   : > { %17617 = vmatprep.subr.bf16.mxu1 %v17616_v23 }
 0xa14   : > { %17635 = vmatpush3.bf16.xpose.msk.msra.mxu0 %vm19636_vm4, %v17633_v2 }
 0xa15   : > { %17664 = vmatprep.subr.bf16.mxu0 %v19261_v3 }
 0xa16   : > { %17619 = vmatpush3.bf16.msra.mxu1 %v17616_v23 }
 0xa17   : > { %17636 = vmatprep.subr.bf16.mxu1 %v19261_v3 }
 0xa19   : > { %16155 = vmatmul.mubr.msk.f32.vlgmr.msra.gmra.mrb[14].mxu1 %vm331_vm1, %v19548_v55 }
 0xa1a   : > { %16157 = vmatprep.mubr.msk.f32.mxu1 %vm331_vm1, %v19552_v57 }
 0xa1d   : > { %16158 = vmatmul.mubr.msk.f32.gmra.mrb[16].mxu1 %vm331_vm1, %v19562_v61 }
 0xa1e   : > { %16160 = vmatprep.mubr.msk.f32.mxu1 %vm331_vm1, %v19577_v6  ;;  %v14541_v6 = vld [vmem:[%s22569_s4 + $0x8] ss:$0 sm:$0xff] }
 0xa21   : > { %16161 = vmatmul.mubr.msk.f32.gmra.mrb[18].mxu1 %vm331_vm1, %v19584_v9 }
 0xa22   : > { %16163 = vmatprep.mubr.msk.f32.mxu1 %vm331_vm1, %v19595_v13 }
 0xa25   : > { %16164 = vmatmul.mubr.msk.f32.gmra.mrb[20].mxu1 %vm331_vm1, %v19602_v17 }
 0xa26   : > { %16201 = vmatprep.mubr.msk.f32.mxu1 %vm19262_vm0, %v19263_v11 }
 0xae4   : > { %v1644_v5 = vpop.f32.mrb[12].mxu1 }
 0xae5   : > { %v19678_v7 = vadd.f32 %v14530_v51, %v1644_v5  ;;  %v16125_v10 = vpop.f32.mrb[13].mxu1 }
 0xae7   : > { %16183 = vmatmul.mubr.msk.f32.vlgmr.msra.gmra.mrb[20].mxu0 %vm1917_vm3, %v19678_v7 }
 0xae8   : > { %16244 = vmatprep.mubr.msk.f32.mxu0 %vm19262_vm0, %v19263_v11 }
 0xaec   : > { %v16156_v9 = vpop.f32.mrb[14].mxu1 }
 0xaed   : > { %v1883_v25 = vadd.f32 %v16156_v9, %v14541_v6  ;;  %v1877_v13 = vpop.f32.mrb[15].mxu1 }
 0xaee   : > { %v1878_v26 = vadd.f32 %v14541_v6, %v1877_v13 }
 0xaf0   : > { %v16159_v27 = vpop.f32.mrb[16].mxu1  ;;  %v17637_v17 = vpack.c.bf16 %v1883_v25, %v1878_v26  ;;  %v19717_v29 = vpack.i.bf16 %v1883_v25, %v1878_v26 }
 0xaf1   : > { %v1887_v33 = vpop.f32.mrb[17].mxu1  ;;  %v1893_v40 = vadd.f32 %v16159_v27, %v14541_v6 }
 0xaf2   : > { %17638 = vmatpush3.bf16.msra.mxu1 %v17637_v17  ;;  %18352 = vrot.lane.b32.xlu0 %v19717_v29, %s19267_s19  ;;  %v1888_v41 = vadd.f32 %v14541_v6, %v1887_v33 }
 0xaf3   : > { %17639 = vmatprep.subr.bf16.mxu1 %v19261_v3 }
 0xaf4   : > { %v16162_v34 = vpop.f32.mrb[18].mxu1  ;;  %v17640_v43 = vpack.c.bf16 %v1893_v40, %v1888_v41  ;;  %v19723_v44 = vpack.i.bf16 %v1893_v40, %v1888_v41 }
 0xaf5   : > { %v1903_v42 = vadd.f32 %v16162_v34, %v14541_v6  ;;  %v1897_v46 = vpop.f32.mrb[19].mxu1 }
 0xaf6   : > { %v1898_v48 = vadd.f32 %v14541_v6, %v1897_v46  ;;  %17641 = vmatpush3.bf16.msra.mxu1 %v17640_v43 }
 0xaf7   : > { %17642 = vmatprep.subr.bf16.mxu1 %v19261_v3 }
 0xaf8   : > { %v16165_v49 = vpop.f32.mrb[20].mxu1  ;;  %v17643_v50 = vpack.c.bf16 %v1903_v42, %v1898_v48  ;;  %v19732_v52 = vpack.i.bf16 %v1903_v42, %v1898_v48 }
 0xaf9   : > { %v1907_v53 = vpop.f32.mrb[21].mxu1  ;;  %v1913_v56 = vadd.f32 %v16165_v49, %v14541_v6 }
 0xafa   : > { %v1908_v62 = vadd.f32 %v14541_v6, %v1907_v53  ;;  %17644 = vmatpush3.bf16.msra.mxu1 %v17643_v50 }
 0xafb   : > { %17645 = vmatprep.subr.bf16.mxu1 %v19261_v3 }
 0xafc   : > { %v17646_v28 = vpack.c.bf16 %v1913_v56, %v1908_v62  ;;  %v19737_v30 = vpack.i.bf16 %v1913_v56, %v1908_v62 }
 0xafe   : > { %17647 = vmatpush3.bf16.msra.mxu1 %v17646_v28 }
 0xaff   : > { %16204 = vmatprep.subr.mxu1 %v19263_v11 }
 0xb64   : > { %v18353_v16 = vpop.permute.xlu0 %18352 }
 0xb65   : > { %v18355_v1 = vunpack.i.h.bf16 %v18353_v16  ;;  %v18354_v2 = vunpack.i.l.bf16 %v18353_v16 }
 0xb67   : > { %v17665_v51 = vpack.c.bf16 %v18355_v1, %v18354_v2 }
 0xb69   : > { %17666 = vmatpush3.bf16.msra.mxu0 %v17665_v51 }
 0xb6a   : > { %17667 = vmatprep.subr.bf16.mxu0 %v19261_v3 }
 0xbba   : > { %v2011_v55 = vpop.f32.mrb[20].mxu0 }
 0xbbb   : > { %v2015_v57 = vmul.f32 0.5, %v2011_v55  ;;  %v16184_v24 = vpop.f32.mrb[21].mxu0 }
 0xbbc   : > { %v18340_v24 = vunpack.i.h.bf16 %v18338_v0 }
 0xbbd   : > { %v2017_v61 = vsel %vm2016_vm5, %v2015_v57, -inf }
 0xbbe   : > { %2018 = vmax.xlane.f32.xlu1 %v2017_v61  ;;  %v18339_v61 = vunpack.i.l.bf16 %v18338_v0 }
 0xbc0   : > { %v17653_v6 = vpack.c.bf16 %v18340_v24, %v18339_v61 }
 0xc4b   : > { %v2019_v35 = vpop.xlane.xlu1 %2018 }
 0xc4c   : > { %v2020_v36 = vsub.f32 %v2015_v57, %v2019_v35 }
 0xc4e   : > { %v2021_v37 = vmul.f32 1.442695, %v2020_v36 }
 0xc50   : > { %18829 = vpow2.f32 %v2021_v37 }
 0xc5a   : > { %v18830_v39 = vpop.eup %18829 }
 0xc5b   : > { %v2023_v31 = vsel %vm2016_vm5, %v18830_v39, 0.0 }
 0xc5c   : > { %2024 = vadd.xlane.f32.xlu1 %v2023_v31 }
 0xc6d   : > { %18332 = vrot.lane.b32.xlu1 %v19727_v45, %s19267_s19 }
 0xc71   : > { %18342 = vrot.lane.b32.xlu1 %v19665_v58, %s19267_s19 }
 0xc75   : > { %18347 = vrot.lane.b32.xlu1 %v19670_v4, %s19267_s19 }
 0xc79   : > { %2183 = vrot.lane.b32.xlu1 %v19678_v7, %s19267_s19 }
 0xce9   : > { %v2025_v5 = vpop.xlane.xlu1 %2024 }
 0xcea   : > { %18831 = vrcp.f32 %v2025_v5 }
 0xced   : > { %v18333_v20 = vpop.permute.xlu1 %18332 }
 0xcee   : > { %v18335_v21 = vunpack.i.h.bf16 %v18333_v20  ;;  %v18334_v22 = vunpack.i.l.bf16 %v18333_v20 }
 0xcf0   : > { %v17649_v23 = vpack.c.bf16 %v18335_v21, %v18334_v22  ;;  %v2406_v21 = vrot.slane %v19748_v18, 4 }
 0xcf1   : > { %v18343_v9 = vpop.permute.xlu1 %18342 }
 0xcf2   : > { %v18345_v25 = vunpack.i.h.bf16 %v18343_v9  ;;  %v18344_v13 = vunpack.i.l.bf16 %v18343_v9 }
 0xcf4   : > { %v18832_v10 = vpop.eup %18831  ;;  %v17657_v26 = vpack.c.bf16 %v18345_v25, %v18344_v13 }
 0xcf5   : > { %v2027_v14 = vmul.f32 %v18832_v10, %v18830_v39  ;;  %v18348_v27 = vpop.permute.xlu1 %18347 }
 0xcf6   : > { %v18350_v17 = vunpack.i.h.bf16 %v18348_v27  ;;  %v18349_v33 = vunpack.i.l.bf16 %v18348_v27 }
 0xcf7   : > { %16202 = vmatmul.mubr.msk.f32.vlgmr.msra.gmra.mrb[22].mxu1 %vm2016_vm5, %v2027_v14 }
 0xcf8   : > { %16205 = vmatpush3.msk.msra.mxu1 %vm2104_vm6, %v19748_v18  ;;  %16206 = vmatprep.mubr.msk.f32.mxu1 %vm19262_vm0, %v19263_v11  ;;  %v17661_v34 = vpack.c.bf16 %v18350_v17, %v18349_v33 }
 0xcf9   : > { %17648 = vmatprep.subr.bf16.mxu1 %v19261_v3  ;;  %v2184_v35 = vpop.permute.xlu1 %2183 }
 0xdca   : > { %v2097_v55 = vpop.f32.mrb[22].mxu1 }
 0xdcb   : > { %v16203_v57 = vpop.f32.mrb[23].mxu1  ;;  %16207 = vmatmul.mubr.msk.f32.vlgmr.msra.gmra.mrb[24].mxu1 %vm1917_vm3, %v2097_v55 }
 0xdcc   : > { %17651 = vmatpush3.bf16.xpose.msk.msra.mxu1 %vm19636_vm4, %v17649_v23  ;;  %16225 = vmatprep.mubr.msk.f32.mxu1 %vm19262_vm0, %v19263_v11 }
 0xdcd   : > { %17652 = vmatprep.subr.bf16.mxu1 %v19261_v3 }
 0xdd4   : > { %17655 = vmatpush3.bf16.xpose.msk.msra.mxu1 %vm19636_vm4, %v17653_v6 }
 0xdd5   : > { %17656 = vmatprep.subr.bf16.mxu1 %v19261_v3 }
 0xddc   : > { %17659 = vmatpush3.bf16.xpose.msk.msra.mxu1 %vm19636_vm4, %v17657_v26 }
 0xddd   : > { %17660 = vmatprep.subr.bf16.mxu1 %v19261_v3 }
 0xde4   : > { %17663 = vmatpush3.bf16.xpose.msk.msra.mxu1 %vm19636_vm4, %v17661_v34 }
 0xde5   : > { %17692 = vmatprep.subr.bf16.mxu1 %v19261_v3 }
 0xdeb   : > { %16226 = vmatmul.mubr.msk.f32.vlgmr.msra.gmra.mrb[26].mxu1 %vm1917_vm3, %v2184_v35 }
 0xdec   : > { %16287 = vmatprep.mubr.msk.f32.mxu1 %vm19262_vm0, %v19263_v11 }
 0xe9e   : > { %v19774_v36 = vpop.f32.mrb[24].mxu1 }
 0xe9f   : > { %v16208_v37 = vpop.f32.mrb[25].mxu1 }
 0xebe   : > { %v2285_v39 = vpop.f32.mrb[26].mxu1 }
 0xebf   : > { %v2289_v31 = vmul.f32 0.5, %v2285_v39  ;;  %v16227_v40 = vpop.f32.mrb[27].mxu1 }
 0xec0   : > { %v14562_v40 = vld [vmem:[%s22569_s4 + $0x9] ss:$0 sm:$0xff] }
 0xec1   : > { %v2290_v41 = vsel %vm2016_vm5, %v2289_v31, -inf }
 0xec2   : > { %2291 = vmax.xlane.f32.xlu1 %v2290_v41  ;;  %v2182_v41 = vadd.f32 %v14562_v40, %v19774_v36 }
 0xed3   : > { %18357 = vrot.lane.b32.xlu1 %v19723_v44, %s19267_s19 }
 0xed7   : > { %18362 = vrot.lane.b32.xlu1 %v19732_v52, %s19267_s19 }
 0xedb   : > { %18372 = vrot.lane.b32.xlu1 %v19727_v45, %s19264_s23 }
 0xedf   : > { %18382 = vrot.lane.b32.xlu1 %v19665_v58, %s19264_s23 }
 0xee3   : > { %2483 = vrot.lane.b32.xlu1 %v19678_v7, %s19264_s23 }
 0xee7   : > { %18397 = vrot.lane.b32.xlu1 %v19723_v44, %s19264_s23 }
 0xf4f   : > { %v2292_v42 = vpop.xlane.xlu1 %2291 }
 0xf50   : > { %v2293_v43 = vsub.f32 %v2289_v31, %v2292_v42 }
 0xf52   : > { %v2294_v46 = vmul.f32 1.442695, %v2293_v43 }
 0xf53   : > { %v18358_v48 = vpop.permute.xlu1 %18357 }
 0xf54   : > { %18833 = vpow2.f32 %v2294_v46  ;;  %v18360_v49 = vunpack.i.h.bf16 %v18358_v48  ;;  %v18359_v50 = vunpack.i.l.bf16 %v18358_v48 }
 0xf56   : > { %v17668_v53 = vpack.c.bf16 %v18360_v49, %v18359_v50 }
 0xf57   : > { %v18363_v56 = vpop.permute.xlu1 %18362 }
 0xf58   : > { %v18365_v62 = vunpack.i.h.bf16 %v18363_v56  ;;  %v18364_v28 = vunpack.i.l.bf16 %v18363_v56  ;;  %17669 = vmatpush3.bf16.msra.mxu0 %v17668_v53 }
 0xf59   : > { %17670 = vmatprep.subr.bf16.mxu0 %v19261_v3 }
 0xf5a   : > { %v17671_v0 = vpack.c.bf16 %v18365_v62, %v18364_v28 }
 0xf5b   : > { %v18373_v23 = vpop.permute.xlu1 %18372 }
 0xf5c   : > { %17672 = vmatpush3.bf16.msra.mxu0 %v17671_v0  ;;  %v18375_v55 = vunpack.i.h.bf16 %v18373_v23  ;;  %v18374_v57 = vunpack.i.l.bf16 %v18373_v23 }
 0xf5d   : > { %17673 = vmatprep.subr.bf16.mxu0 %v19261_v3 }
 0xf5e   : > { %v18834_v16 = vpop.eup %18833  ;;  %v17677_v24 = vpack.c.bf16 %v18375_v55, %v18374_v57 }
 0xf5f   : > { %v2296_v1 = vsel %vm2016_vm5, %v18834_v16, 0.0  ;;  %v18383_v26 = vpop.permute.xlu1 %18382 }
 0xf60   : > { %2297 = vadd.xlane.f32.xlu0 %v2296_v1  ;;  %v18385_v27 = vunpack.i.h.bf16 %v18383_v26  ;;  %v18384_v17 = vunpack.i.l.bf16 %v18383_v26 }
 0xf62   : > { %v17685_v33 = vpack.c.bf16 %v18385_v27, %v18384_v17  ;;  %v19857_v17 = vld [vmem:[%s22568_s3 + $0x1c8] sm:$0xff] }
 0xf63   : > { %v2484_v31 = vpop.permute.xlu1 %2483 }
 0xf67   : > { %v18398_v28 = vpop.permute.xlu1 %18397 }
 0xf76   : > { %18367 = vrot.lane.b32.xlu0 %v19737_v30, %s19267_s19 }
 0xf7a   : > { %18377 = vrot.lane.b32.xlu0 %v19645_v38, %s19264_s23 }
 0xf7e   : > { %18387 = vrot.lane.b32.xlu0 %v19670_v4, %s19264_s23 }
 0xfed   : > { %v2298_v2 = vpop.xlane.xlu0 %2297 }
 0xfee   : > { %18835 = vrcp.f32 %v2298_v2  ;;  %v18400_v2 = vunpack.i.h.bf16 %v18398_v28 }
 0xff1   : > { %v18368_v51 = vpop.permute.xlu0 %18367 }
 0xff2   : > { %v18370_v5 = vunpack.i.h.bf16 %v18368_v51  ;;  %v18369_v10 = vunpack.i.l.bf16 %v18368_v51  ;;  %v18399_v51 = vunpack.i.l.bf16 %v18398_v28 }
 0xff4   : > { %v17674_v14 = vpack.c.bf16 %v18370_v5, %v18369_v10 }
 0xff5   : > { %v18378_v6 = vpop.permute.xlu0 %18377 }
 0xff6   : > { %17675 = vmatpush3.bf16.msra.mxu0 %v17674_v14  ;;  %v18380_v18 = vunpack.i.h.bf16 %v18378_v6  ;;  %v18379_v25 = vunpack.i.l.bf16 %v18378_v6 }
 0xff7   : > { %16247 = vmatprep.subr.mxu0 %v19263_v11 }
 0xff8   : > { %v18836_v20 = vpop.eup %18835  ;;  %v17681_v13 = vpack.c.bf16 %v18380_v18, %v18379_v25 }
 0xff9   : > { %v2300_v22 = vmul.f32 %v18836_v20, %v18834_v16  ;;  %v18388_v34 = vpop.permute.xlu0 %18387 }
 0xffa   : > { %v18390_v35 = vunpack.i.h.bf16 %v18388_v34  ;;  %v18389_v37 = vunpack.i.l.bf16 %v18388_v34 }
 0xffb   : > { %16245 = vmatmul.mubr.msk.f32.vlgmr.msra.gmra.mrb[22].mxu0 %vm2016_vm5, %v2300_v22 }
 0xffc   : > { %16248 = vmatpush3.msk.msra.mxu0 %vm2104_vm6, %v2406_v21  ;;  %16249 = vmatprep.mubr.msk.f32.mxu0 %vm19262_vm0, %v19263_v11  ;;  %v17689_v39 = vpack.c.bf16 %v18390_v35, %v18389_v37 }
 0xffd   : > { %17676 = vmatprep.subr.bf16.mxu0 %v19261_v3 }
0x10ce   : > { %v2402_v61 = vpop.f32.mrb[22].mxu0 }
0x10cf   : > { %v16246_v9 = vpop.f32.mrb[23].mxu0  ;;  %16250 = vmatmul.mubr.msk.f32.vlgmr.msra.gmra.mrb[24].mxu0 %vm1917_vm3, %v2402_v61 }
0x10d0   : > { %17679 = vmatpush3.bf16.xpose.msk.msra.mxu0 %vm19636_vm4, %v17677_v24  ;;  %16268 = vmatprep.mubr.msk.f32.mxu0 %vm19262_vm0, %v19263_v11 }
0x10d1   : > { %17680 = vmatprep.subr.bf16.mxu0 %v19261_v3 }
0x10d8   : > { %17683 = vmatpush3.bf16.xpose.msk.msra.mxu0 %vm19636_vm4, %v17681_v13 }
0x10d9   : > { %17684 = vmatprep.subr.bf16.mxu0 %v19261_v3 }
0x10e0   : > { %17687 = vmatpush3.bf16.xpose.msk.msra.mxu0 %vm19636_vm4, %v17685_v33 }
0x10e1   : > { %17688 = vmatprep.subr.bf16.mxu0 %v19261_v3 }
0x10e8   : > { %17691 = vmatpush3.bf16.xpose.msk.msra.mxu0 %vm19636_vm4, %v17689_v39 }
0x10e9   : > { %17720 = vmatprep.subr.bf16.mxu0 %v19261_v3 }
0x10ef   : > { %16269 = vmatmul.mubr.msk.f32.vlgmr.msra.gmra.mrb[26].mxu0 %vm1917_vm3, %v2484_v31 }
0x10f0   : > { %16330 = vmatprep.mubr.msk.f32.mxu0 %vm19262_vm0, %v19263_v11 }
0x11a2   : > { %v2478_v42 = vpop.f32.mrb[24].mxu0 }
0x11a3   : > { %v19827_v43 = vadd.f32 %v2478_v42, %v2182_v41  ;;  %v16251_v46 = vpop.f32.mrb[25].mxu0 }
0x11c2   : > { %v2585_v48 = vpop.f32.mrb[26].mxu0 }
0x11c3   : > { %v2589_v49 = vmul.f32 0.5, %v2585_v48  ;;  %v16270_v50 = vpop.f32.mrb[27].mxu0 }
0x11c5   : > { %v2590_v53 = vsel %vm2016_vm5, %v2589_v49, -inf }
0x11c6   : > { %2591 = vmax.xlane.f32.xlu0 %v2590_v53 }
0x11dc   : > { %18392 = vrot.lane.b32.xlu0 %v19717_v29, %s19264_s23 }
0x11e0   : > { %18402 = vrot.lane.b32.xlu0 %v19732_v52, %s19264_s23 }
0x11e4   : > { %18412 = vrot.lane.b32.xlu0 %v19727_v45, %s19268_s17 }
0x11e8   : > { %18422 = vrot.lane.b32.xlu0 %v19665_v58, %s19268_s17  ;;  %v17696_v58 = vpack.c.bf16 %v18400_v2, %v18399_v51 }
0x11ec   : > { %2775 = vrot.lane.b32.xlu0 %v19678_v7, %s19268_s17 }
0x11f0   : > { %18432 = vrot.lane.b32.xlu0 %v19717_v29, %s19268_s17 }
0x1253   : > { %v2592_v36 = vpop.xlane.xlu0 %2591 }
0x1254   : > { %v2593_v56 = vsub.f32 %v2589_v49, %v2592_v36 }
0x1256   : > { %v2594_v62 = vmul.f32 1.442695, %v2593_v56 }
0x1257   : > { %v18393_v0 = vpop.permute.xlu0 %18392 }
0x1258   : > { %18837 = vpow2.f32 %v2594_v62  ;;  %v18395_v16 = vunpack.i.h.bf16 %v18393_v0  ;;  %v18394_v1 = vunpack.i.l.bf16 %v18393_v0 }
0x125a   : > { %v17693_v45 = vpack.c.bf16 %v18395_v16, %v18394_v1 }
0x125b   : > { %v18403_v5 = vpop.permute.xlu0 %18402 }
0x125c   : > { %17694 = vmatpush3.bf16.msra.mxu1 %v17693_v45  ;;  %v18405_v7 = vunpack.i.h.bf16 %v18403_v5  ;;  %v18404_v10 = vunpack.i.l.bf16 %v18403_v5 }
0x125d   : > { %17695 = vmatprep.subr.bf16.mxu1 %v19261_v3 }
0x125e   : > { %v17699_v20 = vpack.c.bf16 %v18405_v7, %v18404_v10 }
0x125f   : > { %v18413_v14 = vpop.permute.xlu0 %18412 }
0x1260   : > { %17697 = vmatpush3.bf16.msra.mxu1 %v17696_v58 }
0x1261   : > { %17698 = vmatprep.subr.bf16.mxu1 %v19261_v3 }
0x1262   : > { %v18838_v29 = vpop.eup %18837 }
0x1263   : > { %v18423_v21 = vpop.permute.xlu0 %18422  ;;  %v2596_v22 = vsel %vm2016_vm5, %v18838_v29, 0.0 }
0x1264   : > { %2597 = vadd.xlane.f32.xlu1 %v2596_v22  ;;  %17700 = vmatpush3.bf16.msra.mxu1 %v17699_v20  ;;  %v18425_v41 = vunpack.i.h.bf16 %v18423_v21  ;;  %v18424_v42 = vunpack.i.l.bf16 %v18423_v21 }
0x1265   : > { %17701 = vmatprep.subr.bf16.mxu1 %v19261_v3 }
0x1266   : > { %v17713_v46 = vpack.c.bf16 %v18425_v41, %v18424_v42  ;;  %v14607_v41 = vld [vmem:[%s22568_s3 + $0x240] sm:$0xff]  ;;  %v14608_v42 = vld [vmem:[%s22568_s3 + $0x248] sm:$0xff] }
0x1267   : > { %v2776_v23 = vpop.permute.xlu0 %2775 }
0x126b   : > { %v18433_v55 = vpop.permute.xlu0 %18432 }
0x126c   : > { %v18435_v57 = vunpack.i.h.bf16 %v18433_v55  ;;  %v18434_v24 = vunpack.i.l.bf16 %v18433_v55 }
0x126e   : > { %v17721_v61 = vpack.c.bf16 %v18435_v57, %v18434_v24 }
0x1270   : > { %17722 = vmatpush3.bf16.msra.mxu0 %v17721_v61  ;;  %v2990_v61 = vrot.slane %v19857_v17, 4 }
0x1271   : > { %17723 = vmatprep.subr.bf16.mxu0 %v19261_v3 }
0x1275   : > { %18407 = vrot.lane.b32.xlu1 %v19737_v30, %s19264_s23 }
0x1279   : > { %18417 = vrot.lane.b32.xlu1 %v19645_v38, %s19268_s17  ;;  %v18415_v38 = vunpack.i.h.bf16 %v18413_v14 }
0x127d   : > { %18427 = vrot.lane.b32.xlu1 %v19670_v4, %s19268_s17  ;;  %v18414_v4 = vunpack.i.l.bf16 %v18413_v14 }
0x127f   : > { %v17705_v33 = vpack.c.bf16 %v18415_v38, %v18414_v4 }
0x12f1   : > { %v2598_v6 = vpop.xlane.xlu1 %2597 }
0x12f2   : > { %18839 = vrcp.f32 %v2598_v6 }
0x12f5   : > { %v18408_v9 = vpop.permute.xlu1 %18407 }
0x12f6   : > { %v18410_v18 = vunpack.i.h.bf16 %v18408_v9  ;;  %v18409_v25 = vunpack.i.l.bf16 %v18408_v9 }
0x12f8   : > { %v17702_v13 = vpack.c.bf16 %v18410_v18, %v18409_v25 }
0x12f9   : > { %v18418_v35 = vpop.permute.xlu1 %18417 }
0x12fa   : > { %17703 = vmatpush3.bf16.msra.mxu1 %v17702_v13  ;;  %v18420_v39 = vunpack.i.h.bf16 %v18418_v35  ;;  %v18419_v31 = vunpack.i.l.bf16 %v18418_v35  ;;  %v14601_v35 = vld [vmem:[%s22568_s3 + $0x200] sm:$0xff] }
0x12fb   : > { %16290 = vmatprep.subr.mxu1 %v19263_v11 }
0x12fc   : > { %v18840_v26 = vpop.eup %18839  ;;  %v17709_v40 = vpack.c.bf16 %v18420_v39, %v18419_v31  ;;  %v14604_v31 = vld [vmem:[%s22568_s3 + $0x218] sm:$0xff] }
0x12fd   : > { %v2600_v27 = vmul.f32 %v18840_v26, %v18838_v29  ;;  %v18428_v48 = vpop.permute.xlu1 %18427 }
0x12fe   : > { %v18430_v49 = vunpack.i.h.bf16 %v18428_v48  ;;  %v18429_v50 = vunpack.i.l.bf16 %v18428_v48  ;;  %v17739_v48 = vpack.c.bf16 %v14608_v42, %v14607_v41  ;;  %v14618_v41 = vld [vmem:[%s22569_s4 + $0xf] ss:$0 sm:$0xff] }
0x12ff   : > { %16288 = vmatmul.mubr.msk.f32.vlgmr.msra.gmra.mrb[28].mxu1 %vm2016_vm5, %v2600_v27 }
0x1300   : > { %16291 = vmatpush3.msk.msra.mxu1 %vm2104_vm6, %v19857_v17  ;;  %16292 = vmatprep.mubr.msk.f32.mxu1 %vm19262_vm0, %v19263_v11  ;;  %v17717_v53 = vpack.c.bf16 %v18430_v49, %v18429_v50  ;;  %v14610_v49 = vld [vmem:[%s22568_s3 + $0x258] sm:$0xff] }
0x1301   : > { %17704 = vmatprep.subr.bf16.mxu1 %v19261_v3 }
0x13d2   : > { %v2694_v34 = vpop.f32.mrb[28].mxu1 }
0x13d3   : > { %v16289_v37 = vpop.f32.mrb[29].mxu1  ;;  %16293 = vmatmul.mubr.msk.f32.vlgmr.msra.gmra.mrb[30].mxu1 %vm1917_vm3, %v2694_v34 }
0x13d4   : > { %17707 = vmatpush3.bf16.xpose.msk.msra.mxu1 %vm19636_vm4, %v17705_v33  ;;  %16311 = vmatprep.mubr.msk.f32.mxu1 %vm19262_vm0, %v19263_v11  ;;  %v14602_v37 = vld [vmem:[%s22568_s3 + $0x208] sm:$0xff] }
0x13d5   : > { %17708 = vmatprep.subr.bf16.mxu1 %v19261_v3  ;;  %v17733_v39 = vpack.c.bf16 %v14602_v37, %v14601_v35 }
0x13dc   : > { %17711 = vmatpush3.bf16.xpose.msk.msra.mxu1 %vm19636_vm4, %v17709_v40 }
0x13dd   : > { %17712 = vmatprep.subr.bf16.mxu1 %v19261_v3 }
0x13e4   : > { %17715 = vmatpush3.bf16.xpose.msk.msra.mxu1 %vm19636_vm4, %v17713_v46  ;;  %v14609_v46 = vld [vmem:[%s22568_s3 + $0x250] sm:$0xff] }
0x13e5   : > { %17716 = vmatprep.subr.bf16.mxu1 %v19261_v3  ;;  %v17742_v50 = vpack.c.bf16 %v14610_v49, %v14609_v46 }
0x13ec   : > { %17719 = vmatpush3.bf16.xpose.msk.msra.mxu1 %vm19636_vm4, %v17717_v53  ;;  %v14611_v53 = vld [vmem:[%s22568_s3 + $0x260] sm:$0xff] }
0x13ed   : > { %17738 = vmatprep.subr.bf16.mxu1 %v19261_v3 }
0x13f3   : > { %16312 = vmatmul.mubr.msk.f32.vlgmr.msra.gmra.mrb[32].mxu1 %vm1917_vm3, %v2776_v23 }
0x13f4   : > { %16365 = vmatprep.mubr.msk.f32.mxu1 %vm19262_vm0, %v19263_v11  ;;  %17740 = vmatpush3.bf16.msra.mxu1 %v17739_v48  ;;  %v19211_v48 = vld [vmem:[%s19379_s12] sm:$0xff] }
0x13f5   : > { %17741 = vmatprep.subr.bf16.mxu1 %v19261_v3 }
0x13f8   : > { %17743 = vmatpush3.bf16.msra.mxu1 %v17742_v50  ;;  %v14633_v50 = vld [vmem:[%s22569_s4 + $0x10] ss:$0 sm:$0xff] }
0x13f9   : > { %17744 = vmatprep.subr.bf16.mxu1 %v19261_v3 }
0x14a6   : > { %v2770_v36 = vpop.f32.mrb[30].mxu1 }
0x14a7   : > { %v2774_v56 = vadd.f32 %v2770_v36, %v19827_v43  ;;  %v16294_v62 = vpop.f32.mrb[31].mxu1  ;;  %v14612_v36 = vld [vmem:[%s22568_s3 + $0x268] sm:$0xff] }
0x14c6   : > { %v2877_v28 = vpop.f32.mrb[32].mxu1 }
0x14c7   : > { %v2881_v0 = vmul.f32 0.5, %v2877_v28  ;;  %v16313_v16 = vpop.f32.mrb[33].mxu1 }
0x14c9   : > { %v2882_v1 = vsel %vm2016_vm5, %v2881_v0, -inf }
0x14ca   : > { %2883 = vmax.xlane.f32.xlu1 %v2882_v1  ;;  %v14599_v1 = vld [vmem:[%s22569_s4 + $0xa] ss:$0 sm:$0xff] }
0x14db   : > { %18437 = vrot.lane.b32.xlu1 %v19723_v44, %s19268_s17 }
0x14df   : > { %18442 = vrot.lane.b32.xlu1 %v19732_v52, %s19268_s17 }
0x1557   : > { %v2884_v2 = vpop.xlane.xlu1 %2883 }
0x1558   : > { %v2885_v51 = vsub.f32 %v2881_v0, %v2884_v2 }
0x155a   : > { %v2886_v45 = vmul.f32 1.442695, %v2885_v51  ;;  %v14600_v51 = vld [vmem:[%s22569_s4 + $0xb] ss:$0 sm:$0xff] }
0x155b   : > { %v18438_v5 = vpop.permute.xlu1 %18437 }
0x155c   : > { %18841 = vpow2.f32 %v2886_v45  ;;  %v18440_v58 = vunpack.i.h.bf16 %v18438_v5  ;;  %v18439_v43 = vunpack.i.l.bf16 %v18438_v5 }
0x155e   : > { %v17724_v7 = vpack.c.bf16 %v18440_v58, %v18439_v43  ;;  %v14613_v58 = vld [vmem:[%s22568_s3 + $0x270] sm:$0xff]  ;;  %v14614_v43 = vld [vmem:[%s22568_s3 + $0x278] sm:$0xff] }
0x155f   : > { %v18443_v10 = vpop.permute.xlu1 %18442 }
0x1560   : > { %v18445_v14 = vunpack.i.h.bf16 %v18443_v10  ;;  %v18444_v29 = vunpack.i.l.bf16 %v18443_v10  ;;  %17725 = vmatpush3.bf16.msra.mxu0 %v17724_v7  ;;  %v17748_v7 = vpack.c.bf16 %v14614_v43, %v14613_v58  ;;  %v14605_v10 = vld [vmem:[%s22569_s4 + $0xc] ss:$0 sm:$0xff] }
0x1561   : > { %17726 = vmatprep.subr.bf16.mxu0 %v19261_v3 }
0x1562   : > { %v17727_v20 = vpack.c.bf16 %v18445_v14, %v18444_v29 }
0x1564   : > { %17728 = vmatpush3.bf16.msra.mxu0 %v17727_v20 }
0x1565   : > { %17729 = vmatprep.subr.bf16.mxu0 %v19261_v3 }
0x1566   : > { %v18842_v44 = vpop.eup %18841 }
0x1567   : > { %v2888_v52 = vsel %vm2016_vm5, %v18842_v44, 0.0 }
0x1568   : > { %2889 = vadd.xlane.f32.xlu0 %v2888_v52 }
0x157e   : > { %18447 = vrot.lane.b32.xlu0 %v19737_v30, %s19268_s17 }
0x15f5   : > { %v2890_v21 = vpop.xlane.xlu0 %2889 }
0x15f6   : > { %18843 = vrcp.f32 %v2890_v21 }
0x15f9   : > { %v18448_v22 = vpop.permute.xlu0 %18447 }
0x15fa   : > { %v18450_v23 = vunpack.i.h.bf16 %v18448_v22  ;;  %v18449_v55 = vunpack.i.l.bf16 %v18448_v22 }
0x15fc   : > { %v17730_v57 = vpack.c.bf16 %v18450_v23, %v18449_v55 }
0x15fe   : > { %17731 = vmatpush3.bf16.msra.mxu0 %v17730_v57  ;;  %v14619_v57 = vld [vmem:[%s22568_s3 + $0x280] sm:$0xff] }
0x15ff   : > { %16333 = vmatprep.subr.mxu0 %v19263_v11 }
0x1600   : > { %v18844_v24 = vpop.eup %18843 }
0x1601   : > { %v2892_v6 = vmul.f32 %v18844_v24, %v18842_v44  ;;  %v14615_v44 = vld [vmem:[%s22569_s4 + $0xd] ss:$0 sm:$0xff] }
0x1602   : > { %v14620_v24 = vld [vmem:[%s22568_s3 + $0x288] sm:$0xff] }
0x1603   : > { %16331 = vmatmul.mubr.msk.f32.vlgmr.msra.gmra.mrb[28].mxu0 %vm2016_vm5, %v2892_v6 }
0x1604   : > { %16334 = vmatpush3.msk.msra.mxu0 %vm2104_vm6, %v2990_v61  ;;  %16335 = vmatprep.mubr.msk.f32.mxu0 %vm19262_vm0, %v19263_v11  ;;  %v17750_v61 = vpack.c.bf16 %v14620_v24, %v14619_v57 }
0x1605   : > { %17732 = vmatprep.subr.bf16.mxu0 %v19261_v3 }
0x16d6   : > { %v2986_v30 = vpop.f32.mrb[28].mxu0 }
0x16d7   : > { %v16332_v9 = vpop.f32.mrb[29].mxu0  ;;  %16336 = vmatmul.mubr.msk.f32.vlgmr.msra.gmra.mrb[30].mxu0 %vm1917_vm3, %v2986_v30 }
0x16d8   : > { %16346 = vmatprep.mubr.msk.f32.mxu0 %vm19262_vm0, %v19263_v11  ;;  %17734 = vmatpush3.bf16.msra.mxu0 %v17733_v39 }
0x16d9   : > { %17735 = vmatprep.subr.bf16.mxu0 %v19261_v3 }
0x17aa   : > { %v3062_v18 = vpop.f32.mrb[30].mxu0 }
0x17ab   : > { %v3066_v25 = vadd.f32 %v3062_v18, %v2774_v56  ;;  %v16337_v13 = vpop.f32.mrb[31].mxu0  ;;  %v17745_v56 = vpack.c.bf16 %v14612_v36, %v14611_v53 }
0x17ac   : > { %v14621_v13 = vld [vmem:[%s22568_s3 + $0x290] sm:$0xff] }
0x17ad   : > { %v3067_v26 = vadd.f32 %v3066_v25, %v19658_v47  ;;  %v14603_v47 = vld [vmem:[%s22568_s3 + $0x210] sm:$0xff]  ;;  %17746 = vmatpush3.bf16.msra.mxu1 %v17745_v56 }
0x17ae   : > { %v17736_v40 = vpack.c.bf16 %v14604_v31, %v14603_v47  ;;  %17747 = vmatprep.subr.bf16.mxu1 %v19261_v3  ;;  %v14617_v31 = vld [vmem:[%s22569_s4 + $0xe] ss:$0 sm:$0xff] }
0x17af   : > { %v3070_v27 = vsel %vm331_vm1, %v3067_v26, 0.0 }
0x17b0   : > { %3071 = vadd.xlane.f32.xlu1 %v3070_v27  ;;  %17737 = vmatpush3.bf16.msra.mxu0 %v17736_v40 }
0x17b1   : > { %17749 = vmatpush3.bf16.msra.mxu1 %v17748_v7  ;;  %17751 = vmatprep.subr.bf16.mxu0 %v17750_v61 }
0x17b2   : > { %17758 = vmatprep.subr.bf16.mxu1 %v19261_v3 }
0x183d   : > { %v3072_v17 = vpop.xlane.xlu1 %3071 }
0x183e   : > { %v3073_v38 = vmul.f32 0.03125, %v3072_v17  ;;  %v14627_v17 = vld [vmem:[%s22568_s3 + $0x300] sm:$0xff] }
0x1840   : > { %v3074_v4 = vsub.f32 %v3067_v26, %v3073_v38  ;;  %v14622_v26 = vld [vmem:[%s22568_s3 + $0x298] sm:$0xff]  ;;  %v14628_v38 = vld [vmem:[%s22568_s3 + $0x308] sm:$0xff] }
0x1841   : > { %v17754_v27 = vpack.c.bf16 %v14622_v26, %v14621_v13 }
0x1842   : > { %v3075_v33 = vmul.f32 %v3074_v4, %v3074_v4 }
0x1844   : > { %v3076_v34 = vsel %vm331_vm1, %v3075_v33, 0.0 }
0x1845   : > { %3077 = vadd.xlane.f32.xlu0 %v3076_v34  ;;  %v14626_v34 = vld [vmem:[%s22568_s3 + $0x2d8] sm:$0xff] }
0x18d2   : > { %v3078_v62 = vpop.xlane.xlu0 %3077 }
0x18d3   : > { %v3079_v28 = vmul.f32 0.03125, %v3078_v62 }
0x18d5   : > { %v3080_v0 = vadd.f32 1e-05, %v3079_v28 }
0x18d7   : > { %18845 = vrsqrt.f32 %v3080_v0 }
0x18e1   : > { %v18846_v16 = vpop.eup %18845 }
0x18e2   : > { %v3082_v2 = vmul.f32 %v18846_v16, %v3074_v4  ;;  %v17765_v4 = vpack.c.bf16 %v14628_v38, %v14627_v17 }
0x18e4   : > { %v3087_v45 = vmul.f32 %v14599_v1, %v3082_v2 }
0x18e6   : > { %v3092_v5 = vadd.f32 %v14600_v51, %v3087_v45 }
0x18e8   : > { %16347 = vmatmul.mubr.msk.f32.vlgmr.msra.gmra.mrb[32].mxu0 %vm331_vm1, %v3092_v5 }
0x18e9   : > { %16376 = vmatprep.mubr.msk.f32.mxu0 %vm331_vm1, %v19543_v54  ;;  %17753 = vmatpush3.bf16.msra.mxu0 %v17750_v61 }
0x18ea   : > { %17755 = vmatprep.subr.bf16.mxu0 %v17754_v27 }
0x18ed   : > { %17757 = vmatpush3.bf16.msra.mxu0 %v17754_v27 }
0x18ee   : > { %17764 = vmatprep.subr.bf16.mxu0 %v19261_v3 }
0x18f0   : > { %16377 = vmatmul.mubr.msk.f32.vlgmr.msra.gmra.mrb[34].mxu0 %vm331_vm1, %v19556_v59  ;;  %v14623_v59 = vld [vmem:[%s22568_s3 + $0x2c0] sm:$0xff] }
0x18f1   : > { %16379 = vmatprep.mubr.msk.f32.mxu0 %vm331_vm1, %v19559_v60  ;;  %v14624_v60 = vld [vmem:[%s22568_s3 + $0x2c8] sm:$0xff]  ;;  %17766 = vmatpush3.bf16.msra.mxu0 %v17765_v4 }
0x18f2   : > { %17767 = vmatprep.subr.bf16.mxu0 %v19261_v3 }
0x18f4   : > { %16380 = vmatmul.mubr.msk.f32.gmra.mrb[36].mxu0 %vm331_vm1, %v19569_v63  ;;  %v17759_v63 = vpack.c.bf16 %v14624_v60, %v14623_v59 }
0x18f5   : > { %16382 = vmatprep.mubr.msk.f32.mxu0 %vm331_vm1, %v19581_v8  ;;  %v14629_v8 = vld [vmem:[%s22568_s3 + $0x310] sm:$0xff] }
0x18f8   : > { %16383 = vmatmul.mubr.msk.f32.gmra.mrb[38].mxu0 %vm331_vm1, %v19588_v12  ;;  %v14630_v12 = vld [vmem:[%s22568_s3 + $0x318] sm:$0xff] }
0x18f9   : > { %16385 = vmatprep.mubr.msk.f32.mxu0 %vm331_vm1, %v19599_v15  ;;  %v17768_v33 = vpack.c.bf16 %v14630_v12, %v14629_v8  ;;  %v14625_v15 = vld [vmem:[%s22568_s3 + $0x2d0] sm:$0xff] }
0x18fa   : > { %v17762_v35 = vpack.c.bf16 %v14626_v34, %v14625_v15 }
0x18fb   : > { %17769 = vmatpush3.bf16.msra.mxu0 %v17768_v33 }
0x18fc   : > { %16386 = vmatmul.mubr.msk.f32.gmra.mrb[40].mxu0 %vm331_vm1, %v19606_v19 }
0x18fd   : > { %16407 = vmatprep.mubr.msk.f32.mxu0 %vm19262_vm0, %v19263_v11 }
0x19bb   : > { %v3172_v14 = vpop.f32.mrb[32].mxu0 }
0x19bc   : > { %v3173_v29 = vadd.f32 %v14605_v10, %v3172_v14  ;;  %v16348_v20 = vpop.f32.mrb[33].mxu0  ;;  %v14644_v14 = vld [vmem:[%s22569_s4 + $0x12] ss:$0 sm:$0xff] }
0x19bd   : > { %v14642_v20 = vld [vmem:[%s22569_s4 + $0x11] ss:$0 sm:$0xff] }
0x19be   : > { %v3176_v54 = vmax.f32 %v3173_v29, 0.0 }
0x19c0   : > { %16366 = vmatmul.mubr.msk.f32.vlgmr.msra.gmra.mrb[34].mxu1 %vm2016_vm5, %v3176_v54 }
0x19c1   : > { %16396 = vmatprep.mubr.msk.f32.mxu1 %vm19262_vm0, %v19263_v11  ;;  %17760 = vmatpush3.bf16.msra.mxu1 %v17759_v63 }
0x19c2   : > { %17761 = vmatprep.subr.bf16.mxu1 %v19261_v3 }
0x19c3   : > { %v16378_v53 = vpop.f32.mrb[34].mxu0 }
0x19c4   : > { %v20042_v36 = vadd.f32 %v16378_v53, %v14633_v50  ;;  %v3380_v56 = vpop.f32.mrb[35].mxu0 }
0x19c5   : > { %17763 = vmatpush3.bf16.msra.mxu1 %v17762_v35  ;;  %v20044_v62 = vadd.f32 %v14633_v50, %v3380_v56 }
0x19c7   : > { %v16381_v28 = vpop.f32.mrb[36].mxu0 }
0x19c8   : > { %v20048_v0 = vadd.f32 %v16381_v28, %v14633_v50  ;;  %v3390_v16 = vpop.f32.mrb[37].mxu0 }
0x19c9   : > { %v20050_v1 = vadd.f32 %v14633_v50, %v3390_v16 }
0x19cb   : > { %v16384_v2 = vpop.f32.mrb[38].mxu0 }
0x19cc   : > { %v20052_v51 = vadd.f32 %v16384_v2, %v14633_v50  ;;  %v3400_v45 = vpop.f32.mrb[39].mxu0 }
0x19cf   : > { %v16387_v58 = vpop.f32.mrb[40].mxu0 }
0x19d0   : > { %v20056_v43 = vadd.f32 %v16387_v58, %v14633_v50  ;;  %v3410_v7 = vpop.f32.mrb[41].mxu0 }
0x19d1   : > { %v20058_v10 = vadd.f32 %v14633_v50, %v3410_v7 }
0x1a93   : > { %v3260_v52 = vpop.f32.mrb[34].mxu1 }
0x1a94   : > { %v3261_v21 = vadd.f32 %v14615_v44, %v3260_v52  ;;  %v16367_v22 = vpop.f32.mrb[35].mxu1 }
0x1a96   : > { %v3264_v23 = vadd.f32 %v3261_v21, %v3092_v5  ;;  %v20054_v5 = vadd.f32 %v14633_v50, %v3400_v45 }
0x1a98   : > { %v3267_v55 = vsel %vm331_vm1, %v3264_v23, 0.0 }
0x1a99   : > { %3268 = vadd.xlane.f32.xlu0 %v3267_v55 }
0x1b26   : > { %v3269_v6 = vpop.xlane.xlu0 %3268 }
0x1b27   : > { %v3270_v30 = vmul.f32 0.03125, %v3269_v6 }
0x1b29   : > { %v3271_v9 = vsub.f32 %v3264_v23, %v3270_v30 }
0x1b2b   : > { %v3272_v18 = vmul.f32 %v3271_v9, %v3271_v9 }
0x1b2d   : > { %v3273_v25 = vsel %vm331_vm1, %v3272_v18, 0.0 }
0x1b2e   : > { %3274 = vadd.xlane.f32.xlu1 %v3273_v25 }
0x1bbb   : > { %v3275_v37 = vpop.xlane.xlu1 %3274 }
0x1bbc   : > { %v3276_v39 = vmul.f32 0.03125, %v3275_v37 }
0x1bbe   : > { %v3277_v19 = vadd.f32 1e-05, %v3276_v39 }
0x1bc0   : > { %18847 = vrsqrt.f32 %v3277_v19 }
0x1bca   : > { %v18848_v47 = vpop.eup %18847 }
0x1bcb   : > { %v3279_v40 = vmul.f32 %v18848_v47, %v3271_v9 }
0x1bcd   : > { %v3284_v42 = vmul.f32 %v14617_v31, %v3279_v40 }
0x1bcf   : > { %v20029_v46 = vadd.f32 %v14618_v41, %v3284_v42 }
0x1bd1   : > { %16408 = vmatmul.mubr.msk.f32.vlgmr.msra.gmra.mrb[42].mxu0 %vm331_vm1, %v20029_v46  ;;  %v20035_v49 = vadd.f32 %v19211_v48, %v20029_v46 }
0x1bd3   : > { %16397 = vmatmul.mubr.msk.f32.vlgmr.msra.gmra.mrb[36].mxu1 %vm331_vm1, %v20035_v49 }
0x1bd4   : > { %16412 = vmatprep.mubr.msk.f32.mxu1 %vm1917_vm3, %v20044_v62 }
0x1ca4   : > { %v3571_v29 = vpop.f32.mrb[42].mxu0 }
0x1ca5   : > { %v20066_v54 = vadd.f32 %v14644_v14, %v3571_v29  ;;  %v16409_v44 = vpop.f32.mrb[43].mxu0 }
0x1ca6   : > { %v3493_v52 = vpop.f32.mrb[36].mxu1 }
0x1ca7   : > { %v20068_v21 = vadd.f32 %v14642_v20, %v3493_v52  ;;  %v16398_v22 = vpop.f32.mrb[37].mxu1  ;;  %16424 = vmatprep.subr.mxu0 %v20066_v54 }
0x1ca8   : > { %16425 = vmatpush3.msra.mxu0 %v20066_v54 }
0x1ca9   : > { %16410 = vmatprep.subr.msk.mxu1 %vm1917_vm3, %v20068_v21 }
0x1caa   : > { %16411 = vmatpush3.xpose.msk.msra.mxu1 %vm1917_vm3, %v20068_v21 }
0x1cad   : > { %16413 = vmatmul.mubr.msk.f32.vlgmr.msra.gmra.mrb[38].mxu1 %vm1917_vm3, %v20042_v36 }
0x1cae   : > { %16415 = vmatprep.mubr.msk.f32.mxu1 %vm1917_vm3, %v20050_v1 }
0x1cb1   : > { %16416 = vmatmul.mubr.msk.f32.gmra.mrb[40].mxu1 %vm1917_vm3, %v20048_v0 }
0x1cb2   : > { %16418 = vmatprep.mubr.msk.f32.mxu1 %vm1917_vm3, %v20054_v5 }
0x1cb5   : > { %16419 = vmatmul.mubr.msk.f32.gmra.mrb[42].mxu1 %vm1917_vm3, %v20052_v51 }
0x1cb6   : > { %16421 = vmatprep.mubr.msk.f32.mxu1 %vm1917_vm3, %v20058_v10 }
0x1cb9   : > { %16422 = vmatmul.mubr.msk.f32.gmra.mrb[44].mxu1 %vm1917_vm3, %v20056_v43 }
0x1d80   : > { %v16414_v23 = vpop.f32.mrb[38].mxu1 }
0x1d81   : > { %v3709_v55 = vmul.f32 0.5, %v16414_v23  ;;  %v3669_v57 = vpop.f32.mrb[39].mxu1 }
0x1d82   : > { %v3708_v24 = vmul.f32 0.5, %v3669_v57 }
0x1d83   : > { %v3719_v61 = vsel %vm556_vm2, %v3709_v55, -inf }
0x1d84   : > { %3720 = vmax.xlane.f32.xlu1 %v3719_v61  ;;  %v16417_v6 = vpop.f32.mrb[40].mxu1  ;;  %v3716_v30 = vsel %vm556_vm2, %v3708_v24, -inf }
0x1d85   : > { %v3711_v9 = vmul.f32 0.5, %v16417_v6  ;;  %3717 = vmax.xlane.f32.xlu0 %v3716_v30  ;;  %v3679_v18 = vpop.f32.mrb[41].mxu1 }
0x1d86   : > { %v3710_v25 = vmul.f32 0.5, %v3679_v18 }
0x1d87   : > { %v3725_v13 = vsel %vm556_vm2, %v3711_v9, -inf }
0x1d88   : > { %3726 = vmax.xlane.f32.xlu1 %v3725_v13  ;;  %v16420_v26 = vpop.f32.mrb[42].mxu1  ;;  %v3722_v27 = vsel %vm556_vm2, %v3710_v25, -inf }
0x1d89   : > { %v3713_v17 = vmul.f32 0.5, %v16420_v26  ;;  %3723 = vmax.xlane.f32.xlu0 %v3722_v27  ;;  %v3689_v38 = vpop.f32.mrb[43].mxu1 }
0x1d8a   : > { %v3712_v4 = vmul.f32 0.5, %v3689_v38 }
0x1d8b   : > { %v3731_v59 = vsel %vm556_vm2, %v3713_v17, -inf }
0x1d8c   : > { %3732 = vmax.xlane.f32.xlu1 %v3731_v59  ;;  %v16423_v60 = vpop.f32.mrb[44].mxu1  ;;  %v3728_v63 = vsel %vm556_vm2, %v3712_v4, -inf }
0x1d8d   : > { %v3715_v8 = vmul.f32 0.5, %v16423_v60  ;;  %3729 = vmax.xlane.f32.xlu0 %v3728_v63  ;;  %v3699_v12 = vpop.f32.mrb[45].mxu1 }
0x1d8e   : > { %v3714_v33 = vmul.f32 0.5, %v3699_v12 }
0x1d8f   : > { %v3737_v15 = vsel %vm556_vm2, %v3715_v8, -inf }
0x1d90   : > { %3738 = vmax.xlane.f32.xlu1 %v3737_v15  ;;  %v3734_v34 = vsel %vm556_vm2, %v3714_v33, -inf }
0x1d91   : > { %3735 = vmax.xlane.f32.xlu0 %v3734_v34 }
0x1e11   : > { %v3721_v35 = vpop.xlane.xlu1 %3720 }
0x1e12   : > { %v3741_v37 = vsub.f32 %v3709_v55, %v3721_v35  ;;  %v3718_v39 = vpop.xlane.xlu0 %3717 }
0x1e13   : > { %v3740_v19 = vsub.f32 %v3708_v24, %v3718_v39 }
0x1e14   : > { %v3750_v47 = vmul.f32 1.442695, %v3741_v37 }
0x1e15   : > { %v3748_v31 = vmul.f32 1.442695, %v3740_v19  ;;  %v3727_v40 = vpop.xlane.xlu1 %3726 }
0x1e16   : > { %18849 = vpow2.f32 %v3750_v47  ;;  %v3743_v41 = vsub.f32 %v3711_v9, %v3727_v40  ;;  %v3724_v42 = vpop.xlane.xlu0 %3723 }
0x1e17   : > { %18851 = vpow2.f32 %v3748_v31  ;;  %v3742_v48 = vsub.f32 %v3710_v25, %v3724_v42 }
0x1e18   : > { %v3754_v50 = vmul.f32 1.442695, %v3743_v41 }
0x1e19   : > { %v3752_v53 = vmul.f32 1.442695, %v3742_v48  ;;  %v3733_v56 = vpop.xlane.xlu1 %3732 }
0x1e1a   : > { %18853 = vpow2.f32 %v3754_v50  ;;  %v3745_v28 = vsub.f32 %v3713_v17, %v3733_v56  ;;  %v3730_v16 = vpop.xlane.xlu0 %3729 }
0x1e1b   : > { %18855 = vpow2.f32 %v3752_v53  ;;  %v3744_v2 = vsub.f32 %v3712_v4, %v3730_v16 }
0x1e1c   : > { %v3758_v45 = vmul.f32 1.442695, %v3745_v28 }
0x1e1d   : > { %v3756_v58 = vmul.f32 1.442695, %v3744_v2  ;;  %v3739_v7 = vpop.xlane.xlu1 %3738 }
0x1e1e   : > { %18857 = vpow2.f32 %v3758_v45  ;;  %v3747_v14 = vsub.f32 %v3715_v8, %v3739_v7  ;;  %v3736_v29 = vpop.xlane.xlu0 %3735 }
0x1e1f   : > { %18859 = vpow2.f32 %v3756_v58  ;;  %v3746_v20 = vsub.f32 %v3714_v33, %v3736_v29 }
0x1e20   : > { %v20098_v44 = vpop.eup %18849  ;;  %v3762_v52 = vmul.f32 1.442695, %v3747_v14 }
0x1e21   : > { %v18852_v22 = vpop.eup %18851  ;;  %v3760_v23 = vmul.f32 1.442695, %v3746_v20  ;;  %v3767_v55 = vsel %vm556_vm2, %v20098_v44, 0.0 }
0x1e22   : > { %18861 = vpow2.f32 %v3762_v52  ;;  %3768 = vadd.xlane.f32.xlu1 %v3767_v55  ;;  %v3764_v57 = vsel %vm556_vm2, %v18852_v22, 0.0 }
0x1e23   : > { %18863 = vpow2.f32 %v3760_v23  ;;  %3765 = vadd.xlane.f32.xlu0 %v3764_v57 }
0x1e24   : > { %v20103_v24 = vpop.eup %18853 }
0x1e25   : > { %v18856_v61 = vpop.eup %18855  ;;  %v3773_v6 = vsel %vm556_vm2, %v20103_v24, 0.0 }
0x1e26   : > { %3774 = vadd.xlane.f32.xlu1 %v3773_v6  ;;  %v3770_v30 = vsel %vm556_vm2, %v18856_v61, 0.0 }
0x1e27   : > { %3771 = vadd.xlane.f32.xlu0 %v3770_v30 }
0x1e28   : > { %v20108_v9 = vpop.eup %18857 }
0x1e29   : > { %v20110_v18 = vpop.eup %18859  ;;  %v3779_v25 = vsel %vm556_vm2, %v20108_v9, 0.0 }
0x1e2a   : > { %3780 = vadd.xlane.f32.xlu1 %v3779_v25  ;;  %v3776_v13 = vsel %vm556_vm2, %v20110_v18, 0.0 }
0x1e2b   : > { %3777 = vadd.xlane.f32.xlu0 %v3776_v13 }
0x1e2c   : > { %v20116_v26 = vpop.eup %18861 }
0x1e2d   : > { %v20118_v27 = vpop.eup %18863  ;;  %v3785_v17 = vsel %vm556_vm2, %v20116_v26, 0.0 }
0x1e2e   : > { %3786 = vadd.xlane.f32.xlu1 %v3785_v17  ;;  %v3782_v38 = vsel %vm556_vm2, %v20118_v27, 0.0 }
0x1e2f   : > { %3783 = vadd.xlane.f32.xlu0 %v3782_v38 }
0x1e3f   : > { %4077 = vrot.lane.b32.xlu1 %v20044_v62, %s19267_s19 }
0x1e43   : > { %4079 = vrot.lane.b32.xlu1 %v20042_v36, %s19267_s19 }
0x1e45   : > { %4093 = vrot.lane.b32.xlu0 %v20068_v21, %s19267_s19 }
0x1e47   : > { %4083 = vrot.lane.b32.xlu1 %v20048_v0, %s19267_s19 }
0x1e49   : > { %4081 = vrot.lane.b32.xlu0 %v20050_v1, %s19267_s19 }
0x1e4b   : > { %4087 = vrot.lane.b32.xlu1 %v20052_v51, %s19267_s19 }
0x1e4d   : > { %4085 = vrot.lane.b32.xlu0 %v20054_v5, %s19267_s19 }
0x1e4f   : > { %4091 = vrot.lane.b32.xlu1 %v20056_v43, %s19267_s19 }
0x1e51   : > { %4089 = vrot.lane.b32.xlu0 %v20058_v10, %s19267_s19 }
0x1e53   : > { %4587 = vrot.lane.b32.xlu1 %v20044_v62, %s19264_s23 }
0x1e55   : > { %4603 = vrot.lane.b32.xlu0 %v20068_v21, %s19264_s23 }
0x1e57   : > { %4591 = vrot.lane.b32.xlu1 %v20050_v1, %s19264_s23 }
0x1e59   : > { %4589 = vrot.lane.b32.xlu0 %v20042_v36, %s19264_s23 }
0x1e5b   : > { %4595 = vrot.lane.b32.xlu1 %v20054_v5, %s19264_s23 }
0x1e5d   : > { %4593 = vrot.lane.b32.xlu0 %v20048_v0, %s19264_s23 }
0x1e5f   : > { %4599 = vrot.lane.b32.xlu1 %v20058_v10, %s19264_s23 }
0x1e61   : > { %4597 = vrot.lane.b32.xlu0 %v20052_v51, %s19264_s23 }
0x1e65   : > { %4601 = vrot.lane.b32.xlu0 %v20056_v43, %s19264_s23 }
0x1eaf   : > { %v3769_v4 = vpop.xlane.xlu1 %3768 }
0x1eb0   : > { %18865 = vrcp.f32 %v3769_v4  ;;  %v3766_v59 = vpop.xlane.xlu0 %3765 }
0x1eb1   : > { %18867 = vrcp.f32 %v3766_v59 }
0x1eb3   : > { %v3775_v60 = vpop.xlane.xlu1 %3774 }
0x1eb4   : > { %18869 = vrcp.f32 %v3775_v60  ;;  %v3772_v63 = vpop.xlane.xlu0 %3771 }
0x1eb5   : > { %18871 = vrcp.f32 %v3772_v63 }
0x1eb7   : > { %v3781_v8 = vpop.xlane.xlu1 %3780 }
0x1eb8   : > { %18873 = vrcp.f32 %v3781_v8  ;;  %v3778_v12 = vpop.xlane.xlu0 %3777 }
0x1eb9   : > { %18875 = vrcp.f32 %v3778_v12 }
0x1eba   : > { %v18866_v33 = vpop.eup %18865 }
0x1ebb   : > { %v18868_v15 = vpop.eup %18867  ;;  %v3787_v34 = vpop.xlane.xlu1 %3786  ;;  %v3797_v39 = vmul.f32 %v18866_v33, %v20098_v44 }
0x1ebc   : > { %18877 = vrcp.f32 %v3787_v34  ;;  %v3784_v35 = vpop.xlane.xlu0 %3783  ;;  %v3796_v37 = vmul.f32 %v18868_v15, %v18852_v22 }
0x1ebd   : > { %18879 = vrcp.f32 %v3784_v35 }
0x1ebe   : > { %v18870_v19 = vpop.eup %18869  ;;  %16426 = vmatprep.mubr.msk.f32.mxu0 %vm556_vm2, %v3796_v37 }
0x1ebf   : > { %v18872_v47 = vpop.eup %18871  ;;  %v4078_v31 = vpop.permute.xlu1 %4077  ;;  %16427 = vmatmul.mubr.msk.f32.vlgmr.msra.gmra.mrb[44].mxu0 %vm556_vm2, %v3797_v39  ;;  %v3799_v42 = vmul.f32 %v18870_v19, %v20103_v24 }
0x1ec0   : > { %v4094_v40 = vpop.permute.xlu0 %4093  ;;  %v3798_v41 = vmul.f32 %v18872_v47, %v18856_v61 }
0x1ec1   : > { %16452 = vmatprep.subr.msk.mxu0 %vm1917_vm3, %v4094_v40 }
0x1ec2   : > { %v18874_v48 = vpop.eup %18873  ;;  %16429 = vmatprep.mubr.msk.f32.mxu0 %vm556_vm2, %v3798_v41  ;;  %16453 = vmatpush3.xpose.msk.msra.mxu0 %vm1917_vm3, %v4094_v40 }
0x1ec3   : > { %v18876_v50 = vpop.eup %18875  ;;  %v4080_v53 = vpop.permute.xlu1 %4079  ;;  %16430 = vmatmul.mubr.msk.f32.gmra.mrb[46].mxu0 %vm556_vm2, %v3799_v42  ;;  %v3801_v16 = vmul.f32 %v18874_v48, %v20108_v9 }
0x1ec4   : > { %v4082_v56 = vpop.permute.xlu0 %4081  ;;  %v3800_v28 = vmul.f32 %v18876_v50, %v20110_v18  ;;  %v20197_v18 = vld [vmem:[%s22568_s3 + $0x340] sm:$0xff] }
0x1ec5   : > { %16438 = vmatprep.subr.msk.mxu1 %vm2104_vm6, %v20197_v18 }
0x1ec6   : > { %v18878_v2 = vpop.eup %18877  ;;  %16432 = vmatprep.mubr.msk.f32.mxu0 %vm556_vm2, %v3800_v28  ;;  %16439 = vmatpush3.msk.msra.mxu1 %vm2104_vm6, %v20197_v18 }
0x1ec7   : > { %v18880_v45 = vpop.eup %18879  ;;  %v4084_v58 = vpop.permute.xlu1 %4083  ;;  %16433 = vmatmul.mubr.msk.f32.gmra.mrb[48].mxu0 %vm556_vm2, %v3801_v16  ;;  %v3803_v29 = vmul.f32 %v18878_v2, %v20116_v26 }
0x1ec8   : > { %v4086_v7 = vpop.permute.xlu0 %4085  ;;  %v3802_v14 = vmul.f32 %v18880_v45, %v20118_v27 }
0x1eca   : > { %16435 = vmatprep.mubr.msk.f32.mxu0 %vm556_vm2, %v3802_v14 }
0x1ecb   : > { %v4088_v20 = vpop.permute.xlu1 %4087  ;;  %16436 = vmatmul.mubr.msk.f32.gmra.mrb[50].mxu0 %vm556_vm2, %v3803_v29 }
0x1ecc   : > { %16454 = vmatprep.mubr.msk.f32.mxu0 %vm1917_vm3, %v4078_v31  ;;  %v4090_v44 = vpop.permute.xlu0 %4089 }
0x1ecf   : > { %v4092_v52 = vpop.permute.xlu1 %4091  ;;  %16455 = vmatmul.mubr.msk.f32.vlgmr.msra.gmra.mrb[52].mxu0 %vm1917_vm3, %v4080_v53 }
0x1ed0   : > { %16457 = vmatprep.mubr.msk.f32.mxu0 %vm1917_vm3, %v4082_v56  ;;  %v4604_v22 = vpop.permute.xlu0 %4603 }
0x1ed1   : > { %16494 = vmatprep.subr.msk.mxu0 %vm1917_vm3, %v4604_v22 }
0x1ed2   : > { %16495 = vmatpush3.xpose.msk.msra.mxu0 %vm1917_vm3, %v4604_v22 }
0x1ed3   : > { %16458 = vmatmul.mubr.msk.f32.gmra.mrb[54].mxu0 %vm1917_vm3, %v4084_v58  ;;  %v4588_v23 = vpop.permute.xlu1 %4587 }
0x1ed4   : > { %16460 = vmatprep.mubr.msk.f32.mxu0 %vm1917_vm3, %v4086_v7  ;;  %v4590_v55 = vpop.permute.xlu0 %4589 }
0x1ed7   : > { %16461 = vmatmul.mubr.msk.f32.gmra.mrb[56].mxu0 %vm1917_vm3, %v4088_v20  ;;  %v4592_v57 = vpop.permute.xlu1 %4591 }
0x1ed8   : > { %16463 = vmatprep.mubr.msk.f32.mxu0 %vm1917_vm3, %v4090_v44  ;;  %v4594_v24 = vpop.permute.xlu0 %4593 }
0x1edb   : > { %16464 = vmatmul.mubr.msk.f32.gmra.mrb[58].mxu0 %vm1917_vm3, %v4092_v52  ;;  %v4596_v61 = vpop.permute.xlu1 %4595 }
0x1edc   : > { %16496 = vmatprep.mubr.msk.f32.mxu0 %vm1917_vm3, %v4588_v23  ;;  %v4598_v6 = vpop.permute.xlu0 %4597 }
0x1edf   : > { %16497 = vmatmul.mubr.msk.f32.vlgmr.msra.gmra.mrb[60].mxu0 %vm1917_vm3, %v4590_v55  ;;  %v4600_v30 = vpop.permute.xlu1 %4599 }
0x1ee0   : > { %16499 = vmatprep.mubr.msk.f32.mxu0 %vm1917_vm3, %v4592_v57  ;;  %v4602_v9 = vpop.permute.xlu0 %4601 }
0x1ee3   : > { %16500 = vmatmul.mubr.msk.f32.gmra.mrb[62].mxu0 %vm1917_vm3, %v4594_v24 }
0x1ee4   : > { %16502 = vmatprep.mubr.msk.f32.mxu0 %vm1917_vm3, %v4596_v61 }
0x1ee7   : > { %16503 = vmatmul.mubr.msk.f32.gmra.mrb[64].mxu0 %vm1917_vm3, %v4598_v6 }
0x1ee8   : > { %16505 = vmatprep.mubr.msk.f32.mxu0 %vm1917_vm3, %v4600_v30 }
0x1eeb   : > { %16506 = vmatmul.mubr.msk.f32.gmra.mrb[66].mxu0 %vm1917_vm3, %v4602_v9 }
0x1f92   : > { %v16428_v25 = vpop.f32.mrb[44].mxu0 }
0x1f93   : > { %v3894_v13 = vpop.f32.mrb[45].mxu0 }
0x1f94   : > { %16440 = vmatprep.mubr.msk.f32.mxu1 %vm1917_vm3, %v3894_v13 }
0x1f95   : > { %16441 = vmatmul.mubr.msk.f32.vlgmr.msra.gmra.mrb[46].mxu1 %vm1917_vm3, %v16428_v25 }
0x1f96   : > { %v16431_v26 = vpop.f32.mrb[46].mxu0 }
0x1f97   : > { %v3904_v27 = vpop.f32.mrb[47].mxu0 }
0x1f98   : > { %16443 = vmatprep.mubr.msk.f32.mxu1 %vm1917_vm3, %v3904_v27 }
0x1f99   : > { %16444 = vmatmul.mubr.msk.f32.gmra.mrb[48].mxu1 %vm1917_vm3, %v16431_v26 }
0x1f9a   : > { %v16434_v17 = vpop.f32.mrb[48].mxu0 }
0x1f9b   : > { %v3914_v38 = vpop.f32.mrb[49].mxu0 }
0x1f9c   : > { %16446 = vmatprep.mubr.msk.f32.mxu1 %vm1917_vm3, %v3914_v38 }
0x1f9d   : > { %16447 = vmatmul.mubr.msk.f32.gmra.mrb[50].mxu1 %vm1917_vm3, %v16434_v17 }
0x1f9e   : > { %v16437_v4 = vpop.f32.mrb[50].mxu0 }
0x1f9f   : > { %v3924_v59 = vpop.f32.mrb[51].mxu0 }
0x1fa0   : > { %16449 = vmatprep.mubr.msk.f32.mxu1 %vm1917_vm3, %v3924_v59 }
0x1fa1   : > { %16450 = vmatmul.mubr.msk.f32.gmra.mrb[52].mxu1 %vm1917_vm3, %v16437_v4 }
0x1fa2   : > { %v20211_v60 = vpop.f32.mrb[52].mxu0 }
0x1fa3   : > { %v20213_v63 = vpop.f32.mrb[53].mxu0 }
0x1fa6   : > { %v20215_v8 = vpop.f32.mrb[54].mxu0 }
0x1fa7   : > { %v20217_v12 = vpop.f32.mrb[55].mxu0 }
0x1faa   : > { %v20219_v33 = vpop.f32.mrb[56].mxu0 }
0x1fab   : > { %v20221_v15 = vpop.f32.mrb[57].mxu0 }
0x1fae   : > { %v20223_v34 = vpop.f32.mrb[58].mxu0 }
0x1faf   : > { %v20225_v35 = vpop.f32.mrb[59].mxu0 }
0x1fb2   : > { %v16498_v37 = vpop.f32.mrb[60].mxu0 }
0x1fb3   : > { %v4729_v39 = vmul.f32 0.5, %v16498_v37  ;;  %v4689_v19 = vpop.f32.mrb[61].mxu0 }
0x1fb4   : > { %v4728_v47 = vmul.f32 0.5, %v4689_v19 }
0x1fb5   : > { %v4739_v31 = vsel %vm556_vm2, %v4729_v39, -inf }
0x1fb6   : > { %4740 = vmax.xlane.f32.xlu0 %v4739_v31  ;;  %v16501_v40 = vpop.f32.mrb[62].mxu0  ;;  %v4736_v41 = vsel %vm556_vm2, %v4728_v47, -inf }
0x1fb7   : > { %v4731_v42 = vmul.f32 0.5, %v16501_v40  ;;  %4737 = vmax.xlane.f32.xlu1 %v4736_v41  ;;  %v4699_v48 = vpop.f32.mrb[63].mxu0 }
0x1fb8   : > { %v4730_v50 = vmul.f32 0.5, %v4699_v48 }
0x1fb9   : > { %v4745_v53 = vsel %vm556_vm2, %v4731_v42, -inf }
0x1fba   : > { %v16504_v56 = vpop.f32.mrb[64].mxu0  ;;  %v4742_v28 = vsel %vm556_vm2, %v4730_v50, -inf }
0x1fbb   : > { %v4733_v16 = vmul.f32 0.5, %v16504_v56  ;;  %4746 = vmax.xlane.f32.xlu1 %v4745_v53  ;;  %4743 = vmax.xlane.f32.xlu0 %v4742_v28  ;;  %v4709_v2 = vpop.f32.mrb[65].mxu0 }
0x1fbc   : > { %v4732_v45 = vmul.f32 0.5, %v4709_v2 }
0x1fbd   : > { %v4751_v58 = vsel %vm556_vm2, %v4733_v16, -inf }
0x1fbe   : > { %v16507_v7 = vpop.f32.mrb[66].mxu0  ;;  %v4748_v14 = vsel %vm556_vm2, %v4732_v45, -inf }
0x1fbf   : > { %v4735_v29 = vmul.f32 0.5, %v16507_v7  ;;  %4752 = vmax.xlane.f32.xlu1 %v4751_v58  ;;  %4749 = vmax.xlane.f32.xlu0 %v4748_v14  ;;  %v4719_v20 = vpop.f32.mrb[67].mxu0 }
0x1fc0   : > { %v4734_v44 = vmul.f32 0.5, %v4719_v20 }
0x1fc1   : > { %v4757_v52 = vsel %vm556_vm2, %v4735_v29, -inf }
0x1fc2   : > { %v4754_v22 = vsel %vm556_vm2, %v4734_v44, -inf }
0x1fc3   : > { %4758 = vmax.xlane.f32.xlu1 %v4757_v52  ;;  %4755 = vmax.xlane.f32.xlu0 %v4754_v22  ;;  %v20292_v22 = vmul.f32 0.5, %v20213_v63  ;;  %v20313_v63 = vmul.f32 0.5, %v20221_v15 }
0x1fd4   : > { %5112 = vrot.lane.b32.xlu1 %v20068_v21, %s19268_s17 }
0x1fd8   : > { %5096 = vrot.lane.b32.xlu1 %v20044_v62, %s19268_s17 }
0x1fd9   : > { %4824 = vrot.lane.b32.xlu0 %v20066_v54, %s19264_s23 }
0x1fdd   : > { %5098 = vrot.lane.b32.xlu0 %v20042_v36, %s19268_s17 }
0x2043   : > { %v4741_v23 = vpop.xlane.xlu0 %4740 }
0x2044   : > { %v4761_v55 = vsub.f32 %v4729_v39, %v4741_v23  ;;  %v4738_v57 = vpop.xlane.xlu1 %4737 }
0x2045   : > { %v4760_v24 = vsub.f32 %v4728_v47, %v4738_v57 }
0x2046   : > { %v4770_v61 = vmul.f32 1.442695, %v4761_v55  ;;  %v4238_v55 = vsel %vm556_vm2, %v20313_v63, -inf }
0x2047   : > { %v4768_v6 = vmul.f32 1.442695, %v4760_v24 }
0x2048   : > { %18881 = vpow2.f32 %v4770_v61  ;;  %v4747_v30 = vpop.xlane.xlu1 %4746  ;;  %v4744_v9 = vpop.xlane.xlu0 %4743 }
0x2049   : > { %18883 = vpow2.f32 %v4768_v6  ;;  %v4763_v21 = vsub.f32 %v4731_v42, %v4747_v30  ;;  %v4762_v25 = vsub.f32 %v4730_v50, %v4744_v9 }
0x204b   : > { %v4774_v13 = vmul.f32 1.442695, %v4763_v21  ;;  %v4772_v62 = vmul.f32 1.442695, %v4762_v25 }
0x204c   : > { %v4753_v26 = vpop.xlane.xlu1 %4752  ;;  %v4750_v27 = vpop.xlane.xlu0 %4749 }
0x204d   : > { %18885 = vpow2.f32 %v4774_v13  ;;  %v4765_v17 = vsub.f32 %v4733_v16, %v4753_v26  ;;  %v4764_v38 = vsub.f32 %v4732_v45, %v4750_v27 }
0x204e   : > { %18887 = vpow2.f32 %v4772_v62 }
0x204f   : > { %v4778_v36 = vmul.f32 1.442695, %v4765_v17  ;;  %v4776_v4 = vmul.f32 1.442695, %v4764_v38 }
0x2050   : > { %v4759_v59 = vpop.xlane.xlu1 %4758  ;;  %v4756_v37 = vpop.xlane.xlu0 %4755 }
0x2051   : > { %18889 = vpow2.f32 %v4778_v36  ;;  %v4767_v39 = vsub.f32 %v4735_v29, %v4759_v59  ;;  %v4766_v19 = vsub.f32 %v4734_v44, %v4756_v37 }
0x2052   : > { %v20243_v47 = vpop.eup %18881  ;;  %18891 = vpow2.f32 %v4776_v4 }
0x2053   : > { %v20245_v31 = vpop.eup %18883  ;;  %v4782_v40 = vmul.f32 1.442695, %v4767_v39  ;;  %v4780_v41 = vmul.f32 1.442695, %v4766_v19  ;;  %v4787_v42 = vsel %vm556_vm2, %v20243_v47, 0.0 }
0x2054   : > { %4788 = vadd.xlane.f32.xlu1 %v4787_v42  ;;  %v4825_v48 = vpop.permute.xlu0 %4824  ;;  %v4784_v50 = vsel %vm556_vm2, %v20245_v31, 0.0  ;;  %v20251_v53 = vpop.permute.xlu1 %5112 }
0x2055   : > { %18893 = vpow2.f32 %v4782_v40  ;;  %4785 = vadd.xlane.f32.xlu0 %v4784_v50  ;;  %16508 = vmatprep.subr.mxu0 %v4825_v48  ;;  %v14754_v50 = vld [vmem:[%s22568_s3 + $0x708] sm:$0xff] }
0x2056   : > { %18895 = vpow2.f32 %v4780_v41  ;;  %16509 = vmatpush3.msra.mxu0 %v4825_v48  ;;  %v14753_v48 = vld [vmem:[%s22568_s3 + $0x700] sm:$0xff] }
0x2057   : > { %v20253_v56 = vpop.eup %18885  ;;  %16536 = vmatprep.subr.msk.mxu0 %vm1917_vm3, %v20251_v53 }
0x2058   : > { %v20257_v28 = vpop.eup %18887  ;;  %v4793_v16 = vsel %vm556_vm2, %v20253_v56, 0.0  ;;  %v5099_v24 = vpop.permute.xlu0 %5098 }
0x2059   : > { %4794 = vadd.xlane.f32.xlu1 %v4793_v16  ;;  %v4790_v2 = vsel %vm556_vm2, %v20257_v28, 0.0  ;;  %v14756_v16 = vld [vmem:[%s22568_s3 + $0x718] sm:$0xff] }
0x205a   : > { %4791 = vadd.xlane.f32.xlu0 %v4790_v2 }
0x205b   : > { %v20263_v45 = vpop.eup %18889 }
0x205c   : > { %v20265_v58 = vpop.eup %18891  ;;  %v4799_v7 = vsel %vm556_vm2, %v20263_v45, 0.0 }
0x205d   : > { %4800 = vadd.xlane.f32.xlu1 %v4799_v7  ;;  %v4796_v14 = vsel %vm556_vm2, %v20265_v58, 0.0 }
0x205e   : > { %4797 = vadd.xlane.f32.xlu0 %v4796_v14 }
0x205f   : > { %v20271_v29 = vpop.eup %18893 }
0x2060   : > { %v20273_v20 = vpop.eup %18895  ;;  %v4805_v44 = vsel %vm556_vm2, %v20271_v29, 0.0 }
0x2061   : > { %4806 = vadd.xlane.f32.xlu1 %v4805_v44  ;;  %v4802_v52 = vsel %vm556_vm2, %v20273_v20, 0.0 }
0x2062   : > { %4803 = vadd.xlane.f32.xlu0 %v4802_v52 }
0x2072   : > { %5100 = vrot.lane.b32.xlu1 %v20050_v1, %s19268_s17  ;;  %v20295_v1 = vmul.f32 0.5, %v20211_v60 }
0x2076   : > { %5104 = vrot.lane.b32.xlu1 %v20054_v5, %s19268_s17  ;;  %v20298_v5 = vmul.f32 0.5, %v20215_v8 }
0x2078   : > { %5102 = vrot.lane.b32.xlu0 %v20048_v0, %s19268_s17  ;;  %v4226_v0 = vsel %vm556_vm2, %v20292_v22, -inf  ;;  %v4235_v60 = vsel %vm556_vm2, %v20298_v5, -inf }
0x207a   : > { %5108 = vrot.lane.b32.xlu1 %v20058_v10, %s19268_s17  ;;  %v20303_v10 = vmul.f32 0.5, %v20217_v12  ;;  %v20318_v12 = vmul.f32 0.5, %v20223_v34  ;;  %v5097_v34 = vpop.permute.xlu1 %5096 }
0x207c   : > { %5106 = vrot.lane.b32.xlu0 %v20052_v51, %s19268_s17  ;;  %v4229_v51 = vsel %vm556_vm2, %v20295_v1, -inf  ;;  %v4232_v8 = vsel %vm556_vm2, %v20303_v10, -inf  ;;  %v4247_v15 = vsel %vm556_vm2, %v20318_v12, -inf }
0x2080   : > { %5110 = vrot.lane.b32.xlu0 %v20056_v43, %s19268_s17  ;;  %v20308_v43 = vmul.f32 0.5, %v20219_v33  ;;  %v20323_v33 = vmul.f32 0.5, %v20225_v35 }
0x2082   : > { %v4241_v23 = vsel %vm556_vm2, %v20308_v43, -inf  ;;  %v4244_v57 = vsel %vm556_vm2, %v20323_v33, -inf }
0x209e   : > { %4227 = vmax.xlane.f32.xlu1 %v4226_v0 }
0x209f   : > { %4230 = vmax.xlane.f32.xlu0 %v4229_v51 }
0x20a2   : > { %4236 = vmax.xlane.f32.xlu1 %v4235_v60 }
0x20a3   : > { %4233 = vmax.xlane.f32.xlu0 %v4232_v8 }
0x20a6   : > { %4242 = vmax.xlane.f32.xlu1 %v4241_v23 }
0x20a7   : > { %4239 = vmax.xlane.f32.xlu0 %v4238_v55 }
0x20aa   : > { %4248 = vmax.xlane.f32.xlu1 %v4247_v15 }
0x20ab   : > { %4245 = vmax.xlane.f32.xlu0 %v4244_v57 }
0x20e1   : > { %v4789_v61 = vpop.xlane.xlu1 %4788 }
0x20e2   : > { %18897 = vrcp.f32 %v4789_v61  ;;  %v4786_v6 = vpop.xlane.xlu0 %4785 }
0x20e3   : > { %18899 = vrcp.f32 %v4786_v6 }
0x20e6   : > { %v4795_v35 = vpop.xlane.xlu1 %4794 }
0x20e7   : > { %18901 = vrcp.f32 %v4795_v35  ;;  %v4792_v30 = vpop.xlane.xlu0 %4791 }
0x20e8   : > { %18903 = vrcp.f32 %v4792_v30 }
0x20ea   : > { %v4801_v9 = vpop.xlane.xlu1 %4800 }
0x20eb   : > { %18905 = vrcp.f32 %v4801_v9  ;;  %v4798_v21 = vpop.xlane.xlu0 %4797 }
0x20ec   : > { %v18898_v25 = vpop.eup %18897  ;;  %18907 = vrcp.f32 %v4798_v21 }
0x20ed   : > { %v18900_v13 = vpop.eup %18899  ;;  %v4817_v27 = vmul.f32 %v18898_v25, %v20243_v47 }
0x20ee   : > { %v4807_v62 = vpop.xlane.xlu1 %4806  ;;  %v4816_v26 = vmul.f32 %v18900_v13, %v20245_v31 }
0x20ef   : > { %18909 = vrcp.f32 %v4807_v62  ;;  %v4804_v17 = vpop.xlane.xlu0 %4803 }
0x20f0   : > { %18911 = vrcp.f32 %v4804_v17  ;;  %16510 = vmatprep.mubr.msk.f32.mxu0 %vm556_vm2, %v4816_v26 }
0x20f1   : > { %v18902_v38 = vpop.eup %18901  ;;  %16511 = vmatmul.mubr.msk.f32.vlgmr.msra.gmra.mrb[68].mxu0 %vm556_vm2, %v4817_v27 }
0x20f2   : > { %v18904_v36 = vpop.eup %18903  ;;  %16537 = vmatpush3.xpose.msk.msra.mxu0 %vm1917_vm3, %v20251_v53  ;;  %v4819_v4 = vmul.f32 %v18902_v38, %v20253_v56  ;;  %v5101_v53 = vpop.permute.xlu1 %5100  ;;  %v17771_v56 = vpack.c.bf16 %v14754_v50, %v14753_v48 }
0x20f3   : > { %v4818_v59 = vmul.f32 %v18904_v36, %v20257_v28  ;;  %17770 = vmatprep.subr.bf16.mxu0 %v19261_v3  ;;  %v14755_v28 = vld [vmem:[%s22568_s3 + $0x710] sm:$0xff]  ;;  %v5103_v2 = vpop.permute.xlu0 %5102 }
0x20f5   : > { %v18906_v37 = vpop.eup %18905  ;;  %16513 = vmatprep.mubr.msk.f32.mxu0 %vm556_vm2, %v4818_v59 }
0x20f6   : > { %v18908_v39 = vpop.eup %18907  ;;  %16514 = vmatmul.mubr.msk.f32.gmra.mrb[70].mxu0 %vm556_vm2, %v4819_v4  ;;  %v4821_v19 = vmul.f32 %v18906_v37, %v20263_v45  ;;  %v17774_v45 = vpack.c.bf16 %v14756_v16, %v14755_v28 }
0x20f7   : > { %v4820_v47 = vmul.f32 %v18908_v39, %v20265_v58  ;;  %v5105_v58 = vpop.permute.xlu1 %5104  ;;  %v5107_v7 = vpop.permute.xlu0 %5106 }
0x20f9   : > { %v18910_v31 = vpop.eup %18909  ;;  %16516 = vmatprep.mubr.msk.f32.mxu0 %vm556_vm2, %v4820_v47 }
0x20fa   : > { %v18912_v40 = vpop.eup %18911  ;;  %16517 = vmatmul.mubr.msk.f32.gmra.mrb[72].mxu0 %vm556_vm2, %v4821_v19  ;;  %v4823_v41 = vmul.f32 %v18910_v31, %v20271_v29 }
0x20fb   : > { %v4822_v42 = vmul.f32 %v18912_v40, %v20273_v20  ;;  %v5109_v14 = vpop.permute.xlu1 %5108  ;;  %v5111_v29 = vpop.permute.xlu0 %5110 }
0x20fd   : > { %16519 = vmatprep.mubr.msk.f32.mxu0 %vm556_vm2, %v4822_v42 }
0x20fe   : > { %16520 = vmatmul.mubr.msk.f32.gmra.mrb[74].mxu0 %vm556_vm2, %v4823_v41 }
0x20ff   : > { %16538 = vmatprep.mubr.msk.f32.mxu0 %vm1917_vm3, %v5097_v34 }
0x2102   : > { %16539 = vmatmul.mubr.msk.f32.vlgmr.msra.gmra.mrb[76].mxu0 %vm1917_vm3, %v5099_v24 }
0x2103   : > { %16541 = vmatprep.mubr.msk.f32.mxu0 %vm1917_vm3, %v5101_v53  ;;  %17772 = vmatpush3.bf16.msra.mxu0 %v17771_v56 }
0x2104   : > { %17773 = vmatprep.subr.bf16.mxu0 %v19261_v3 }
0x2106   : > { %16542 = vmatmul.mubr.msk.f32.gmra.mrb[78].mxu0 %vm1917_vm3, %v5103_v2 }
0x2107   : > { %16544 = vmatprep.mubr.msk.f32.mxu0 %vm1917_vm3, %v5105_v58  ;;  %17775 = vmatpush3.bf16.msra.mxu0 %v17774_v45 }
0x210a   : > { %16545 = vmatmul.mubr.msk.f32.gmra.mrb[80].mxu0 %vm1917_vm3, %v5107_v7 }
0x210b   : > { %16547 = vmatprep.mubr.msk.f32.mxu0 %vm1917_vm3, %v5109_v14 }
0x210e   : > { %16548 = vmatmul.mubr.msk.f32.gmra.mrb[82].mxu0 %vm1917_vm3, %v5111_v29 }
0x210f   : > { %16586 = vmatprep.mubr.msk.f32.mxu0 %vm19262_vm0, %v19263_v11 }
0x2112   : > { %16587 = vmatmul.mubr.msk.f32.vlgmr.msra.gmra.mrb[84].mxu0 %vm331_vm1, %v20035_v49 }
0x212b   : > { %v4228_v20 = vpop.xlane.xlu1 %4227 }
0x212c   : > { %v4250_v44 = vsub.f32 %v20292_v22, %v4228_v20  ;;  %v4231_v52 = vpop.xlane.xlu0 %4230 }
0x212d   : > { %v4251_v0 = vsub.f32 %v20295_v1, %v4231_v52 }
0x212e   : > { %v4258_v51 = vmul.f32 1.442695, %v4250_v44 }
0x212f   : > { %v4260_v60 = vmul.f32 1.442695, %v4251_v0  ;;  %v4237_v8 = vpop.xlane.xlu1 %4236 }
0x2130   : > { %18913 = vpow2.f32 %v4258_v51  ;;  %v4253_v23 = vsub.f32 %v20298_v5, %v4237_v8  ;;  %v4234_v55 = vpop.xlane.xlu0 %4233 }
0x2131   : > { %18915 = vpow2.f32 %v4260_v60  ;;  %v4252_v15 = vsub.f32 %v20303_v10, %v4234_v55 }
0x2132   : > { %v4264_v57 = vmul.f32 1.442695, %v4253_v23 }
0x2133   : > { %v4262_v34 = vmul.f32 1.442695, %v4252_v15  ;;  %v4243_v24 = vpop.xlane.xlu1 %4242 }
0x2134   : > { %18917 = vpow2.f32 %v4264_v57  ;;  %v4255_v61 = vsub.f32 %v20308_v43, %v4243_v24  ;;  %v4240_v22 = vpop.xlane.xlu0 %4239  ;;  %v4447_v57 = vrot.slane %v20197_v18, 4 }
0x2135   : > { %18919 = vpow2.f32 %v4262_v34  ;;  %v4254_v1 = vsub.f32 %v20313_v63, %v4240_v22 }
0x2136   : > { %v4268_v6 = vmul.f32 1.442695, %v4255_v61 }
0x2137   : > { %v4266_v35 = vmul.f32 1.442695, %v4254_v1  ;;  %v4249_v30 = vpop.xlane.xlu1 %4248 }
0x2138   : > { %18921 = vpow2.f32 %v4268_v6  ;;  %v4257_v5 = vsub.f32 %v20318_v12, %v4249_v30  ;;  %v4246_v9 = vpop.xlane.xlu0 %4245 }
0x2139   : > { %18923 = vpow2.f32 %v4266_v35  ;;  %v4256_v10 = vsub.f32 %v20323_v33, %v4246_v9 }
0x213a   : > { %v18914_v21 = vpop.eup %18913  ;;  %v4272_v25 = vmul.f32 1.442695, %v4257_v5 }
0x213b   : > { %v20383_v13 = vpop.eup %18915  ;;  %v4270_v62 = vmul.f32 1.442695, %v4256_v10  ;;  %v4274_v43 = vsel %vm556_vm2, %v18914_v21, 0.0 }
0x213c   : > { %18925 = vpow2.f32 %v4272_v25  ;;  %4275 = vadd.xlane.f32.xlu0 %v4274_v43  ;;  %v4277_v63 = vsel %vm556_vm2, %v20383_v13, 0.0 }
0x213d   : > { %18927 = vpow2.f32 %v4270_v62  ;;  %4278 = vadd.xlane.f32.xlu1 %v4277_v63 }
0x213e   : > { %v20388_v26 = vpop.eup %18917 }
0x213f   : > { %v20390_v12 = vpop.eup %18919  ;;  %v4283_v33 = vsel %vm556_vm2, %v20388_v26, 0.0 }
0x2140   : > { %v4280_v27 = vsel %vm556_vm2, %v20390_v12, 0.0 }
0x2141   : > { %4284 = vadd.xlane.f32.xlu1 %v4283_v33  ;;  %4281 = vadd.xlane.f32.xlu0 %v4280_v27 }
0x2142   : > { %v20396_v17 = vpop.eup %18921 }
0x2143   : > { %v20398_v38 = vpop.eup %18923  ;;  %v4289_v36 = vsel %vm556_vm2, %v20396_v17, 0.0 }
0x2144   : > { %v4286_v4 = vsel %vm556_vm2, %v20398_v38, 0.0 }
0x2145   : > { %4290 = vadd.xlane.f32.xlu1 %v4289_v36  ;;  %4287 = vadd.xlane.f32.xlu0 %v4286_v4 }
0x2146   : > { %v20404_v59 = vpop.eup %18925 }
0x2147   : > { %v20406_v37 = vpop.eup %18927  ;;  %v4295_v39 = vsel %vm556_vm2, %v20404_v59, 0.0 }
0x2148   : > { %v4292_v19 = vsel %vm556_vm2, %v20406_v37, 0.0 }
0x2149   : > { %4296 = vadd.xlane.f32.xlu1 %v4295_v39  ;;  %4293 = vadd.xlane.f32.xlu0 %v4292_v19 }
0x215f   : > { %4315 = vrot.lane.b32.xlu0 %v20066_v54, %s19267_s19 }
0x21c4   : > { %v20414_v47 = vpop.f32.mrb[68].mxu0 }
0x21c5   : > { %v20416_v31 = vpop.f32.mrb[69].mxu0 }
0x21c9   : > { %v20418_v40 = vpop.f32.mrb[70].mxu0  ;;  %v4276_v41 = vpop.xlane.xlu0 %4275 }
0x21ca   : > { %v20420_v42 = vpop.f32.mrb[71].mxu0  ;;  %v4279_v48 = vpop.xlane.xlu1 %4278  ;;  %18929 = vrcp.f32 %v4276_v41 }
0x21cb   : > { %18931 = vrcp.f32 %v4279_v48 }
0x21cd   : > { %v20422_v50 = vpop.f32.mrb[72].mxu0 }
0x21ce   : > { %v20424_v53 = vpop.f32.mrb[73].mxu0  ;;  %v4285_v56 = vpop.xlane.xlu1 %4284 }
0x21cf   : > { %v4282_v28 = vpop.xlane.xlu0 %4281 }
0x21d0   : > { %18933 = vrcp.f32 %v4282_v28  ;;  %v20470_v28 = vld [vmem:[%s22568_s3 + $0x348] sm:$0xff] }
0x21d1   : > { %v20426_v16 = vpop.f32.mrb[74].mxu0  ;;  %18935 = vrcp.f32 %v4285_v56 }
0x21d2   : > { %v20428_v2 = vpop.f32.mrb[75].mxu0  ;;  %v4291_v45 = vpop.xlane.xlu1 %4290 }
0x21d3   : > { %v4288_v58 = vpop.xlane.xlu0 %4287 }
0x21d4   : > { %v18930_v7 = vpop.eup %18929  ;;  %18937 = vrcp.f32 %v4288_v58 }
0x21d5   : > { %v16540_v14 = vpop.f32.mrb[76].mxu0  ;;  %v4306_v29 = vmul.f32 %v18930_v7, %v18914_v21  ;;  %18939 = vrcp.f32 %v4291_v45  ;;  %v18932_v51 = vpop.eup %18931 }
0x21d6   : > { %v5198_v20 = vpop.f32.mrb[77].mxu0  ;;  %v4297_v0 = vpop.xlane.xlu1 %4296  ;;  %v20433_v60 = vmul.f32 0.5, %v16540_v14  ;;  %v4307_v24 = vmul.f32 %v18932_v51, %v20383_v13 }
0x21d7   : > { %v20430_v44 = vmul.f32 0.5, %v5198_v20  ;;  %v4294_v52 = vpop.xlane.xlu0 %4293  ;;  %16468 = vmatprep.mubr.msk.f32.mxu1 %vm556_vm2, %v4306_v29 }
0x21d8   : > { %18941 = vrcp.f32 %v4294_v52  ;;  %v5248_v6 = vsel %vm556_vm2, %v20433_v60, -inf }
0x21d9   : > { %v16543_v8 = vpop.f32.mrb[78].mxu0  ;;  %v5245_v23 = vsel %vm556_vm2, %v20430_v44, -inf  ;;  %18943 = vrcp.f32 %v4297_v0 }
0x21da   : > { %v18934_v55 = vpop.eup %18933  ;;  %v5208_v15 = vpop.f32.mrb[79].mxu0  ;;  %5246 = vmax.xlane.f32.xlu1 %v5245_v23  ;;  %v5240_v25 = vmul.f32 0.5, %v16543_v8 }
0x21db   : > { %v4316_v34 = vpop.permute.xlu0 %4315  ;;  %v18936_v61 = vpop.eup %18935  ;;  %v5239_v22 = vmul.f32 0.5, %v5208_v15  ;;  %v4308_v35 = vmul.f32 %v18934_v55, %v20390_v12 }
0x21dc   : > { %16466 = vmatprep.subr.mxu1 %v4316_v34  ;;  %v4309_v10 = vmul.f32 %v18936_v61, %v20388_v26  ;;  %v5254_v4 = vsel %vm556_vm2, %v5240_v25, -inf }
0x21dd   : > { %16467 = vmatpush3.msra.mxu1 %v4316_v34  ;;  %v16546_v1 = vpop.f32.mrb[80].mxu0  ;;  %v5251_v62 = vsel %vm556_vm2, %v5239_v22, -inf }
0x21de   : > { %v18938_v30 = vpop.eup %18937  ;;  %16469 = vmatmul.mubr.msk.f32.vlgmr.msra.gmra.mrb[54].mxu1 %vm556_vm2, %v4307_v24  ;;  %v20443_v5 = vmul.f32 0.5, %v16546_v1  ;;  %v5218_v18 = vpop.f32.mrb[81].mxu0  ;;  %5249 = vmax.xlane.f32.xlu1 %v5248_v6 }
0x21df   : > { %16471 = vmatprep.mubr.msk.f32.mxu1 %vm556_vm2, %v4308_v35  ;;  %16480 = vmatprep.subr.msk.mxu1 %vm2104_vm6, %v4447_v57  ;;  %v18940_v21 = vpop.eup %18939  ;;  %v4310_v43 = vmul.f32 %v18938_v30, %v20398_v38  ;;  %v5241_v27 = vmul.f32 0.5, %v5218_v18 }
0x21e0   : > { %v5260_v9 = vsel %vm556_vm2, %v20443_v5, -inf  ;;  %16481 = vmatpush3.msk.msra.mxu1 %vm2104_vm6, %v4447_v57  ;;  %v4311_v33 = vmul.f32 %v18940_v21, %v20396_v17 }
0x21e1   : > { %v16549_v13 = vpop.f32.mrb[82].mxu0  ;;  %5261 = vmax.xlane.f32.xlu0 %v5260_v9  ;;  %v5257_v48 = vsel %vm556_vm2, %v5241_v27, -inf  ;;  %16522 = vmatprep.subr.msk.mxu1 %vm2104_vm6, %v20470_v28 }
0x21e2   : > { %v18942_v63 = vpop.eup %18941  ;;  %16472 = vmatmul.mubr.msk.f32.gmra.mrb[56].mxu1 %vm556_vm2, %v4309_v10  ;;  %v5228_v12 = vpop.f32.mrb[83].mxu0  ;;  %5252 = vmax.xlane.f32.xlu1 %v5251_v62  ;;  %v5244_v17 = vmul.f32 0.5, %v16549_v13 }
0x21e3   : > { %16474 = vmatprep.mubr.msk.f32.mxu1 %vm556_vm2, %v4310_v43  ;;  %v18944_v26 = vpop.eup %18943  ;;  %v4312_v39 = vmul.f32 %v18942_v63, %v20406_v37  ;;  %v5243_v41 = vmul.f32 0.5, %v5228_v12 }
0x21e4   : > { %v4313_v19 = vmul.f32 %v18944_v26, %v20404_v59  ;;  %v5266_v37 = vsel %vm556_vm2, %v5244_v17, -inf }
0x21e5   : > { %v20456_v36 = vpop.f32.mrb[84].mxu0  ;;  %v5263_v56 = vsel %vm556_vm2, %v5243_v41, -inf }
0x21e6   : > { %16475 = vmatmul.mubr.msk.f32.gmra.mrb[58].mxu1 %vm556_vm2, %v4311_v33  ;;  %v16588_v38 = vpop.f32.mrb[85].mxu0  ;;  %5255 = vmax.xlane.f32.xlu1 %v5254_v4 }
0x21e7   : > { %16477 = vmatprep.mubr.msk.f32.mxu1 %vm556_vm2, %v4312_v39 }
0x21ea   : > { %16478 = vmatmul.mubr.msk.f32.gmra.mrb[60].mxu1 %vm556_vm2, %v4313_v19  ;;  %5258 = vmax.xlane.f32.xlu1 %v5257_v48 }
0x21ee   : > { %5264 = vmax.xlane.f32.xlu1 %v5263_v56 }
0x21f2   : > { %5267 = vmax.xlane.f32.xlu1 %v5266_v37 }
0x2267   : > { %v5247_v59 = vpop.xlane.xlu1 %5246 }
0x2268   : > { %v5269_v45 = vsub.f32 %v20430_v44, %v5247_v59 }
0x226a   : > { %v5277_v58 = vmul.f32 1.442695, %v5269_v45 }
0x226b   : > { %v5250_v7 = vpop.xlane.xlu1 %5249 }
0x226c   : > { %18945 = vpow2.f32 %v5277_v58  ;;  %v5270_v14 = vsub.f32 %v20433_v60, %v5250_v7  ;;  %v5465_v58 = vrot.slane %v20470_v28, 4 }
0x226e   : > { %v5279_v29 = vmul.f32 1.442695, %v5270_v14  ;;  %v5262_v51 = vpop.xlane.xlu0 %5261 }
0x226f   : > { %v5253_v20 = vpop.xlane.xlu1 %5252  ;;  %v5274_v15 = vsub.f32 %v20443_v5, %v5262_v51 }
0x2270   : > { %18947 = vpow2.f32 %v5279_v29  ;;  %v5271_v52 = vsub.f32 %v5239_v22, %v5253_v20 }
0x2271   : > { %v5287_v61 = vmul.f32 1.442695, %v5274_v15 }
0x2272   : > { %v5281_v0 = vmul.f32 1.442695, %v5271_v52 }
0x2273   : > { %v5256_v8 = vpop.xlane.xlu1 %5255 }
0x2274   : > { %18949 = vpow2.f32 %v5281_v0  ;;  %v5272_v23 = vsub.f32 %v5240_v25, %v5256_v8 }
0x2276   : > { %v20476_v55 = vpop.eup %18945  ;;  %v5283_v57 = vmul.f32 1.442695, %v5272_v23 }
0x2277   : > { %v5259_v44 = vpop.xlane.xlu1 %5258  ;;  %v5293_v34 = vsel %vm556_vm2, %v20476_v55, 0.0 }
0x2278   : > { %18951 = vpow2.f32 %v5283_v57  ;;  %v5273_v60 = vsub.f32 %v5241_v27, %v5259_v44  ;;  %5294 = vadd.xlane.f32.xlu1 %v5293_v34 }
0x227a   : > { %v20481_v24 = vpop.eup %18947  ;;  %v5285_v22 = vmul.f32 1.442695, %v5273_v60 }
0x227b   : > { %v5265_v1 = vpop.xlane.xlu1 %5264  ;;  %v5296_v6 = vsel %vm556_vm2, %v20481_v24, 0.0 }
0x227c   : > { %18953 = vpow2.f32 %v5285_v22  ;;  %v5275_v35 = vsub.f32 %v5243_v41, %v5265_v1  ;;  %5297 = vadd.xlane.f32.xlu1 %v5296_v6 }
0x227d   : > { %18955 = vpow2.f32 %v5287_v61 }
0x227e   : > { %v20485_v30 = vpop.eup %18949  ;;  %v5289_v5 = vmul.f32 1.442695, %v5275_v35 }
0x227f   : > { %v5268_v18 = vpop.xlane.xlu1 %5267  ;;  %v5299_v9 = vsel %vm556_vm2, %v20485_v30, 0.0 }
0x2280   : > { %18957 = vpow2.f32 %v5289_v5  ;;  %v5276_v10 = vsub.f32 %v5244_v17, %v5268_v18  ;;  %5300 = vadd.xlane.f32.xlu1 %v5299_v9 }
0x2282   : > { %v20489_v21 = vpop.eup %18951  ;;  %v5291_v25 = vmul.f32 1.442695, %v5276_v10 }
0x2283   : > { %v5302_v13 = vsel %vm556_vm2, %v20489_v21, 0.0 }
0x2284   : > { %18959 = vpow2.f32 %v5291_v25  ;;  %5303 = vadd.xlane.f32.xlu1 %v5302_v13 }
0x2286   : > { %v20493_v62 = vpop.eup %18953 }
0x2287   : > { %v5305_v43 = vsel %vm556_vm2, %v20493_v62, 0.0  ;;  %v20497_v63 = vpop.eup %18955 }
0x2288   : > { %5306 = vadd.xlane.f32.xlu1 %v5305_v43  ;;  %v5308_v26 = vsel %vm556_vm2, %v20497_v63, 0.0  ;;  %v19213_v43 = vld [vmem:[%s19519_s8 + $0x8] sm:$0xff] }
0x228a   : > { %v20499_v12 = vpop.eup %18957 }
0x228b   : > { %v5311_v33 = vsel %vm556_vm2, %v20499_v12, 0.0 }
0x228c   : > { %5312 = vadd.xlane.f32.xlu0 %v5311_v33  ;;  %5309 = vadd.xlane.f32.xlu1 %v5308_v26 }
0x228e   : > { %v20505_v27 = vpop.eup %18959 }
0x228f   : > { %v5314_v4 = vsel %vm556_vm2, %v20505_v27, 0.0 }
0x2290   : > { %5315 = vadd.xlane.f32.xlu1 %v5314_v4 }
0x22a2   : > { %5333 = vrot.lane.b32.xlu0 %v20066_v54, %s19268_s17 }
0x22b1   : > { %v16470_v39 = vpop.f32.mrb[54].mxu1 }
0x22b2   : > { %v4408_v38 = vpop.f32.mrb[55].mxu1 }
0x22b3   : > { %16482 = vmatprep.mubr.msk.f32.mxu1 %vm1917_vm3, %v4408_v38  ;;  %v19214_v38 = vld [vmem:[%s19519_s8 + $0x10] sm:$0xff] }
0x22b4   : > { %16483 = vmatmul.mubr.msk.f32.vlgmr.msra.gmra.mrb[46].mxu1 %vm1917_vm3, %v16470_v39 }
0x22b5   : > { %v16473_v19 = vpop.f32.mrb[56].mxu1  ;;  %16523 = vmatpush3.msk.msra.mxu1 %vm2104_vm6, %v20470_v28 }
0x22b6   : > { %v4418_v41 = vpop.f32.mrb[57].mxu1 }
0x22b7   : > { %16485 = vmatprep.mubr.msk.f32.mxu1 %vm1917_vm3, %v4418_v41 }
0x22b8   : > { %16486 = vmatmul.mubr.msk.f32.gmra.mrb[48].mxu1 %vm1917_vm3, %v16473_v19 }
0x22b9   : > { %v16476_v48 = vpop.f32.mrb[58].mxu1 }
0x22ba   : > { %v4428_v17 = vpop.f32.mrb[59].mxu1 }
0x22bb   : > { %16488 = vmatprep.mubr.msk.f32.mxu1 %vm1917_vm3, %v4428_v17 }
0x22bc   : > { %16489 = vmatmul.mubr.msk.f32.gmra.mrb[50].mxu1 %vm1917_vm3, %v16476_v48  ;;  %v19215_v48 = vld [vmem:[%s19519_s8 + $0x28] sm:$0xff] }
0x22bd   : > { %v16479_v54 = vpop.f32.mrb[60].mxu1 }
0x22be   : > { %v4438_v56 = vpop.f32.mrb[61].mxu1 }
0x22bf   : > { %16491 = vmatprep.mubr.msk.f32.mxu1 %vm1917_vm3, %v4438_v56 }
0x22c0   : > { %16492 = vmatmul.mubr.msk.f32.gmra.mrb[52].mxu1 %vm1917_vm3, %v16479_v54 }
0x22c1   : > { %16524 = vmatprep.mubr.msk.f32.mxu1 %vm1917_vm3, %v20416_v31 }
0x22c4   : > { %16525 = vmatmul.mubr.msk.f32.vlgmr.msra.gmra.mrb[46].mxu1 %vm1917_vm3, %v20414_v47 }
0x22c5   : > { %16527 = vmatprep.mubr.msk.f32.mxu1 %vm1917_vm3, %v20420_v42 }
0x22c8   : > { %16528 = vmatmul.mubr.msk.f32.gmra.mrb[48].mxu1 %vm1917_vm3, %v20418_v40 }
0x22c9   : > { %16530 = vmatprep.mubr.msk.f32.mxu1 %vm1917_vm3, %v20424_v53 }
0x22cc   : > { %16531 = vmatmul.mubr.msk.f32.gmra.mrb[50].mxu1 %vm1917_vm3, %v20422_v50 }
0x22cd   : > { %16533 = vmatprep.mubr.msk.f32.mxu1 %vm1917_vm3, %v20428_v2 }
0x22d0   : > { %16534 = vmatmul.mubr.msk.f32.gmra.mrb[52].mxu1 %vm1917_vm3, %v20426_v16 }
0x2305   : > { %v5295_v31 = vpop.xlane.xlu1 %5294 }
0x2306   : > { %18961 = vrcp.f32 %v5295_v31 }
0x2309   : > { %v5298_v47 = vpop.xlane.xlu1 %5297 }
0x230a   : > { %18963 = vrcp.f32 %v5298_v47  ;;  %v19216_v47 = vld [vmem:[%s19519_s8 + $0x18] sm:$0xff] }
0x230d   : > { %v5301_v37 = vpop.xlane.xlu1 %5300 }
0x230e   : > { %18965 = vrcp.f32 %v5301_v37 }
0x2310   : > { %v18962_v42 = vpop.eup %18961 }
0x2311   : > { %v5304_v59 = vpop.xlane.xlu1 %5303  ;;  %v5325_v40 = vmul.f32 %v18962_v42, %v20476_v55 }
0x2312   : > { %18967 = vrcp.f32 %v5304_v59 }
0x2313   : > { %16552 = vmatprep.mubr.msk.f32.mxu1 %vm556_vm2, %v5325_v40  ;;  %v19217_v40 = vld [vmem:[%s19519_s8 + $0x20] sm:$0xff] }
0x2314   : > { %v18964_v45 = vpop.eup %18963 }
0x2315   : > { %v5307_v50 = vpop.xlane.xlu1 %5306  ;;  %v5326_v29 = vmul.f32 %v18964_v45, %v20481_v24 }
0x2316   : > { %18969 = vrcp.f32 %v5307_v50 }
0x2318   : > { %v18966_v16 = vpop.eup %18965 }
0x2319   : > { %v5310_v53 = vpop.xlane.xlu1 %5309  ;;  %v5313_v2 = vpop.xlane.xlu0 %5312  ;;  %v5327_v52 = vmul.f32 %v18966_v16, %v20485_v30  ;;  %v14672_v30 = vld [vmem:[%s22569_s4 + $0x13] ss:$0 sm:$0xff] }
0x231a   : > { %18971 = vrcp.f32 %v5310_v53  ;;  %v19218_v16 = vld [vmem:[%s19519_s8 + $0x30] sm:$0xff] }
0x231b   : > { %18973 = vrcp.f32 %v5313_v2 }
0x231c   : > { %v18968_v20 = vpop.eup %18967 }
0x231d   : > { %v5316_v7 = vpop.xlane.xlu1 %5315  ;;  %v5334_v14 = vpop.permute.xlu0 %5333  ;;  %v5328_v28 = vmul.f32 %v18968_v20, %v20489_v21  ;;  %v19212_v21 = vld [vmem:[%s19519_s8] sm:$0xff] }
0x231e   : > { %18975 = vrcp.f32 %v5316_v7  ;;  %16550 = vmatprep.subr.mxu1 %v5334_v14 }
0x231f   : > { %16551 = vmatpush3.msra.mxu1 %v5334_v14  ;;  %v19219_v14 = vld [vmem:[%s19519_s8 + $0x38] sm:$0xff] }
0x2320   : > { %v18970_v0 = vpop.eup %18969  ;;  %16553 = vmatmul.mubr.msk.f32.vlgmr.msra.gmra.mrb[62].mxu1 %vm556_vm2, %v5326_v29  ;;  %16564 = vmatprep.subr.msk.mxu1 %vm2104_vm6, %v5465_v58 }
0x2321   : > { %16555 = vmatprep.mubr.msk.f32.mxu1 %vm556_vm2, %v5327_v52  ;;  %16565 = vmatpush3.msk.msra.mxu1 %vm2104_vm6, %v5465_v58  ;;  %v5329_v51 = vmul.f32 %v18970_v0, %v20493_v62 }
0x2322   : > { %17792 = vmatprep.subr.bf16.mxu1 %v19261_v3 }
0x2324   : > { %v18972_v8 = vpop.eup %18971  ;;  %16556 = vmatmul.mubr.msk.f32.gmra.mrb[64].mxu1 %vm556_vm2, %v5328_v28 }
0x2325   : > { %v18974_v23 = vpop.eup %18973  ;;  %16558 = vmatprep.mubr.msk.f32.mxu1 %vm556_vm2, %v5329_v51  ;;  %v5330_v55 = vmul.f32 %v18972_v8, %v20497_v63 }
0x2326   : > { %v5331_v15 = vmul.f32 %v18974_v23, %v20499_v12 }
0x2328   : > { %v18976_v57 = vpop.eup %18975  ;;  %16559 = vmatmul.mubr.msk.f32.gmra.mrb[66].mxu1 %vm556_vm2, %v5330_v55 }
0x2329   : > { %16561 = vmatprep.mubr.msk.f32.mxu1 %vm556_vm2, %v5331_v15  ;;  %v5332_v44 = vmul.f32 %v18976_v57, %v20505_v27 }
0x232c   : > { %16562 = vmatmul.mubr.msk.f32.gmra.mrb[68].mxu1 %vm556_vm2, %v5332_v44 }
0x23f3   : > { %v16554_v34 = vpop.f32.mrb[62].mxu1 }
0x23f4   : > { %v5426_v60 = vpop.f32.mrb[63].mxu1 }
0x23f5   : > { %16566 = vmatprep.mubr.msk.f32.mxu1 %vm1917_vm3, %v5426_v60 }
0x23f6   : > { %16567 = vmatmul.mubr.msk.f32.vlgmr.msra.gmra.mrb[46].mxu1 %vm1917_vm3, %v16554_v34 }
0x23f7   : > { %v16557_v24 = vpop.f32.mrb[64].mxu1 }
0x23f8   : > { %v5436_v61 = vpop.f32.mrb[65].mxu1 }
0x23f9   : > { %16569 = vmatprep.mubr.msk.f32.mxu1 %vm1917_vm3, %v5436_v61 }
0x23fa   : > { %16570 = vmatmul.mubr.msk.f32.gmra.mrb[48].mxu1 %vm1917_vm3, %v16557_v24 }
0x23fb   : > { %v16560_v22 = vpop.f32.mrb[66].mxu1 }
0x23fc   : > { %v5446_v1 = vpop.f32.mrb[67].mxu1 }
0x23fd   : > { %16572 = vmatprep.mubr.msk.f32.mxu1 %vm1917_vm3, %v5446_v1 }
0x23fe   : > { %16573 = vmatmul.mubr.msk.f32.gmra.mrb[50].mxu1 %vm1917_vm3, %v16560_v22 }
0x23ff   : > { %v16563_v6 = vpop.f32.mrb[68].mxu1 }
0x2400   : > { %v5456_v35 = vpop.f32.mrb[69].mxu1 }
0x2401   : > { %16575 = vmatprep.mubr.msk.f32.mxu1 %vm1917_vm3, %v5456_v35 }
0x2402   : > { %16576 = vmatmul.mubr.msk.f32.gmra.mrb[52].mxu1 %vm1917_vm3, %v16563_v6 }
0x2403   : > { %16645 = vmatprep.mubr.msk.f32.mxu1 %vm19262_vm0, %v19263_v11 }
0x24c9   : > { %v16568_v5 = vpop.f32.mrb[46].mxu1 }
0x24ca   : > { %v5558_v18 = vpop.f32.mrb[47].mxu1  ;;  %v18229_v9 = vadd.f32 %v16568_v5, %v14672_v30 }
0x24cb   : > { %v18230_v10 = vadd.f32 %v14672_v30, %v5558_v18 }
0x24cc   : > { %v5606_v63 = vadd.f32 %v19213_v43, %v18229_v9 }
0x24cd   : > { %v5605_v25 = vadd.f32 %v19212_v21, %v18230_v10  ;;  %v16571_v13 = vpop.f32.mrb[48].mxu1 }
0x24ce   : > { %v5568_v62 = vpop.f32.mrb[49].mxu1  ;;  %v18231_v39 = vadd.f32 %v16571_v13, %v14672_v30  ;;  %v5618_v41 = vsel %vm331_vm1, %v5606_v63, 0.0 }
0x24cf   : > { %v18232_v12 = vadd.f32 %v14672_v30, %v5568_v62  ;;  %v5615_v33 = vsel %vm331_vm1, %v5605_v25, 0.0 }
0x24d0   : > { %5616 = vadd.xlane.f32.xlu1 %v5615_v33  ;;  %v5608_v37 = vadd.f32 %v19216_v47, %v18231_v39 }
0x24d1   : > { %v16574_v26 = vpop.f32.mrb[50].mxu1  ;;  %v5607_v19 = vadd.f32 %v19214_v38, %v18232_v12 }
0x24d2   : > { %v18233_v27 = vadd.f32 %v16574_v26, %v14672_v30  ;;  %v5578_v4 = vpop.f32.mrb[51].mxu1  ;;  %v5624_v2 = vsel %vm331_vm1, %v5608_v37, 0.0 }
0x24d3   : > { %v18234_v42 = vadd.f32 %v14672_v30, %v5578_v4  ;;  %v5621_v59 = vsel %vm331_vm1, %v5607_v19, 0.0 }
0x24d4   : > { %v5610_v17 = vadd.f32 %v19215_v48, %v18233_v27  ;;  %5619 = vadd.xlane.f32.xlu1 %v5618_v41 }
0x24d5   : > { %v16577_v54 = vpop.f32.mrb[52].mxu1  ;;  %v5609_v50 = vadd.f32 %v19217_v40, %v18234_v42  ;;  %v14760_v42 = vld [vmem:[%s22568_s3 + $0x758] sm:$0xff]  ;;  %v14761_v40 = vld [vmem:[%s22568_s3 + $0x780] sm:$0xff] }
0x24d6   : > { %v5588_v56 = vpop.f32.mrb[53].mxu1  ;;  %v5630_v31 = vsel %vm331_vm1, %v5610_v17, 0.0  ;;  %v18235_v45 = vadd.f32 %v16577_v54, %v14672_v30 }
0x24d7   : > { %5631 = vadd.xlane.f32.xlu0 %v5630_v31  ;;  %v18236_v53 = vadd.f32 %v14672_v30, %v5588_v56  ;;  %v5627_v7 = vsel %vm331_vm1, %v5609_v50, 0.0  ;;  %v14757_v56 = vld [vmem:[%s22568_s3 + $0x740] sm:$0xff]  ;;  %v14758_v31 = vld [vmem:[%s22568_s3 + $0x748] sm:$0xff] }
0x24d8   : > { %5622 = vadd.xlane.f32.xlu1 %v5621_v59  ;;  %v5612_v29 = vadd.f32 %v19219_v14, %v18235_v45  ;;  %v17776_v47 = vpack.c.bf16 %v14758_v31, %v14757_v56 }
0x24d9   : > { %v5611_v58 = vadd.f32 %v19218_v16, %v18236_v53 }
0x24da   : > { %v5636_v52 = vsel %vm331_vm1, %v5612_v29, 0.0  ;;  %17777 = vmatprep.subr.bf16.mxu0 %v17776_v47 }
0x24db   : > { %v5633_v20 = vsel %vm331_vm1, %v5611_v58, 0.0  ;;  %17779 = vmatpush3.bf16.msra.mxu0 %v17776_v47 }
0x24dc   : > { %5625 = vadd.xlane.f32.xlu1 %v5624_v2 }
0x24e0   : > { %5628 = vadd.xlane.f32.xlu1 %v5627_v7 }
0x24e4   : > { %5634 = vadd.xlane.f32.xlu1 %v5633_v20 }
0x24e8   : > { %5637 = vadd.xlane.f32.xlu1 %v5636_v52 }
0x255d   : > { %v5617_v0 = vpop.xlane.xlu1 %5616 }
0x255e   : > { %v5639_v28 = vmul.f32 0.03125, %v5617_v0 }
0x2560   : > { %v20586_v51 = vsub.f32 %v5605_v25, %v5639_v28 }
0x2561   : > { %v5620_v8 = vpop.xlane.xlu1 %5619 }
0x2562   : > { %v5640_v23 = vmul.f32 0.03125, %v5620_v8  ;;  %v5655_v55 = vmul.f32 %v20586_v51, %v20586_v51 }
0x2564   : > { %v20590_v15 = vsub.f32 %v5606_v63, %v5640_v23  ;;  %v5663_v57 = vsel %vm331_vm1, %v5655_v55, 0.0  ;;  %v5632_v22 = vpop.xlane.xlu0 %5631  ;;  %v20651_v23 = vld [vmem:[%s22569_s4 + $0x14] ss:$0 sm:$0xff] }
0x2565   : > { %v5623_v44 = vpop.xlane.xlu1 %5622  ;;  %5664 = vadd.xlane.f32.xlu1 %v5663_v57  ;;  %v5644_v30 = vmul.f32 0.03125, %v5632_v22 }
0x2566   : > { %v5641_v34 = vmul.f32 0.03125, %v5623_v44  ;;  %v5656_v60 = vmul.f32 %v20590_v15, %v20590_v15 }
0x2567   : > { %v20605_v25 = vsub.f32 %v5610_v17, %v5644_v30 }
0x2568   : > { %v20595_v24 = vsub.f32 %v5607_v19, %v5641_v34  ;;  %v5666_v61 = vsel %vm331_vm1, %v5656_v60, 0.0  ;;  %v20659_v34 = vld [vmem:[%s22569_s4 + $0x15] ss:$0 sm:$0xff] }
0x2569   : > { %v5626_v1 = vpop.xlane.xlu1 %5625  ;;  %5667 = vadd.xlane.f32.xlu1 %v5666_v61  ;;  %v5660_v27 = vmul.f32 %v20605_v25, %v20605_v25 }
0x256a   : > { %v5642_v6 = vmul.f32 0.03125, %v5626_v1  ;;  %v5657_v35 = vmul.f32 %v20595_v24, %v20595_v24 }
0x256b   : > { %v5678_v41 = vsel %vm331_vm1, %v5660_v27, 0.0 }
0x256c   : > { %v20600_v5 = vsub.f32 %v5608_v37, %v5642_v6  ;;  %v5669_v18 = vsel %vm331_vm1, %v5657_v35, 0.0  ;;  %v14759_v37 = vld [vmem:[%s22568_s3 + $0x750] sm:$0xff] }
0x256d   : > { %v5629_v9 = vpop.xlane.xlu1 %5628  ;;  %5670 = vadd.xlane.f32.xlu1 %v5669_v18  ;;  %v17780_v59 = vpack.c.bf16 %v14760_v42, %v14759_v37  ;;  %v19222_v42 = vld [vmem:[%s19524_s13 + $0x10] sm:$0xff] }
0x256e   : > { %v5643_v10 = vmul.f32 0.03125, %v5629_v9  ;;  %v5658_v21 = vmul.f32 %v20600_v5, %v20600_v5 }
0x256f   : > { %17781 = vmatprep.subr.bf16.mxu0 %v17780_v59 }
0x2570   : > { %v20607_v13 = vsub.f32 %v5609_v50, %v5643_v10  ;;  %v5672_v62 = vsel %vm331_vm1, %v5658_v21, 0.0  ;;  %17783 = vmatpush3.bf16.msra.mxu0 %v17780_v59  ;;  %v14762_v50 = vld [vmem:[%s22568_s3 + $0x788] sm:$0xff]  ;;  %v19220_v21 = vld [vmem:[%s19524_s13] sm:$0xff] }
0x2571   : > { %5673 = vadd.xlane.f32.xlu1 %v5672_v62  ;;  %v5635_v43 = vpop.xlane.xlu1 %5634  ;;  %v20644_v53 = vpack.c.bf16 %v14762_v50, %v14761_v40 }
0x2572   : > { %v5645_v63 = vmul.f32 0.03125, %v5635_v43  ;;  %v5659_v12 = vmul.f32 %v20607_v13, %v20607_v13 }
0x2573   : > { %17785 = vmatprep.subr.bf16.mxu0 %v20644_v53 }
0x2574   : > { %v20612_v33 = vsub.f32 %v5611_v58, %v5645_v63  ;;  %v5675_v26 = vsel %vm331_vm1, %v5659_v12, 0.0  ;;  %v14763_v12 = vld [vmem:[%s22568_s3 + $0x790] sm:$0xff] }
0x2575   : > { %5676 = vadd.xlane.f32.xlu1 %v5675_v26  ;;  %v5638_v4 = vpop.xlane.xlu1 %5637  ;;  %v14764_v26 = vld [vmem:[%s22568_s3 + $0x798] sm:$0xff] }
0x2576   : > { %v5646_v39 = vmul.f32 0.03125, %v5638_v4  ;;  %v5661_v38 = vmul.f32 %v20612_v33, %v20612_v33 }
0x2578   : > { %v20619_v19 = vsub.f32 %v5612_v29, %v5646_v39  ;;  %v5681_v48 = vsel %vm331_vm1, %v5661_v38, 0.0 }
0x2579   : > { %5679 = vadd.xlane.f32.xlu1 %v5678_v41  ;;  %5682 = vadd.xlane.f32.xlu0 %v5681_v48  ;;  %v19221_v48 = vld [vmem:[%s19524_s13 + $0x8] sm:$0xff] }
0x257a   : > { %v5662_v17 = vmul.f32 %v20619_v19, %v20619_v19 }
0x257c   : > { %v5684_v54 = vsel %vm331_vm1, %v5662_v17, 0.0 }
0x257d   : > { %5685 = vadd.xlane.f32.xlu1 %v5684_v54  ;;  %v17788_v54 = vpack.c.bf16 %v14764_v26, %v14763_v12 }
0x25f2   : > { %v5665_v2 = vpop.xlane.xlu1 %5664 }
0x25f3   : > { %v5687_v45 = vmul.f32 0.03125, %v5665_v2  ;;  %v19223_v2 = vld [vmem:[%s19524_s13 + $0x18] sm:$0xff] }
0x25f5   : > { %v5695_v16 = vadd.f32 1e-05, %v5687_v45 }
0x25f6   : > { %v5668_v58 = vpop.xlane.xlu1 %5667 }
0x25f7   : > { %18977 = vrsqrt.f32 %v5695_v16  ;;  %v5688_v7 = vmul.f32 0.03125, %v5668_v58 }
0x25f9   : > { %v5696_v14 = vadd.f32 1e-05, %v5688_v7 }
0x25fa   : > { %v5671_v29 = vpop.xlane.xlu1 %5670 }
0x25fb   : > { %18979 = vrsqrt.f32 %v5696_v14  ;;  %v5689_v20 = vmul.f32 0.03125, %v5671_v29 }
0x25fd   : > { %v5697_v52 = vadd.f32 1e-05, %v5689_v20  ;;  %v19224_v20 = vld [vmem:[%s19524_s13 + $0x20] sm:$0xff] }
0x25fe   : > { %v5674_v0 = vpop.xlane.xlu1 %5673 }
0x25ff   : > { %18981 = vrsqrt.f32 %v5697_v52  ;;  %v5690_v28 = vmul.f32 0.03125, %v5674_v0 }
0x2601   : > { %v18978_v8 = vpop.eup %18977  ;;  %v5698_v55 = vadd.f32 1e-05, %v5690_v28 }
0x2602   : > { %v5711_v57 = vmul.f32 %v18978_v8, %v20586_v51  ;;  %v5677_v44 = vpop.xlane.xlu1 %5676 }
0x2603   : > { %18983 = vrsqrt.f32 %v5698_v55  ;;  %v5691_v60 = vmul.f32 0.03125, %v5677_v44 }
0x2604   : > { %v5723_v61 = vmul.f32 %v20651_v23, %v5711_v57  ;;  %v19225_v57 = vld [vmem:[%s19524_s13 + $0x30] sm:$0xff] }
0x2605   : > { %v18980_v22 = vpop.eup %18979  ;;  %v5699_v1 = vadd.f32 1e-05, %v5691_v60  ;;  %v19226_v60 = vld [vmem:[%s19524_s13 + $0x28] sm:$0xff] }
0x2606   : > { %v20663_v6 = vadd.f32 %v20659_v34, %v5723_v61  ;;  %v5712_v35 = vmul.f32 %v18980_v22, %v20590_v15  ;;  %v5683_v30 = vpop.xlane.xlu0 %5682  ;;  %v5680_v51 = vpop.xlane.xlu1 %5679 }
0x2607   : > { %18985 = vrsqrt.f32 %v5699_v1  ;;  %v5693_v18 = vmul.f32 0.03125, %v5683_v30  ;;  %v5692_v9 = vmul.f32 0.03125, %v5680_v51 }
0x2608   : > { %5743 = vst.msk [vmem:[%s20666_s26] sm:$0xff] %vm331_vm1, %v20663_v6  ;;  %v5724_v10 = vmul.f32 %v20651_v23, %v5712_v35  ;;  %v20674_v62 = vadd.f32 %v19220_v21, %v20663_v6 }
0x2609   : > { %v18982_v15 = vpop.eup %18981  ;;  %v5701_v43 = vadd.f32 1e-05, %v5693_v18  ;;  %v5700_v63 = vadd.f32 1e-05, %v5692_v9 }
0x260a   : > { %v20683_v27 = vadd.f32 %v20659_v34, %v5724_v10  ;;  %v5713_v4 = vmul.f32 %v18982_v15, %v20595_v24  ;;  %16597 = vmatprep.mubr.msk.f32.mxu0 %vm331_vm1, %v20674_v62  ;;  %v5686_v39 = vpop.xlane.xlu1 %5685 }
0x260b   : > { %18987 = vrsqrt.f32 %v5701_v43  ;;  %v5694_v38 = vmul.f32 0.03125, %v5686_v39 }
0x260c   : > { %5744 = vst.msk [vmem:[%s20666_s26 + $0x8] sm:$0xff] %vm331_vm1, %v20683_v27  ;;  %v5725_v41 = vmul.f32 %v20651_v23, %v5713_v4  ;;  %18989 = vrsqrt.f32 %v5700_v63  ;;  %v20694_v17 = vadd.f32 %v19221_v48, %v20683_v27 }
0x260d   : > { %v18984_v24 = vpop.eup %18983  ;;  %v5702_v56 = vadd.f32 1e-05, %v5694_v38 }
0x260e   : > { %v20697_v31 = vadd.f32 %v20659_v34, %v5725_v41  ;;  %v5714_v47 = vmul.f32 %v18984_v24, %v20600_v5  ;;  %16598 = vmatmul.mubr.msk.f32.vlgmr.msra.gmra.mrb[86].mxu0 %vm331_vm1, %v20694_v17  ;;  %v14767_v41 = vld [vmem:[%s22569_s4 + $0x2c] ss:$0 sm:$0xff] }
0x260f   : > { %18991 = vrsqrt.f32 %v5702_v56  ;;  %17787 = vmatpush3.bf16.msra.mxu0 %v20644_v53 }
0x2610   : > { %5745 = vst.msk [vmem:[%s20666_s26 + $0x10] sm:$0xff] %vm331_vm1, %v20697_v31  ;;  %v5726_v37 = vmul.f32 %v20651_v23, %v5714_v47  ;;  %v20709_v59 = vadd.f32 %v19222_v42, %v20697_v31  ;;  %17789 = vmatprep.subr.bf16.mxu0 %v17788_v54  ;;  %v14778_v42 = vld [vmem:[%s22569_s4 + $0x2e] ss:$0 sm:$0xff] }
0x2611   : > { %v18986_v40 = vpop.eup %18985 }
0x2612   : > { %v20712_v5 = vadd.f32 %v20659_v34, %v5726_v37  ;;  %v5715_v50 = vmul.f32 %v18986_v40, %v20607_v13  ;;  %16600 = vmatprep.mubr.msk.f32.mxu0 %vm331_vm1, %v20709_v59  ;;  %v20830_v40 = vadd.f32 %v14767_v41, %v20456_v36 }
0x2613   : > { %17791 = vmatpush3.bf16.msra.mxu0 %v17788_v54 }
0x2614   : > { %5746 = vst.msk [vmem:[%s20666_s26 + $0x18] sm:$0xff] %vm331_vm1, %v20712_v5  ;;  %v5727_v53 = vmul.f32 %v20651_v23, %v5715_v50  ;;  %v20723_v45 = vadd.f32 %v19223_v2, %v20712_v5  ;;  %17808 = vmatprep.subr.bf16.mxu0 %v19261_v3 }
0x2615   : > { %v18988_v16 = vpop.eup %18987 }
0x2616   : > { %v18990_v58 = vpop.eup %18989  ;;  %v20727_v13 = vadd.f32 %v20659_v34, %v5727_v53  ;;  %v5717_v7 = vmul.f32 %v18988_v16, %v20612_v33  ;;  %16601 = vmatmul.mubr.msk.f32.gmra.mrb[88].mxu0 %vm331_vm1, %v20723_v45 }
0x2617   : > { %v5716_v14 = vmul.f32 %v18990_v58, %v20605_v25 }
0x2618   : > { %5747 = vst.msk [vmem:[%s20666_s26 + $0x20] sm:$0xff] %vm331_vm1, %v20727_v13  ;;  %v5729_v29 = vmul.f32 %v20651_v23, %v5717_v7  ;;  %v20739_v52 = vadd.f32 %v19224_v20, %v20727_v13 }
0x2619   : > { %v18992_v0 = vpop.eup %18991  ;;  %v5728_v33 = vmul.f32 %v20651_v23, %v5716_v14 }
0x261a   : > { %v20743_v28 = vadd.f32 %v20659_v34, %v5729_v29  ;;  %v5718_v25 = vmul.f32 %v18992_v0, %v20619_v19  ;;  %16603 = vmatprep.mubr.msk.f32.mxu0 %vm331_vm1, %v20739_v52 }
0x261b   : > { %v20749_v8 = vadd.f32 %v20659_v34, %v5728_v33 }
0x261c   : > { %5749 = vst.msk [vmem:[%s20666_s26 + $0x30] sm:$0xff] %vm331_vm1, %v20743_v28  ;;  %v5730_v55 = vmul.f32 %v20651_v23, %v5718_v25  ;;  %v20757_v44 = vadd.f32 %v19225_v57, %v20743_v28  ;;  %v19227_v23 = vld [vmem:[%s19524_s13 + $0x38] sm:$0xff] }
0x261d   : > { %5748 = vst.msk [vmem:[%s20666_s26 + $0x28] sm:$0xff] %vm331_vm1, %v20749_v8  ;;  %v20764_v19 = vadd.f32 %v19226_v60, %v20749_v8 }
0x261e   : > { %v20767_v61 = vadd.f32 %v20659_v34, %v5730_v55  ;;  %v14769_v34 = vld [vmem:[%s22569_s4 + $0x2d] ss:$0 sm:$0xff] }
0x261f   : > { %16604 = vmatmul.mubr.msk.f32.gmra.mrb[90].mxu0 %vm331_vm1, %v20764_v19 }
0x2620   : > { %5750 = vst.msk [vmem:[%s20666_s26 + $0x38] sm:$0xff] %vm331_vm1, %v20767_v61  ;;  %16606 = vmatprep.mubr.msk.f32.mxu0 %vm331_vm1, %v20757_v44  ;;  %v20778_v22 = vadd.f32 %v19227_v23, %v20767_v61 }
0x2623   : > { %16607 = vmatmul.mubr.msk.f32.gmra.mrb[92].mxu0 %vm331_vm1, %v20778_v22 }
0x2624   : > { %16617 = vmatprep.mubr.msk.f32.mxu0 %vm331_vm1, %v20663_v6 }
0x2627   : > { %16618 = vmatmul.mubr.msk.f32.vlgmr.msra.gmra.mrb[94].mxu0 %vm331_vm1, %v20683_v27 }
0x2628   : > { %16620 = vmatprep.mubr.msk.f32.mxu0 %vm331_vm1, %v20697_v31 }
0x262b   : > { %16621 = vmatmul.mubr.msk.f32.gmra.mrb[96].mxu0 %vm331_vm1, %v20712_v5 }
0x262c   : > { %16623 = vmatprep.mubr.msk.f32.mxu0 %vm331_vm1, %v20727_v13 }
0x262f   : > { %16624 = vmatmul.mubr.msk.f32.gmra.mrb[98].mxu0 %vm331_vm1, %v20749_v8 }
0x2630   : > { %16626 = vmatprep.mubr.msk.f32.mxu0 %vm331_vm1, %v20743_v28 }
0x2633   : > { %16627 = vmatmul.mubr.msk.f32.gmra.mrb[100].mxu0 %vm331_vm1, %v20767_v61 }
0x2634   : > { %16664 = vmatprep.mubr.msk.f32.mxu0 %vm19262_vm0, %v19263_v11 }
0x26e1   : > { %v16599_v1 = vpop.f32.mrb[86].mxu0 }
0x26e2   : > { %v5953_v35 = vadd.f32 %v16599_v1, %v14769_v34  ;;  %v5947_v30 = vpop.f32.mrb[87].mxu0 }
0x26e3   : > { %v5948_v51 = vadd.f32 %v14769_v34, %v5947_v30 }
0x26e5   : > { %v17793_v18 = vpack.c.bf16 %v5953_v35, %v5948_v51  ;;  %v20803_v9 = vpack.i.bf16 %v5953_v35, %v5948_v51 }
0x26e7   : > { %18452 = vrot.lane.b32.xlu0 %v20803_v9, %s19267_s19  ;;  %17795 = vmatpush3.bf16.xpose.msk.msra.mxu1 %vm19636_vm4, %v17793_v18 }
0x26e8   : > { %17796 = vmatprep.subr.bf16.mxu1 %v19261_v3 }
0x26e9   : > { %v16602_v10 = vpop.f32.mrb[88].mxu0 }
0x26ea   : > { %v5963_v21 = vadd.f32 %v16602_v10, %v14769_v34  ;;  %v5957_v15 = vpop.f32.mrb[89].mxu0 }
0x26eb   : > { %v5958_v43 = vadd.f32 %v14769_v34, %v5957_v15 }
0x26ed   : > { %v17797_v63 = vpack.c.bf16 %v5963_v21, %v5958_v43  ;;  %v20810_v12 = vpack.i.bf16 %v5963_v21, %v5958_v43 }
0x26ef   : > { %18457 = vrot.lane.b32.xlu1 %v20810_v12, %s19267_s19  ;;  %17799 = vmatpush3.bf16.xpose.msk.msra.mxu1 %vm19636_vm4, %v17797_v63 }
0x26f0   : > { %17800 = vmatprep.subr.bf16.mxu1 %v19261_v3 }
0x26f2   : > { %v16605_v26 = vpop.f32.mrb[90].mxu0 }
0x26f3   : > { %v5973_v4 = vadd.f32 %v16605_v26, %v14769_v34  ;;  %v5967_v39 = vpop.f32.mrb[91].mxu0 }
0x26f4   : > { %v5968_v38 = vadd.f32 %v14769_v34, %v5967_v39 }
0x26f6   : > { %v17801_v48 = vpack.c.bf16 %v5973_v4, %v5968_v38  ;;  %v16608_v54 = vpop.f32.mrb[92].mxu0  ;;  %v20820_v24 = vpack.i.bf16 %v5973_v4, %v5968_v38 }
0x26f7   : > { %v5983_v56 = vadd.f32 %v16608_v54, %v14769_v34  ;;  %v5977_v47 = vpop.f32.mrb[93].mxu0 }
0x26f8   : > { %v5978_v37 = vadd.f32 %v14769_v34, %v5977_v47  ;;  %18462 = vrot.lane.b32.xlu1 %v20820_v24, %s19267_s19  ;;  %17803 = vmatpush3.bf16.xpose.msk.msra.mxu1 %vm19636_vm4, %v17801_v48 }
0x26f9   : > { %17804 = vmatprep.subr.bf16.mxu1 %v19261_v3 }
0x26fa   : > { %v17805_v50 = vpack.c.bf16 %v5983_v56, %v5978_v37  ;;  %v16619_v53 = vpop.f32.mrb[94].mxu0  ;;  %v20833_v2 = vpack.i.bf16 %v5983_v56, %v5978_v37 }
0x26fb   : > { %v6087_v16 = vadd.f32 %v16619_v53, %v14778_v42  ;;  %v6081_v58 = vpop.f32.mrb[95].mxu0 }
0x26fc   : > { %v6082_v7 = vadd.f32 %v14778_v42, %v6081_v58  ;;  %6384 = vrot.lane.b32.xlu1 %v20830_v40, %s19267_s19  ;;  %18467 = vrot.lane.b32.xlu0 %v20833_v2, %s19267_s19 }
0x26fe   : > { %v16622_v14 = vpop.f32.mrb[96].mxu0  ;;  %v17809_v29 = vpack.c.bf16 %v6087_v16, %v6082_v7  ;;  %v20839_v20 = vpack.i.bf16 %v6087_v16, %v6082_v7 }
0x26ff   : > { %v6097_v36 = vadd.f32 %v16622_v14, %v14778_v42  ;;  %v6091_v0 = vpop.f32.mrb[97].mxu0 }
0x2700   : > { %v6092_v33 = vadd.f32 %v14778_v42, %v6091_v0  ;;  %17807 = vmatpush3.bf16.xpose.msk.msra.mxu1 %vm19636_vm4, %v17805_v50  ;;  %17810 = vmatpush3.bf16.msra.mxu0 %v17809_v29 }
0x2701   : > { %17811 = vmatprep.subr.bf16.mxu0 %v19261_v3  ;;  %17820 = vmatprep.subr.bf16.mxu1 %v19261_v3 }
0x2702   : > { %v16625_v25 = vpop.f32.mrb[98].mxu0  ;;  %v17812_v55 = vpack.c.bf16 %v6097_v36, %v6092_v33  ;;  %v20845_v57 = vpack.i.bf16 %v6097_v36, %v6092_v33 }
0x2703   : > { %v6107_v60 = vadd.f32 %v16625_v25, %v14778_v42  ;;  %v6101_v23 = vpop.f32.mrb[99].mxu0 }
0x2704   : > { %v6102_v34 = vadd.f32 %v14778_v42, %v6101_v23  ;;  %17813 = vmatpush3.bf16.msra.mxu0 %v17812_v55 }
0x2705   : > { %17814 = vmatprep.subr.bf16.mxu0 %v19261_v3 }
0x2706   : > { %v16628_v1 = vpop.f32.mrb[100].mxu0  ;;  %v17815_v35 = vpack.c.bf16 %v6107_v60, %v6102_v34  ;;  %v20848_v30 = vpack.i.bf16 %v6107_v60, %v6102_v34 }
0x2707   : > { %v6117_v51 = vadd.f32 %v16628_v1, %v14778_v42  ;;  %v6111_v18 = vpop.f32.mrb[101].mxu0  ;;  %16646 = vmatmul.mubr.msk.f32.vlgmr.msra.gmra.mrb[70].mxu1 %vm1917_vm3, %v20830_v40 }
0x2708   : > { %v6112_v10 = vadd.f32 %v14778_v42, %v6111_v18  ;;  %17816 = vmatpush3.bf16.msra.mxu0 %v17815_v35  ;;  %16688 = vmatprep.mubr.msk.f32.mxu1 %vm19262_vm0, %v19263_v11 }
0x2709   : > { %17817 = vmatprep.subr.bf16.mxu0 %v19261_v3 }
0x270a   : > { %v17818_v21 = vpack.c.bf16 %v6117_v51, %v6112_v10  ;;  %v20855_v15 = vpack.i.bf16 %v6117_v51, %v6112_v10 }
0x270c   : > { %17819 = vmatpush3.bf16.msra.mxu0 %v17818_v21 }
0x270d   : > { %16667 = vmatprep.subr.mxu0 %v19263_v11 }
0x2759   : > { %v18453_v43 = vpop.permute.xlu0 %18452 }
0x275a   : > { %v18455_v63 = vunpack.i.h.bf16 %v18453_v43  ;;  %v18454_v26 = vunpack.i.l.bf16 %v18453_v43 }
0x275c   : > { %v17821_v4 = vpack.c.bf16 %v18455_v63, %v18454_v26 }
0x275e   : > { %17823 = vmatpush3.bf16.xpose.msk.msra.mxu1 %vm19636_vm4, %v17821_v4 }
0x275f   : > { %17824 = vmatprep.subr.bf16.mxu1 %v19261_v3 }
0x2761   : > { %v18458_v39 = vpop.permute.xlu1 %18457 }
0x2762   : > { %v18460_v38 = vunpack.i.h.bf16 %v18458_v39  ;;  %v18459_v41 = vunpack.i.l.bf16 %v18458_v39  ;;  %v14765_v39 = vld [vmem:[%s22568_s3 + $0x7c0] sm:$0xff] }
0x2764   : > { %v17825_v48 = vpack.c.bf16 %v18460_v38, %v18459_v41 }
0x2766   : > { %17827 = vmatpush3.bf16.xpose.msk.msra.mxu1 %vm19636_vm4, %v17825_v48 }
0x2767   : > { %17828 = vmatprep.subr.bf16.mxu1 %v19261_v3 }
0x276a   : > { %v18463_v54 = vpop.permute.xlu1 %18462 }
0x276b   : > { %v18465_v56 = vunpack.i.h.bf16 %v18463_v54  ;;  %v18464_v47 = vunpack.i.l.bf16 %v18463_v54 }
0x276d   : > { %v17829_v37 = vpack.c.bf16 %v18465_v56, %v18464_v47 }
0x276e   : > { %v18468_v42 = vpop.permute.xlu0 %18467  ;;  %v6385_v58 = vpop.permute.xlu1 %6384 }
0x276f   : > { %17831 = vmatpush3.bf16.xpose.msk.msra.mxu1 %vm19636_vm4, %v17829_v37  ;;  %v18470_v50 = vunpack.i.h.bf16 %v18468_v42  ;;  %v18469_v53 = vunpack.i.l.bf16 %v18468_v42 }
0x2770   : > { %17832 = vmatprep.subr.bf16.mxu1 %v19261_v3 }
0x2771   : > { %v17833_v16 = vpack.c.bf16 %v18470_v50, %v18469_v53 }
0x2777   : > { %17835 = vmatpush3.bf16.xpose.msk.msra.mxu1 %vm19636_vm4, %v17833_v16 }
0x2778   : > { %17864 = vmatprep.subr.bf16.mxu1 %v19261_v3 }
0x277e   : > { %16689 = vmatmul.mubr.msk.f32.vlgmr.msra.gmra.mrb[72].mxu1 %vm1917_vm3, %v6385_v58 }
0x277f   : > { %16750 = vmatprep.mubr.msk.f32.mxu1 %vm19262_vm0, %v19263_v11 }
0x27da   : > { %v6214_v7 = vpop.f32.mrb[70].mxu1 }
0x27db   : > { %v6218_v14 = vmul.f32 0.5, %v6214_v7  ;;  %v16647_v29 = vpop.f32.mrb[71].mxu1 }
0x27dd   : > { %v6219_v36 = vsel %vm2016_vm5, %v6218_v14, -inf }
0x27de   : > { %6220 = vmax.xlane.f32.xlu0 %v6219_v36 }
0x2851   : > { %v6486_v0 = vpop.f32.mrb[72].mxu1 }
0x2852   : > { %v6490_v33 = vmul.f32 0.5, %v6486_v0  ;;  %v16690_v25 = vpop.f32.mrb[73].mxu1 }
0x2854   : > { %v6491_v55 = vsel %vm2016_vm5, %v6490_v33, -inf }
0x2855   : > { %6492 = vmax.xlane.f32.xlu0 %v6491_v55 }
0x286b   : > { %v6221_v60 = vpop.xlane.xlu0 %6220 }
0x286c   : > { %v6222_v23 = vsub.f32 %v6218_v14, %v6221_v60 }
0x286e   : > { %v6223_v34 = vmul.f32 1.442695, %v6222_v23 }
0x2870   : > { %18993 = vpow2.f32 %v6223_v34 }
0x287a   : > { %v18994_v1 = vpop.eup %18993 }
0x287b   : > { %v6225_v35 = vsel %vm2016_vm5, %v18994_v1, 0.0 }
0x287c   : > { %6226 = vadd.xlane.f32.xlu1 %v6225_v35 }
0x288d   : > { %18472 = vrot.lane.b32.xlu1 %v20839_v20, %s19267_s19 }
0x2891   : > { %18482 = vrot.lane.b32.xlu1 %v20848_v30, %s19267_s19 }
0x2895   : > { %18487 = vrot.lane.b32.xlu1 %v20855_v15, %s19267_s19 }
0x2899   : > { %18497 = vrot.lane.b32.xlu1 %v20810_v12, %s19264_s23 }
0x289d   : > { %18507 = vrot.lane.b32.xlu1 %v20833_v2, %s19264_s23 }
0x28e2   : > { %v6493_v51 = vpop.xlane.xlu0 %6492 }
0x28e3   : > { %v6494_v18 = vsub.f32 %v6490_v33, %v6493_v51 }
0x28e5   : > { %v6495_v10 = vmul.f32 1.442695, %v6494_v18 }
0x28e7   : > { %18995 = vpow2.f32 %v6495_v10  ;;  %v6607_v10 = vrot.slane %v14765_v39, 4 }
0x28f1   : > { %v18996_v21 = vpop.eup %18995 }
0x28f2   : > { %v6497_v43 = vsel %vm2016_vm5, %v18996_v21, 0.0 }
0x28f3   : > { %6498 = vadd.xlane.f32.xlu0 %v6497_v43 }
0x2909   : > { %v6227_v63 = vpop.xlane.xlu1 %6226  ;;  %18477 = vrot.lane.b32.xlu0 %v20845_v57, %s19267_s19 }
0x290a   : > { %18997 = vrcp.f32 %v6227_v63 }
0x290d   : > { %18492 = vrot.lane.b32.xlu0 %v20803_v9, %s19264_s23  ;;  %v18473_v53 = vpop.permute.xlu1 %18472 }
0x290e   : > { %v18475_v16 = vunpack.i.h.bf16 %v18473_v53  ;;  %v18474_v58 = vunpack.i.l.bf16 %v18473_v53 }
0x2910   : > { %v17837_v14 = vpack.c.bf16 %v18475_v16, %v18474_v58 }
0x2911   : > { %18502 = vrot.lane.b32.xlu0 %v20820_v24, %s19264_s23  ;;  %v18483_v7 = vpop.permute.xlu1 %18482 }
0x2912   : > { %v18485_v25 = vunpack.i.h.bf16 %v18483_v7  ;;  %v18484_v55 = vunpack.i.l.bf16 %v18483_v7 }
0x2914   : > { %v18998_v26 = vpop.eup %18997  ;;  %v17843_v34 = vpack.c.bf16 %v18485_v25, %v18484_v55 }
0x2915   : > { %v6229_v4 = vmul.f32 %v18998_v26, %v18994_v1  ;;  %6684 = vrot.lane.b32.xlu0 %v20830_v40, %s19264_s23  ;;  %v18488_v23 = vpop.permute.xlu1 %18487 }
0x2916   : > { %v18490_v1 = vunpack.i.h.bf16 %v18488_v23  ;;  %v18489_v35 = vunpack.i.l.bf16 %v18488_v23 }
0x2917   : > { %16665 = vmatmul.mubr.msk.f32.vlgmr.msra.gmra.mrb[102].mxu0 %vm2016_vm5, %v6229_v4 }
0x2918   : > { %16669 = vmatprep.mubr.msk.f32.mxu0 %vm19262_vm0, %v19263_v11  ;;  %16668 = vmatpush3.msk.msra.mxu0 %vm2104_vm6, %v14765_v39  ;;  %v17846_v18 = vpack.c.bf16 %v18490_v1, %v18489_v35 }
0x2919   : > { %18512 = vrot.lane.b32.xlu0 %v20839_v20, %s19264_s23  ;;  %17836 = vmatprep.subr.bf16.mxu0 %v19261_v3  ;;  %v18498_v39 = vpop.permute.xlu1 %18497 }
0x291d   : > { %v18508_v58 = vpop.permute.xlu1 %18507 }
0x291e   : > { %v18510_v7 = vunpack.i.h.bf16 %v18508_v58 }
0x2980   : > { %v6499_v38 = vpop.xlane.xlu0 %6498 }
0x2981   : > { %18999 = vrcp.f32 %v6499_v38 }
0x2984   : > { %v18478_v41 = vpop.permute.xlu0 %18477 }
0x2985   : > { %v18480_v29 = vunpack.i.h.bf16 %v18478_v41  ;;  %v18479_v36 = vunpack.i.l.bf16 %v18478_v41 }
0x2987   : > { %v17840_v60 = vpack.c.bf16 %v18480_v29, %v18479_v36 }
0x2988   : > { %v18493_v48 = vpop.permute.xlu0 %18492 }
0x2989   : > { %v18495_v4 = vunpack.i.h.bf16 %v18493_v48  ;;  %v18494_v38 = vunpack.i.l.bf16 %v18493_v48 }
0x298b   : > { %v19000_v51 = vpop.eup %18999  ;;  %v17849_v41 = vpack.c.bf16 %v18495_v4, %v18494_v38 }
0x298c   : > { %v20905_v54 = vpop.permute.xlu0 %18502  ;;  %v6501_v43 = vmul.f32 %v19000_v51, %v18996_v21  ;;  %v18500_v21 = vunpack.i.h.bf16 %v18498_v39 }
0x298d   : > { %v18505_v48 = vunpack.i.h.bf16 %v20905_v54  ;;  %v18504_v53 = vunpack.i.l.bf16 %v20905_v54  ;;  %v14799_v54 = vld [vmem:[%s22569_s4 + $0x2f] ss:$0 sm:$0xff] }
0x298f   : > { %v17857_v16 = vpack.c.bf16 %v18505_v48, %v18504_v53 }
0x2990   : > { %v20907_v56 = vpop.permute.xlu0 %6684 }
0x2994   : > { %v18513_v47 = vpop.permute.xlu0 %18512 }
0x2995   : > { %v18515_v37 = vunpack.i.h.bf16 %v18513_v47  ;;  %v18514_v42 = vunpack.i.l.bf16 %v18513_v47 }
0x2997   : > { %v17865_v50 = vpack.c.bf16 %v18515_v37, %v18514_v42  ;;  %v18499_v42 = vunpack.i.l.bf16 %v18498_v39 }
0x2999   : > { %17866 = vmatpush3.bf16.msra.mxu1 %v17865_v50  ;;  %v17853_v50 = vpack.c.bf16 %v18500_v21, %v18499_v42  ;;  %v20974_v42 = vld [vmem:[%s22568_s3 + $0x7c8] sm:$0xff] }
0x299a   : > { %17867 = vmatprep.subr.bf16.mxu1 %v19261_v3 }
0x29ea   : > { %v6299_v0 = vpop.f32.mrb[102].mxu0 }
0x29eb   : > { %v16666_v33 = vpop.f32.mrb[103].mxu0  ;;  %16670 = vmatmul.mubr.msk.f32.vlgmr.msra.gmra.mrb[104].mxu0 %vm1917_vm3, %v6299_v0 }
0x29ec   : > { %17838 = vmatpush3.bf16.msra.mxu0 %v17837_v14  ;;  %16707 = vmatprep.mubr.msk.f32.mxu0 %vm19262_vm0, %v19263_v11  ;;  %v18509_v14 = vunpack.i.l.bf16 %v18508_v58 }
0x29ed   : > { %17839 = vmatprep.subr.bf16.mxu0 %v19261_v3 }
0x29ee   : > { %v17861_v29 = vpack.c.bf16 %v18510_v7, %v18509_v14 }
0x29f0   : > { %17841 = vmatpush3.bf16.msra.mxu0 %v17840_v60 }
0x29f1   : > { %17842 = vmatprep.subr.bf16.mxu0 %v19261_v3 }
0x29f4   : > { %17844 = vmatpush3.bf16.msra.mxu0 %v17843_v34 }
0x29f5   : > { %17845 = vmatprep.subr.bf16.mxu0 %v19261_v3 }
0x29f8   : > { %17847 = vmatpush3.bf16.msra.mxu0 %v17846_v18 }
0x29f9   : > { %16710 = vmatprep.subr.mxu0 %v19263_v11 }
0x29fb   : > { %16708 = vmatmul.mubr.msk.f32.vlgmr.msra.gmra.mrb[106].mxu0 %vm2016_vm5, %v6501_v43 }
0x29fc   : > { %16711 = vmatpush3.msk.msra.mxu0 %vm2104_vm6, %v6607_v10  ;;  %16712 = vmatprep.mubr.msk.f32.mxu0 %vm19262_vm0, %v19263_v11 }
0x29fd   : > { %17848 = vmatprep.subr.bf16.mxu0 %v19261_v3 }
0x2abe   : > { %v6375_v63 = vpop.f32.mrb[104].mxu0 }
0x2abf   : > { %v16671_v26 = vpop.f32.mrb[105].mxu0  ;;  %v6383_v36 = vadd.f32 %v14799_v54, %v6375_v63 }
0x2ace   : > { %v6603_v47 = vpop.f32.mrb[106].mxu0 }
0x2acf   : > { %v16709_v37 = vpop.f32.mrb[107].mxu0  ;;  %16713 = vmatmul.mubr.msk.f32.vlgmr.msra.gmra.mrb[108].mxu0 %vm1917_vm3, %v6603_v47 }
0x2ad0   : > { %17851 = vmatpush3.bf16.xpose.msk.msra.mxu0 %vm19636_vm4, %v17849_v41  ;;  %16731 = vmatprep.mubr.msk.f32.mxu0 %vm19262_vm0, %v19263_v11 }
0x2ad1   : > { %17852 = vmatprep.subr.bf16.mxu0 %v19261_v3 }
0x2ad8   : > { %17855 = vmatpush3.bf16.xpose.msk.msra.mxu0 %vm19636_vm4, %v17853_v50 }
0x2ad9   : > { %17856 = vmatprep.subr.bf16.mxu0 %v19261_v3 }
0x2ae0   : > { %17859 = vmatpush3.bf16.xpose.msk.msra.mxu0 %vm19636_vm4, %v17857_v16 }
0x2ae1   : > { %17860 = vmatprep.subr.bf16.mxu0 %v19261_v3 }
0x2ae8   : > { %17863 = vmatpush3.bf16.xpose.msk.msra.mxu0 %vm19636_vm4, %v17861_v29 }
0x2ae9   : > { %17892 = vmatprep.subr.bf16.mxu0 %v19261_v3 }
0x2aef   : > { %16732 = vmatmul.mubr.msk.f32.vlgmr.msra.gmra.mrb[110].mxu0 %vm1917_vm3, %v20907_v56 }
0x2af0   : > { %16793 = vmatprep.mubr.msk.f32.mxu0 %vm19262_vm0, %v19263_v11 }
0x2ba2   : > { %v6679_v0 = vpop.f32.mrb[108].mxu0 }
0x2ba3   : > { %v20946_v33 = vadd.f32 %v6679_v0, %v6383_v36  ;;  %v16714_v25 = vpop.f32.mrb[109].mxu0 }
0x2bc2   : > { %v6786_v55 = vpop.f32.mrb[110].mxu0 }
0x2bc3   : > { %v6790_v60 = vmul.f32 0.5, %v6786_v55  ;;  %v16733_v23 = vpop.f32.mrb[111].mxu0 }
0x2bc5   : > { %v6791_v34 = vsel %vm2016_vm5, %v6790_v60, -inf }
0x2bc6   : > { %6792 = vmax.xlane.f32.xlu1 %v6791_v34 }
0x2bd7   : > { %18517 = vrot.lane.b32.xlu1 %v20845_v57, %s19264_s23 }
0x2bdb   : > { %18522 = vrot.lane.b32.xlu1 %v20848_v30, %s19264_s23 }
0x2bdf   : > { %18532 = vrot.lane.b32.xlu1 %v20803_v9, %s19268_s17 }
0x2be3   : > { %18542 = vrot.lane.b32.xlu1 %v20820_v24, %s19268_s17 }
0x2be7   : > { %6976 = vrot.lane.b32.xlu1 %v20830_v40, %s19268_s17 }
0x2beb   : > { %18557 = vrot.lane.b32.xlu1 %v20845_v57, %s19268_s17 }
0x2c53   : > { %v6793_v56 = vpop.xlane.xlu1 %6792 }
0x2c54   : > { %v6794_v1 = vsub.f32 %v6790_v60, %v6793_v56  ;;  %v14846_v56 = vld [vmem:[%s22568_s3 + $0x400] sm:$0xff] }
0x2c56   : > { %v6795_v35 = vmul.f32 1.442695, %v6794_v1  ;;  %v14847_v1 = vld [vmem:[%s22568_s3 + $0x408] sm:$0xff] }
0x2c57   : > { %v18518_v51 = vpop.permute.xlu1 %18517 }
0x2c58   : > { %19001 = vpow2.f32 %v6795_v35  ;;  %v18520_v18 = vunpack.i.h.bf16 %v18518_v51  ;;  %v18519_v10 = vunpack.i.l.bf16 %v18518_v51  ;;  %v17917_v35 = vpack.c.bf16 %v14847_v1, %v14846_v56  ;;  %v14848_v51 = vld [vmem:[%s22568_s3 + $0x410] sm:$0xff] }
0x2c59   : > { %v7191_v56 = vrot.slane %v20974_v42, 4 }
0x2c5a   : > { %v17868_v43 = vpack.c.bf16 %v18520_v18, %v18519_v10  ;;  %v14849_v18 = vld [vmem:[%s22568_s3 + $0x418] sm:$0xff] }
0x2c5b   : > { %v18523_v63 = vpop.permute.xlu1 %18522 }
0x2c5c   : > { %v18525_v26 = vunpack.i.h.bf16 %v18523_v63  ;;  %v18524_v9 = vunpack.i.l.bf16 %v18523_v63  ;;  %17869 = vmatpush3.bf16.msra.mxu1 %v17868_v43  ;;  %v17920_v43 = vpack.c.bf16 %v14849_v18, %v14848_v51  ;;  %v14841_v18 = vld [vmem:[%s22568_s3 + $0x398] sm:$0xff] }
0x2c5d   : > { %17870 = vmatprep.subr.bf16.mxu1 %v19261_v3 }
0x2c5e   : > { %v17871_v24 = vpack.c.bf16 %v18525_v26, %v18524_v9 }
0x2c60   : > { %17872 = vmatpush3.bf16.msra.mxu1 %v17871_v24 }
0x2c61   : > { %17873 = vmatprep.subr.bf16.mxu1 %v19261_v3 }
0x2c62   : > { %v19002_v40 = vpop.eup %19001 }
0x2c63   : > { %v6797_v57 = vsel %vm2016_vm5, %v19002_v40, 0.0 }
0x2c64   : > { %6798 = vadd.xlane.f32.xlu0 %v6797_v57 }
0x2c7a   : > { %18527 = vrot.lane.b32.xlu0 %v20855_v15, %s19264_s23 }
0x2c7e   : > { %18537 = vrot.lane.b32.xlu0 %v20810_v12, %s19268_s17  ;;  %v18533_v12 = vpop.permute.xlu1 %18532 }
0x2c7f   : > { %v18534_v50 = vunpack.i.l.bf16 %v18533_v12 }
0x2c82   : > { %18547 = vrot.lane.b32.xlu0 %v20833_v2, %s19268_s17  ;;  %v18535_v2 = vunpack.i.h.bf16 %v18533_v12  ;;  %v18543_v54 = vpop.permute.xlu1 %18542 }
0x2c83   : > { %v18545_v36 = vunpack.i.h.bf16 %v18543_v54  ;;  %v18544_v0 = vunpack.i.l.bf16 %v18543_v54 }
0x2c84   : > { %v17877_v48 = vpack.c.bf16 %v18535_v2, %v18534_v50 }
0x2c85   : > { %v17885_v25 = vpack.c.bf16 %v18545_v36, %v18544_v0 }
0x2c86   : > { %v6977_v10 = vpop.permute.xlu1 %6976 }
0x2c8a   : > { %v18558_v12 = vpop.permute.xlu1 %18557 }
0x2cf1   : > { %v6799_v4 = vpop.xlane.xlu0 %6798 }
0x2cf2   : > { %19003 = vrcp.f32 %v6799_v4 }
0x2cf5   : > { %v18528_v38 = vpop.permute.xlu0 %18527 }
0x2cf6   : > { %v18530_v41 = vunpack.i.h.bf16 %v18528_v38  ;;  %v18529_v47 = vunpack.i.l.bf16 %v18528_v38  ;;  %v14858_v38 = vld [vmem:[%s22569_s4 + $0x18] ss:$0 sm:$0xff] }
0x2cf8   : > { %v17874_v39 = vpack.c.bf16 %v18530_v41, %v18529_v47 }
0x2cf9   : > { %v18538_v16 = vpop.permute.xlu0 %18537 }
0x2cfa   : > { %17875 = vmatpush3.bf16.msra.mxu1 %v17874_v39  ;;  %v18540_v7 = vunpack.i.h.bf16 %v18538_v16  ;;  %v18539_v14 = vunpack.i.l.bf16 %v18538_v16  ;;  %v18559_v16 = vunpack.i.l.bf16 %v18558_v12 }
0x2cfb   : > { %16753 = vmatprep.subr.mxu1 %v19263_v11 }
0x2cfc   : > { %v19004_v37 = vpop.eup %19003  ;;  %v17881_v29 = vpack.c.bf16 %v18540_v7, %v18539_v14 }
0x2cfd   : > { %v6801_v21 = vmul.f32 %v19004_v37, %v19002_v40  ;;  %v18548_v55 = vpop.permute.xlu0 %18547 }
0x2cfe   : > { %v18550_v60 = vunpack.i.h.bf16 %v18548_v55  ;;  %v18549_v23 = vunpack.i.l.bf16 %v18548_v55 }
0x2cff   : > { %16751 = vmatmul.mubr.msk.f32.vlgmr.msra.gmra.mrb[74].mxu1 %vm2016_vm5, %v6801_v21 }
0x2d00   : > { %16754 = vmatpush3.msk.msra.mxu1 %vm2104_vm6, %v20974_v42  ;;  %16755 = vmatprep.mubr.msk.f32.mxu1 %vm19262_vm0, %v19263_v11  ;;  %v17889_v34 = vpack.c.bf16 %v18550_v60, %v18549_v23  ;;  %v14840_v42 = vld [vmem:[%s22568_s3 + $0x390] sm:$0xff] }
0x2d01   : > { %17876 = vmatprep.subr.bf16.mxu1 %v19261_v3 }
0x2dd2   : > { %v6895_v53 = vpop.f32.mrb[74].mxu1 }
0x2dd3   : > { %v16752_v58 = vpop.f32.mrb[75].mxu1  ;;  %16756 = vmatmul.mubr.msk.f32.vlgmr.msra.gmra.mrb[76].mxu1 %vm1917_vm3, %v6895_v53  ;;  %v18560_v53 = vunpack.i.h.bf16 %v18558_v12  ;;  %v14856_v12 = vld [vmem:[%s22569_s4 + $0x17] ss:$0 sm:$0xff] }
0x2dd4   : > { %17879 = vmatpush3.bf16.xpose.msk.msra.mxu1 %vm19636_vm4, %v17877_v48  ;;  %16774 = vmatprep.mubr.msk.f32.mxu1 %vm19262_vm0, %v19263_v11 }
0x2dd5   : > { %17880 = vmatprep.subr.bf16.mxu1 %v19261_v3  ;;  %v17896_v14 = vpack.c.bf16 %v18560_v53, %v18559_v16 }
0x2ddc   : > { %17883 = vmatpush3.bf16.xpose.msk.msra.mxu1 %vm19636_vm4, %v17881_v29 }
0x2ddd   : > { %17884 = vmatprep.subr.bf16.mxu1 %v19261_v3 }
0x2de4   : > { %17887 = vmatpush3.bf16.xpose.msk.msra.mxu1 %vm19636_vm4, %v17885_v25 }
0x2de5   : > { %17888 = vmatprep.subr.bf16.mxu1 %v19261_v3 }
0x2dec   : > { %17891 = vmatpush3.bf16.xpose.msk.msra.mxu1 %vm19636_vm4, %v17889_v34 }
0x2ded   : > { %17916 = vmatprep.subr.bf16.mxu1 %v19261_v3 }
0x2df3   : > { %16775 = vmatmul.mubr.msk.f32.vlgmr.msra.gmra.mrb[78].mxu1 %vm1917_vm3, %v6977_v10 }
0x2df4   : > { %17918 = vmatpush3.bf16.msra.mxu1 %v17917_v35  ;;  %16831 = vmatprep.mubr.msk.f32.mxu1 %vm19262_vm0, %v19263_v11  ;;  %v14839_v35 = vld [vmem:[%s22568_s3 + $0x388] sm:$0xff] }
0x2df5   : > { %17919 = vmatprep.subr.bf16.mxu1 %v19261_v3 }
0x2df8   : > { %17921 = vmatpush3.bf16.msra.mxu1 %v17920_v43 }
0x2df9   : > { %16839 = vmatprep.subr.mxu1 %v19263_v11 }
0x2dfb   : > { %16832 = vmatmul.mubr.msk.f32.vlgmr.msra.gmra.mrb[80].mxu1 %vm331_vm1, %v20029_v46 }
0x2dfc   : > { %16841 = vmatprep.mubr.msk.f32.mxu1 %vm19262_vm0, %v19263_v11 }
0x2ea6   : > { %v6971_v63 = vpop.f32.mrb[76].mxu1 }
0x2ea7   : > { %v21019_v26 = vadd.f32 %v6971_v63, %v20946_v33  ;;  %v16757_v9 = vpop.f32.mrb[77].mxu1  ;;  %v17908_v63 = vpack.c.bf16 %v14841_v18, %v14840_v42 }
0x2ea8   : > { %v14842_v9 = vld [vmem:[%s22568_s3 + $0x3c0] sm:$0xff] }
0x2ec6   : > { %v7078_v24 = vpop.f32.mrb[78].mxu1 }
0x2ec7   : > { %v7082_v40 = vmul.f32 0.5, %v7078_v24  ;;  %v16776_v57 = vpop.f32.mrb[79].mxu1  ;;  %v14843_v24 = vld [vmem:[%s22568_s3 + $0x3c8] sm:$0xff] }
0x2ec8   : > { %v14844_v57 = vld [vmem:[%s22568_s3 + $0x3d0] sm:$0xff] }
0x2ec9   : > { %v7083_v4 = vsel %vm2016_vm5, %v7082_v40, -inf }
0x2eca   : > { %7084 = vmax.xlane.f32.xlu0 %v7083_v4  ;;  %v14845_v4 = vld [vmem:[%s22568_s3 + $0x3d8] sm:$0xff] }
0x2ece   : > { %v7536_v41 = vpop.f32.mrb[80].mxu1 }
0x2ecf   : > { %v21025_v47 = vadd.f32 %v14858_v38, %v7536_v41  ;;  %v16833_v39 = vpop.f32.mrb[81].mxu1  ;;  %v17914_v38 = vpack.c.bf16 %v14845_v4, %v14844_v57 }
0x2ed1   : > { %16840 = vmatpush3.msra.mxu1 %v21025_v47 }
0x2ed2   : > { %16849 = vmatprep.subr.mxu1 %v19263_v11 }
0x2ee0   : > { %18552 = vrot.lane.b32.xlu0 %v20839_v20, %s19268_s17 }
0x2ee4   : > { %18562 = vrot.lane.b32.xlu0 %v20848_v30, %s19268_s17 }
0x2f57   : > { %v7085_v33 = vpop.xlane.xlu0 %7084 }
0x2f58   : > { %v7086_v37 = vsub.f32 %v7082_v40, %v7085_v33  ;;  %v17911_v40 = vpack.c.bf16 %v14843_v24, %v14842_v9 }
0x2f5a   : > { %v7087_v21 = vmul.f32 1.442695, %v7086_v37 }
0x2f5b   : > { %v18553_v2 = vpop.permute.xlu0 %18552 }
0x2f5c   : > { %19005 = vpow2.f32 %v7087_v21  ;;  %v18555_v50 = vunpack.i.h.bf16 %v18553_v2  ;;  %v18554_v48 = vunpack.i.l.bf16 %v18553_v2 }
0x2f5e   : > { %v17893_v58 = vpack.c.bf16 %v18555_v50, %v18554_v48  ;;  %v14854_v50 = vld [vmem:[%s22569_s4 + $0x16] ss:$0 sm:$0xff] }
0x2f5f   : > { %v18563_v7 = vpop.permute.xlu0 %18562 }
0x2f60   : > { %17894 = vmatpush3.bf16.msra.mxu0 %v17893_v58  ;;  %v18565_v20 = vunpack.i.h.bf16 %v18563_v7  ;;  %v18564_v29 = vunpack.i.l.bf16 %v18563_v7 }
0x2f61   : > { %17895 = vmatprep.subr.bf16.mxu0 %v19261_v3 }
0x2f62   : > { %v17899_v54 = vpack.c.bf16 %v18565_v20, %v18564_v29 }
0x2f64   : > { %17897 = vmatpush3.bf16.msra.mxu0 %v17896_v14 }
0x2f65   : > { %17898 = vmatprep.subr.bf16.mxu0 %v19261_v3 }
0x2f66   : > { %v19006_v30 = vpop.eup %19005 }
0x2f67   : > { %v7089_v36 = vsel %vm2016_vm5, %v19006_v30, 0.0 }
0x2f68   : > { %7090 = vadd.xlane.f32.xlu1 %v7089_v36  ;;  %17900 = vmatpush3.bf16.msra.mxu0 %v17899_v54 }
0x2f69   : > { %17901 = vmatprep.subr.bf16.mxu0 %v19261_v3 }
0x2f79   : > { %18567 = vrot.lane.b32.xlu1 %v20855_v15, %s19268_s17  ;;  %v14838_v15 = vld [vmem:[%s22568_s3 + $0x380] sm:$0xff] }
0x2f7a   : > { %v17905_v51 = vpack.c.bf16 %v14839_v35, %v14838_v15 }
0x2ff5   : > { %v7091_v0 = vpop.xlane.xlu1 %7090 }
0x2ff6   : > { %19007 = vrcp.f32 %v7091_v0 }
0x2ff9   : > { %v18568_v25 = vpop.permute.xlu1 %18567 }
0x2ffa   : > { %v18570_v55 = vunpack.i.h.bf16 %v18568_v25  ;;  %v18569_v60 = vunpack.i.l.bf16 %v18568_v25 }
0x2ffc   : > { %v17902_v23 = vpack.c.bf16 %v18570_v55, %v18569_v60 }
0x2ffe   : > { %17903 = vmatpush3.bf16.msra.mxu0 %v17902_v23  ;;  %v14850_v23 = vld [vmem:[%s22568_s3 + $0x440] sm:$0xff] }
0x2fff   : > { %16796 = vmatprep.subr.mxu0 %v19263_v11 }
0x3000   : > { %v19008_v34 = vpop.eup %19007 }
0x3001   : > { %v7093_v1 = vmul.f32 %v19008_v34, %v19006_v30 }
0x3003   : > { %16794 = vmatmul.mubr.msk.f32.vlgmr.msra.gmra.mrb[112].mxu0 %vm2016_vm5, %v7093_v1 }
0x3004   : > { %16797 = vmatpush3.msk.msra.mxu0 %vm2104_vm6, %v7191_v56  ;;  %16798 = vmatprep.mubr.msk.f32.mxu0 %vm19262_vm0, %v19263_v11 }
0x3005   : > { %17904 = vmatprep.subr.bf16.mxu0 %v19261_v3 }
0x30d6   : > { %v7187_v10 = vpop.f32.mrb[112].mxu0 }
0x30d7   : > { %v16795_v43 = vpop.f32.mrb[113].mxu0  ;;  %16799 = vmatmul.mubr.msk.f32.vlgmr.msra.gmra.mrb[114].mxu0 %vm1917_vm3, %v7187_v10 }
0x30d8   : > { %17906 = vmatpush3.bf16.msra.mxu0 %v17905_v51  ;;  %16809 = vmatprep.mubr.msk.f32.mxu0 %vm19262_vm0, %v19263_v11 }
0x30d9   : > { %17907 = vmatprep.subr.bf16.mxu0 %v19261_v3 }
0x30dc   : > { %17909 = vmatpush3.bf16.msra.mxu0 %v17908_v63 }
0x30dd   : > { %17910 = vmatprep.subr.bf16.mxu0 %v19261_v3 }
0x30df   : > { %16810 = vmatmul.mubr.msk.f32.vlgmr.msra.gmra.mrb[116].mxu0 %vm331_vm1, %v20035_v49 }
0x30e0   : > { %17912 = vmatpush3.bf16.msra.mxu0 %v17911_v40  ;;  %16820 = vmatprep.mubr.msk.f32.mxu0 %vm19262_vm0, %v19263_v11 }
0x30e1   : > { %17913 = vmatprep.subr.bf16.mxu0 %v19261_v3 }
0x30e4   : > { %17915 = vmatpush3.bf16.msra.mxu0 %v17914_v38 }
0x30e5   : > { %16834 = vmatprep.subr.mxu0 %v19263_v11 }
0x30e7   : > { %16821 = vmatmul.mubr.msk.f32.vlgmr.msra.gmra.mrb[118].mxu0 %vm331_vm1, %v20035_v49 }
0x30e8   : > { %16836 = vmatprep.mubr.msk.f32.mxu0 %vm19262_vm0, %v19263_v11 }
0x31aa   : > { %v7263_v41 = vpop.f32.mrb[114].mxu0 }
0x31ab   : > { %v21086_v39 = vadd.f32 %v7263_v41, %v21019_v26  ;;  %v16800_v33 = vpop.f32.mrb[115].mxu0 }
0x31ad   : > { %v7268_v32 = vadd.f32 %v21086_v39, %v20029_v46 }
0x31b2   : > { %v7386_v37 = vpop.f32.mrb[116].mxu0 }
0x31b3   : > { %v16811_v21 = vpop.f32.mrb[117].mxu0  ;;  %v21098_v26 = vadd.f32 %v14854_v50, %v7386_v37  ;;  %v14851_v37 = vld [vmem:[%s22568_s3 + $0x448] sm:$0xff] }
0x31ba   : > { %v7461_v2 = vpop.f32.mrb[118].mxu0 }
0x31bb   : > { %v21094_v49 = vadd.f32 %v14856_v12, %v7461_v2  ;;  %v16822_v48 = vpop.f32.mrb[119].mxu0 }
0x31bd   : > { %16835 = vmatpush3.xpose.msk.msra.mxu0 %vm556_vm2, %v21094_v49 }
0x31be   : > { %16844 = vmatprep.subr.mxu0 %v19263_v11 }
0x31c0   : > { %16837 = vmatmul.mubr.msk.f32.vlgmr.msra.gmra.mrb[120].mxu0 %vm556_vm2, %v21098_v26 }
0x31c1   : > { %16846 = vmatprep.mubr.msk.f32.mxu0 %vm19262_vm0, %v19263_v11  ;;  %16845 = vmatpush3.msra.mxu0 %v14850_v23 }
0x31c2   : > { %16854 = vmatprep.subr.mxu0 %v19263_v11 }
0x3293   : > { %v7613_v53 = vpop.f32.mrb[120].mxu0 }
0x3294   : > { %v7617_v16 = vmul.f32 0.35355338, %v7613_v53  ;;  %v16838_v58 = vpop.f32.mrb[121].mxu0 }
0x3296   : > { %v7618_v7 = vsel %vm556_vm2, %v7617_v16, -inf }
0x3297   : > { %7619 = vmax.xlane.f32.xlu0 %v7618_v7 }
0x32ad   : > { %7782 = vrot.lane.b32.xlu0 %v21094_v49, %s19264_s23 }
0x3324   : > { %v7620_v14 = vpop.xlane.xlu0 %7619 }
0x3325   : > { %v7621_v20 = vsub.f32 %v7617_v16, %v7620_v14 }
0x3327   : > { %v7622_v29 = vmul.f32 1.442695, %v7621_v20 }
0x3328   : > { %v7783_v55 = vpop.permute.xlu0 %7782 }
0x3329   : > { %19009 = vpow2.f32 %v7622_v29  ;;  %v14864_v29 = vld [vmem:[%s22569_s4 + $0x19] ss:$0 sm:$0xff] }
0x3333   : > { %v19010_v30 = vpop.eup %19009 }
0x3334   : > { %v7624_v54 = vsel %vm556_vm2, %v19010_v30, 0.0 }
0x3335   : > { %7625 = vadd.xlane.f32.xlu1 %v7624_v54 }
0x3346   : > { %7780 = vrot.lane.b32.xlu1 %v21098_v26, %s19264_s23 }
0x33c2   : > { %v7626_v36 = vpop.xlane.xlu1 %7625 }
0x33c3   : > { %19011 = vrcp.f32 %v7626_v36 }
0x33c6   : > { %v7781_v60 = vpop.permute.xlu1 %7780 }
0x33cd   : > { %v19012_v0 = vpop.eup %19011 }
0x33ce   : > { %v7628_v25 = vmul.f32 %v19012_v0, %v19010_v30 }
0x33d0   : > { %16842 = vmatmul.mubr.msk.f32.vlgmr.msra.gmra.mrb[82].mxu1 %vm556_vm2, %v7628_v25 }
0x33d1   : > { %16850 = vmatpush3.xpose.msk.msra.mxu1 %vm556_vm2, %v7783_v55  ;;  %16851 = vmatprep.mubr.msk.f32.mxu1 %vm19262_vm0, %v19263_v11 }
0x33d2   : > { %16859 = vmatprep.subr.mxu1 %v19263_v11 }
0x33d4   : > { %16852 = vmatmul.mubr.msk.f32.vlgmr.msra.gmra.mrb[84].mxu1 %vm556_vm2, %v7781_v60 }
0x33d5   : > { %16861 = vmatprep.mubr.msk.f32.mxu1 %vm19262_vm0, %v19263_v11  ;;  %16860 = vmatpush3.msra.mxu1 %v14851_v37  ;;  %v14883_v37 = vld [vmem:[%s22568_s3 + $0x4c0] sm:$0xff] }
0x33d6   : > { %16869 = vmatprep.subr.mxu1 %v19263_v11 }
0x34a3   : > { %v7698_v34 = vpop.f32.mrb[82].mxu1 }
0x34a4   : > { %v16843_v56 = vpop.f32.mrb[83].mxu1  ;;  %16847 = vmatmul.mubr.msk.f32.vlgmr.msra.gmra.mrb[122].mxu0 %vm556_vm2, %v7698_v34  ;;  %v14852_v34 = vld [vmem:[%s22568_s3 + $0x450] sm:$0xff] }
0x34a5   : > { %16856 = vmatprep.mubr.msk.f32.mxu0 %vm19262_vm0, %v19263_v11 }
0x34a7   : > { %v7854_v1 = vpop.f32.mrb[84].mxu1 }
0x34a8   : > { %v7858_v15 = vmul.f32 0.35355338, %v7854_v1  ;;  %v16853_v35 = vpop.f32.mrb[85].mxu1 }
0x34aa   : > { %v7859_v51 = vsel %vm556_vm2, %v7858_v15, -inf }
0x34ab   : > { %7860 = vmax.xlane.f32.xlu0 %v7859_v51 }
0x34c1   : > { %7871 = vrot.lane.b32.xlu0 %v21025_v47, %s19264_s23 }
0x34c5   : > { %8021 = vrot.lane.b32.xlu0 %v21098_v26, %s19265_s7 }
0x3538   : > { %v7861_v42 = vpop.xlane.xlu0 %7860 }
0x3539   : > { %v7862_v18 = vsub.f32 %v7858_v15, %v7861_v42 }
0x353b   : > { %v7863_v10 = vmul.f32 1.442695, %v7862_v18 }
0x353c   : > { %v7872_v43 = vpop.permute.xlu0 %7871 }
0x353d   : > { %19013 = vpow2.f32 %v7863_v10  ;;  %16855 = vmatpush3.msra.mxu0 %v7872_v43 }
0x353e   : > { %16864 = vmatprep.subr.mxu0 %v19263_v11 }
0x3540   : > { %v8022_v33 = vpop.permute.xlu0 %8021 }
0x3547   : > { %v19014_v63 = vpop.eup %19013 }
0x3548   : > { %v7865_v9 = vsel %vm556_vm2, %v19014_v63, 0.0 }
0x3549   : > { %7866 = vadd.xlane.f32.xlu1 %v7865_v9 }
0x355a   : > { %8023 = vrot.lane.b32.xlu1 %v21094_v49, %s19265_s7 }
0x3577   : > { %v7771_v24 = vpop.f32.mrb[122].mxu0 }
0x3578   : > { %v16848_v40 = vpop.f32.mrb[123].mxu0  ;;  %v7779_v30 = vadd.f32 %v14864_v29, %v7771_v24 }
0x3579   : > { %v14853_v40 = vld [vmem:[%s22568_s3 + $0x458] sm:$0xff] }
0x35d6   : > { %v7867_v57 = vpop.xlane.xlu1 %7866 }
0x35d7   : > { %19015 = vrcp.f32 %v7867_v57 }
0x35da   : > { %v8024_v41 = vpop.permute.xlu1 %8023 }
0x35e1   : > { %v19016_v4 = vpop.eup %19015 }
0x35e2   : > { %v7869_v38 = vmul.f32 %v19016_v4, %v19014_v63 }
0x35e4   : > { %16857 = vmatmul.mubr.msk.f32.vlgmr.msra.gmra.mrb[124].mxu0 %vm556_vm2, %v7869_v38 }
0x35e5   : > { %16865 = vmatpush3.xpose.msk.msra.mxu0 %vm556_vm2, %v8024_v41  ;;  %16866 = vmatprep.mubr.msk.f32.mxu0 %vm19262_vm0, %v19263_v11 }
0x35e6   : > { %16874 = vmatprep.subr.mxu0 %v19263_v11 }
0x35e8   : > { %16867 = vmatmul.mubr.msk.f32.vlgmr.msra.gmra.mrb[126].mxu0 %vm556_vm2, %v8022_v33 }
0x35e9   : > { %16876 = vmatprep.mubr.msk.f32.mxu0 %vm19262_vm0, %v19263_v11  ;;  %16875 = vmatpush3.msra.mxu0 %v14852_v34 }
0x35ea   : > { %16884 = vmatprep.subr.mxu0 %v19263_v11 }
0x36b7   : > { %v7943_v21 = vpop.f32.mrb[124].mxu0 }
0x36b8   : > { %v16858_v12 = vpop.f32.mrb[125].mxu0  ;;  %16862 = vmatmul.mubr.msk.f32.vlgmr.msra.gmra.mrb[86].mxu1 %vm556_vm2, %v7943_v21  ;;  %v14884_v21 = vld [vmem:[%s22568_s3 + $0x4c8] sm:$0xff] }
0x36b9   : > { %16871 = vmatprep.mubr.msk.f32.mxu1 %vm19262_vm0, %v19263_v11  ;;  %v17928_v12 = vpack.c.bf16 %v14884_v21, %v14883_v37  ;;  %v14879_v37 = vld [vmem:[%s22568_s3 + $0x480] sm:$0xff]  ;;  %v14880_v21 = vld [vmem:[%s22568_s3 + $0x488] sm:$0xff] }
0x36bb   : > { %v8095_v2 = vpop.f32.mrb[126].mxu0 }
0x36bc   : > { %v8099_v50 = vmul.f32 0.35355338, %v8095_v2  ;;  %v16868_v48 = vpop.f32.mrb[127].mxu0  ;;  %v14885_v2 = vld [vmem:[%s22568_s3 + $0x4d0] sm:$0xff] }
0x36be   : > { %v8100_v53 = vsel %vm556_vm2, %v8099_v50, -inf }
0x36bf   : > { %8101 = vmax.xlane.f32.xlu1 %v8100_v53 }
0x36d0   : > { %8263 = vrot.lane.b32.xlu1 %v21094_v49, %s19266_s10 }
0x36d4   : > { %8261 = vrot.lane.b32.xlu1 %v21098_v26, %s19266_s10 }
0x374c   : > { %v8102_v16 = vpop.xlane.xlu1 %8101 }
0x374d   : > { %v8103_v58 = vsub.f32 %v8099_v50, %v8102_v16  ;;  %v14886_v50 = vld [vmem:[%s22568_s3 + $0x4d8] sm:$0xff] }
0x374e   : > { %v17932_v48 = vpack.c.bf16 %v14886_v50, %v14885_v2  ;;  %v14881_v2 = vld [vmem:[%s22568_s3 + $0x490] sm:$0xff]  ;;  %v14882_v50 = vld [vmem:[%s22568_s3 + $0x498] sm:$0xff] }
0x374f   : > { %v8104_v7 = vmul.f32 1.442695, %v8103_v58 }
0x3750   : > { %v8264_v55 = vpop.permute.xlu1 %8263 }
0x3751   : > { %19017 = vpow2.f32 %v8104_v7 }
0x3754   : > { %v8262_v23 = vpop.permute.xlu1 %8261 }
0x375b   : > { %v19018_v14 = vpop.eup %19017 }
0x375c   : > { %v8106_v20 = vsel %vm556_vm2, %v19018_v14, 0.0 }
0x375d   : > { %8107 = vadd.xlane.f32.xlu0 %v8106_v20 }
0x3773   : > { %8111 = vrot.lane.b32.xlu0 %v21025_v47, %s19265_s7 }
0x378b   : > { %v8016_v49 = vpop.f32.mrb[86].mxu1 }
0x378c   : > { %v8020_v54 = vadd.f32 %v8016_v49, %v7779_v30  ;;  %v16863_v36 = vpop.f32.mrb[87].mxu1  ;;  %v14895_v30 = vld [vmem:[%s22569_s4 + $0x1d] ss:$0 sm:$0xff] }
0x37ea   : > { %v8108_v26 = vpop.xlane.xlu0 %8107 }
0x37eb   : > { %19019 = vrcp.f32 %v8108_v26 }
0x37ee   : > { %v8112_v0 = vpop.permute.xlu0 %8111 }
0x37ef   : > { %16870 = vmatpush3.msra.mxu1 %v8112_v0 }
0x37f0   : > { %16879 = vmatprep.subr.mxu1 %v19263_v11 }
0x37f5   : > { %v19020_v25 = vpop.eup %19019 }
0x37f6   : > { %v8110_v60 = vmul.f32 %v19020_v25, %v19018_v14 }
0x37f8   : > { %16872 = vmatmul.mubr.msk.f32.vlgmr.msra.gmra.mrb[88].mxu1 %vm556_vm2, %v8110_v60 }
0x37f9   : > { %16880 = vmatpush3.xpose.msk.msra.mxu1 %vm556_vm2, %v8264_v55  ;;  %16881 = vmatprep.mubr.msk.f32.mxu1 %vm19262_vm0, %v19263_v11 }
0x37fa   : > { %16889 = vmatprep.subr.mxu1 %v19263_v11 }
0x37fc   : > { %16882 = vmatmul.mubr.msk.f32.vlgmr.msra.gmra.mrb[90].mxu1 %vm556_vm2, %v8262_v23 }
0x37fd   : > { %16891 = vmatprep.mubr.msk.f32.mxu1 %vm19262_vm0, %v19263_v11  ;;  %16890 = vmatpush3.msra.mxu1 %v14853_v40 }
0x37fe   : > { %17929 = vmatprep.subr.bf16.mxu1 %v17928_v12 }
0x38cb   : > { %v8183_v56 = vpop.f32.mrb[88].mxu1 }
0x38cc   : > { %v16873_v1 = vpop.f32.mrb[89].mxu1  ;;  %16877 = vmatmul.mubr.msk.f32.vlgmr.msra.gmra.mrb[128].mxu0 %vm556_vm2, %v8183_v56 }
0x38cd   : > { %16886 = vmatprep.mubr.msk.f32.mxu0 %vm19262_vm0, %v19263_v11 }
0x38cf   : > { %v8335_v15 = vpop.f32.mrb[90].mxu1 }
0x38d0   : > { %v8339_v35 = vmul.f32 0.35355338, %v8335_v15  ;;  %v16883_v51 = vpop.f32.mrb[91].mxu1 }
0x38d2   : > { %v8340_v42 = vsel %vm556_vm2, %v8339_v35, -inf }
0x38d3   : > { %8341 = vmax.xlane.f32.xlu0 %v8340_v42 }
0x38e9   : > { %8351 = vrot.lane.b32.xlu0 %v21025_v47, %s19266_s10  ;;  %s14230_s10 = scalar_lea.vmem (%p19329_p4), %s22570_s5, %s15212_s21 }
0x3960   : > { %v8342_v18 = vpop.xlane.xlu0 %8341 }
0x3961   : > { %v8343_v10 = vsub.f32 %v8339_v35, %v8342_v18 }
0x3963   : > { %v8344_v43 = vmul.f32 1.442695, %v8343_v10 }
0x3964   : > { %v8352_v63 = vpop.permute.xlu0 %8351 }
0x3965   : > { %19021 = vpow2.f32 %v8344_v43  ;;  %16885 = vmatpush3.msra.mxu0 %v8352_v63 }
0x3966   : > { %17922 = vmatprep.subr.bf16.mxu0 %v19261_v3 }
0x396f   : > { %v19022_v9 = vpop.eup %19021 }
0x3970   : > { %v8346_v24 = vsel %vm556_vm2, %v19022_v9, 0.0 }
0x3971   : > { %8347 = vadd.xlane.f32.xlu1 %v8346_v24 }
0x399f   : > { %v8256_v57 = vpop.f32.mrb[128].mxu0 }
0x39a0   : > { %v8260_v4 = vadd.f32 %v8256_v57, %v8020_v54  ;;  %v16878_v47 = vpop.f32.mrb[129].mxu0 }
0x39fe   : > { %v8348_v38 = vpop.xlane.xlu1 %8347 }
0x39ff   : > { %19023 = vrcp.f32 %v8348_v38 }
0x3a09   : > { %v19024_v41 = vpop.eup %19023 }
0x3a0a   : > { %v8350_v33 = vmul.f32 %v19024_v41, %v19022_v9 }
0x3a0c   : > { %16887 = vmatmul.mubr.msk.f32.vlgmr.msra.gmra.mrb[130].mxu0 %vm556_vm2, %v8350_v33 }
0x3a0d   : > { %16902 = vmatprep.mubr.msk.f32.mxu0 %vm19262_vm0, %v19263_v11 }
0x3adf   : > { %v8423_v53 = vpop.f32.mrb[130].mxu0 }
0x3ae0   : > { %v16888_v16 = vpop.f32.mrb[131].mxu0  ;;  %16892 = vmatmul.mubr.msk.f32.vlgmr.msra.gmra.mrb[92].mxu1 %vm556_vm2, %v8423_v53  ;;  %v17926_v53 = vpack.c.bf16 %v14882_v50, %v14881_v2 }
0x3ae1   : > { %17931 = vmatpush3.bf16.msra.mxu1 %v17928_v12  ;;  %16913 = vmatprep.mubr.msk.f32.mxu1 %vm331_vm1, %v20674_v62  ;;  %v17923_v12 = vpack.c.bf16 %v14880_v21, %v14879_v37  ;;  %v14888_v16 = vld [vmem:[%s22568_s3 + $0x508] sm:$0xff] }
0x3ae2   : > { %17933 = vmatprep.subr.bf16.mxu1 %v17932_v48 }
0x3ae3   : > { %17924 = vmatpush3.bf16.msra.mxu0 %v17923_v12 }
0x3ae4   : > { %17925 = vmatprep.subr.bf16.mxu0 %v19261_v3 }
0x3ae5   : > { %17935 = vmatpush3.bf16.msra.mxu1 %v17932_v48  ;;  %v14887_v48 = vld [vmem:[%s22568_s3 + $0x500] sm:$0xff] }
0x3ae6   : > { %17944 = vmatprep.subr.bf16.mxu1 %v19261_v3 }
0x3ae7   : > { %17927 = vmatpush3.bf16.msra.mxu0 %v17926_v53 }
0x3ae8   : > { %16914 = vmatmul.mubr.msk.f32.vlgmr.msra.gmra.mrb[94].mxu1 %vm331_vm1, %v20694_v17 }
0x3ae9   : > { %16916 = vmatprep.mubr.msk.f32.mxu1 %vm331_vm1, %v20709_v59 }
0x3aec   : > { %16917 = vmatmul.mubr.msk.f32.gmra.mrb[96].mxu1 %vm331_vm1, %v20723_v45 }
0x3aed   : > { %16919 = vmatprep.mubr.msk.f32.mxu1 %vm331_vm1, %v20739_v52 }
0x3af0   : > { %16920 = vmatmul.mubr.msk.f32.gmra.mrb[98].mxu1 %vm331_vm1, %v20764_v19 }
0x3af1   : > { %16922 = vmatprep.mubr.msk.f32.mxu1 %vm331_vm1, %v20757_v44 }
0x3af4   : > { %16923 = vmatmul.mubr.msk.f32.gmra.mrb[100].mxu1 %vm331_vm1, %v20778_v22 }
0x3af5   : > { %16961 = vmatprep.mubr.msk.f32.mxu1 %vm19262_vm0, %v19263_v11 }
0x3bb3   : > { %v8496_v58 = vpop.f32.mrb[92].mxu1 }
0x3bb4   : > { %v8500_v7 = vadd.f32 %v8496_v58, %v8260_v4  ;;  %v16893_v14 = vpop.f32.mrb[93].mxu1  ;;  %v17936_v58 = vpack.c.bf16 %v14888_v16, %v14887_v48 }
0x3bb6   : > { %v8501_v20 = vadd.f32 %v8500_v7, %v20029_v46  ;;  %17937 = vmatprep.subr.bf16.mxu0 %v17936_v58 }
0x3bb8   : > { %v8504_v29 = vsel %vm331_vm1, %v8501_v20, 0.0 }
0x3bb9   : > { %8505 = vadd.xlane.f32.xlu1 %v8504_v29 }
0x3bbb   : > { %v16915_v49 = vpop.f32.mrb[94].mxu1 }
0x3bbc   : > { %v8701_v54 = vadd.f32 %v16915_v49, %v14895_v30  ;;  %v8695_v36 = vpop.f32.mrb[95].mxu1 }
0x3bbd   : > { %v8696_v26 = vadd.f32 %v14895_v30, %v8695_v36 }
0x3bbf   : > { %v17945_v0 = vpack.c.bf16 %v8701_v54, %v8696_v26  ;;  %v16918_v25 = vpop.f32.mrb[96].mxu1  ;;  %v21225_v55 = vpack.i.bf16 %v8701_v54, %v8696_v26  ;;  %v14878_v54 = vld [vmem:[%s22569_s4 + $0x1b] ss:$0 sm:$0xff]  ;;  %v14889_v26 = vld [vmem:[%s22568_s3 + $0x510] sm:$0xff] }
0x3bc0   : > { %v8711_v60 = vadd.f32 %v16918_v25, %v14895_v30  ;;  %v8705_v23 = vpop.f32.mrb[97].mxu1 }
0x3bc1   : > { %v8706_v34 = vadd.f32 %v14895_v30, %v8705_v23  ;;  %17947 = vmatpush3.bf16.xpose.msk.msra.mxu1 %vm19636_vm4, %v17945_v0  ;;  %v14890_v0 = vld [vmem:[%s22568_s3 + $0x518] sm:$0xff] }
0x3bc2   : > { %17948 = vmatprep.subr.bf16.mxu1 %v19261_v3 }
0x3bc3   : > { %v17949_v56 = vpack.c.bf16 %v8711_v60, %v8706_v34  ;;  %v16921_v1 = vpop.f32.mrb[98].mxu1  ;;  %v21230_v15 = vpack.i.bf16 %v8711_v60, %v8706_v34  ;;  %v21286_v60 = vld [vmem:[%s19379_s12] sm:$0xff]  ;;  %v17940_v34 = vpack.c.bf16 %v14890_v0, %v14889_v26  ;;  %s14472_s12 = sshll.u32 %s267_s27, 4 }
0x3bc4   : > { %v8721_v35 = vadd.f32 %v16921_v1, %v14895_v30  ;;  %v8715_v51 = vpop.f32.mrb[99].mxu1  ;;  %s269_s15 = scalar_lea.vmem [#allocation2], %s14472_s12 }
0x3bc5   : > { %v8716_v42 = vadd.f32 %v14895_v30, %v8715_v51  ;;  %18577 = vrot.lane.b32.xlu0 %v21230_v15, %s19267_s19 }
0x3bc7   : > { %v17953_v18 = vpack.c.bf16 %v8721_v35, %v8716_v42  ;;  %v16924_v10 = vpop.f32.mrb[100].mxu1  ;;  %v21234_v43 = vpack.i.bf16 %v8721_v35, %v8716_v42  ;;  %v14904_v42 = vld [vmem:[%s22569_s4 + $0x1e] ss:$0 sm:$0xff] }
0x3bc8   : > { %v8731_v63 = vadd.f32 %v16924_v10, %v14895_v30  ;;  %v8725_v9 = vpop.f32.mrb[101].mxu1 }
0x3bc9   : > { %v8726_v24 = vadd.f32 %v14895_v30, %v8725_v9  ;;  %18582 = vrot.lane.b32.xlu0 %v21234_v43, %s19267_s19  ;;  %17951 = vmatpush3.bf16.xpose.msk.msra.mxu1 %vm19636_vm4, %v17949_v56  ;;  %v14877_v30 = vld [vmem:[%s22569_s4 + $0x1a] ss:$0 sm:$0xff]  ;;  %v14893_v56 = vld [vmem:[%s22569_s4 + $0x1c] ss:$0 sm:$0xff] }
0x3bca   : > { %17952 = vmatprep.subr.bf16.mxu1 %v19261_v3 }
0x3bcb   : > { %v17957_v40 = vpack.c.bf16 %v8731_v63, %v8726_v24  ;;  %v21241_v57 = vpack.i.bf16 %v8731_v63, %v8726_v24 }
0x3bcd   : > { %18587 = vrot.lane.b32.xlu0 %v21241_v57, %s19267_s19 }
0x3bd1   : > { %17955 = vmatpush3.bf16.xpose.msk.msra.mxu1 %vm19636_vm4, %v17953_v18 }
0x3bd2   : > { %17956 = vmatprep.subr.bf16.mxu1 %v19261_v3 }
0x3bd9   : > { %17959 = vmatpush3.bf16.xpose.msk.msra.mxu1 %vm19636_vm4, %v17957_v40 }
0x3bda   : > { %17988 = vmatprep.subr.bf16.mxu1 %v19261_v3 }
0x3c46   : > { %v8506_v4 = vpop.xlane.xlu1 %8505 }
0x3c47   : > { %v8507_v47 = vmul.f32 0.03125, %v8506_v4 }
0x3c49   : > { %v8508_v38 = vsub.f32 %v8501_v20, %v8507_v47 }
0x3c4b   : > { %v8509_v41 = vmul.f32 %v8508_v38, %v8508_v38 }
0x3c4d   : > { %v8510_v33 = vsel %vm331_vm1, %v8509_v41, 0.0 }
0x3c4e   : > { %8511 = vadd.xlane.f32.xlu1 %v8510_v33 }
0x3cdb   : > { %v8512_v7 = vpop.xlane.xlu1 %8511 }
0x3cdc   : > { %v8513_v14 = vmul.f32 0.03125, %v8512_v7 }
0x3cde   : > { %v8514_v20 = vadd.f32 1e-05, %v8513_v14 }
0x3ce0   : > { %19025 = vrsqrt.f32 %v8514_v20 }
0x3cea   : > { %v19026_v29 = vpop.eup %19025 }
0x3ceb   : > { %v8516_v49 = vmul.f32 %v19026_v29, %v8508_v38 }
0x3ced   : > { %v8521_v36 = vmul.f32 %v14877_v30, %v8516_v49 }
0x3cef   : > { %v21283_v25 = vadd.f32 %v14878_v54, %v8521_v36 }
0x3cf1   : > { %v8527_v23 = vadd.f32 %v21286_v60, %v21283_v25 }
0x3cf3   : > { %16903 = vmatmul.mubr.msk.f32.vlgmr.msra.gmra.mrb[132].mxu0 %vm331_vm1, %v8527_v23 }
0x3cf4   : > { %17939 = vmatpush3.bf16.msra.mxu0 %v17936_v58  ;;  %16933 = vmatprep.mubr.msk.f32.mxu0 %vm331_vm1, %v20663_v6 }
0x3cf5   : > { %17941 = vmatprep.subr.bf16.mxu0 %v17940_v34 }
0x3cf8   : > { %17943 = vmatpush3.bf16.msra.mxu0 %v17940_v34 }
0x3cf9   : > { %17960 = vmatprep.subr.bf16.mxu0 %v19261_v3 }
0x3cfb   : > { %16934 = vmatmul.mubr.msk.f32.vlgmr.msra.gmra.mrb[134].mxu0 %vm331_vm1, %v20683_v27 }
0x3cfc   : > { %16936 = vmatprep.mubr.msk.f32.mxu0 %vm331_vm1, %v20697_v31 }
0x3cff   : > { %16937 = vmatmul.mubr.msk.f32.gmra.mrb[136].mxu0 %vm331_vm1, %v20712_v5 }
0x3d00   : > { %16939 = vmatprep.mubr.msk.f32.mxu0 %vm331_vm1, %v20727_v13 }
0x3d03   : > { %16940 = vmatmul.mubr.msk.f32.gmra.mrb[138].mxu0 %vm331_vm1, %v20749_v8 }
0x3d04   : > { %16942 = vmatprep.mubr.msk.f32.mxu0 %vm331_vm1, %v20743_v28 }
0x3d07   : > { %16943 = vmatmul.mubr.msk.f32.gmra.mrb[140].mxu0 %vm331_vm1, %v20767_v61 }
0x3d08   : > { %16980 = vmatprep.mubr.msk.f32.mxu0 %vm19262_vm0, %v19263_v11 }
0x3dc6   : > { %v8620_v1 = vpop.f32.mrb[132].mxu0 }
0x3dc7   : > { %v21313_v35 = vadd.f32 %v14893_v56, %v8620_v1  ;;  %v16904_v51 = vpop.f32.mrb[133].mxu0 }
0x3dc9   : > { %9108 = vrot.lane.b32.xlu0 %v21313_v35, %s19267_s19  ;;  %16962 = vmatmul.mubr.msk.f32.vlgmr.msra.gmra.mrb[102].mxu1 %vm1917_vm3, %v21313_v35 }
0x3dca   : > { %17023 = vmatprep.mubr.msk.f32.mxu1 %vm19262_vm0, %v19263_v11 }
0x3dce   : > { %v16935_v18 = vpop.f32.mrb[134].mxu0 }
0x3dcf   : > { %v8811_v10 = vadd.f32 %v16935_v18, %v14904_v42  ;;  %v8805_v63 = vpop.f32.mrb[135].mxu0  ;;  %v21345_v18 = vld [vmem:[%s22568_s3 + $0x540] sm:$0xff] }
0x3dd0   : > { %v8806_v9 = vadd.f32 %v14904_v42, %v8805_v63 }
0x3dd2   : > { %v16938_v24 = vpop.f32.mrb[136].mxu0  ;;  %v17961_v40 = vpack.c.bf16 %v8811_v10, %v8806_v9  ;;  %v21324_v4 = vpack.i.bf16 %v8811_v10, %v8806_v9 }
0x3dd3   : > { %v8821_v47 = vadd.f32 %v16938_v24, %v14904_v42  ;;  %v8815_v38 = vpop.f32.mrb[137].mxu0 }
0x3dd4   : > { %v8816_v41 = vadd.f32 %v14904_v42, %v8815_v38  ;;  %17962 = vmatpush3.bf16.msra.mxu0 %v17961_v40 }
0x3dd5   : > { %17963 = vmatprep.subr.bf16.mxu0 %v19261_v3 }
0x3dd6   : > { %v16941_v33 = vpop.f32.mrb[138].mxu0  ;;  %v17964_v37 = vpack.c.bf16 %v8821_v47, %v8816_v41  ;;  %v21327_v21 = vpack.i.bf16 %v8821_v47, %v8816_v41  ;;  %v18578_v47 = vpop.permute.xlu0 %18577 }
0x3dd7   : > { %v8831_v12 = vadd.f32 %v16941_v33, %v14904_v42  ;;  %v8825_v2 = vpop.f32.mrb[139].mxu0  ;;  %v18580_v41 = vunpack.i.h.bf16 %v18578_v47  ;;  %v18579_v33 = vunpack.i.l.bf16 %v18578_v47 }
0x3dd8   : > { %v8826_v50 = vadd.f32 %v14904_v42, %v8825_v2  ;;  %17965 = vmatpush3.bf16.msra.mxu0 %v17964_v37 }
0x3dd9   : > { %17966 = vmatprep.subr.bf16.mxu0 %v19261_v3  ;;  %v17977_v37 = vpack.c.bf16 %v18580_v41, %v18579_v33 }
0x3dda   : > { %v16944_v48 = vpop.f32.mrb[140].mxu0  ;;  %v17967_v53 = vpack.c.bf16 %v8831_v12, %v8826_v50  ;;  %v21330_v16 = vpack.i.bf16 %v8831_v12, %v8826_v50  ;;  %v18583_v12 = vpop.permute.xlu0 %18582 }
0x3ddb   : > { %v8841_v58 = vadd.f32 %v16944_v48, %v14904_v42  ;;  %v8835_v7 = vpop.f32.mrb[141].mxu0  ;;  %v18585_v2 = vunpack.i.h.bf16 %v18583_v12  ;;  %v18584_v50 = vunpack.i.l.bf16 %v18583_v12 }
0x3ddc   : > { %v8836_v14 = vadd.f32 %v14904_v42, %v8835_v7  ;;  %17968 = vmatpush3.bf16.msra.mxu0 %v17967_v53 }
0x3ddd   : > { %17969 = vmatprep.subr.bf16.mxu0 %v19261_v3  ;;  %v17981_v48 = vpack.c.bf16 %v18585_v2, %v18584_v50 }
0x3dde   : > { %v17970_v20 = vpack.c.bf16 %v8841_v58, %v8836_v14  ;;  %v21333_v29 = vpack.i.bf16 %v8841_v58, %v8836_v14  ;;  %v18588_v53 = vpop.permute.xlu0 %18587 }
0x3ddf   : > { %v18590_v58 = vunpack.i.h.bf16 %v18588_v53  ;;  %v18589_v7 = vunpack.i.l.bf16 %v18588_v53 }
0x3de0   : > { %17971 = vmatpush3.bf16.msra.mxu0 %v17970_v20 }
0x3de1   : > { %16983 = vmatprep.subr.mxu0 %v19263_v11  ;;  %v17985_v14 = vpack.c.bf16 %v18590_v58, %v18589_v7 }
0x3e3b   : > { %v9109_v20 = vpop.permute.xlu0 %9108 }
0x3e9c   : > { %v8938_v30 = vpop.f32.mrb[102].mxu1 }
0x3e9d   : > { %v8942_v49 = vmul.f32 0.5, %v8938_v30  ;;  %v16963_v54 = vpop.f32.mrb[103].mxu1 }
0x3e9f   : > { %v8943_v36 = vsel %vm2016_vm5, %v8942_v49, -inf }
0x3ea0   : > { %8944 = vmax.xlane.f32.xlu1 %v8943_v36 }
0x3f2d   : > { %v8945_v26 = vpop.xlane.xlu1 %8944 }
0x3f2e   : > { %v8946_v0 = vsub.f32 %v8942_v49, %v8945_v26 }
0x3f30   : > { %v8947_v23 = vmul.f32 1.442695, %v8946_v0 }
0x3f32   : > { %19027 = vpow2.f32 %v8947_v23 }
0x3f3c   : > { %v19028_v34 = vpop.eup %19027 }
0x3f3d   : > { %v8949_v56 = vsel %vm2016_vm5, %v19028_v34, 0.0 }
0x3f3e   : > { %8950 = vadd.xlane.f32.xlu1 %v8949_v56 }
0x3f4f   : > { %18572 = vrot.lane.b32.xlu1 %v21225_v55, %s19267_s19 }
0x3f53   : > { %18597 = vrot.lane.b32.xlu1 %v21327_v21, %s19267_s19 }
0x3fcb   : > { %v8951_v1 = vpop.xlane.xlu1 %8950 }
0x3fcc   : > { %19029 = vrcp.f32 %v8951_v1 }
0x3fcf   : > { %v18573_v10 = vpop.permute.xlu1 %18572 }
0x3fd0   : > { %v18575_v63 = vunpack.i.h.bf16 %v18573_v10  ;;  %v18574_v9 = vunpack.i.l.bf16 %v18573_v10 }
0x3fd2   : > { %v17973_v24 = vpack.c.bf16 %v18575_v63, %v18574_v9 }
0x3fd3   : > { %v18598_v1 = vpop.permute.xlu1 %18597 }
0x3fd4   : > { %v18600_v63 = vunpack.i.h.bf16 %v18598_v1  ;;  %v18599_v9 = vunpack.i.l.bf16 %v18598_v1 }
0x3fd6   : > { %v19030_v51 = vpop.eup %19029  ;;  %v17992_v47 = vpack.c.bf16 %v18600_v63, %v18599_v9 }
0x3fd7   : > { %v8953_v42 = vmul.f32 %v19030_v51, %v19028_v34 }
0x3fd9   : > { %16981 = vmatmul.mubr.msk.f32.vlgmr.msra.gmra.mrb[142].mxu0 %vm2016_vm5, %v8953_v42 }
0x3fda   : > { %16984 = vmatpush3.msk.msra.mxu0 %vm2104_vm6, %v21345_v18  ;;  %16985 = vmatprep.mubr.msk.f32.mxu0 %vm19262_vm0, %v19263_v11 }
0x3fdb   : > { %17972 = vmatprep.subr.bf16.mxu0 %v19261_v3 }
0x40ac   : > { %v9023_v40 = vpop.f32.mrb[142].mxu0 }
0x40ad   : > { %v16982_v38 = vpop.f32.mrb[143].mxu0  ;;  %16986 = vmatmul.mubr.msk.f32.vlgmr.msra.gmra.mrb[144].mxu0 %vm1917_vm3, %v9023_v40 }
0x40ae   : > { %17975 = vmatpush3.bf16.xpose.msk.msra.mxu0 %vm19636_vm4, %v17973_v24  ;;  %17004 = vmatprep.mubr.msk.f32.mxu0 %vm19262_vm0, %v19263_v11 }
0x40af   : > { %17976 = vmatprep.subr.bf16.mxu0 %v19261_v3 }
0x40b6   : > { %17979 = vmatpush3.bf16.xpose.msk.msra.mxu0 %vm19636_vm4, %v17977_v37 }
0x40b7   : > { %17980 = vmatprep.subr.bf16.mxu0 %v19261_v3 }
0x40be   : > { %17983 = vmatpush3.bf16.xpose.msk.msra.mxu0 %vm19636_vm4, %v17981_v48 }
0x40bf   : > { %17984 = vmatprep.subr.bf16.mxu0 %v19261_v3 }
0x40c6   : > { %17987 = vmatpush3.bf16.xpose.msk.msra.mxu0 %vm19636_vm4, %v17985_v14 }
0x40c7   : > { %18016 = vmatprep.subr.bf16.mxu0 %v19261_v3 }
0x40cd   : > { %17005 = vmatmul.mubr.msk.f32.vlgmr.msra.gmra.mrb[146].mxu0 %vm1917_vm3, %v9109_v20 }
0x40ce   : > { %17066 = vmatprep.mubr.msk.f32.mxu0 %vm19262_vm0, %v19263_v11 }
0x4180   : > { %v21371_v30 = vpop.f32.mrb[144].mxu0 }
0x4181   : > { %v16987_v49 = vpop.f32.mrb[145].mxu0 }
0x41a0   : > { %v9210_v54 = vpop.f32.mrb[146].mxu0 }
0x41a1   : > { %v9214_v36 = vmul.f32 0.5, %v9210_v54  ;;  %v17006_v26 = vpop.f32.mrb[147].mxu0 }
0x41a3   : > { %v9215_v0 = vsel %vm2016_vm5, %v9214_v36, -inf }
0x41a4   : > { %9216 = vmax.xlane.f32.xlu0 %v9215_v0 }
0x41ba   : > { %18592 = vrot.lane.b32.xlu0 %v21324_v4, %s19267_s19 }
0x41be   : > { %18602 = vrot.lane.b32.xlu0 %v21330_v16, %s19267_s19 }
0x41c2   : > { %18612 = vrot.lane.b32.xlu0 %v21225_v55, %s19264_s23 }
0x41c6   : > { %18622 = vrot.lane.b32.xlu0 %v21234_v43, %s19264_s23 }
0x41ca   : > { %9408 = vrot.lane.b32.xlu0 %v21313_v35, %s19264_s23 }
0x41ce   : > { %18632 = vrot.lane.b32.xlu0 %v21324_v4, %s19264_s23 }
0x4231   : > { %v9217_v23 = vpop.xlane.xlu0 %9216 }
0x4232   : > { %v9218_v34 = vsub.f32 %v9214_v36, %v9217_v23  ;;  %v9331_v23 = vrot.slane %v21345_v18, 4 }
0x4234   : > { %v9219_v56 = vmul.f32 1.442695, %v9218_v34 }
0x4235   : > { %v18593_v51 = vpop.permute.xlu0 %18592 }
0x4236   : > { %19031 = vpow2.f32 %v9219_v56  ;;  %v18595_v42 = vunpack.i.h.bf16 %v18593_v51  ;;  %v18594_v10 = vunpack.i.l.bf16 %v18593_v51 }
0x4238   : > { %v17989_v24 = vpack.c.bf16 %v18595_v42, %v18594_v10 }
0x4239   : > { %v18603_v40 = vpop.permute.xlu0 %18602 }
0x423a   : > { %17990 = vmatpush3.bf16.msra.mxu1 %v17989_v24  ;;  %v18605_v38 = vunpack.i.h.bf16 %v18603_v40  ;;  %v18604_v41 = vunpack.i.l.bf16 %v18603_v40 }
0x423b   : > { %17991 = vmatprep.subr.bf16.mxu1 %v19261_v3 }
0x423c   : > { %v17995_v12 = vpack.c.bf16 %v18605_v38, %v18604_v41 }
0x423d   : > { %v18613_v33 = vpop.permute.xlu0 %18612 }
0x423e   : > { %17993 = vmatpush3.bf16.msra.mxu1 %v17992_v47  ;;  %v18615_v56 = vunpack.i.h.bf16 %v18613_v33  ;;  %v18614_v1 = vunpack.i.l.bf16 %v18613_v33 }
0x423f   : > { %17994 = vmatprep.subr.bf16.mxu1 %v19261_v3 }
0x4240   : > { %v19032_v37 = vpop.eup %19031  ;;  %v18001_v51 = vpack.c.bf16 %v18615_v56, %v18614_v1 }
0x4241   : > { %v18623_v2 = vpop.permute.xlu0 %18622  ;;  %v9221_v50 = vsel %vm2016_vm5, %v19032_v37, 0.0 }
0x4242   : > { %9222 = vadd.xlane.f32.xlu1 %v9221_v50  ;;  %17996 = vmatpush3.bf16.msra.mxu1 %v17995_v12  ;;  %v18625_v40 = vunpack.i.h.bf16 %v18623_v2  ;;  %v18624_v47 = vunpack.i.l.bf16 %v18623_v2  ;;  %v14925_v2 = vld [vmem:[%s22569_s4 + $0x1f] ss:$0 sm:$0xff] }
0x4243   : > { %17997 = vmatprep.subr.bf16.mxu1 %v19261_v3  ;;  %v9107_v50 = vadd.f32 %v14925_v2, %v21371_v30 }
0x4244   : > { %v18009_v38 = vpack.c.bf16 %v18625_v40, %v18624_v47  ;;  %v21454_v40 = vld [vmem:[%s22568_s3 + $0x548] sm:$0xff] }
0x4245   : > { %v9409_v48 = vpop.permute.xlu0 %9408 }
0x4249   : > { %v18633_v53 = vpop.permute.xlu0 %18632 }
0x424a   : > { %v18635_v58 = vunpack.i.h.bf16 %v18633_v53  ;;  %v18634_v7 = vunpack.i.l.bf16 %v18633_v53 }
0x424c   : > { %v18017_v14 = vpack.c.bf16 %v18635_v58, %v18634_v7 }
0x424e   : > { %18018 = vmatpush3.bf16.msra.mxu0 %v18017_v14 }
0x424f   : > { %18019 = vmatprep.subr.bf16.mxu0 %v19261_v3 }
0x4253   : > { %18607 = vrot.lane.b32.xlu1 %v21333_v29, %s19267_s19 }
0x4257   : > { %18617 = vrot.lane.b32.xlu1 %v21230_v15, %s19264_s23 }
0x425b   : > { %18627 = vrot.lane.b32.xlu1 %v21241_v57, %s19264_s23 }
0x42cf   : > { %v9223_v20 = vpop.xlane.xlu1 %9222 }
0x42d0   : > { %19033 = vrcp.f32 %v9223_v20 }
0x42d3   : > { %v18608_v49 = vpop.permute.xlu1 %18607 }
0x42d4   : > { %v18610_v54 = vunpack.i.h.bf16 %v18608_v49  ;;  %v18609_v36 = vunpack.i.l.bf16 %v18608_v49 }
0x42d6   : > { %v17998_v26 = vpack.c.bf16 %v18610_v54, %v18609_v36 }
0x42d7   : > { %v18618_v10 = vpop.permute.xlu1 %18617 }
0x42d8   : > { %17999 = vmatpush3.bf16.msra.mxu1 %v17998_v26  ;;  %v18620_v18 = vunpack.i.h.bf16 %v18618_v10  ;;  %v18619_v9 = vunpack.i.l.bf16 %v18618_v10 }
0x42d9   : > { %17026 = vmatprep.subr.mxu1 %v19263_v11 }
0x42da   : > { %v19034_v0 = vpop.eup %19033  ;;  %v18005_v24 = vpack.c.bf16 %v18620_v18, %v18619_v9 }
0x42db   : > { %v9225_v34 = vmul.f32 %v19034_v0, %v19032_v37  ;;  %v18628_v41 = vpop.permute.xlu1 %18627 }
0x42dc   : > { %v18630_v33 = vunpack.i.h.bf16 %v18628_v41  ;;  %v18629_v37 = vunpack.i.l.bf16 %v18628_v41 }
0x42dd   : > { %17024 = vmatmul.mubr.msk.f32.vlgmr.msra.gmra.mrb[104].mxu1 %vm2016_vm5, %v9225_v34 }
0x42de   : > { %17027 = vmatpush3.msk.msra.mxu1 %vm2104_vm6, %v9331_v23  ;;  %17028 = vmatprep.mubr.msk.f32.mxu1 %vm19262_vm0, %v19263_v11  ;;  %v18013_v12 = vpack.c.bf16 %v18630_v33, %v18629_v37 }
0x42df   : > { %18000 = vmatprep.subr.bf16.mxu1 %v19261_v3 }
0x43b0   : > { %v9327_v42 = vpop.f32.mrb[104].mxu1 }
0x43b1   : > { %v17025_v63 = vpop.f32.mrb[105].mxu1  ;;  %17029 = vmatmul.mubr.msk.f32.vlgmr.msra.gmra.mrb[106].mxu1 %vm1917_vm3, %v9327_v42 }
0x43b2   : > { %18003 = vmatpush3.bf16.xpose.msk.msra.mxu1 %vm19636_vm4, %v18001_v51  ;;  %17047 = vmatprep.mubr.msk.f32.mxu1 %vm19262_vm0, %v19263_v11 }
0x43b3   : > { %18004 = vmatprep.subr.bf16.mxu1 %v19261_v3 }
0x43ba   : > { %18007 = vmatpush3.bf16.xpose.msk.msra.mxu1 %vm19636_vm4, %v18005_v24 }
0x43bb   : > { %18008 = vmatprep.subr.bf16.mxu1 %v19261_v3 }
0x43c2   : > { %18011 = vmatpush3.bf16.xpose.msk.msra.mxu1 %vm19636_vm4, %v18009_v38 }
0x43c3   : > { %18012 = vmatprep.subr.bf16.mxu1 %v19261_v3 }
0x43ca   : > { %18015 = vmatpush3.bf16.xpose.msk.msra.mxu1 %vm19636_vm4, %v18013_v12 }
0x43cb   : > { %18044 = vmatprep.subr.bf16.mxu1 %v19261_v3 }
0x43d1   : > { %17048 = vmatmul.mubr.msk.f32.vlgmr.msra.gmra.mrb[108].mxu1 %vm1917_vm3, %v9409_v48 }
0x43d2   : > { %17109 = vmatprep.mubr.msk.f32.mxu1 %vm19262_vm0, %v19263_v11 }
0x4484   : > { %v9403_v53 = vpop.f32.mrb[106].mxu1 }
0x4485   : > { %v21426_v58 = vadd.f32 %v9403_v53, %v9107_v50  ;;  %v17030_v7 = vpop.f32.mrb[107].mxu1 }
0x44a4   : > { %v9510_v14 = vpop.f32.mrb[108].mxu1 }
0x44a5   : > { %v9514_v20 = vmul.f32 0.5, %v9510_v14  ;;  %v17049_v49 = vpop.f32.mrb[109].mxu1 }
0x44a7   : > { %v9515_v54 = vsel %vm2016_vm5, %v9514_v20, -inf }
0x44a8   : > { %9516 = vmax.xlane.f32.xlu1 %v9515_v54 }
0x44b9   : > { %18637 = vrot.lane.b32.xlu1 %v21327_v21, %s19264_s23 }
0x44bd   : > { %18642 = vrot.lane.b32.xlu1 %v21330_v16, %s19264_s23 }
0x44c1   : > { %18652 = vrot.lane.b32.xlu1 %v21225_v55, %s19268_s17 }
0x44c5   : > { %18662 = vrot.lane.b32.xlu1 %v21234_v43, %s19268_s17 }
0x44c9   : > { %9700 = vrot.lane.b32.xlu1 %v21313_v35, %s19268_s17 }
0x44cd   : > { %18677 = vrot.lane.b32.xlu1 %v21327_v21, %s19268_s17 }
0x4535   : > { %v9517_v30 = vpop.xlane.xlu1 %9516 }
0x4536   : > { %v9518_v48 = vsub.f32 %v9514_v20, %v9517_v30 }
0x4538   : > { %v9519_v36 = vmul.f32 1.442695, %v9518_v48 }
0x4539   : > { %v18638_v26 = vpop.permute.xlu1 %18637 }
0x453a   : > { %19035 = vpow2.f32 %v9519_v36  ;;  %v18640_v0 = vunpack.i.h.bf16 %v18638_v26  ;;  %v18639_v23 = vunpack.i.l.bf16 %v18638_v26 }
0x453c   : > { %v18020_v34 = vpack.c.bf16 %v18640_v0, %v18639_v23 }
0x453d   : > { %v18643_v56 = vpop.permute.xlu1 %18642 }
0x453e   : > { %v18645_v1 = vunpack.i.h.bf16 %v18643_v56  ;;  %v18644_v55 = vunpack.i.l.bf16 %v18643_v56  ;;  %18021 = vmatpush3.bf16.msra.mxu0 %v18020_v34 }
0x453f   : > { %18022 = vmatprep.subr.bf16.mxu0 %v19261_v3 }
0x4540   : > { %v18023_v43 = vpack.c.bf16 %v18645_v1, %v18644_v55 }
0x4542   : > { %18024 = vmatpush3.bf16.msra.mxu0 %v18023_v43 }
0x4543   : > { %18025 = vmatprep.subr.bf16.mxu0 %v19261_v3 }
0x4544   : > { %v19036_v35 = vpop.eup %19035 }
0x4545   : > { %v9521_v21 = vsel %vm2016_vm5, %v19036_v35, 0.0 }
0x4546   : > { %9522 = vadd.xlane.f32.xlu0 %v9521_v21 }
0x455c   : > { %18647 = vrot.lane.b32.xlu0 %v21333_v29, %s19264_s23 }
0x4560   : > { %18657 = vrot.lane.b32.xlu0 %v21230_v15, %s19268_s17  ;;  %v18653_v15 = vpop.permute.xlu1 %18652 }
0x4561   : > { %v18654_v47 = vunpack.i.l.bf16 %v18653_v15 }
0x4564   : > { %18667 = vrot.lane.b32.xlu0 %v21241_v57, %s19268_s17  ;;  %v18655_v57 = vunpack.i.h.bf16 %v18653_v15  ;;  %v18663_v53 = vpop.permute.xlu1 %18662 }
0x4565   : > { %v18665_v7 = vunpack.i.h.bf16 %v18663_v53  ;;  %v18664_v14 = vunpack.i.l.bf16 %v18663_v53  ;;  %v9915_v53 = vrot.slane %v21454_v40, 4 }
0x4566   : > { %v18029_v38 = vpack.c.bf16 %v18655_v57, %v18654_v47 }
0x4567   : > { %v18037_v20 = vpack.c.bf16 %v18665_v7, %v18664_v14 }
0x4568   : > { %v9701_v36 = vpop.permute.xlu1 %9700 }
0x45d3   : > { %v9523_v51 = vpop.xlane.xlu0 %9522 }
0x45d4   : > { %19037 = vrcp.f32 %v9523_v51  ;;  %v18678_v51 = vpop.permute.xlu1 %18677 }
0x45d7   : > { %v18648_v42 = vpop.permute.xlu0 %18647 }
0x45d8   : > { %v18650_v10 = vunpack.i.h.bf16 %v18648_v42  ;;  %v18649_v63 = vunpack.i.l.bf16 %v18648_v42 }
0x45da   : > { %v18026_v18 = vpack.c.bf16 %v18650_v10, %v18649_v63  ;;  %v18680_v63 = vunpack.i.h.bf16 %v18678_v51 }
0x45db   : > { %v18658_v33 = vpop.permute.xlu0 %18657 }
0x45dc   : > { %18027 = vmatpush3.bf16.msra.mxu0 %v18026_v18  ;;  %v18660_v12 = vunpack.i.h.bf16 %v18658_v33  ;;  %v18659_v2 = vunpack.i.l.bf16 %v18658_v33  ;;  %v18679_v18 = vunpack.i.l.bf16 %v18678_v51 }
0x45dd   : > { %17069 = vmatprep.subr.mxu0 %v19263_v11 }
0x45de   : > { %v19038_v9 = vpop.eup %19037  ;;  %v18033_v50 = vpack.c.bf16 %v18660_v12, %v18659_v2  ;;  %v18048_v15 = vpack.c.bf16 %v18680_v63, %v18679_v18  ;;  %v14973_v18 = vld [vmem:[%s22568_s3 + $0x5d8] sm:$0xff] }
0x45df   : > { %v9525_v24 = vmul.f32 %v19038_v9, %v19036_v35  ;;  %v18668_v49 = vpop.permute.xlu0 %18667 }
0x45e0   : > { %v18670_v54 = vunpack.i.h.bf16 %v18668_v49  ;;  %v18669_v30 = vunpack.i.l.bf16 %v18668_v49 }
0x45e1   : > { %17067 = vmatmul.mubr.msk.f32.vlgmr.msra.gmra.mrb[148].mxu0 %vm2016_vm5, %v9525_v24 }
0x45e2   : > { %17070 = vmatpush3.msk.msra.mxu0 %vm2104_vm6, %v21454_v40  ;;  %17071 = vmatprep.mubr.msk.f32.mxu0 %vm19262_vm0, %v19263_v11  ;;  %v18041_v48 = vpack.c.bf16 %v18670_v54, %v18669_v30 }
0x45e3   : > { %18028 = vmatprep.subr.bf16.mxu0 %v19261_v3 }
0x46b4   : > { %v9619_v41 = vpop.f32.mrb[148].mxu0 }
0x46b5   : > { %v17068_v37 = vpop.f32.mrb[149].mxu0  ;;  %17072 = vmatmul.mubr.msk.f32.vlgmr.msra.gmra.mrb[150].mxu0 %vm1917_vm3, %v9619_v41 }
0x46b6   : > { %18031 = vmatpush3.bf16.xpose.msk.msra.mxu0 %vm19636_vm4, %v18029_v38  ;;  %17090 = vmatprep.mubr.msk.f32.mxu0 %vm19262_vm0, %v19263_v11 }
0x46b7   : > { %18032 = vmatprep.subr.bf16.mxu0 %v19261_v3 }
0x46be   : > { %18035 = vmatpush3.bf16.xpose.msk.msra.mxu0 %vm19636_vm4, %v18033_v50 }
0x46bf   : > { %18036 = vmatprep.subr.bf16.mxu0 %v19261_v3 }
0x46c6   : > { %18039 = vmatpush3.bf16.xpose.msk.msra.mxu0 %vm19636_vm4, %v18037_v20 }
0x46c7   : > { %18040 = vmatprep.subr.bf16.mxu0 %v19261_v3 }
0x46ce   : > { %18043 = vmatpush3.bf16.xpose.msk.msra.mxu0 %vm19636_vm4, %v18041_v48 }
0x46cf   : > { %18062 = vmatprep.subr.bf16.mxu0 %v19261_v3 }
0x46d5   : > { %17091 = vmatmul.mubr.msk.f32.vlgmr.msra.gmra.mrb[152].mxu0 %vm1917_vm3, %v9701_v36 }
0x46d6   : > { %17144 = vmatprep.mubr.msk.f32.mxu0 %vm19262_vm0, %v19263_v11 }
0x4788   : > { %v9695_v26 = vpop.f32.mrb[150].mxu0 }
0x4789   : > { %v9699_v0 = vadd.f32 %v9695_v26, %v21426_v58  ;;  %v17073_v23 = vpop.f32.mrb[151].mxu0 }
0x47a8   : > { %v9802_v34 = vpop.f32.mrb[152].mxu0 }
0x47a9   : > { %v9806_v56 = vmul.f32 0.5, %v9802_v34  ;;  %v17092_v1 = vpop.f32.mrb[153].mxu0 }
0x47ab   : > { %v9807_v55 = vsel %vm2016_vm5, %v9806_v56, -inf }
0x47ac   : > { %9808 = vmax.xlane.f32.xlu0 %v9807_v55  ;;  %v14967_v55 = vld [vmem:[%s22568_s3 + $0x598] sm:$0xff] }
0x47c2   : > { %18672 = vrot.lane.b32.xlu0 %v21324_v4, %s19268_s17 }
0x47c6   : > { %18682 = vrot.lane.b32.xlu0 %v21330_v16, %s19268_s17 }
0x4839   : > { %v9809_v43 = vpop.xlane.xlu0 %9808 }
0x483a   : > { %v9810_v35 = vsub.f32 %v9806_v56, %v9809_v43  ;;  %v14964_v56 = vld [vmem:[%s22568_s3 + $0x580] sm:$0xff] }
0x483c   : > { %v9811_v21 = vmul.f32 1.442695, %v9810_v35  ;;  %v14982_v35 = vld [vmem:[%s22568_s3 + $0x600] sm:$0xff] }
0x483d   : > { %v18673_v42 = vpop.permute.xlu0 %18672 }
0x483e   : > { %19039 = vpow2.f32 %v9811_v21  ;;  %v18675_v58 = vunpack.i.h.bf16 %v18673_v42  ;;  %v18674_v10 = vunpack.i.l.bf16 %v18673_v42  ;;  %v14983_v21 = vld [vmem:[%s22568_s3 + $0x608] sm:$0xff]  ;;  %v14970_v42 = vld [vmem:[%s22568_s3 + $0x5c0] sm:$0xff] }
0x483f   : > { %v18074_v51 = vpack.c.bf16 %v14983_v21, %v14982_v35 }
0x4840   : > { %v18045_v9 = vpack.c.bf16 %v18675_v58, %v18674_v10  ;;  %v14971_v58 = vld [vmem:[%s22568_s3 + $0x5c8] sm:$0xff]  ;;  %v14972_v10 = vld [vmem:[%s22568_s3 + $0x5d0] sm:$0xff] }
0x4841   : > { %v18683_v24 = vpop.permute.xlu0 %18682  ;;  %v18063_v63 = vpack.c.bf16 %v14971_v58, %v14970_v42 }
0x4842   : > { %18046 = vmatpush3.bf16.msra.mxu1 %v18045_v9  ;;  %v18685_v4 = vunpack.i.h.bf16 %v18683_v24  ;;  %v18684_v57 = vunpack.i.l.bf16 %v18683_v24  ;;  %v18066_v9 = vpack.c.bf16 %v14973_v18, %v14972_v10  ;;  %v14974_v24 = vld [vmem:[%s22568_s3 + $0x5e0] sm:$0xff] }
0x4843   : > { %18047 = vmatprep.subr.bf16.mxu1 %v19261_v3  ;;  %18064 = vmatpush3.bf16.msra.mxu0 %v18063_v63 }
0x4844   : > { %v18051_v47 = vpack.c.bf16 %v18685_v4, %v18684_v57  ;;  %18065 = vmatprep.subr.bf16.mxu0 %v19261_v3 }
0x4846   : > { %18049 = vmatpush3.bf16.msra.mxu1 %v18048_v15  ;;  %v14975_v15 = vld [vmem:[%s22568_s3 + $0x5e8] sm:$0xff] }
0x4847   : > { %18050 = vmatprep.subr.bf16.mxu1 %v19261_v3  ;;  %18067 = vmatpush3.bf16.msra.mxu0 %v18066_v9  ;;  %v18069_v4 = vpack.c.bf16 %v14975_v15, %v14974_v24  ;;  %v14990_v24 = vld [vmem:[%s22568_s3 + $0x680] sm:$0xff]  ;;  %v14991_v15 = vld [vmem:[%s22568_s3 + $0x688] sm:$0xff] }
0x4848   : > { %v19040_v16 = vpop.eup %19039  ;;  %18068 = vmatprep.subr.bf16.mxu0 %v19261_v3 }
0x4849   : > { %v9813_v38 = vsel %vm2016_vm5, %v19040_v16, 0.0 }
0x484a   : > { %9814 = vadd.xlane.f32.xlu1 %v9813_v38  ;;  %18052 = vmatpush3.bf16.msra.mxu1 %v18051_v47 }
0x484b   : > { %18053 = vmatprep.subr.bf16.mxu1 %v19261_v3  ;;  %18070 = vmatpush3.bf16.msra.mxu0 %v18069_v4  ;;  %v18089_v4 = vpack.c.bf16 %v14991_v15, %v14990_v24 }
0x484c   : > { %18071 = vmatprep.subr.bf16.mxu0 %v19261_v3 }
0x485b   : > { %18687 = vrot.lane.b32.xlu1 %v21333_v29, %s19268_s17 }
0x48d7   : > { %v9815_v41 = vpop.xlane.xlu1 %9814 }
0x48d8   : > { %19041 = vrcp.f32 %v9815_v41  ;;  %v14962_v41 = vld [vmem:[%s22569_s4 + $0x20] ss:$0 sm:$0xff] }
0x48db   : > { %v18688_v33 = vpop.permute.xlu1 %18687 }
0x48dc   : > { %v18690_v37 = vunpack.i.h.bf16 %v18688_v33  ;;  %v18689_v12 = vunpack.i.l.bf16 %v18688_v33 }
0x48de   : > { %v18054_v2 = vpack.c.bf16 %v18690_v37, %v18689_v12  ;;  %v14963_v37 = vld [vmem:[%s22569_s4 + $0x21] ss:$0 sm:$0xff]  ;;  %v14984_v12 = vld [vmem:[%s22568_s3 + $0x610] sm:$0xff] }
0x48e0   : > { %18055 = vmatpush3.bf16.msra.mxu1 %v18054_v2  ;;  %v14985_v2 = vld [vmem:[%s22568_s3 + $0x618] sm:$0xff] }
0x48e1   : > { %17112 = vmatprep.subr.mxu1 %v19263_v11 }
0x48e2   : > { %v19042_v50 = vpop.eup %19041 }
0x48e3   : > { %v9817_v7 = vmul.f32 %v19042_v50, %v19040_v16 }
0x48e5   : > { %17110 = vmatmul.mubr.msk.f32.vlgmr.msra.gmra.mrb[110].mxu1 %vm2016_vm5, %v9817_v7  ;;  %v18078_v7 = vpack.c.bf16 %v14985_v2, %v14984_v12  ;;  %v14989_v12 = vld [vmem:[%s22568_s3 + $0x658] sm:$0xff] }
0x48e6   : > { %17113 = vmatpush3.msk.msra.mxu1 %vm2104_vm6, %v9915_v53  ;;  %17114 = vmatprep.mubr.msk.f32.mxu1 %vm19262_vm0, %v19263_v11 }
0x48e7   : > { %18056 = vmatprep.subr.bf16.mxu1 %v19261_v3 }
0x49b8   : > { %v9911_v29 = vpop.f32.mrb[110].mxu1 }
0x49b9   : > { %v17111_v14 = vpop.f32.mrb[111].mxu1  ;;  %17115 = vmatmul.mubr.msk.f32.vlgmr.msra.gmra.mrb[112].mxu1 %vm1917_vm3, %v9911_v29  ;;  %v14996_v29 = vld [vmem:[%s22569_s4 + $0x26] ss:$0 sm:$0xff] }
0x49ba   : > { %17125 = vmatprep.mubr.msk.f32.mxu1 %vm19262_vm0, %v19263_v11 }
0x4a8c   : > { %v9987_v20 = vpop.f32.mrb[112].mxu1 }
0x4a8d   : > { %v9991_v49 = vadd.f32 %v9987_v20, %v9699_v0  ;;  %v17116_v40 = vpop.f32.mrb[113].mxu1  ;;  %v14965_v0 = vld [vmem:[%s22568_s3 + $0x588] sm:$0xff] }
0x4a8e   : > { %v18057_v1 = vpack.c.bf16 %v14965_v0, %v14964_v56 }
0x4a8f   : > { %v9992_v54 = vadd.f32 %v9991_v49, %v21283_v25  ;;  %v14966_v25 = vld [vmem:[%s22568_s3 + $0x590] sm:$0xff] }
0x4a90   : > { %18058 = vmatpush3.bf16.msra.mxu1 %v18057_v1  ;;  %v18060_v43 = vpack.c.bf16 %v14967_v55, %v14966_v25  ;;  %v14978_v55 = vld [vmem:[%s22569_s4 + $0x23] ss:$0 sm:$0xff] }
0x4a91   : > { %v9995_v30 = vsel %vm331_vm1, %v9992_v54, 0.0  ;;  %18059 = vmatprep.subr.bf16.mxu1 %v19261_v3 }
0x4a92   : > { %9996 = vadd.xlane.f32.xlu0 %v9995_v30 }
0x4a94   : > { %18061 = vmatpush3.bf16.msra.mxu1 %v18060_v43 }
0x4a95   : > { %18075 = vmatprep.subr.bf16.mxu1 %v18074_v51 }
0x4b1f   : > { %v9997_v48 = vpop.xlane.xlu0 %9996 }
0x4b20   : > { %v9998_v36 = vmul.f32 0.03125, %v9997_v48 }
0x4b22   : > { %v9999_v26 = vsub.f32 %v9992_v54, %v9998_v36 }
0x4b24   : > { %v10000_v23 = vmul.f32 %v9999_v26, %v9999_v26 }
0x4b26   : > { %v10001_v34 = vsel %vm331_vm1, %v10000_v23, 0.0 }
0x4b27   : > { %10002 = vadd.xlane.f32.xlu1 %v10001_v34 }
0x4bb4   : > { %v10003_v57 = vpop.xlane.xlu1 %10002 }
0x4bb5   : > { %v10004_v16 = vmul.f32 0.03125, %v10003_v57  ;;  %v14986_v57 = vld [vmem:[%s22568_s3 + $0x640] sm:$0xff] }
0x4bb7   : > { %v10005_v47 = vadd.f32 1e-05, %v10004_v16  ;;  %v14987_v16 = vld [vmem:[%s22568_s3 + $0x648] sm:$0xff] }
0x4bb9   : > { %19043 = vrsqrt.f32 %v10005_v47  ;;  %v18083_v47 = vpack.c.bf16 %v14987_v16, %v14986_v57 }
0x4bc3   : > { %v19044_v38 = vpop.eup %19043 }
0x4bc4   : > { %v10007_v33 = vmul.f32 %v19044_v38, %v9999_v26  ;;  %v14992_v38 = vld [vmem:[%s22568_s3 + $0x690] sm:$0xff] }
0x4bc6   : > { %v10012_v50 = vmul.f32 %v14962_v41, %v10007_v33  ;;  %v14993_v41 = vld [vmem:[%s22568_s3 + $0x698] sm:$0xff] }
0x4bc7   : > { %v18092_v33 = vpack.c.bf16 %v14993_v41, %v14992_v38 }
0x4bc8   : > { %v10017_v53 = vadd.f32 %v14963_v37, %v10012_v50  ;;  %v14988_v37 = vld [vmem:[%s22568_s3 + $0x650] sm:$0xff] }
0x4bc9   : > { %v18086_v2 = vpack.c.bf16 %v14989_v12, %v14988_v37 }
0x4bca   : > { %17126 = vmatmul.mubr.msk.f32.vlgmr.msra.gmra.mrb[114].mxu1 %vm331_vm1, %v10017_v53 }
0x4bcb   : > { %18077 = vmatpush3.bf16.msra.mxu1 %v18074_v51  ;;  %17155 = vmatprep.mubr.msk.f32.mxu1 %vm331_vm1, %v20674_v62  ;;  %v14976_v62 = vld [vmem:[%s22568_s3 + $0x5f0] sm:$0xff] }
0x4bcc   : > { %18079 = vmatprep.subr.bf16.mxu1 %v18078_v7 }
0x4bcf   : > { %18081 = vmatpush3.bf16.msra.mxu1 %v18078_v7 }
0x4bd0   : > { %18088 = vmatprep.subr.bf16.mxu1 %v19261_v3 }
0x4bd2   : > { %17156 = vmatmul.mubr.msk.f32.vlgmr.msra.gmra.mrb[116].mxu1 %vm331_vm1, %v20694_v17  ;;  %v14977_v17 = vld [vmem:[%s22568_s3 + $0x5f8] sm:$0xff] }
0x4bd3   : > { %17158 = vmatprep.mubr.msk.f32.mxu1 %vm331_vm1, %v20709_v59  ;;  %v18072_v59 = vpack.c.bf16 %v14977_v17, %v14976_v62  ;;  %18090 = vmatpush3.bf16.msra.mxu1 %v18089_v4  ;;  %v14980_v17 = vld [vmem:[%s22569_s4 + $0x24] ss:$0 sm:$0xff] }
0x4bd4   : > { %18091 = vmatprep.subr.bf16.mxu1 %v19261_v3 }
0x4bd5   : > { %18073 = vmatpush3.bf16.msra.mxu0 %v18072_v59 }
0x4bd6   : > { %17159 = vmatmul.mubr.msk.f32.gmra.mrb[118].mxu1 %vm331_vm1, %v20723_v45  ;;  %18082 = vmatprep.subr.bf16.mxu0 %v19261_v3  ;;  %v14968_v45 = vld [vmem:[%s22569_s4 + $0x22] ss:$0 sm:$0xff] }
0x4bd7   : > { %17161 = vmatprep.mubr.msk.f32.mxu1 %vm331_vm1, %v20739_v52  ;;  %18093 = vmatpush3.bf16.msra.mxu1 %v18092_v33 }
0x4bda   : > { %17162 = vmatmul.mubr.msk.f32.gmra.mrb[120].mxu1 %vm331_vm1, %v20764_v19 }
0x4bdb   : > { %17164 = vmatprep.mubr.msk.f32.mxu1 %vm331_vm1, %v20757_v44 }
0x4bde   : > { %17165 = vmatmul.mubr.msk.f32.gmra.mrb[122].mxu1 %vm331_vm1, %v20778_v22 }
0x4bdf   : > { %17186 = vmatprep.mubr.msk.f32.mxu1 %vm19262_vm0, %v19263_v11 }
0x4c9d   : > { %v10097_v52 = vpop.f32.mrb[114].mxu1 }
0x4c9e   : > { %v10098_v44 = vadd.f32 %v14968_v45, %v10097_v52  ;;  %v17127_v19 = vpop.f32.mrb[115].mxu1  ;;  %v14981_v45 = vld [vmem:[%s22569_s4 + $0x25] ss:$0 sm:$0xff] }
0x4ca0   : > { %v10101_v22 = vmax.f32 %v10098_v44, 0.0 }
0x4ca2   : > { %17145 = vmatmul.mubr.msk.f32.vlgmr.msra.gmra.mrb[154].mxu0 %vm2016_vm5, %v10101_v22 }
0x4ca3   : > { %17175 = vmatprep.mubr.msk.f32.mxu0 %vm19262_vm0, %v19263_v11  ;;  %18084 = vmatpush3.bf16.msra.mxu0 %v18083_v47 }
0x4ca4   : > { %18085 = vmatprep.subr.bf16.mxu0 %v19261_v3 }
0x4ca5   : > { %v17157_v14 = vpop.f32.mrb[116].mxu1 }
0x4ca6   : > { %v21593_v20 = vadd.f32 %v17157_v14, %v14996_v29  ;;  %v10305_v49 = vpop.f32.mrb[117].mxu1  ;;  %v15007_v14 = vld [vmem:[%s22569_s4 + $0x28] ss:$0 sm:$0xff] }
0x4ca7   : > { %18087 = vmatpush3.bf16.msra.mxu0 %v18086_v2  ;;  %v21652_v22 = vadd.f32 %v14996_v29, %v10305_v49 }
0x4ca9   : > { %v17160_v40 = vpop.f32.mrb[118].mxu1 }
0x4caa   : > { %v21595_v54 = vadd.f32 %v17160_v40, %v14996_v29  ;;  %v10315_v30 = vpop.f32.mrb[119].mxu1 }
0x4cab   : > { %v21597_v48 = vadd.f32 %v14996_v29, %v10315_v30  ;;  %v15005_v30 = vld [vmem:[%s22569_s4 + $0x27] ss:$0 sm:$0xff] }
0x4cad   : > { %v17163_v36 = vpop.f32.mrb[120].mxu1 }
0x4cae   : > { %v21599_v26 = vadd.f32 %v17163_v36, %v14996_v29  ;;  %v10325_v23 = vpop.f32.mrb[121].mxu1 }
0x4caf   : > { %v21601_v34 = vadd.f32 %v14996_v29, %v10325_v23 }
0x4cb1   : > { %v17166_v56 = vpop.f32.mrb[122].mxu1 }
0x4cb2   : > { %v21603_v0 = vadd.f32 %v17166_v56, %v14996_v29  ;;  %v10335_v1 = vpop.f32.mrb[123].mxu1 }
0x4cb3   : > { %v21605_v25 = vadd.f32 %v14996_v29, %v10335_v1 }
0x4d75   : > { %v10185_v43 = vpop.f32.mrb[154].mxu0 }
0x4d76   : > { %v10186_v35 = vadd.f32 %v14978_v55, %v10185_v43  ;;  %v17146_v21 = vpop.f32.mrb[155].mxu0 }
0x4d78   : > { %v10189_v51 = vadd.f32 %v10186_v35, %v10017_v53 }
0x4d7a   : > { %v10192_v42 = vsel %vm331_vm1, %v10189_v51, 0.0 }
0x4d7b   : > { %10193 = vadd.xlane.f32.xlu0 %v10192_v42 }
0x4e08   : > { %v10194_v58 = vpop.xlane.xlu0 %10193 }
0x4e09   : > { %v10195_v10 = vmul.f32 0.03125, %v10194_v58 }
0x4e0b   : > { %v10196_v63 = vsub.f32 %v10189_v51, %v10195_v10 }
0x4e0d   : > { %v10197_v18 = vmul.f32 %v10196_v63, %v10196_v63 }
0x4e0f   : > { %v10198_v9 = vsel %vm331_vm1, %v10197_v18, 0.0 }
0x4e10   : > { %10199 = vadd.xlane.f32.xlu0 %v10198_v9 }
0x4e9d   : > { %v10200_v50 = vpop.xlane.xlu0 %10199 }
0x4e9e   : > { %v10201_v53 = vmul.f32 0.03125, %v10200_v50 }
0x4ea0   : > { %v10202_v7 = vadd.f32 1e-05, %v10201_v53 }
0x4ea2   : > { %19045 = vrsqrt.f32 %v10202_v7 }
0x4eac   : > { %v19046_v62 = vpop.eup %19045 }
0x4ead   : > { %v10204_v59 = vmul.f32 %v19046_v62, %v10196_v63 }
0x4eaf   : > { %v10209_v52 = vmul.f32 %v14980_v17, %v10204_v59 }
0x4eb1   : > { %v21644_v44 = vadd.f32 %v14981_v45, %v10209_v52 }
0x4eb3   : > { %17187 = vmatmul.mubr.msk.f32.vlgmr.msra.gmra.mrb[124].mxu1 %vm331_vm1, %v21644_v44  ;;  %v21650_v19 = vadd.f32 %v21286_v60, %v21644_v44 }
0x4eb5   : > { %17176 = vmatmul.mubr.msk.f32.vlgmr.msra.gmra.mrb[156].mxu0 %vm331_vm1, %v21650_v19 }
0x4eb6   : > { %17191 = vmatprep.mubr.msk.f32.mxu0 %vm1917_vm3, %v21652_v22 }
0x4f86   : > { %v10496_v40 = vpop.f32.mrb[124].mxu1 }
0x4f87   : > { %v21664_v36 = vadd.f32 %v15007_v14, %v10496_v40  ;;  %v17188_v60 = vpop.f32.mrb[125].mxu1 }
0x4f88   : > { %v10418_v29 = vpop.f32.mrb[156].mxu0 }
0x4f89   : > { %v21666_v49 = vadd.f32 %v15005_v30, %v10418_v29  ;;  %v17177_v23 = vpop.f32.mrb[157].mxu0  ;;  %17203 = vmatprep.subr.mxu1 %v21664_v36 }
0x4f8a   : > { %17204 = vmatpush3.msra.mxu1 %v21664_v36 }
0x4f8b   : > { %17189 = vmatprep.subr.msk.mxu0 %vm1917_vm3, %v21666_v49 }
0x4f8c   : > { %17190 = vmatpush3.xpose.msk.msra.mxu0 %vm1917_vm3, %v21666_v49 }
0x4f8f   : > { %17192 = vmatmul.mubr.msk.f32.vlgmr.msra.gmra.mrb[158].mxu0 %vm1917_vm3, %v21593_v20 }
0x4f90   : > { %17194 = vmatprep.mubr.msk.f32.mxu0 %vm1917_vm3, %v21597_v48 }
0x4f93   : > { %17195 = vmatmul.mubr.msk.f32.gmra.mrb[160].mxu0 %vm1917_vm3, %v21595_v54 }
0x4f94   : > { %17197 = vmatprep.mubr.msk.f32.mxu0 %vm1917_vm3, %v21601_v34 }
0x4f97   : > { %17198 = vmatmul.mubr.msk.f32.gmra.mrb[162].mxu0 %vm1917_vm3, %v21599_v26 }
0x4f98   : > { %17200 = vmatprep.mubr.msk.f32.mxu0 %vm1917_vm3, %v21605_v25 }
0x4f9b   : > { %17201 = vmatmul.mubr.msk.f32.gmra.mrb[164].mxu0 %vm1917_vm3, %v21603_v0 }
0x5062   : > { %v17193_v56 = vpop.f32.mrb[158].mxu0 }
0x5063   : > { %v10634_v1 = vmul.f32 0.5, %v17193_v56  ;;  %v10594_v55 = vpop.f32.mrb[159].mxu0 }
0x5064   : > { %v10633_v43 = vmul.f32 0.5, %v10594_v55 }
0x5065   : > { %v10644_v35 = vsel %vm556_vm2, %v10634_v1, -inf }
0x5066   : > { %10645 = vmax.xlane.f32.xlu0 %v10644_v35  ;;  %v17196_v21 = vpop.f32.mrb[160].mxu0  ;;  %v10641_v51 = vsel %vm556_vm2, %v10633_v43, -inf }
0x5067   : > { %v10636_v42 = vmul.f32 0.5, %v17196_v21  ;;  %10642 = vmax.xlane.f32.xlu1 %v10641_v51  ;;  %v10604_v58 = vpop.f32.mrb[161].mxu0 }
0x5068   : > { %v10635_v10 = vmul.f32 0.5, %v10604_v58 }
0x5069   : > { %v10650_v63 = vsel %vm556_vm2, %v10636_v42, -inf }
0x506a   : > { %10651 = vmax.xlane.f32.xlu0 %v10650_v63  ;;  %v17199_v18 = vpop.f32.mrb[162].mxu0  ;;  %v10647_v9 = vsel %vm556_vm2, %v10635_v10, -inf }
0x506b   : > { %v10638_v24 = vmul.f32 0.5, %v17199_v18  ;;  %10648 = vmax.xlane.f32.xlu1 %v10647_v9  ;;  %v10614_v15 = vpop.f32.mrb[163].mxu0 }
0x506c   : > { %v10637_v4 = vmul.f32 0.5, %v10614_v15 }
0x506d   : > { %v10656_v57 = vsel %vm556_vm2, %v10638_v24, -inf }
0x506e   : > { %10657 = vmax.xlane.f32.xlu0 %v10656_v57  ;;  %v17202_v16 = vpop.f32.mrb[164].mxu0  ;;  %v10653_v47 = vsel %vm556_vm2, %v10637_v4, -inf }
0x506f   : > { %v10640_v38 = vmul.f32 0.5, %v17202_v16  ;;  %10654 = vmax.xlane.f32.xlu1 %v10653_v47  ;;  %v10624_v41 = vpop.f32.mrb[165].mxu0 }
0x5070   : > { %v21694_v33 = vmul.f32 0.5, %v10624_v41 }
0x5071   : > { %v10662_v37 = vsel %vm556_vm2, %v10640_v38, -inf }
0x5072   : > { %10663 = vmax.xlane.f32.xlu0 %v10662_v37  ;;  %v10659_v12 = vsel %vm556_vm2, %v21694_v33, -inf }
0x5073   : > { %10660 = vmax.xlane.f32.xlu1 %v10659_v12 }
0x5084   : > { %11018 = vrot.lane.b32.xlu1 %v21666_v49, %s19267_s19 }
0x50f3   : > { %v10646_v2 = vpop.xlane.xlu0 %10645 }
0x50f4   : > { %v10666_v50 = vsub.f32 %v10634_v1, %v10646_v2  ;;  %v10643_v53 = vpop.xlane.xlu1 %10642 }
0x50f5   : > { %v10665_v7 = vsub.f32 %v10633_v43, %v10643_v53 }
0x50f6   : > { %v10675_v62 = vmul.f32 1.442695, %v10666_v50 }
0x50f7   : > { %v10673_v17 = vmul.f32 1.442695, %v10665_v7  ;;  %v10652_v59 = vpop.xlane.xlu0 %10651 }
0x50f8   : > { %19047 = vpow2.f32 %v10675_v62  ;;  %v10668_v45 = vsub.f32 %v10636_v42, %v10652_v59  ;;  %v10649_v52 = vpop.xlane.xlu1 %10648 }
0x50f9   : > { %19049 = vpow2.f32 %v10673_v17  ;;  %v10667_v14 = vsub.f32 %v10635_v10, %v10649_v52 }
0x50fa   : > { %v10679_v40 = vmul.f32 1.442695, %v10668_v45 }
0x50fb   : > { %v10677_v30 = vmul.f32 1.442695, %v10667_v14  ;;  %v10658_v60 = vpop.xlane.xlu0 %10657 }
0x50fc   : > { %19051 = vpow2.f32 %v10679_v40  ;;  %v10670_v29 = vsub.f32 %v10638_v24, %v10658_v60  ;;  %v10655_v23 = vpop.xlane.xlu1 %10654 }
0x50fd   : > { %19053 = vpow2.f32 %v10677_v30  ;;  %v10669_v56 = vsub.f32 %v10637_v4, %v10655_v23 }
0x50fe   : > { %v10683_v55 = vmul.f32 1.442695, %v10670_v29 }
0x50ff   : > { %v10681_v1 = vmul.f32 1.442695, %v10669_v56  ;;  %v10664_v35 = vpop.xlane.xlu0 %10663 }
0x5100   : > { %19055 = vpow2.f32 %v10683_v55  ;;  %v10672_v43 = vsub.f32 %v10640_v38, %v10664_v35  ;;  %v10661_v21 = vpop.xlane.xlu1 %10660 }
0x5101   : > { %19057 = vpow2.f32 %v10681_v1  ;;  %v10671_v12 = vsub.f32 %v21694_v33, %v10661_v21 }
0x5102   : > { %v21701_v51 = vpop.eup %19047  ;;  %v10687_v42 = vmul.f32 1.442695, %v10672_v43 }
0x5103   : > { %v19050_v58 = vpop.eup %19049  ;;  %v10692_v10 = vsel %vm556_vm2, %v21701_v51, 0.0  ;;  %v10685_v2 = vmul.f32 1.442695, %v10671_v12 }
0x5104   : > { %19059 = vpow2.f32 %v10687_v42  ;;  %10693 = vadd.xlane.f32.xlu0 %v10692_v10  ;;  %v11019_v63 = vpop.permute.xlu1 %11018  ;;  %v10689_v18 = vsel %vm556_vm2, %v19050_v58, 0.0 }
0x5105   : > { %10690 = vadd.xlane.f32.xlu1 %v10689_v18  ;;  %17231 = vmatprep.subr.msk.mxu1 %vm1917_vm3, %v11019_v63  ;;  %19061 = vpow2.f32 %v10685_v2 }
0x5106   : > { %v19052_v9 = vpop.eup %19051 }
0x5107   : > { %v19054_v24 = vpop.eup %19053  ;;  %v10698_v15 = vsel %vm556_vm2, %v19052_v9, 0.0 }
0x5108   : > { %10699 = vadd.xlane.f32.xlu0 %v10698_v15  ;;  %v10695_v4 = vsel %vm556_vm2, %v19054_v24, 0.0 }
0x5109   : > { %10696 = vadd.xlane.f32.xlu1 %v10695_v4 }
0x510a   : > { %v19056_v57 = vpop.eup %19055 }
0x510b   : > { %v19058_v16 = vpop.eup %19057  ;;  %v10704_v47 = vsel %vm556_vm2, %v19056_v57, 0.0 }
0x510c   : > { %10705 = vadd.xlane.f32.xlu0 %v10704_v47  ;;  %v10701_v38 = vsel %vm556_vm2, %v19058_v16, 0.0 }
0x510d   : > { %10702 = vadd.xlane.f32.xlu1 %v10701_v38 }
0x510e   : > { %v21711_v41 = vpop.eup %19059 }
0x510f   : > { %v10710_v37 = vsel %vm556_vm2, %v21711_v41, 0.0  ;;  %v19062_v50 = vpop.eup %19061 }
0x5110   : > { %10711 = vadd.xlane.f32.xlu0 %v10710_v37  ;;  %v10707_v33 = vsel %vm556_vm2, %v19062_v50, 0.0 }
0x511e   : > { %11004 = vrot.lane.b32.xlu1 %v21593_v20, %s19267_s19 }
0x5122   : > { %11006 = vrot.lane.b32.xlu1 %v21597_v48, %s19267_s19 }
0x5126   : > { %11002 = vrot.lane.b32.xlu0 %v21652_v22, %s19267_s19 }
0x512a   : > { %11008 = vrot.lane.b32.xlu0 %v21595_v54, %s19267_s19 }
0x512e   : > { %11012 = vrot.lane.b32.xlu0 %v21599_v26, %s19267_s19 }
0x5132   : > { %11016 = vrot.lane.b32.xlu0 %v21603_v0, %s19267_s19 }
0x5136   : > { %11512 = vrot.lane.b32.xlu0 %v21652_v22, %s19264_s23 }
0x513a   : > { %11516 = vrot.lane.b32.xlu0 %v21597_v48, %s19264_s23 }
0x513e   : > { %11520 = vrot.lane.b32.xlu0 %v21601_v34, %s19264_s23 }
0x5142   : > { %11524 = vrot.lane.b32.xlu0 %v21605_v25, %s19264_s23 }
0x5146   : > { %10708 = vadd.xlane.f32.xlu1 %v10707_v33 }
0x5157   : > { %11010 = vrot.lane.b32.xlu1 %v21601_v34, %s19267_s19 }
0x515b   : > { %11014 = vrot.lane.b32.xlu1 %v21605_v25, %s19267_s19 }
0x515f   : > { %11528 = vrot.lane.b32.xlu1 %v21666_v49, %s19264_s23 }
0x5163   : > { %11514 = vrot.lane.b32.xlu1 %v21593_v20, %s19264_s23 }
0x5167   : > { %11518 = vrot.lane.b32.xlu1 %v21595_v54, %s19264_s23 }
0x516b   : > { %11522 = vrot.lane.b32.xlu1 %v21599_v26, %s19264_s23 }
0x516f   : > { %11526 = vrot.lane.b32.xlu1 %v21603_v0, %s19264_s23 }
0x5191   : > { %v10694_v53 = vpop.xlane.xlu0 %10693 }
0x5192   : > { %19063 = vrcp.f32 %v10694_v53  ;;  %v10691_v7 = vpop.xlane.xlu1 %10690 }
0x5193   : > { %19065 = vrcp.f32 %v10691_v7 }
0x5195   : > { %v10700_v62 = vpop.xlane.xlu0 %10699 }
0x5196   : > { %19067 = vrcp.f32 %v10700_v62  ;;  %v10697_v17 = vpop.xlane.xlu1 %10696 }
0x5197   : > { %19069 = vrcp.f32 %v10697_v17 }
0x5199   : > { %v10706_v59 = vpop.xlane.xlu0 %10705 }
0x519a   : > { %19071 = vrcp.f32 %v10706_v59  ;;  %v10703_v45 = vpop.xlane.xlu1 %10702 }
0x519b   : > { %19073 = vrcp.f32 %v10703_v45 }
0x519c   : > { %v19064_v52 = vpop.eup %19063 }
0x519d   : > { %v19066_v14 = vpop.eup %19065  ;;  %v10722_v30 = vmul.f32 %v19064_v52, %v21701_v51  ;;  %v10712_v51 = vpop.xlane.xlu0 %10711 }
0x519e   : > { %v10721_v40 = vmul.f32 %v19066_v14, %v19050_v58  ;;  %v11005_v21 = vpop.permute.xlu1 %11004  ;;  %19075 = vrcp.f32 %v10712_v51 }
0x51a0   : > { %v19068_v60 = vpop.eup %19067  ;;  %17205 = vmatprep.mubr.msk.f32.mxu1 %vm556_vm2, %v10721_v40 }
0x51a1   : > { %v19070_v29 = vpop.eup %19069  ;;  %17206 = vmatmul.mubr.msk.f32.vlgmr.msra.gmra.mrb[126].mxu1 %vm556_vm2, %v10722_v30  ;;  %v10724_v56 = vmul.f32 %v19068_v60, %v19052_v9  ;;  %v11003_v10 = vpop.permute.xlu0 %11002 }
0x51a2   : > { %17232 = vmatpush3.xpose.msk.msra.mxu1 %vm1917_vm3, %v11019_v63  ;;  %v10723_v23 = vmul.f32 %v19070_v29, %v19054_v24  ;;  %v11007_v42 = vpop.permute.xlu1 %11006 }
0x51a4   : > { %v19072_v55 = vpop.eup %19071  ;;  %17208 = vmatprep.mubr.msk.f32.mxu1 %vm556_vm2, %v10723_v23 }
0x51a5   : > { %v19074_v1 = vpop.eup %19073  ;;  %17209 = vmatmul.mubr.msk.f32.gmra.mrb[128].mxu1 %vm556_vm2, %v10724_v56  ;;  %v10726_v43 = vmul.f32 %v19072_v55, %v19056_v57  ;;  %v11009_v18 = vpop.permute.xlu0 %11008 }
0x51a6   : > { %v10725_v35 = vmul.f32 %v19074_v1, %v19058_v16 }
0x51a8   : > { %17211 = vmatprep.mubr.msk.f32.mxu1 %vm556_vm2, %v10725_v35  ;;  %v19076_v24 = vpop.eup %19075 }
0x51a9   : > { %17212 = vmatmul.mubr.msk.f32.gmra.mrb[130].mxu1 %vm556_vm2, %v10726_v43  ;;  %v11013_v16 = vpop.permute.xlu0 %11012  ;;  %v10728_v57 = vmul.f32 %v19076_v24, %v21711_v41 }
0x51ad   : > { %v11017_v38 = vpop.permute.xlu0 %11016 }
0x51b1   : > { %v11513_v37 = vpop.permute.xlu0 %11512 }
0x51b5   : > { %v11517_v12 = vpop.permute.xlu0 %11516 }
0x51b9   : > { %v11521_v33 = vpop.permute.xlu0 %11520 }
0x51bd   : > { %v11525_v7 = vpop.permute.xlu0 %11524 }
0x51d3   : > { %v10709_v58 = vpop.xlane.xlu1 %10708 }
0x51d4   : > { %19077 = vrcp.f32 %v10709_v58 }
0x51d7   : > { %v11011_v63 = vpop.permute.xlu1 %11010 }
0x51db   : > { %v11015_v9 = vpop.permute.xlu1 %11014 }
0x51de   : > { %v19078_v15 = vpop.eup %19077 }
0x51df   : > { %v11529_v4 = vpop.permute.xlu1 %11528  ;;  %v10727_v47 = vmul.f32 %v19078_v15, %v19062_v50  ;;  %v21776_v50 = vld [vmem:[%s22568_s3 + $0x6c0] sm:$0xff] }
0x51e0   : > { %17273 = vmatprep.subr.msk.mxu1 %vm1917_vm3, %v11529_v4  ;;  %17217 = vmatprep.subr.msk.mxu0 %vm2104_vm6, %v21776_v50 }
0x51e1   : > { %17214 = vmatprep.mubr.msk.f32.mxu1 %vm556_vm2, %v10727_v47  ;;  %17218 = vmatpush3.msk.msra.mxu0 %vm2104_vm6, %v21776_v50 }
0x51e2   : > { %17215 = vmatmul.mubr.msk.f32.gmra.mrb[132].mxu1 %vm556_vm2, %v10728_v57 }
0x51e3   : > { %17233 = vmatprep.mubr.msk.f32.mxu1 %vm1917_vm3, %v11003_v10  ;;  %v11515_v41 = vpop.permute.xlu1 %11514 }
0x51e6   : > { %17234 = vmatmul.mubr.msk.f32.vlgmr.msra.gmra.mrb[134].mxu1 %vm1917_vm3, %v11005_v21 }
0x51e7   : > { %17274 = vmatpush3.xpose.msk.msra.mxu1 %vm1917_vm3, %v11529_v4  ;;  %17236 = vmatprep.mubr.msk.f32.mxu1 %vm1917_vm3, %v11007_v42  ;;  %v11519_v2 = vpop.permute.xlu1 %11518 }
0x51ea   : > { %17237 = vmatmul.mubr.msk.f32.gmra.mrb[136].mxu1 %vm1917_vm3, %v11009_v18 }
0x51eb   : > { %17239 = vmatprep.mubr.msk.f32.mxu1 %vm1917_vm3, %v11011_v63  ;;  %v11523_v53 = vpop.permute.xlu1 %11522 }
0x51ee   : > { %17240 = vmatmul.mubr.msk.f32.gmra.mrb[138].mxu1 %vm1917_vm3, %v11013_v16 }
0x51ef   : > { %17242 = vmatprep.mubr.msk.f32.mxu1 %vm1917_vm3, %v11015_v9  ;;  %v11527_v62 = vpop.permute.xlu1 %11526 }
0x51f2   : > { %17243 = vmatmul.mubr.msk.f32.gmra.mrb[140].mxu1 %vm1917_vm3, %v11017_v38 }
0x51f3   : > { %17275 = vmatprep.mubr.msk.f32.mxu1 %vm1917_vm3, %v11513_v37 }
0x51f6   : > { %17276 = vmatmul.mubr.msk.f32.vlgmr.msra.gmra.mrb[142].mxu1 %vm1917_vm3, %v11515_v41 }
0x51f7   : > { %17278 = vmatprep.mubr.msk.f32.mxu1 %vm1917_vm3, %v11517_v12 }
0x51fa   : > { %17279 = vmatmul.mubr.msk.f32.gmra.mrb[144].mxu1 %vm1917_vm3, %v11519_v2 }
0x51fb   : > { %17281 = vmatprep.mubr.msk.f32.mxu1 %vm1917_vm3, %v11521_v33 }
0x51fe   : > { %17282 = vmatmul.mubr.msk.f32.gmra.mrb[146].mxu1 %vm1917_vm3, %v11523_v53 }
0x51ff   : > { %17284 = vmatprep.mubr.msk.f32.mxu1 %vm1917_vm3, %v11525_v7 }
0x5202   : > { %17285 = vmatmul.mubr.msk.f32.gmra.mrb[148].mxu1 %vm1917_vm3, %v11527_v62 }
0x5274   : > { %v17207_v17 = vpop.f32.mrb[126].mxu1 }
0x5275   : > { %v10819_v59 = vpop.f32.mrb[127].mxu1 }
0x5276   : > { %17219 = vmatprep.mubr.msk.f32.mxu0 %vm1917_vm3, %v10819_v59 }
0x5277   : > { %17220 = vmatmul.mubr.msk.f32.vlgmr.msra.gmra.mrb[166].mxu0 %vm1917_vm3, %v17207_v17 }
0x5278   : > { %v17210_v45 = vpop.f32.mrb[128].mxu1 }
0x5279   : > { %v10829_v52 = vpop.f32.mrb[129].mxu1 }
0x527a   : > { %17222 = vmatprep.mubr.msk.f32.mxu0 %vm1917_vm3, %v10829_v52 }
0x527b   : > { %17223 = vmatmul.mubr.msk.f32.gmra.mrb[168].mxu0 %vm1917_vm3, %v17210_v45 }
0x527c   : > { %v17213_v14 = vpop.f32.mrb[130].mxu1 }
0x527d   : > { %v10839_v40 = vpop.f32.mrb[131].mxu1 }
0x527e   : > { %17225 = vmatprep.mubr.msk.f32.mxu0 %vm1917_vm3, %v10839_v40 }
0x527f   : > { %17226 = vmatmul.mubr.msk.f32.gmra.mrb[170].mxu0 %vm1917_vm3, %v17213_v14 }
0x52b5   : > { %v17216_v30 = vpop.f32.mrb[132].mxu1 }
0x52b6   : > { %v10849_v60 = vpop.f32.mrb[133].mxu1 }
0x52b7   : > { %17228 = vmatprep.mubr.msk.f32.mxu0 %vm1917_vm3, %v10849_v60 }
0x52b8   : > { %17229 = vmatmul.mubr.msk.f32.gmra.mrb[172].mxu0 %vm1917_vm3, %v17216_v30 }
0x52b9   : > { %v21797_v29 = vpop.f32.mrb[134].mxu1 }
0x52ba   : > { %v21799_v23 = vpop.f32.mrb[135].mxu1 }
0x52bd   : > { %v21801_v56 = vpop.f32.mrb[136].mxu1 }
0x52be   : > { %v21803_v55 = vpop.f32.mrb[137].mxu1 }
0x52c1   : > { %v21805_v1 = vpop.f32.mrb[138].mxu1 }
0x52c2   : > { %v21807_v35 = vpop.f32.mrb[139].mxu1 }
0x52c5   : > { %v21809_v43 = vpop.f32.mrb[140].mxu1 }
0x52c6   : > { %v21811_v21 = vpop.f32.mrb[141].mxu1 }
0x52c9   : > { %v17277_v51 = vpop.f32.mrb[142].mxu1 }
0x52ca   : > { %v11654_v42 = vmul.f32 0.5, %v17277_v51  ;;  %v11614_v58 = vpop.f32.mrb[143].mxu1 }
0x52cb   : > { %v11653_v10 = vmul.f32 0.5, %v11614_v58 }
0x52cc   : > { %v11664_v63 = vsel %vm556_vm2, %v11654_v42, -inf }
0x52cd   : > { %11665 = vmax.xlane.f32.xlu1 %v11664_v63  ;;  %v17280_v18 = vpop.f32.mrb[144].mxu1  ;;  %v11661_v9 = vsel %vm556_vm2, %v11653_v10, -inf }
0x52ce   : > { %11662 = vmax.xlane.f32.xlu0 %v11661_v9  ;;  %v11624_v24 = vpop.f32.mrb[145].mxu1  ;;  %v11656_v4 = vmul.f32 0.5, %v17280_v18 }
0x52cf   : > { %v11655_v15 = vmul.f32 0.5, %v11624_v24 }
0x52d0   : > { %v11670_v12 = vsel %vm556_vm2, %v11656_v4, -inf }
0x52d1   : > { %v17283_v47 = vpop.f32.mrb[146].mxu1  ;;  %v11667_v16 = vsel %vm556_vm2, %v11655_v15, -inf }
0x52d2   : > { %11668 = vmax.xlane.f32.xlu0 %v11667_v16  ;;  %v11634_v57 = vpop.f32.mrb[147].mxu1  ;;  %v11658_v37 = vmul.f32 0.5, %v17283_v47 }
0x52d3   : > { %v11657_v38 = vmul.f32 0.5, %v11634_v57 }
0x52d4   : > { %v11676_v62 = vsel %vm556_vm2, %v11658_v37, -inf }
0x52d5   : > { %v17286_v41 = vpop.f32.mrb[148].mxu1  ;;  %v11673_v2 = vsel %vm556_vm2, %v11657_v38, -inf }
0x52d6   : > { %11671 = vmax.xlane.f32.xlu0 %v11670_v12  ;;  %11674 = vmax.xlane.f32.xlu1 %v11673_v2  ;;  %v11644_v33 = vpop.f32.mrb[149].mxu1  ;;  %v11660_v7 = vmul.f32 0.5, %v17286_v41 }
0x52d7   : > { %v11659_v53 = vmul.f32 0.5, %v11644_v33 }
0x52d8   : > { %v11682_v59 = vsel %vm556_vm2, %v11660_v7, -inf }
0x52d9   : > { %v11679_v17 = vsel %vm556_vm2, %v11659_v53, -inf }
0x52da   : > { %11677 = vmax.xlane.f32.xlu0 %v11676_v62  ;;  %11680 = vmax.xlane.f32.xlu1 %v11679_v17 }
0x52de   : > { %11683 = vmax.xlane.f32.xlu0 %v11682_v59 }
0x52eb   : > { %11749 = vrot.lane.b32.xlu1 %v21664_v36, %s19264_s23 }
0x52ef   : > { %12021 = vrot.lane.b32.xlu1 %v21652_v22, %s19268_s17 }
0x52f3   : > { %12023 = vrot.lane.b32.xlu1 %v21593_v20, %s19268_s17 }
0x52f4   : > { %12037 = vrot.lane.b32.xlu0 %v21666_v49, %s19268_s17 }
0x52f8   : > { %12025 = vrot.lane.b32.xlu0 %v21597_v48, %s19268_s17 }
0x535a   : > { %v11666_v45 = vpop.xlane.xlu1 %11665 }
0x535b   : > { %v11686_v52 = vsub.f32 %v11654_v42, %v11666_v45  ;;  %v11663_v14 = vpop.xlane.xlu0 %11662 }
0x535c   : > { %v11685_v40 = vsub.f32 %v11653_v10, %v11663_v14 }
0x535d   : > { %v11695_v30 = vmul.f32 1.442695, %v11686_v52 }
0x535e   : > { %v11693_v60 = vmul.f32 1.442695, %v11685_v40 }
0x535f   : > { %19079 = vpow2.f32 %v11695_v30  ;;  %v11669_v51 = vpop.xlane.xlu0 %11668 }
0x5360   : > { %19081 = vpow2.f32 %v11693_v60  ;;  %v11687_v58 = vsub.f32 %v11655_v15, %v11669_v51 }
0x5362   : > { %v11697_v22 = vmul.f32 1.442695, %v11687_v58 }
0x5363   : > { %v11672_v63 = vpop.xlane.xlu0 %11671  ;;  %v11675_v18 = vpop.xlane.xlu1 %11674 }
0x5364   : > { %19083 = vpow2.f32 %v11697_v22  ;;  %v11688_v20 = vsub.f32 %v11656_v4, %v11672_v63  ;;  %v11689_v9 = vsub.f32 %v11657_v38, %v11675_v18  ;;  %v21878_v22 = vmul.f32 0.5, %v21799_v23 }
0x5365   : > { %v21881_v63 = vmul.f32 0.5, %v21797_v29  ;;  %v21899_v23 = vmul.f32 0.5, %v21811_v21 }
0x5366   : > { %v11699_v49 = vmul.f32 1.442695, %v11688_v20  ;;  %v11701_v24 = vmul.f32 1.442695, %v11689_v9  ;;  %v21911_v20 = vmul.f32 0.5, %v21809_v43 }
0x5367   : > { %v11678_v47 = vpop.xlane.xlu0 %11677  ;;  %v11681_v48 = vpop.xlane.xlu1 %11680 }
0x5368   : > { %19085 = vpow2.f32 %v11699_v49  ;;  %v11690_v42 = vsub.f32 %v11658_v37, %v11678_v47  ;;  %v11691_v16 = vsub.f32 %v11659_v53, %v11681_v48  ;;  %v11172_v9 = vsel %vm556_vm2, %v21911_v20, -inf }
0x5369   : > { %v21831_v10 = vpop.eup %19079  ;;  %19087 = vpow2.f32 %v11701_v24 }
0x536a   : > { %v21833_v57 = vpop.eup %19081  ;;  %v11703_v41 = vmul.f32 1.442695, %v11690_v42  ;;  %v11705_v15 = vmul.f32 1.442695, %v11691_v16  ;;  %v11712_v12 = vsel %vm556_vm2, %v21831_v10, 0.0 }
0x536b   : > { %v11684_v2 = vpop.xlane.xlu0 %11683  ;;  %11713 = vadd.xlane.f32.xlu0 %v11712_v12  ;;  %v11750_v4 = vpop.permute.xlu1 %11749  ;;  %v11709_v38 = vsel %vm556_vm2, %v21833_v57, 0.0 }
0x536c   : > { %19089 = vpow2.f32 %v11703_v41  ;;  %v11692_v33 = vsub.f32 %v11660_v7, %v11684_v2  ;;  %11710 = vadd.xlane.f32.xlu1 %v11709_v38  ;;  %17287 = vmatprep.subr.mxu1 %v11750_v4 }
0x536d   : > { %19091 = vpow2.f32 %v11705_v15  ;;  %17288 = vmatpush3.msra.mxu1 %v11750_v4 }
0x536e   : > { %v21839_v37 = vpop.eup %19083  ;;  %v11707_v53 = vmul.f32 1.442695, %v11692_v33 }
0x536f   : > { %v21841_v62 = vpop.permute.xlu0 %12037  ;;  %v11715_v17 = vsel %vm556_vm2, %v21839_v37, 0.0 }
0x5370   : > { %19093 = vpow2.f32 %v11707_v53  ;;  %11716 = vadd.xlane.f32.xlu1 %v11715_v17  ;;  %17315 = vmatprep.subr.msk.mxu1 %vm1917_vm3, %v21841_v62 }
0x5372   : > { %v21847_v59 = vpop.eup %19085 }
0x5373   : > { %v21849_v7 = vpop.eup %19087  ;;  %v11718_v45 = vsel %vm556_vm2, %v21847_v59, 0.0  ;;  %v12026_v49 = vpop.permute.xlu0 %12025 }
0x5374   : > { %11719 = vadd.xlane.f32.xlu0 %v11718_v45  ;;  %v11721_v52 = vsel %vm556_vm2, %v21849_v7, 0.0 }
0x5375   : > { %11722 = vadd.xlane.f32.xlu1 %v11721_v52 }
0x5376   : > { %v21855_v14 = vpop.eup %19089 }
0x5377   : > { %v21857_v40 = vpop.eup %19091  ;;  %v11724_v30 = vsel %vm556_vm2, %v21855_v14, 0.0 }
0x5378   : > { %11725 = vadd.xlane.f32.xlu0 %v11724_v30  ;;  %v11727_v60 = vsel %vm556_vm2, %v21857_v40, 0.0 }
0x5379   : > { %11728 = vadd.xlane.f32.xlu1 %v11727_v60 }
0x537a   : > { %v21863_v51 = vpop.eup %19093 }
0x537b   : > { %v11730_v58 = vsel %vm556_vm2, %v21863_v51, 0.0 }
0x537c   : > { %11731 = vadd.xlane.f32.xlu0 %v11730_v58 }
0x538a   : > { %12027 = vrot.lane.b32.xlu1 %v21595_v54, %s19268_s17  ;;  %v21884_v54 = vmul.f32 0.5, %v21803_v55 }
0x538c   : > { %v11157_v29 = vsel %vm556_vm2, %v21884_v54, -inf }
0x538e   : > { %12031 = vrot.lane.b32.xlu1 %v21599_v26, %s19268_s17  ;;  %v11151_v26 = vsel %vm556_vm2, %v21878_v22, -inf }
0x5392   : > { %12035 = vrot.lane.b32.xlu1 %v21603_v0, %s19268_s17  ;;  %12029 = vrot.lane.b32.xlu0 %v21601_v34, %s19268_s17  ;;  %v21889_v0 = vmul.f32 0.5, %v21807_v35  ;;  %v11154_v34 = vsel %vm556_vm2, %v21881_v63, -inf  ;;  %v21904_v35 = vmul.f32 0.5, %v21805_v1  ;;  %v12022_v1 = vpop.permute.xlu1 %12021 }
0x5394   : > { %v11163_v55 = vsel %vm556_vm2, %v21889_v0, -inf  ;;  %v11166_v21 = vsel %vm556_vm2, %v21904_v35, -inf }
0x5396   : > { %12033 = vrot.lane.b32.xlu0 %v21605_v25, %s19268_s17  ;;  %v21894_v25 = vmul.f32 0.5, %v21801_v56  ;;  %v11169_v56 = vsel %vm556_vm2, %v21899_v23, -inf  ;;  %v12024_v24 = vpop.permute.xlu1 %12023 }
0x5398   : > { %v11160_v18 = vsel %vm556_vm2, %v21894_v25, -inf }
0x53b5   : > { %11152 = vmax.xlane.f32.xlu0 %v11151_v26 }
0x53b6   : > { %11155 = vmax.xlane.f32.xlu1 %v11154_v34 }
0x53b9   : > { %11158 = vmax.xlane.f32.xlu0 %v11157_v29 }
0x53ba   : > { %11164 = vmax.xlane.f32.xlu1 %v11163_v55 }
0x53bd   : > { %11161 = vmax.xlane.f32.xlu0 %v11160_v18 }
0x53be   : > { %11170 = vmax.xlane.f32.xlu1 %v11169_v56 }
0x53c1   : > { %11167 = vmax.xlane.f32.xlu0 %v11166_v21 }
0x53c5   : > { %11173 = vmax.xlane.f32.xlu0 %v11172_v9 }
0x53f8   : > { %v11714_v47 = vpop.xlane.xlu0 %11713 }
0x53f9   : > { %19095 = vrcp.f32 %v11714_v47  ;;  %v11711_v48 = vpop.xlane.xlu1 %11710 }
0x53fa   : > { %19097 = vrcp.f32 %v11711_v48 }
0x53fd   : > { %v11717_v42 = vpop.xlane.xlu1 %11716 }
0x53fe   : > { %19099 = vrcp.f32 %v11717_v42 }
0x5401   : > { %v11720_v16 = vpop.xlane.xlu0 %11719 }
0x5402   : > { %19101 = vrcp.f32 %v11720_v16  ;;  %v11723_v43 = vpop.xlane.xlu1 %11722 }
0x5403   : > { %v19096_v41 = vpop.eup %19095  ;;  %19103 = vrcp.f32 %v11723_v43 }
0x5404   : > { %v19098_v15 = vpop.eup %19097  ;;  %v11742_v4 = vmul.f32 %v19096_v41, %v21831_v10 }
0x5405   : > { %v11726_v12 = vpop.xlane.xlu0 %11725  ;;  %v11741_v2 = vmul.f32 %v19098_v15, %v21833_v57 }
0x5406   : > { %19105 = vrcp.f32 %v11726_v12  ;;  %v11729_v38 = vpop.xlane.xlu1 %11728 }
0x5407   : > { %19107 = vrcp.f32 %v11729_v38  ;;  %17289 = vmatprep.mubr.msk.f32.mxu1 %vm556_vm2, %v11741_v2 }
0x5408   : > { %v19100_v33 = vpop.eup %19099  ;;  %17290 = vmatmul.mubr.msk.f32.vlgmr.msra.gmra.mrb[150].mxu1 %vm556_vm2, %v11742_v4 }
0x5409   : > { %17316 = vmatpush3.xpose.msk.msra.mxu1 %vm1917_vm3, %v21841_v62  ;;  %v11732_v53 = vpop.xlane.xlu0 %11731  ;;  %v11743_v17 = vmul.f32 %v19100_v33, %v21839_v37 }
0x540a   : > { %19109 = vrcp.f32 %v11732_v53  ;;  %18094 = vmatprep.subr.bf16.mxu1 %v19261_v3  ;;  %v12028_v34 = vpop.permute.xlu1 %12027 }
0x540b   : > { %17292 = vmatprep.mubr.msk.f32.mxu1 %vm556_vm2, %v11743_v17 }
0x540c   : > { %v19102_v10 = vpop.eup %19101 }
0x540d   : > { %v19104_v57 = vpop.eup %19103  ;;  %v11744_v45 = vmul.f32 %v19102_v10, %v21847_v59  ;;  %v15124_v59 = vld [vmem:[%s22568_s3 + $0x700] sm:$0xff]  ;;  %v12030_v55 = vpop.permute.xlu0 %12029 }
0x540e   : > { %v11745_v52 = vmul.f32 %v19104_v57, %v21849_v7  ;;  %v15125_v7 = vld [vmem:[%s22568_s3 + $0x708] sm:$0xff]  ;;  %v12032_v18 = vpop.permute.xlu1 %12031 }
0x540f   : > { %17293 = vmatmul.mubr.msk.f32.gmra.mrb[152].mxu1 %vm556_vm2, %v11744_v45 }
0x5410   : > { %v19106_v30 = vpop.eup %19105  ;;  %17295 = vmatprep.mubr.msk.f32.mxu1 %vm556_vm2, %v11745_v52 }
0x5411   : > { %v19108_v62 = vpop.eup %19107  ;;  %v11746_v60 = vmul.f32 %v19106_v30, %v21855_v14  ;;  %v18095_v14 = vpack.c.bf16 %v15125_v7, %v15124_v59  ;;  %v12034_v56 = vpop.permute.xlu0 %12033 }
0x5412   : > { %v11747_v37 = vmul.f32 %v19108_v62, %v21857_v40  ;;  %v15126_v40 = vld [vmem:[%s22568_s3 + $0x710] sm:$0xff]  ;;  %v12036_v21 = vpop.permute.xlu1 %12035 }
0x5413   : > { %17296 = vmatmul.mubr.msk.f32.gmra.mrb[154].mxu1 %vm556_vm2, %v11746_v60 }
0x5414   : > { %v19110_v58 = vpop.eup %19109  ;;  %17298 = vmatprep.mubr.msk.f32.mxu1 %vm556_vm2, %v11747_v37 }
0x5415   : > { %v11748_v26 = vmul.f32 %v19110_v58, %v21863_v51  ;;  %v15127_v51 = vld [vmem:[%s22568_s3 + $0x718] sm:$0xff] }
0x5416   : > { %v18098_v29 = vpack.c.bf16 %v15127_v51, %v15126_v40 }
0x5417   : > { %17299 = vmatmul.mubr.msk.f32.gmra.mrb[156].mxu1 %vm556_vm2, %v11748_v26 }
0x5418   : > { %17317 = vmatprep.mubr.msk.f32.mxu1 %vm1917_vm3, %v12022_v1 }
0x541b   : > { %17318 = vmatmul.mubr.msk.f32.vlgmr.msra.gmra.mrb[158].mxu1 %vm1917_vm3, %v12024_v24 }
0x541c   : > { %17320 = vmatprep.mubr.msk.f32.mxu1 %vm1917_vm3, %v12026_v49  ;;  %18096 = vmatpush3.bf16.msra.mxu1 %v18095_v14 }
0x541d   : > { %18097 = vmatprep.subr.bf16.mxu1 %v19261_v3 }
0x541f   : > { %17321 = vmatmul.mubr.msk.f32.gmra.mrb[160].mxu1 %vm1917_vm3, %v12028_v34 }
0x5420   : > { %17323 = vmatprep.mubr.msk.f32.mxu1 %vm1917_vm3, %v12030_v55  ;;  %18099 = vmatpush3.bf16.msra.mxu1 %v18098_v29 }
0x5423   : > { %17324 = vmatmul.mubr.msk.f32.gmra.mrb[162].mxu1 %vm1917_vm3, %v12032_v18 }
0x5424   : > { %17326 = vmatprep.mubr.msk.f32.mxu1 %vm1917_vm3, %v12034_v56 }
0x5427   : > { %17327 = vmatmul.mubr.msk.f32.gmra.mrb[164].mxu1 %vm1917_vm3, %v12036_v21 }
0x5428   : > { %17365 = vmatprep.mubr.msk.f32.mxu1 %vm19262_vm0, %v19263_v11 }
0x542b   : > { %17366 = vmatmul.mubr.msk.f32.vlgmr.msra.gmra.mrb[166].mxu1 %vm331_vm1, %v21650_v19 }
0x5442   : > { %v11153_v9 = vpop.xlane.xlu0 %11152 }
0x5443   : > { %v11175_v1 = vsub.f32 %v21878_v22, %v11153_v9  ;;  %v11156_v49 = vpop.xlane.xlu1 %11155 }
0x5444   : > { %v11176_v24 = vsub.f32 %v21881_v63, %v11156_v49 }
0x5445   : > { %v11183_v47 = vmul.f32 1.442695, %v11175_v1 }
0x5446   : > { %v11185_v48 = vmul.f32 1.442695, %v11176_v24  ;;  %v11159_v42 = vpop.xlane.xlu0 %11158 }
0x5447   : > { %19111 = vpow2.f32 %v11183_v47  ;;  %v11177_v16 = vsub.f32 %v21884_v54, %v11159_v42  ;;  %v11165_v43 = vpop.xlane.xlu1 %11164 }
0x5448   : > { %19113 = vpow2.f32 %v11185_v48  ;;  %v11179_v41 = vsub.f32 %v21889_v0, %v11165_v43 }
0x5449   : > { %v11187_v15 = vmul.f32 1.442695, %v11177_v16 }
0x544a   : > { %v11191_v12 = vmul.f32 1.442695, %v11179_v41  ;;  %v11162_v2 = vpop.xlane.xlu0 %11161 }
0x544b   : > { %19115 = vpow2.f32 %v11187_v15  ;;  %v11178_v19 = vsub.f32 %v21894_v25, %v11162_v2  ;;  %v11171_v22 = vpop.xlane.xlu1 %11170 }
0x544c   : > { %v11181_v4 = vsub.f32 %v21899_v23, %v11171_v22  ;;  %19117 = vpow2.f32 %v11191_v12 }
0x544d   : > { %v11189_v63 = vmul.f32 1.442695, %v11178_v19  ;;  %v11372_v19 = vrot.slane %v21776_v50, 4 }
0x544e   : > { %v11195_v38 = vmul.f32 1.442695, %v11181_v4  ;;  %v11168_v33 = vpop.xlane.xlu0 %11167 }
0x544f   : > { %19119 = vpow2.f32 %v11189_v63  ;;  %v11180_v54 = vsub.f32 %v21904_v35, %v11168_v33 }
0x5450   : > { %19121 = vpow2.f32 %v11195_v38 }
0x5451   : > { %v19112_v53 = vpop.eup %19111  ;;  %v11193_v17 = vmul.f32 1.442695, %v11180_v54 }
0x5452   : > { %v19114_v0 = vpop.eup %19113  ;;  %v11174_v10 = vpop.xlane.xlu0 %11173  ;;  %v11199_v57 = vsel %vm556_vm2, %v19112_v53, 0.0 }
0x5453   : > { %19123 = vpow2.f32 %v11193_v17  ;;  %v11182_v25 = vsub.f32 %v21911_v20, %v11174_v10  ;;  %11200 = vadd.xlane.f32.xlu1 %v11199_v57  ;;  %v11202_v23 = vsel %vm556_vm2, %v19114_v0, 0.0 }
0x5454   : > { %11203 = vadd.xlane.f32.xlu0 %v11202_v23 }
0x5455   : > { %v19116_v45 = vpop.eup %19115  ;;  %v11197_v52 = vmul.f32 1.442695, %v11182_v25 }
0x5456   : > { %v11205_v30 = vsel %vm556_vm2, %v19116_v45, 0.0  ;;  %v21972_v62 = vpop.eup %19117 }
0x5457   : > { %19125 = vpow2.f32 %v11197_v52  ;;  %11206 = vadd.xlane.f32.xlu1 %v11205_v30  ;;  %v11211_v37 = vsel %vm556_vm2, %v21972_v62, 0.0 }
0x5459   : > { %v19120_v35 = vpop.eup %19119 }
0x545a   : > { %v11208_v60 = vsel %vm556_vm2, %v19120_v35, 0.0  ;;  %v21977_v58 = vpop.eup %19121 }
0x545b   : > { %11209 = vadd.xlane.f32.xlu0 %v11208_v60  ;;  %11212 = vadd.xlane.f32.xlu1 %v11211_v37  ;;  %v11217_v59 = vsel %vm556_vm2, %v21977_v58, 0.0 }
0x545d   : > { %v21979_v20 = vpop.eup %19123 }
0x545e   : > { %v11214_v26 = vsel %vm556_vm2, %v21979_v20, 0.0 }
0x545f   : > { %11215 = vadd.xlane.f32.xlu0 %v11214_v26  ;;  %11218 = vadd.xlane.f32.xlu1 %v11217_v59 }
0x5461   : > { %v21985_v7 = vpop.eup %19125 }
0x5462   : > { %v11220_v14 = vsel %vm556_vm2, %v21985_v7, 0.0 }
0x5463   : > { %11221 = vadd.xlane.f32.xlu0 %v11220_v14 }
0x5470   : > { %11240 = vrot.lane.b32.xlu1 %v21664_v36, %s19267_s19 }
0x54db   : > { %v21991_v40 = vpop.f32.mrb[150].mxu1 }
0x54dc   : > { %v21993_v51 = vpop.f32.mrb[151].mxu1 }
0x54e0   : > { %v11201_v34 = vpop.xlane.xlu1 %11200 }
0x54e1   : > { %v11204_v29 = vpop.xlane.xlu0 %11203  ;;  %19127 = vrcp.f32 %v11201_v34 }
0x54e2   : > { %v21995_v55 = vpop.f32.mrb[152].mxu1  ;;  %19129 = vrcp.f32 %v11204_v29 }
0x54e3   : > { %v21997_v18 = vpop.f32.mrb[153].mxu1 }
0x54e4   : > { %v11207_v56 = vpop.xlane.xlu1 %11206 }
0x54e5   : > { %19131 = vrcp.f32 %v11207_v56 }
0x54e6   : > { %v21999_v21 = vpop.f32.mrb[154].mxu1 }
0x54e7   : > { %v22001_v9 = vpop.f32.mrb[155].mxu1 }
0x54e8   : > { %v11210_v1 = vpop.xlane.xlu0 %11209  ;;  %v11213_v49 = vpop.xlane.xlu1 %11212 }
0x54e9   : > { %19133 = vrcp.f32 %v11210_v1 }
0x54ea   : > { %19135 = vrcp.f32 %v11213_v49  ;;  %v22003_v24 = vpop.f32.mrb[156].mxu1 }
0x54eb   : > { %v19128_v47 = vpop.eup %19127  ;;  %v22005_v48 = vpop.f32.mrb[157].mxu1 }
0x54ec   : > { %v11216_v42 = vpop.xlane.xlu0 %11215  ;;  %v11219_v16 = vpop.xlane.xlu1 %11218  ;;  %v11231_v43 = vmul.f32 %v19128_v47, %v19112_v53 }
0x54ed   : > { %19137 = vrcp.f32 %v11216_v42  ;;  %v19130_v41 = vpop.eup %19129 }
0x54ee   : > { %19139 = vrcp.f32 %v11219_v16  ;;  %17247 = vmatprep.mubr.msk.f32.mxu0 %vm556_vm2, %v11231_v43  ;;  %v17319_v15 = vpop.f32.mrb[158].mxu1  ;;  %v11232_v38 = vmul.f32 %v19130_v41, %v19114_v0 }
0x54ef   : > { %v19132_v12 = vpop.eup %19131  ;;  %v12123_v2 = vpop.f32.mrb[159].mxu1  ;;  %v12163_v33 = vmul.f32 0.5, %v17319_v15 }
0x54f0   : > { %v12162_v22 = vmul.f32 0.5, %v12123_v2  ;;  %v11222_v4 = vpop.xlane.xlu0 %11221  ;;  %v11241_v63 = vpop.permute.xlu1 %11240  ;;  %v11233_v17 = vmul.f32 %v19132_v12, %v19116_v45  ;;  %v22035_v12 = vld [vmem:[%s22568_s3 + $0x6c8] sm:$0xff] }
0x54f1   : > { %19141 = vrcp.f32 %v11222_v4  ;;  %17245 = vmatprep.subr.mxu0 %v11241_v63  ;;  %v12173_v52 = vsel %vm556_vm2, %v12163_v33, -inf }
0x54f2   : > { %17246 = vmatpush3.msra.mxu0 %v11241_v63  ;;  %v17322_v54 = vpop.f32.mrb[160].mxu1  ;;  %v12170_v53 = vsel %vm556_vm2, %v12162_v22, -inf }
0x54f3   : > { %v19134_v10 = vpop.eup %19133  ;;  %v12133_v57 = vpop.f32.mrb[161].mxu1  ;;  %12171 = vmax.xlane.f32.xlu0 %v12170_v53  ;;  %17248 = vmatmul.mubr.msk.f32.vlgmr.msra.gmra.mrb[174].mxu0 %vm556_vm2, %v11232_v38  ;;  %v12165_v59 = vmul.f32 0.5, %v17322_v54 }
0x54f4   : > { %v19136_v25 = vpop.eup %19135  ;;  %17250 = vmatprep.mubr.msk.f32.mxu0 %vm556_vm2, %v11233_v17  ;;  %v11234_v50 = vmul.f32 %v19134_v10, %v19120_v35  ;;  %17259 = vmatprep.subr.msk.mxu0 %vm2104_vm6, %v11372_v19  ;;  %v12164_v0 = vmul.f32 0.5, %v12133_v57 }
0x54f5   : > { %17260 = vmatpush3.msk.msra.mxu0 %vm2104_vm6, %v11372_v19  ;;  %v11235_v30 = vmul.f32 %v19136_v25, %v21972_v62  ;;  %v12179_v42 = vsel %vm556_vm2, %v12165_v59, -inf }
0x54f6   : > { %v17325_v23 = vpop.f32.mrb[162].mxu1  ;;  %v12176_v34 = vsel %vm556_vm2, %v12164_v0, -inf  ;;  %17301 = vmatprep.subr.msk.mxu0 %vm2104_vm6, %v22035_v12 }
0x54f7   : > { %v19138_v45 = vpop.eup %19137  ;;  %v12143_v60 = vpop.f32.mrb[163].mxu1  ;;  %12174 = vmax.xlane.f32.xlu0 %v12173_v52  ;;  %17251 = vmatmul.mubr.msk.f32.gmra.mrb[176].mxu0 %vm556_vm2, %v11234_v50  ;;  %v12167_v47 = vmul.f32 0.5, %v17325_v23 }
0x54f8   : > { %v19140_v37 = vpop.eup %19139  ;;  %v12166_v26 = vmul.f32 0.5, %v12143_v60  ;;  %17253 = vmatprep.mubr.msk.f32.mxu0 %vm556_vm2, %v11235_v30  ;;  %v11236_v35 = vmul.f32 %v19138_v45, %v21979_v20 }
0x54f9   : > { %v11237_v62 = vmul.f32 %v19140_v37, %v21977_v58  ;;  %v12185_v41 = vsel %vm556_vm2, %v12167_v47, -inf }
0x54fa   : > { %v17328_v14 = vpop.f32.mrb[164].mxu1  ;;  %v12182_v29 = vsel %vm556_vm2, %v12166_v26, -inf }
0x54fb   : > { %v19142_v56 = vpop.eup %19141  ;;  %v12153_v1 = vpop.f32.mrb[165].mxu1  ;;  %12177 = vmax.xlane.f32.xlu0 %v12176_v34  ;;  %12183 = vmax.xlane.f32.xlu1 %v12182_v29  ;;  %v12169_v58 = vmul.f32 0.5, %v17328_v14 }
0x54fc   : > { %17254 = vmatmul.mubr.msk.f32.gmra.mrb[178].mxu0 %vm556_vm2, %v11236_v35  ;;  %v11238_v49 = vmul.f32 %v19142_v56, %v21985_v7  ;;  %v12168_v43 = vmul.f32 0.5, %v12153_v1 }
0x54fd   : > { %17256 = vmatprep.mubr.msk.f32.mxu0 %vm556_vm2, %v11237_v62  ;;  %v12191_v7 = vsel %vm556_vm2, %v12169_v58, -inf }
0x54fe   : > { %v22025_v20 = vpop.f32.mrb[166].mxu1  ;;  %v12188_v15 = vsel %vm556_vm2, %v12168_v43, -inf }
0x54ff   : > { %v17367_v16 = vpop.f32.mrb[167].mxu1  ;;  %12180 = vmax.xlane.f32.xlu0 %v12179_v42 }
0x5500   : > { %17257 = vmatmul.mubr.msk.f32.gmra.mrb[180].mxu0 %vm556_vm2, %v11238_v49 }
0x5503   : > { %12186 = vmax.xlane.f32.xlu0 %v12185_v41 }
0x5507   : > { %12189 = vmax.xlane.f32.xlu0 %v12188_v15 }
0x550b   : > { %12192 = vmax.xlane.f32.xlu0 %v12191_v7 }
0x5580   : > { %v12172_v2 = vpop.xlane.xlu0 %12171 }
0x5581   : > { %v12194_v19 = vsub.f32 %v12162_v22, %v12172_v2 }
0x5583   : > { %v12202_v4 = vmul.f32 1.442695, %v12194_v19 }
0x5584   : > { %v12175_v63 = vpop.xlane.xlu0 %12174 }
0x5585   : > { %19143 = vpow2.f32 %v12202_v4  ;;  %v12195_v38 = vsub.f32 %v12163_v33, %v12175_v63 }
0x5587   : > { %v12204_v54 = vmul.f32 1.442695, %v12195_v38 }
0x5588   : > { %v12178_v53 = vpop.xlane.xlu0 %12177  ;;  %v12184_v17 = vpop.xlane.xlu1 %12183 }
0x5589   : > { %19145 = vpow2.f32 %v12204_v54  ;;  %v12196_v10 = vsub.f32 %v12164_v0, %v12178_v53  ;;  %v12198_v25 = vsub.f32 %v12166_v26, %v12184_v17 }
0x558b   : > { %v12206_v57 = vmul.f32 1.442695, %v12196_v10  ;;  %v12210_v30 = vmul.f32 1.442695, %v12198_v25 }
0x558c   : > { %v12181_v50 = vpop.xlane.xlu0 %12180 }
0x558d   : > { %19147 = vpow2.f32 %v12206_v57  ;;  %v12197_v23 = vsub.f32 %v12165_v59, %v12181_v50  ;;  %v12390_v50 = vrot.slane %v22035_v12, 4 }
0x558f   : > { %v22039_v52 = vpop.eup %19143  ;;  %v12208_v45 = vmul.f32 1.442695, %v12197_v23 }
0x5590   : > { %v12187_v60 = vpop.xlane.xlu0 %12186  ;;  %v12218_v22 = vsel %vm556_vm2, %v22039_v52, 0.0 }
0x5591   : > { %19149 = vpow2.f32 %v12208_v45  ;;  %v12199_v33 = vsub.f32 %v12167_v47, %v12187_v60  ;;  %12219 = vadd.xlane.f32.xlu0 %v12218_v22 }
0x5592   : > { %19151 = vpow2.f32 %v12210_v30 }
0x5593   : > { %v22043_v37 = vpop.eup %19145  ;;  %v12212_v0 = vmul.f32 1.442695, %v12199_v33 }
0x5594   : > { %v12190_v35 = vpop.xlane.xlu0 %12189  ;;  %v12221_v26 = vsel %vm556_vm2, %v22043_v37, 0.0 }
0x5595   : > { %v12200_v59 = vsub.f32 %v12168_v43, %v12190_v35  ;;  %12222 = vadd.xlane.f32.xlu0 %v12221_v26  ;;  %19153 = vpow2.f32 %v12212_v0 }
0x5597   : > { %v22047_v14 = vpop.eup %19147  ;;  %v12214_v34 = vmul.f32 1.442695, %v12200_v59 }
0x5598   : > { %v12193_v29 = vpop.xlane.xlu0 %12192  ;;  %v12224_v56 = vsel %vm556_vm2, %v22047_v14, 0.0 }
0x5599   : > { %19155 = vpow2.f32 %v12214_v34  ;;  %v12201_v1 = vsub.f32 %v12169_v58, %v12193_v29  ;;  %12225 = vadd.xlane.f32.xlu0 %v12224_v56 }
0x559b   : > { %v22051_v62 = vpop.eup %19149  ;;  %v12216_v49 = vmul.f32 1.442695, %v12201_v1 }
0x559c   : > { %v12227_v47 = vsel %vm556_vm2, %v22051_v62, 0.0  ;;  %v22055_v42 = vpop.eup %19151 }
0x559d   : > { %19157 = vpow2.f32 %v12216_v49  ;;  %12228 = vadd.xlane.f32.xlu0 %v12227_v47  ;;  %v12230_v16 = vsel %vm556_vm2, %v22055_v42, 0.0 }
0x559f   : > { %v22059_v43 = vpop.eup %19153 }
0x55a0   : > { %v12233_v15 = vsel %vm556_vm2, %v22059_v43, 0.0 }
0x55a1   : > { %12231 = vadd.xlane.f32.xlu0 %v12230_v16  ;;  %v15035_v16 = vld [vmem:[%s22569_s4 + $0x29] ss:$0 sm:$0xff] }
0x55a3   : > { %v22061_v41 = vpop.eup %19155 }
0x55a4   : > { %v12236_v58 = vsel %vm556_vm2, %v22061_v41, 0.0 }
0x55a5   : > { %12237 = vadd.xlane.f32.xlu1 %v12236_v58  ;;  %12234 = vadd.xlane.f32.xlu0 %v12233_v15 }
0x55a7   : > { %v22067_v7 = vpop.eup %19157 }
0x55a8   : > { %v12239_v2 = vsel %vm556_vm2, %v22067_v7, 0.0 }
0x55a9   : > { %12240 = vadd.xlane.f32.xlu0 %v12239_v2 }
0x55b6   : > { %12258 = vrot.lane.b32.xlu1 %v21664_v36, %s19268_s17 }
0x55c6   : > { %v17249_v19 = vpop.f32.mrb[174].mxu0 }
0x55c7   : > { %v11333_v4 = vpop.f32.mrb[175].mxu0 }
0x55c8   : > { %17261 = vmatprep.mubr.msk.f32.mxu0 %vm1917_vm3, %v11333_v4 }
0x55c9   : > { %17262 = vmatmul.mubr.msk.f32.vlgmr.msra.gmra.mrb[166].mxu0 %vm1917_vm3, %v17249_v19 }
0x55ca   : > { %v17252_v63 = vpop.f32.mrb[176].mxu0  ;;  %17302 = vmatpush3.msk.msra.mxu0 %vm2104_vm6, %v22035_v12 }
0x55cb   : > { %v11343_v38 = vpop.f32.mrb[177].mxu0 }
0x55cc   : > { %17264 = vmatprep.mubr.msk.f32.mxu0 %vm1917_vm3, %v11343_v38 }
0x55cd   : > { %17265 = vmatmul.mubr.msk.f32.gmra.mrb[168].mxu0 %vm1917_vm3, %v17252_v63 }
0x55cf   : > { %v17255_v54 = vpop.f32.mrb[178].mxu0 }
0x55d0   : > { %v11353_v53 = vpop.f32.mrb[179].mxu0 }
0x55d1   : > { %17267 = vmatprep.mubr.msk.f32.mxu0 %vm1917_vm3, %v11353_v53 }
0x55d2   : > { %17268 = vmatmul.mubr.msk.f32.gmra.mrb[170].mxu0 %vm1917_vm3, %v17255_v54 }
0x55d3   : > { %v17258_v36 = vpop.f32.mrb[180].mxu0 }
0x55d4   : > { %v11363_v17 = vpop.f32.mrb[181].mxu0 }
0x55d5   : > { %17270 = vmatprep.mubr.msk.f32.mxu0 %vm1917_vm3, %v11363_v17 }
0x55d6   : > { %17271 = vmatmul.mubr.msk.f32.gmra.mrb[172].mxu0 %vm1917_vm3, %v17258_v36 }
0x55d7   : > { %17303 = vmatprep.mubr.msk.f32.mxu0 %vm1917_vm3, %v21993_v51 }
0x55da   : > { %17304 = vmatmul.mubr.msk.f32.vlgmr.msra.gmra.mrb[166].mxu0 %vm1917_vm3, %v21991_v40 }
0x55db   : > { %17306 = vmatprep.mubr.msk.f32.mxu0 %vm1917_vm3, %v21997_v18 }
0x55de   : > { %17307 = vmatmul.mubr.msk.f32.gmra.mrb[168].mxu0 %vm1917_vm3, %v21995_v55 }
0x55df   : > { %17309 = vmatprep.mubr.msk.f32.mxu0 %vm1917_vm3, %v22001_v9 }
0x55e2   : > { %17310 = vmatmul.mubr.msk.f32.gmra.mrb[170].mxu0 %vm1917_vm3, %v21999_v21 }
0x55e3   : > { %17312 = vmatprep.mubr.msk.f32.mxu0 %vm1917_vm3, %v22005_v48 }
0x55e6   : > { %17313 = vmatmul.mubr.msk.f32.gmra.mrb[172].mxu0 %vm1917_vm3, %v22003_v24 }
0x561e   : > { %v12220_v51 = vpop.xlane.xlu0 %12219 }
0x561f   : > { %19159 = vrcp.f32 %v12220_v51 }
0x5622   : > { %v12223_v40 = vpop.xlane.xlu0 %12222 }
0x5623   : > { %19161 = vrcp.f32 %v12223_v40 }
0x5626   : > { %v12226_v10 = vpop.xlane.xlu0 %12225 }
0x5627   : > { %19163 = vrcp.f32 %v12226_v10 }
0x5629   : > { %v19160_v18 = vpop.eup %19159 }
0x562a   : > { %v12229_v57 = vpop.xlane.xlu0 %12228  ;;  %v12250_v55 = vmul.f32 %v19160_v18, %v22039_v52 }
0x562b   : > { %19165 = vrcp.f32 %v12229_v57 }
0x562c   : > { %17331 = vmatprep.mubr.msk.f32.mxu0 %vm556_vm2, %v12250_v55 }
0x562d   : > { %v19162_v25 = vpop.eup %19161 }
0x562e   : > { %v12232_v21 = vpop.xlane.xlu0 %12231  ;;  %v12251_v45 = vmul.f32 %v19162_v25, %v22043_v37 }
0x562f   : > { %19167 = vrcp.f32 %v12232_v21 }
0x5631   : > { %v19164_v24 = vpop.eup %19163 }
0x5632   : > { %v12235_v9 = vpop.xlane.xlu0 %12234  ;;  %v12238_v48 = vpop.xlane.xlu1 %12237  ;;  %v12252_v60 = vmul.f32 %v19164_v24, %v22047_v14 }
0x5633   : > { %19169 = vrcp.f32 %v12235_v9 }
0x5634   : > { %19171 = vrcp.f32 %v12238_v48 }
0x5635   : > { %v19166_v52 = vpop.eup %19165 }
0x5636   : > { %v12241_v23 = vpop.xlane.xlu0 %12240  ;;  %v12259_v30 = vpop.permute.xlu1 %12258  ;;  %v12253_v12 = vmul.f32 %v19166_v52, %v22051_v62 }
0x5637   : > { %19173 = vrcp.f32 %v12241_v23  ;;  %17329 = vmatprep.subr.mxu0 %v12259_v30 }
0x5638   : > { %17330 = vmatpush3.msra.mxu0 %v12259_v30 }
0x5639   : > { %v19168_v22 = vpop.eup %19167  ;;  %17332 = vmatmul.mubr.msk.f32.vlgmr.msra.gmra.mrb[182].mxu0 %vm556_vm2, %v12251_v45  ;;  %17343 = vmatprep.subr.msk.mxu0 %vm2104_vm6, %v12390_v50 }
0x563a   : > { %17334 = vmatprep.mubr.msk.f32.mxu0 %vm556_vm2, %v12252_v60  ;;  %17344 = vmatpush3.msk.msra.mxu0 %vm2104_vm6, %v12390_v50  ;;  %v12254_v33 = vmul.f32 %v19168_v22, %v22055_v42 }
0x563b   : > { %18116 = vmatprep.subr.bf16.mxu0 %v19261_v3 }
0x563d   : > { %v19170_v37 = vpop.eup %19169  ;;  %17335 = vmatmul.mubr.msk.f32.gmra.mrb[184].mxu0 %vm556_vm2, %v12253_v12 }
0x563e   : > { %v19172_v0 = vpop.eup %19171  ;;  %17337 = vmatprep.mubr.msk.f32.mxu0 %vm556_vm2, %v12254_v33  ;;  %v12255_v35 = vmul.f32 %v19170_v37, %v22059_v43 }
0x563f   : > { %v12256_v26 = vmul.f32 %v19172_v0, %v22061_v41 }
0x5641   : > { %v19174_v59 = vpop.eup %19173  ;;  %17338 = vmatmul.mubr.msk.f32.gmra.mrb[186].mxu0 %vm556_vm2, %v12255_v35 }
0x5642   : > { %17340 = vmatprep.mubr.msk.f32.mxu0 %vm556_vm2, %v12256_v26  ;;  %v12257_v14 = vmul.f32 %v19174_v59, %v22067_v7 }
0x5645   : > { %17341 = vmatmul.mubr.msk.f32.gmra.mrb[188].mxu0 %vm556_vm2, %v12257_v14 }
0x570c   : > { %v17333_v34 = vpop.f32.mrb[182].mxu0 }
0x570d   : > { %v12351_v29 = vpop.f32.mrb[183].mxu0 }
0x570e   : > { %17345 = vmatprep.mubr.msk.f32.mxu0 %vm1917_vm3, %v12351_v29 }
0x570f   : > { %17346 = vmatmul.mubr.msk.f32.vlgmr.msra.gmra.mrb[166].mxu0 %vm1917_vm3, %v17333_v34 }
0x5710   : > { %v17336_v56 = vpop.f32.mrb[184].mxu0 }
0x5711   : > { %v12361_v1 = vpop.f32.mrb[185].mxu0 }
0x5712   : > { %17348 = vmatprep.mubr.msk.f32.mxu0 %vm1917_vm3, %v12361_v1 }
0x5713   : > { %17349 = vmatmul.mubr.msk.f32.gmra.mrb[168].mxu0 %vm1917_vm3, %v17336_v56 }
0x5714   : > { %v17339_v62 = vpop.f32.mrb[186].mxu0 }
0x5715   : > { %v12371_v49 = vpop.f32.mrb[187].mxu0 }
0x5716   : > { %17351 = vmatprep.mubr.msk.f32.mxu0 %vm1917_vm3, %v12371_v49 }
0x5717   : > { %17352 = vmatmul.mubr.msk.f32.gmra.mrb[170].mxu0 %vm1917_vm3, %v17339_v62 }
0x5718   : > { %v17342_v47 = vpop.f32.mrb[188].mxu0 }
0x5719   : > { %v12381_v42 = vpop.f32.mrb[189].mxu0 }
0x571a   : > { %17354 = vmatprep.mubr.msk.f32.mxu0 %vm1917_vm3, %v12381_v42 }
0x571b   : > { %17355 = vmatmul.mubr.msk.f32.gmra.mrb[172].mxu0 %vm1917_vm3, %v17342_v47 }
0x571c   : > { %17424 = vmatprep.mubr.msk.f32.mxu0 %vm19262_vm0, %v19263_v11 }
0x57e2   : > { %v17347_v43 = vpop.f32.mrb[166].mxu0 }
0x57e3   : > { %v12483_v41 = vpop.f32.mrb[167].mxu0  ;;  %v18237_v58 = vadd.f32 %v17347_v43, %v15035_v16 }
0x57e4   : > { %v18238_v15 = vadd.f32 %v15035_v16, %v12483_v41 }
0x57e5   : > { %v12531_v4 = vadd.f32 %v18237_v58, %v20683_v27 }
0x57e6   : > { %v12530_v7 = vadd.f32 %v18238_v15, %v20663_v6  ;;  %v17350_v2 = vpop.f32.mrb[168].mxu0 }
0x57e7   : > { %v12493_v19 = vpop.f32.mrb[169].mxu0  ;;  %v18239_v36 = vadd.f32 %v17350_v2, %v15035_v16  ;;  %v12543_v40 = vsel %vm331_vm1, %v12531_v4, 0.0 }
0x57e8   : > { %v18240_v63 = vadd.f32 %v15035_v16, %v12493_v19  ;;  %v12540_v38 = vsel %vm331_vm1, %v12530_v7, 0.0 }
0x57e9   : > { %12541 = vadd.xlane.f32.xlu0 %v12540_v38  ;;  %v12533_v57 = vadd.f32 %v18239_v36, %v20712_v5 }
0x57ea   : > { %v17353_v54 = vpop.f32.mrb[170].mxu0  ;;  %v12532_v17 = vadd.f32 %v18240_v63, %v20697_v31 }
0x57eb   : > { %v12503_v53 = vpop.f32.mrb[171].mxu0  ;;  %v18241_v27 = vadd.f32 %v17353_v54, %v15035_v16  ;;  %v12549_v48 = vsel %vm331_vm1, %v12533_v57, 0.0 }
0x57ec   : > { %v18242_v51 = vadd.f32 %v15035_v16, %v12503_v53  ;;  %v12546_v55 = vsel %vm331_vm1, %v12532_v17, 0.0 }
0x57ed   : > { %12544 = vadd.xlane.f32.xlu0 %v12543_v40  ;;  %v12535_v9 = vadd.f32 %v18241_v27, %v20749_v8  ;;  %v15128_v40 = vld [vmem:[%s22568_s3 + $0x740] sm:$0xff] }
0x57ee   : > { %v12534_v10 = vadd.f32 %v18242_v51, %v20727_v13  ;;  %v17356_v6 = vpop.f32.mrb[172].mxu0 }
0x57ef   : > { %v12513_v18 = vpop.f32.mrb[173].mxu0  ;;  %v18243_v25 = vadd.f32 %v17356_v6, %v15035_v16  ;;  %v12555_v24 = vsel %vm331_vm1, %v12535_v9, 0.0 }
0x57f0   : > { %v12552_v21 = vsel %vm331_vm1, %v12534_v10, 0.0  ;;  %v18244_v31 = vadd.f32 %v15035_v16, %v12513_v18  ;;  %v15130_v18 = vld [vmem:[%s22568_s3 + $0x750] sm:$0xff] }
0x57f1   : > { %12547 = vadd.xlane.f32.xlu0 %v12546_v55  ;;  %12553 = vadd.xlane.f32.xlu1 %v12552_v21  ;;  %v12537_v5 = vadd.f32 %v18243_v25, %v20767_v61  ;;  %v15132_v55 = vld [vmem:[%s22568_s3 + $0x780] sm:$0xff]  ;;  %v15133_v21 = vld [vmem:[%s22568_s3 + $0x788] sm:$0xff] }
0x57f2   : > { %v12536_v13 = vadd.f32 %v18244_v31, %v20743_v28 }
0x57f3   : > { %v12561_v23 = vsel %vm331_vm1, %v12537_v5, 0.0 }
0x57f4   : > { %v12558_v50 = vsel %vm331_vm1, %v12536_v13, 0.0 }
0x57f5   : > { %12550 = vadd.xlane.f32.xlu0 %v12549_v48 }
0x57f9   : > { %12556 = vadd.xlane.f32.xlu0 %v12555_v24 }
0x57fd   : > { %12559 = vadd.xlane.f32.xlu0 %v12558_v50 }
0x5801   : > { %12562 = vadd.xlane.f32.xlu0 %v12561_v23 }
0x5876   : > { %v12542_v30 = vpop.xlane.xlu0 %12541 }
0x5877   : > { %v12564_v8 = vmul.f32 0.03125, %v12542_v30 }
0x5879   : > { %v22148_v45 = vsub.f32 %v12530_v7, %v12564_v8 }
0x587a   : > { %v12545_v52 = vpop.xlane.xlu0 %12544 }
0x587b   : > { %v12565_v60 = vmul.f32 0.03125, %v12545_v52  ;;  %v12580_v28 = vmul.f32 %v22148_v45, %v22148_v45 }
0x587d   : > { %v22152_v22 = vsub.f32 %v12531_v4, %v12565_v60  ;;  %v12588_v12 = vsel %vm331_vm1, %v12580_v28, 0.0  ;;  %v22209_v28 = vld [vmem:[%s22569_s4 + $0x2a] ss:$0 sm:$0xff] }
0x587e   : > { %v12548_v61 = vpop.xlane.xlu0 %12547  ;;  %v12554_v33 = vpop.xlane.xlu1 %12553  ;;  %12589 = vadd.xlane.f32.xlu0 %v12588_v12 }
0x587f   : > { %v12566_v37 = vmul.f32 0.03125, %v12548_v61  ;;  %v12581_v0 = vmul.f32 %v22152_v22, %v22152_v22  ;;  %v12568_v26 = vmul.f32 0.03125, %v12554_v33 }
0x5881   : > { %v22157_v35 = vsub.f32 %v12532_v17, %v12566_v37  ;;  %v12591_v59 = vsel %vm331_vm1, %v12581_v0, 0.0  ;;  %v22162_v56 = vsub.f32 %v12534_v10, %v12568_v26  ;;  %v15129_v10 = vld [vmem:[%s22568_s3 + $0x748] sm:$0xff] }
0x5882   : > { %v12551_v14 = vpop.xlane.xlu0 %12550  ;;  %12592 = vadd.xlane.f32.xlu0 %v12591_v59  ;;  %v18100_v6 = vpack.c.bf16 %v15129_v10, %v15128_v40  ;;  %v22215_v0 = vld [vmem:[%s22569_s4 + $0x2b] ss:$0 sm:$0xff] }
0x5883   : > { %v12567_v34 = vmul.f32 0.03125, %v12551_v14  ;;  %v12582_v29 = vmul.f32 %v22157_v35, %v22157_v35  ;;  %v12584_v41 = vmul.f32 %v22162_v56, %v22162_v56 }
0x5884   : > { %18101 = vmatprep.subr.bf16.mxu1 %v18100_v6 }
0x5885   : > { %v22164_v1 = vsub.f32 %v12533_v57, %v12567_v34  ;;  %v12594_v62 = vsel %vm331_vm1, %v12582_v29, 0.0  ;;  %v12600_v2 = vsel %vm331_vm1, %v12584_v41, 0.0  ;;  %18103 = vmatpush3.bf16.msra.mxu1 %v18100_v6  ;;  %v15131_v57 = vld [vmem:[%s22568_s3 + $0x758] sm:$0xff] }
0x5886   : > { %v12557_v49 = vpop.xlane.xlu0 %12556  ;;  %12595 = vadd.xlane.f32.xlu0 %v12594_v62  ;;  %v18104_v27 = vpack.c.bf16 %v15131_v57, %v15130_v18  ;;  %v19231_v57 = vld [vmem:[%s19524_s13 + $0x10] sm:$0xff] }
0x5887   : > { %v12569_v47 = vmul.f32 0.03125, %v12557_v49  ;;  %v12583_v42 = vmul.f32 %v22164_v1, %v22164_v1 }
0x5888   : > { %18105 = vmatprep.subr.bf16.mxu1 %v18104_v27 }
0x5889   : > { %v22169_v16 = vsub.f32 %v12535_v9, %v12569_v47  ;;  %v12597_v43 = vsel %vm331_vm1, %v12583_v42, 0.0  ;;  %18107 = vmatpush3.bf16.msra.mxu1 %v18104_v27  ;;  %v18108_v9 = vpack.c.bf16 %v15133_v21, %v15132_v55 }
0x588a   : > { %12598 = vadd.xlane.f32.xlu0 %v12597_v43  ;;  %v12560_v58 = vpop.xlane.xlu0 %12559  ;;  %v19229_v43 = vld [vmem:[%s19524_s13] sm:$0xff] }
0x588b   : > { %v12570_v15 = vmul.f32 0.03125, %v12560_v58  ;;  %v12585_v19 = vmul.f32 %v22169_v16, %v22169_v16  ;;  %18109 = vmatprep.subr.bf16.mxu1 %v18108_v9 }
0x588d   : > { %v22174_v7 = vsub.f32 %v12536_v13, %v12570_v15  ;;  %v12603_v53 = vsel %vm331_vm1, %v12585_v19, 0.0  ;;  %v15135_v19 = vld [vmem:[%s22568_s3 + $0x798] sm:$0xff] }
0x588e   : > { %12601 = vadd.xlane.f32.xlu0 %v12600_v2  ;;  %v12563_v4 = vpop.xlane.xlu0 %12562  ;;  %v15134_v2 = vld [vmem:[%s22568_s3 + $0x790] sm:$0xff] }
0x588f   : > { %v12571_v63 = vmul.f32 0.03125, %v12563_v4  ;;  %v12586_v38 = vmul.f32 %v22174_v7, %v22174_v7  ;;  %v18112_v40 = vpack.c.bf16 %v15135_v19, %v15134_v2 }
0x5891   : > { %v22181_v54 = vsub.f32 %v12537_v5, %v12571_v63  ;;  %v12606_v36 = vsel %vm331_vm1, %v12586_v38, 0.0 }
0x5892   : > { %12604 = vadd.xlane.f32.xlu0 %v12603_v53  ;;  %12607 = vadd.xlane.f32.xlu1 %v12606_v36  ;;  %v19230_v36 = vld [vmem:[%s19524_s13 + $0x8] sm:$0xff] }
0x5893   : > { %v12587_v17 = vmul.f32 %v22181_v54, %v22181_v54 }
0x5895   : > { %v12609_v51 = vsel %vm331_vm1, %v12587_v17, 0.0 }
0x5896   : > { %12610 = vadd.xlane.f32.xlu0 %v12609_v51 }
0x590b   : > { %v12590_v31 = vpop.xlane.xlu0 %12589 }
0x590c   : > { %v12612_v48 = vmul.f32 0.03125, %v12590_v31 }
0x590e   : > { %v12620_v25 = vadd.f32 1e-05, %v12612_v48 }
0x590f   : > { %v12593_v13 = vpop.xlane.xlu0 %12592 }
0x5910   : > { %19175 = vrsqrt.f32 %v12620_v25  ;;  %v12613_v24 = vmul.f32 0.03125, %v12593_v13 }
0x5912   : > { %v12621_v5 = vadd.f32 1e-05, %v12613_v24 }
0x5913   : > { %v12596_v50 = vpop.xlane.xlu0 %12595 }
0x5914   : > { %19177 = vrsqrt.f32 %v12621_v5  ;;  %v12614_v23 = vmul.f32 0.03125, %v12596_v50 }
0x5916   : > { %v12622_v30 = vadd.f32 1e-05, %v12614_v23  ;;  %v19233_v23 = vld [vmem:[%s19524_s13 + $0x20] sm:$0xff] }
0x5917   : > { %v12599_v8 = vpop.xlane.xlu0 %12598 }
0x5918   : > { %19179 = vrsqrt.f32 %v12622_v30  ;;  %v12615_v52 = vmul.f32 0.03125, %v12599_v8 }
0x591a   : > { %v19176_v60 = vpop.eup %19175  ;;  %v12623_v12 = vadd.f32 1e-05, %v12615_v52 }
0x591b   : > { %v12636_v61 = vmul.f32 %v19176_v60, %v22148_v45  ;;  %v12602_v33 = vpop.xlane.xlu0 %12601 }
0x591c   : > { %19181 = vrsqrt.f32 %v12623_v12  ;;  %v12616_v37 = vmul.f32 0.03125, %v12602_v33 }
0x591d   : > { %v12648_v26 = vmul.f32 %v22209_v28, %v12636_v61  ;;  %v19234_v61 = vld [vmem:[%s19524_s13 + $0x30] sm:$0xff] }
0x591e   : > { %v19178_v59 = vpop.eup %19177  ;;  %v12624_v14 = vadd.f32 1e-05, %v12616_v37 }
0x591f   : > { %v12637_v34 = vmul.f32 %v19178_v59, %v22152_v22  ;;  %v12608_v29 = vpop.xlane.xlu1 %12607  ;;  %v12605_v62 = vpop.xlane.xlu0 %12604  ;;  %v22220_v45 = vadd.f32 %v22215_v0, %v12648_v26  ;;  %v19235_v26 = vld [vmem:[%s19524_s13 + $0x28] sm:$0xff] }
0x5920   : > { %19183 = vrsqrt.f32 %v12624_v14  ;;  %v12618_v49 = vmul.f32 0.03125, %v12608_v29  ;;  %v12617_v47 = vmul.f32 0.03125, %v12605_v62 }
0x5921   : > { %v12649_v42 = vmul.f32 %v22209_v28, %v12637_v34  ;;  %15116 = vst.msk [vmem:[%s20666_s26 + $0x40] sm:$0xff] %vm331_vm1, %v22220_v45  ;;  %v12677_v41 = vadd.f32 %v19229_v43, %v22220_v45 }
0x5922   : > { %v19180_v58 = vpop.eup %19179  ;;  %v12626_v22 = vadd.f32 1e-05, %v12618_v49  ;;  %v12625_v15 = vadd.f32 1e-05, %v12617_v47 }
0x5923   : > { %v12638_v4 = vmul.f32 %v19180_v58, %v22157_v35  ;;  %17376 = vmatprep.mubr.msk.f32.mxu1 %vm331_vm1, %v12677_v41  ;;  %v12611_v63 = vpop.xlane.xlu0 %12610  ;;  %v12661_v38 = vadd.f32 %v22215_v0, %v12649_v42 }
0x5924   : > { %19185 = vrsqrt.f32 %v12626_v22  ;;  %v12619_v53 = vmul.f32 0.03125, %v12611_v63 }
0x5925   : > { %19187 = vrsqrt.f32 %v12625_v15  ;;  %15117 = vst.msk [vmem:[%s20666_s26 + $0x48] sm:$0xff] %vm331_vm1, %v12661_v38  ;;  %v12678_v17 = vadd.f32 %v19230_v36, %v12661_v38  ;;  %v12650_v51 = vmul.f32 %v22209_v28, %v12638_v4 }
0x5926   : > { %v19182_v10 = vpop.eup %19181  ;;  %v12627_v6 = vadd.f32 1e-05, %v12619_v53 }
0x5927   : > { %v12639_v35 = vmul.f32 %v19182_v10, %v22164_v1  ;;  %17377 = vmatmul.mubr.msk.f32.vlgmr.msra.gmra.mrb[168].mxu1 %vm331_vm1, %v12678_v17  ;;  %v12662_v18 = vadd.f32 %v22215_v0, %v12650_v51  ;;  %v15149_v10 = vld [vmem:[%s22569_s4 + $0x2e] ss:$0 sm:$0xff] }
0x5928   : > { %19189 = vrsqrt.f32 %v12627_v6  ;;  %18111 = vmatpush3.bf16.msra.mxu1 %v18108_v9  ;;  %v19232_v9 = vld [vmem:[%s19524_s13 + $0x18] sm:$0xff] }
0x5929   : > { %15118 = vst.msk [vmem:[%s20666_s26 + $0x50] sm:$0xff] %vm331_vm1, %v12662_v18  ;;  %v12679_v27 = vadd.f32 %v19231_v57, %v12662_v18  ;;  %v12651_v55 = vmul.f32 %v22209_v28, %v12639_v35  ;;  %18113 = vmatprep.subr.bf16.mxu1 %v18112_v40 }
0x592a   : > { %v19184_v21 = vpop.eup %19183 }
0x592b   : > { %v12640_v31 = vmul.f32 %v19184_v21, %v22162_v56  ;;  %17379 = vmatprep.mubr.msk.f32.mxu1 %vm331_vm1, %v12679_v27  ;;  %v12663_v1 = vadd.f32 %v22215_v0, %v12651_v55 }
0x592c   : > { %18115 = vmatpush3.bf16.msra.mxu1 %v18112_v40 }
0x592d   : > { %15119 = vst.msk [vmem:[%s20666_s26 + $0x58] sm:$0xff] %vm331_vm1, %v12663_v1  ;;  %v12680_v48 = vadd.f32 %v19232_v9, %v12663_v1  ;;  %v12652_v25 = vmul.f32 %v22209_v28, %v12640_v31  ;;  %18132 = vmatprep.subr.bf16.mxu1 %v19261_v3 }
0x592e   : > { %v19186_v13 = vpop.eup %19185 }
0x592f   : > { %v19188_v24 = vpop.eup %19187  ;;  %v12642_v56 = vmul.f32 %v19186_v13, %v22174_v7  ;;  %17380 = vmatmul.mubr.msk.f32.gmra.mrb[170].mxu1 %vm331_vm1, %v12680_v48  ;;  %v12664_v5 = vadd.f32 %v22215_v0, %v12652_v25  ;;  %v15138_v13 = vld [vmem:[%s22569_s4 + $0x2c] ss:$0 sm:$0xff] }
0x5930   : > { %v12641_v50 = vmul.f32 %v19188_v24, %v22169_v16 }
0x5931   : > { %15120 = vst.msk [vmem:[%s20666_s26 + $0x60] sm:$0xff] %vm331_vm1, %v12664_v5  ;;  %v12681_v30 = vadd.f32 %v19233_v23, %v12664_v5  ;;  %v12654_v8 = vmul.f32 %v22209_v28, %v12642_v56 }
0x5932   : > { %v19190_v52 = vpop.eup %19189  ;;  %v12653_v60 = vmul.f32 %v22209_v28, %v12641_v50 }
0x5933   : > { %v12643_v7 = vmul.f32 %v19190_v52, %v22181_v54  ;;  %17382 = vmatprep.mubr.msk.f32.mxu1 %vm331_vm1, %v12681_v30  ;;  %v12666_v12 = vadd.f32 %v22215_v0, %v12654_v8  ;;  %v19236_v54 = vld [vmem:[%s19524_s13 + $0x38] sm:$0xff]  ;;  %v22329_v8 = vadd.f32 %v15138_v13, %v22025_v20 }
0x5934   : > { %v12665_v16 = vadd.f32 %v22215_v0, %v12653_v60 }
0x5935   : > { %15122 = vst.msk [vmem:[%s20666_s26 + $0x70] sm:$0xff] %vm331_vm1, %v12666_v12  ;;  %v12683_v33 = vadd.f32 %v19234_v61, %v12666_v12  ;;  %v12655_v37 = vmul.f32 %v22209_v28, %v12643_v7  ;;  %v15140_v28 = vld [vmem:[%s22569_s4 + $0x2d] ss:$0 sm:$0xff] }
0x5936   : > { %15121 = vst.msk [vmem:[%s20666_s26 + $0x68] sm:$0xff] %vm331_vm1, %v12665_v16  ;;  %v12682_v59 = vadd.f32 %v19235_v26, %v12665_v16 }
0x5937   : > { %v12667_v14 = vadd.f32 %v22215_v0, %v12655_v37 }
0x5938   : > { %17383 = vmatmul.mubr.msk.f32.gmra.mrb[172].mxu1 %vm331_vm1, %v12682_v59 }
0x5939   : > { %17385 = vmatprep.mubr.msk.f32.mxu1 %vm331_vm1, %v12683_v33  ;;  %15123 = vst.msk [vmem:[%s20666_s26 + $0x78] sm:$0xff] %vm331_vm1, %v12667_v14  ;;  %v12684_v34 = vadd.f32 %v19236_v54, %v12667_v14 }
0x593c   : > { %17386 = vmatmul.mubr.msk.f32.gmra.mrb[174].mxu1 %vm331_vm1, %v12684_v34 }
0x593d   : > { %17396 = vmatprep.mubr.msk.f32.mxu1 %vm331_vm1, %v22220_v45 }
0x5940   : > { %17397 = vmatmul.mubr.msk.f32.vlgmr.msra.gmra.mrb[176].mxu1 %vm331_vm1, %v12661_v38 }
0x5941   : > { %17399 = vmatprep.mubr.msk.f32.mxu1 %vm331_vm1, %v12662_v18 }
0x5944   : > { %17400 = vmatmul.mubr.msk.f32.gmra.mrb[178].mxu1 %vm331_vm1, %v12663_v1 }
0x5945   : > { %17402 = vmatprep.mubr.msk.f32.mxu1 %vm331_vm1, %v12664_v5 }
0x5948   : > { %17403 = vmatmul.mubr.msk.f32.gmra.mrb[180].mxu1 %vm331_vm1, %v12665_v16 }
0x5949   : > { %17405 = vmatprep.mubr.msk.f32.mxu1 %vm331_vm1, %v12666_v12 }
0x594c   : > { %17406 = vmatmul.mubr.msk.f32.gmra.mrb[182].mxu1 %vm331_vm1, %v12667_v14 }
0x594d   : > { %17443 = vmatprep.mubr.msk.f32.mxu1 %vm19262_vm0, %v19263_v11 }
0x59fa   : > { %v17378_v0 = vpop.f32.mrb[168].mxu1 }
0x59fb   : > { %v12875_v29 = vadd.f32 %v17378_v0, %v15140_v28  ;;  %v12869_v62 = vpop.f32.mrb[169].mxu1 }
0x59fc   : > { %v12870_v45 = vadd.f32 %v15140_v28, %v12869_v62 }
0x59fe   : > { %v18117_v49 = vpack.c.bf16 %v12875_v29, %v12870_v45  ;;  %v22297_v47 = vpack.i.bf16 %v12875_v29, %v12870_v45 }
0x5a00   : > { %18119 = vmatpush3.bf16.xpose.msk.msra.mxu0 %vm19636_vm4, %v18117_v49 }
0x5a01   : > { %18120 = vmatprep.subr.bf16.mxu0 %v19261_v3 }
0x5a02   : > { %v17381_v42 = vpop.f32.mrb[170].mxu1 }
0x5a03   : > { %v12885_v43 = vadd.f32 %v17381_v42, %v15140_v28  ;;  %v12879_v41 = vpop.f32.mrb[171].mxu1 }
0x5a04   : > { %v12880_v58 = vadd.f32 %v15140_v28, %v12879_v41 }
0x5a06   : > { %v18121_v22 = vpack.c.bf16 %v12885_v43, %v12880_v58  ;;  %v22302_v15 = vpack.i.bf16 %v12885_v43, %v12880_v58  ;;  %v22359_v58 = vld [vmem:[%s22568_s3 + $0x7c0] sm:$0xff] }
0x5a08   : > { %18123 = vmatpush3.bf16.xpose.msk.msra.mxu0 %vm19636_vm4, %v18121_v22 }
0x5a09   : > { %18124 = vmatprep.subr.bf16.mxu0 %v19261_v3 }
0x5a0b   : > { %v17384_v2 = vpop.f32.mrb[172].mxu1 }
0x5a0c   : > { %v12895_v19 = vadd.f32 %v17384_v2, %v15140_v28  ;;  %v12889_v4 = vpop.f32.mrb[173].mxu1 }
0x5a0d   : > { %v12890_v63 = vadd.f32 %v15140_v28, %v12889_v4 }
0x5a0f   : > { %v18125_v38 = vpack.c.bf16 %v12895_v19, %v12890_v63  ;;  %v17387_v53 = vpop.f32.mrb[174].mxu1  ;;  %v22307_v36 = vpack.i.bf16 %v12895_v19, %v12890_v63 }
0x5a10   : > { %v12905_v17 = vadd.f32 %v17387_v53, %v15140_v28  ;;  %v12899_v51 = vpop.f32.mrb[175].mxu1 }
0x5a11   : > { %v12900_v40 = vadd.f32 %v15140_v28, %v12899_v51  ;;  %18127 = vmatpush3.bf16.xpose.msk.msra.mxu0 %vm19636_vm4, %v18125_v38 }
0x5a12   : > { %18128 = vmatprep.subr.bf16.mxu0 %v19261_v3 }
0x5a13   : > { %v18129_v6 = vpack.c.bf16 %v12905_v17, %v12900_v40  ;;  %v17398_v35 = vpop.f32.mrb[176].mxu1  ;;  %v22315_v18 = vpack.i.bf16 %v12905_v17, %v12900_v40 }
0x5a14   : > { %v13009_v57 = vadd.f32 %v17398_v35, %v15149_v10  ;;  %v13003_v27 = vpop.f32.mrb[177].mxu1 }
0x5a15   : > { %v13004_v55 = vadd.f32 %v15149_v10, %v13003_v27 }
0x5a17   : > { %v17401_v21 = vpop.f32.mrb[178].mxu1  ;;  %v18133_v31 = vpack.c.bf16 %v13009_v57, %v13004_v55  ;;  %v22317_v1 = vpack.i.bf16 %v13009_v57, %v13004_v55 }
0x5a18   : > { %v13019_v9 = vadd.f32 %v17401_v21, %v15149_v10  ;;  %v13013_v48 = vpop.f32.mrb[179].mxu1 }
0x5a19   : > { %v13014_v25 = vadd.f32 %v15149_v10, %v13013_v48  ;;  %18131 = vmatpush3.bf16.xpose.msk.msra.mxu0 %vm19636_vm4, %v18129_v6  ;;  %18134 = vmatpush3.bf16.msra.mxu1 %v18133_v31 }
0x5a1a   : > { %18135 = vmatprep.subr.bf16.mxu1 %v19261_v3  ;;  %18160 = vmatprep.subr.bf16.mxu0 %v19261_v3 }
0x5a1b   : > { %v17404_v24 = vpop.f32.mrb[180].mxu1  ;;  %v18136_v56 = vpack.c.bf16 %v13019_v9, %v13014_v25  ;;  %v22326_v5 = vpack.i.bf16 %v13019_v9, %v13014_v25 }
0x5a1c   : > { %v13029_v50 = vadd.f32 %v17404_v24, %v15149_v10  ;;  %v13023_v23 = vpop.f32.mrb[181].mxu1 }
0x5a1d   : > { %v13024_v30 = vadd.f32 %v15149_v10, %v13023_v23  ;;  %18137 = vmatpush3.bf16.msra.mxu1 %v18136_v56 }
0x5a1e   : > { %18138 = vmatprep.subr.bf16.mxu1 %v19261_v3 }
0x5a1f   : > { %v17407_v52 = vpop.f32.mrb[182].mxu1  ;;  %v18139_v60 = vpack.c.bf16 %v13029_v50, %v13024_v30  ;;  %v22332_v7 = vpack.i.bf16 %v13029_v50, %v13024_v30 }
0x5a20   : > { %v13039_v12 = vadd.f32 %v17407_v52, %v15149_v10  ;;  %v13033_v16 = vpop.f32.mrb[183].mxu1  ;;  %17425 = vmatmul.mubr.msk.f32.vlgmr.msra.gmra.mrb[190].mxu0 %vm1917_vm3, %v22329_v8 }
0x5a21   : > { %v13034_v61 = vadd.f32 %v15149_v10, %v13033_v16  ;;  %18140 = vmatpush3.bf16.msra.mxu1 %v18139_v60  ;;  %17486 = vmatprep.mubr.msk.f32.mxu0 %vm19262_vm0, %v19263_v11 }
0x5a22   : > { %18141 = vmatprep.subr.bf16.mxu1 %v19261_v3 }
0x5a23   : > { %v18142_v20 = vpack.c.bf16 %v13039_v12, %v13034_v61  ;;  %v22339_v33 = vpack.i.bf16 %v13039_v12, %v13034_v61 }
0x5a25   : > { %18143 = vmatpush3.bf16.msra.mxu1 %v18142_v20 }
0x5a26   : > { %17446 = vmatprep.subr.mxu1 %v19263_v11 }
0x5af3   : > { %v13136_v37 = vpop.f32.mrb[190].mxu0 }
0x5af4   : > { %v13140_v26 = vmul.f32 0.5, %v13136_v37  ;;  %v17426_v59 = vpop.f32.mrb[191].mxu0 }
0x5af6   : > { %v13141_v14 = vsel %vm2016_vm5, %v13140_v26, -inf }
0x5af7   : > { %13142 = vmax.xlane.f32.xlu1 %v13141_v14 }
0x5b08   : > { %18692 = vrot.lane.b32.xlu1 %v22297_v47, %s19267_s19 }
0x5b0c   : > { %18702 = vrot.lane.b32.xlu1 %v22307_v36, %s19267_s19 }
0x5b10   : > { %18707 = vrot.lane.b32.xlu1 %v22315_v18, %s19267_s19 }
0x5b84   : > { %v13143_v54 = vpop.xlane.xlu1 %13142 }
0x5b85   : > { %v13144_v34 = vsub.f32 %v13140_v26, %v13143_v54 }
0x5b87   : > { %v13145_v28 = vmul.f32 1.442695, %v13144_v34 }
0x5b88   : > { %v18693_v4 = vpop.permute.xlu1 %18692 }
0x5b89   : > { %19191 = vpow2.f32 %v13145_v28  ;;  %v18695_v63 = vunpack.i.h.bf16 %v18693_v4  ;;  %v18694_v38 = vunpack.i.l.bf16 %v18693_v4 }
0x5b8b   : > { %v18145_v53 = vpack.c.bf16 %v18695_v63, %v18694_v38 }
0x5b8c   : > { %v18703_v35 = vpop.permute.xlu1 %18702 }
0x5b8d   : > { %v18705_v57 = vunpack.i.h.bf16 %v18703_v35  ;;  %v18704_v27 = vunpack.i.l.bf16 %v18703_v35 }
0x5b8f   : > { %v18153_v55 = vpack.c.bf16 %v18705_v57, %v18704_v27 }
0x5b90   : > { %v18708_v21 = vpop.permute.xlu1 %18707 }
0x5b91   : > { %v18710_v31 = vunpack.i.h.bf16 %v18708_v21  ;;  %v18709_v9 = vunpack.i.l.bf16 %v18708_v21 }
0x5b93   : > { %v19192_v0 = vpop.eup %19191  ;;  %v18157_v48 = vpack.c.bf16 %v18710_v31, %v18709_v9  ;;  %v15170_v31 = vld [vmem:[%s22569_s4 + $0x2f] ss:$0 sm:$0xff] }
0x5b94   : > { %v13147_v29 = vsel %vm2016_vm5, %v19192_v0, 0.0 }
0x5b95   : > { %13148 = vadd.xlane.f32.xlu0 %v13147_v29 }
0x5bab   : > { %18697 = vrot.lane.b32.xlu0 %v22302_v15, %s19267_s19 }
0x5baf   : > { %13306 = vrot.lane.b32.xlu0 %v22329_v8, %s19267_s19 }
0x5bb3   : > { %18712 = vrot.lane.b32.xlu0 %v22317_v1, %s19267_s19 }
0x5c22   : > { %v13149_v62 = vpop.xlane.xlu0 %13148 }
0x5c23   : > { %19193 = vrcp.f32 %v13149_v62 }
0x5c26   : > { %v18698_v45 = vpop.permute.xlu0 %18697 }
0x5c27   : > { %v18700_v40 = vunpack.i.h.bf16 %v18698_v45  ;;  %v18699_v10 = vunpack.i.l.bf16 %v18698_v45 }
0x5c29   : > { %v18149_v6 = vpack.c.bf16 %v18700_v40, %v18699_v10 }
0x5c2a   : > { %v13307_v49 = vpop.permute.xlu0 %13306 }
0x5c2d   : > { %v19194_v42 = vpop.eup %19193 }
0x5c2e   : > { %v13151_v43 = vmul.f32 %v19194_v42, %v19192_v0  ;;  %v18713_v41 = vpop.permute.xlu0 %18712  ;;  %v13529_v42 = vrot.slane %v22359_v58, 4 }
0x5c2f   : > { %v18715_v22 = vunpack.i.h.bf16 %v18713_v41  ;;  %v18714_v2 = vunpack.i.l.bf16 %v18713_v41 }
0x5c30   : > { %17444 = vmatmul.mubr.msk.f32.vlgmr.msra.gmra.mrb[184].mxu1 %vm2016_vm5, %v13151_v43 }
0x5c31   : > { %v18161_v19 = vpack.c.bf16 %v18715_v22, %v18714_v2  ;;  %17447 = vmatpush3.msk.msra.mxu1 %vm2104_vm6, %v22359_v58  ;;  %17448 = vmatprep.mubr.msk.f32.mxu1 %vm19262_vm0, %v19263_v11 }
0x5c32   : > { %18144 = vmatprep.subr.bf16.mxu1 %v19261_v3 }
0x5c33   : > { %18162 = vmatpush3.bf16.msra.mxu0 %v18161_v19 }
0x5c34   : > { %18163 = vmatprep.subr.bf16.mxu0 %v19261_v3 }
0x5d03   : > { %v13221_v17 = vpop.f32.mrb[184].mxu1 }
0x5d04   : > { %v17445_v51 = vpop.f32.mrb[185].mxu1  ;;  %17449 = vmatmul.mubr.msk.f32.vlgmr.msra.gmra.mrb[186].mxu1 %vm1917_vm3, %v13221_v17 }
0x5d05   : > { %18147 = vmatpush3.bf16.xpose.msk.msra.mxu1 %vm19636_vm4, %v18145_v53  ;;  %17467 = vmatprep.mubr.msk.f32.mxu1 %vm19262_vm0, %v19263_v11 }
0x5d06   : > { %18148 = vmatprep.subr.bf16.mxu1 %v19261_v3 }
0x5d0d   : > { %18151 = vmatpush3.bf16.xpose.msk.msra.mxu1 %vm19636_vm4, %v18149_v6 }
0x5d0e   : > { %18152 = vmatprep.subr.bf16.mxu1 %v19261_v3 }
0x5d15   : > { %18155 = vmatpush3.bf16.xpose.msk.msra.mxu1 %vm19636_vm4, %v18153_v55 }
0x5d16   : > { %18156 = vmatprep.subr.bf16.mxu1 %v19261_v3 }
0x5d1d   : > { %18159 = vmatpush3.bf16.xpose.msk.msra.mxu1 %vm19636_vm4, %v18157_v48 }
0x5d1e   : > { %18188 = vmatprep.subr.bf16.mxu1 %v19261_v3 }
0x5d24   : > { %17468 = vmatmul.mubr.msk.f32.vlgmr.msra.gmra.mrb[188].mxu1 %vm1917_vm3, %v13307_v49 }
0x5d25   : > { %17529 = vmatprep.mubr.msk.f32.mxu1 %vm19262_vm0, %v19263_v11 }
0x5dd7   : > { %v22386_v25 = vpop.f32.mrb[186].mxu1 }
0x5dd8   : > { %v17450_v13 = vpop.f32.mrb[187].mxu1  ;;  %v13305_v9 = vadd.f32 %v15170_v31, %v22386_v25 }
0x5df7   : > { %v13408_v24 = vpop.f32.mrb[188].mxu1 }
0x5df8   : > { %v13412_v56 = vmul.f32 0.5, %v13408_v24  ;;  %v17469_v50 = vpop.f32.mrb[189].mxu1 }
0x5dfa   : > { %v13413_v23 = vsel %vm2016_vm5, %v13412_v56, -inf }
0x5dfb   : > { %13414 = vmax.xlane.f32.xlu1 %v13413_v23 }
0x5e0c   : > { %18717 = vrot.lane.b32.xlu1 %v22326_v5, %s19267_s19 }
0x5e10   : > { %18722 = vrot.lane.b32.xlu1 %v22332_v7, %s19267_s19 }
0x5e14   : > { %18732 = vrot.lane.b32.xlu1 %v22297_v47, %s19264_s23 }
0x5e18   : > { %18742 = vrot.lane.b32.xlu1 %v22307_v36, %s19264_s23 }
0x5e1c   : > { %13606 = vrot.lane.b32.xlu1 %v22329_v8, %s19264_s23 }
0x5e20   : > { %18757 = vrot.lane.b32.xlu1 %v22326_v5, %s19264_s23 }
0x5e88   : > { %v13415_v30 = vpop.xlane.xlu1 %13414 }
0x5e89   : > { %v13416_v52 = vsub.f32 %v13412_v56, %v13415_v30 }
0x5e8b   : > { %v13417_v60 = vmul.f32 1.442695, %v13416_v52 }
0x5e8c   : > { %v18718_v12 = vpop.permute.xlu1 %18717 }
0x5e8d   : > { %19195 = vpow2.f32 %v13417_v60  ;;  %v18720_v16 = vunpack.i.h.bf16 %v18718_v12  ;;  %v18719_v61 = vunpack.i.l.bf16 %v18718_v12 }
0x5e8f   : > { %v18164_v20 = vpack.c.bf16 %v18720_v16, %v18719_v61 }
0x5e90   : > { %v18723_v37 = vpop.permute.xlu1 %18722 }
0x5e91   : > { %v18725_v26 = vunpack.i.h.bf16 %v18723_v37  ;;  %v18724_v59 = vunpack.i.l.bf16 %v18723_v37  ;;  %18165 = vmatpush3.bf16.msra.mxu0 %v18164_v20 }
0x5e92   : > { %18166 = vmatprep.subr.bf16.mxu0 %v19261_v3 }
0x5e93   : > { %v18167_v14 = vpack.c.bf16 %v18725_v26, %v18724_v59 }
0x5e94   : > { %v18733_v41 = vpop.permute.xlu1 %18732 }
0x5e95   : > { %18168 = vmatpush3.bf16.msra.mxu0 %v18167_v14  ;;  %v18735_v22 = vunpack.i.h.bf16 %v18733_v41  ;;  %v18734_v2 = vunpack.i.l.bf16 %v18733_v41 }
0x5e96   : > { %18169 = vmatprep.subr.bf16.mxu0 %v19261_v3 }
0x5e97   : > { %v19196_v54 = vpop.eup %19195  ;;  %v18173_v19 = vpack.c.bf16 %v18735_v22, %v18734_v2 }
0x5e98   : > { %v13419_v34 = vsel %vm2016_vm5, %v19196_v54, 0.0  ;;  %v18743_v51 = vpop.permute.xlu1 %18742 }
0x5e99   : > { %13420 = vadd.xlane.f32.xlu0 %v13419_v34  ;;  %v18745_v40 = vunpack.i.h.bf16 %v18743_v51  ;;  %v18744_v10 = vunpack.i.l.bf16 %v18743_v51 }
0x5e9b   : > { %v18181_v6 = vpack.c.bf16 %v18745_v40, %v18744_v10 }
0x5e9c   : > { %v13607_v21 = vpop.permute.xlu1 %13606 }
0x5ea0   : > { %v18758_v12 = vpop.permute.xlu1 %18757 }
0x5ea1   : > { %v18760_v37 = vunpack.i.h.bf16 %v18758_v12  ;;  %v18759_v26 = vunpack.i.l.bf16 %v18758_v12 }
0x5eaf   : > { %18727 = vrot.lane.b32.xlu0 %v22339_v33, %s19267_s19 }
0x5eb3   : > { %18737 = vrot.lane.b32.xlu0 %v22302_v15, %s19264_s23 }
0x5eb7   : > { %18747 = vrot.lane.b32.xlu0 %v22315_v18, %s19264_s23 }
0x5f26   : > { %v13421_v28 = vpop.xlane.xlu0 %13420 }
0x5f27   : > { %19197 = vrcp.f32 %v13421_v28 }
0x5f2a   : > { %v18728_v0 = vpop.permute.xlu0 %18727 }
0x5f2b   : > { %v18730_v29 = vunpack.i.h.bf16 %v18728_v0  ;;  %v18729_v62 = vunpack.i.l.bf16 %v18728_v0 }
0x5f2d   : > { %v18170_v45 = vpack.c.bf16 %v18730_v29, %v18729_v62 }
0x5f2e   : > { %v18738_v63 = vpop.permute.xlu0 %18737 }
0x5f2f   : > { %18171 = vmatpush3.bf16.msra.mxu0 %v18170_v45  ;;  %v18740_v58 = vunpack.i.h.bf16 %v18738_v63  ;;  %v18739_v53 = vunpack.i.l.bf16 %v18738_v63 }
0x5f30   : > { %17489 = vmatprep.subr.mxu0 %v19263_v11 }
0x5f31   : > { %v19198_v49 = vpop.eup %19197  ;;  %v18177_v17 = vpack.c.bf16 %v18740_v58, %v18739_v53 }
0x5f32   : > { %v13423_v43 = vmul.f32 %v19198_v49, %v19196_v54  ;;  %v18748_v35 = vpop.permute.xlu0 %18747 }
0x5f33   : > { %v18750_v57 = vunpack.i.h.bf16 %v18748_v35  ;;  %v18749_v27 = vunpack.i.l.bf16 %v18748_v35 }
0x5f34   : > { %17487 = vmatmul.mubr.msk.f32.vlgmr.msra.gmra.mrb[192].mxu0 %vm2016_vm5, %v13423_v43 }
0x5f35   : > { %17490 = vmatpush3.msk.msra.mxu0 %vm2104_vm6, %v13529_v42  ;;  %17491 = vmatprep.mubr.msk.f32.mxu0 %vm19262_vm0, %v19263_v11  ;;  %v18185_v55 = vpack.c.bf16 %v18750_v57, %v18749_v27 }
0x5f36   : > { %18172 = vmatprep.subr.bf16.mxu0 %v19261_v3 }
0x6007   : > { %v13525_v4 = vpop.f32.mrb[192].mxu0 }
0x6008   : > { %v17488_v38 = vpop.f32.mrb[193].mxu0  ;;  %17492 = vmatmul.mubr.msk.f32.vlgmr.msra.gmra.mrb[194].mxu0 %vm1917_vm3, %v13525_v4 }
0x6009   : > { %18175 = vmatpush3.bf16.xpose.msk.msra.mxu0 %vm19636_vm4, %v18173_v19  ;;  %17510 = vmatprep.mubr.msk.f32.mxu0 %vm19262_vm0, %v19263_v11  ;;  %v22469_v38 = vld [vmem:[%s22568_s3 + $0x7c8] sm:$0xff] }
0x600a   : > { %18176 = vmatprep.subr.bf16.mxu0 %v19261_v3 }
0x6011   : > { %18179 = vmatpush3.bf16.xpose.msk.msra.mxu0 %vm19636_vm4, %v18177_v17 }
0x6012   : > { %18180 = vmatprep.subr.bf16.mxu0 %v19261_v3 }
0x6019   : > { %18183 = vmatpush3.bf16.xpose.msk.msra.mxu0 %vm19636_vm4, %v18181_v6 }
0x601a   : > { %18184 = vmatprep.subr.bf16.mxu0 %v19261_v3 }
0x6021   : > { %18187 = vmatpush3.bf16.xpose.msk.msra.mxu0 %vm19636_vm4, %v18185_v55 }
0x6022   : > { %18216 = vmatprep.subr.bf16.mxu0 %v19261_v3 }
0x6028   : > { %17511 = vmatmul.mubr.msk.f32.vlgmr.msra.gmra.mrb[196].mxu0 %vm1917_vm3, %v13607_v21 }
0x6029   : > { %17572 = vmatprep.mubr.msk.f32.mxu0 %vm19262_vm0, %v19263_v11 }
0x60db   : > { %v13601_v48 = vpop.f32.mrb[194].mxu0 }
0x60dc   : > { %v22439_v13 = vadd.f32 %v13601_v48, %v13305_v9  ;;  %v17493_v24 = vpop.f32.mrb[195].mxu0 }
0x60fb   : > { %v13708_v56 = vpop.f32.mrb[196].mxu0 }
0x60fc   : > { %v13712_v50 = vmul.f32 0.5, %v13708_v56  ;;  %v17512_v23 = vpop.f32.mrb[197].mxu0 }
0x60fe   : > { %v13713_v30 = vsel %vm2016_vm5, %v13712_v50, -inf }
0x60ff   : > { %13714 = vmax.xlane.f32.xlu0 %v13713_v30 }
0x6115   : > { %18752 = vrot.lane.b32.xlu0 %v22317_v1, %s19264_s23 }
0x6119   : > { %18762 = vrot.lane.b32.xlu0 %v22332_v7, %s19264_s23 }
0x611d   : > { %18772 = vrot.lane.b32.xlu0 %v22297_v47, %s19268_s17 }
0x6121   : > { %18782 = vrot.lane.b32.xlu0 %v22307_v36, %s19268_s17  ;;  %v18192_v36 = vpack.c.bf16 %v18760_v37, %v18759_v26 }
0x6125   : > { %13898 = vrot.lane.b32.xlu0 %v22329_v8, %s19268_s17 }
0x6129   : > { %18792 = vrot.lane.b32.xlu0 %v22317_v1, %s19268_s17 }
0x618c   : > { %v13715_v25 = vpop.xlane.xlu0 %13714 }
0x618d   : > { %v13716_v52 = vsub.f32 %v13712_v50, %v13715_v25 }
0x618f   : > { %v13717_v60 = vmul.f32 1.442695, %v13716_v52  ;;  %v7271_v52 = vsel %vm331_vm1, %v7268_v32, 0.0 }
0x6190   : > { %v18753_v16 = vpop.permute.xlu0 %18752 }
0x6191   : > { %19199 = vpow2.f32 %v13717_v60  ;;  %v18755_v61 = vunpack.i.h.bf16 %v18753_v16  ;;  %v18754_v20 = vunpack.i.l.bf16 %v18753_v16 }
0x6193   : > { %v18189_v47 = vpack.c.bf16 %v18755_v61, %v18754_v20 }
0x6194   : > { %v18763_v59 = vpop.permute.xlu0 %18762 }
0x6195   : > { %18190 = vmatpush3.bf16.msra.mxu1 %v18189_v47  ;;  %v18765_v8 = vunpack.i.h.bf16 %v18763_v59  ;;  %v18764_v14 = vunpack.i.l.bf16 %v18763_v59 }
0x6196   : > { %18191 = vmatprep.subr.bf16.mxu1 %v19261_v3 }
0x6197   : > { %v18195_v34 = vpack.c.bf16 %v18765_v8, %v18764_v14 }
0x6198   : > { %v18773_v54 = vpop.permute.xlu0 %18772 }
0x6199   : > { %18193 = vmatpush3.bf16.msra.mxu1 %v18192_v36 }
0x619a   : > { %18194 = vmatprep.subr.bf16.mxu1 %v19261_v3 }
0x619b   : > { %v19200_v1 = vpop.eup %19199 }
0x619c   : > { %v18783_v28 = vpop.permute.xlu0 %18782  ;;  %v13719_v0 = vsel %vm2016_vm5, %v19200_v1, 0.0 }
0x619d   : > { %13720 = vadd.xlane.f32.xlu1 %v13719_v0  ;;  %18196 = vmatpush3.bf16.msra.mxu1 %v18195_v34  ;;  %v18785_v35 = vunpack.i.h.bf16 %v18783_v28  ;;  %v18784_v57 = vunpack.i.l.bf16 %v18783_v28  ;;  %v14113_v34 = vrot.slane %v22469_v38, 4 }
0x619e   : > { %18197 = vmatprep.subr.bf16.mxu1 %v19261_v3 }
0x619f   : > { %v18209_v27 = vpack.c.bf16 %v18785_v35, %v18784_v57 }
0x61a0   : > { %v13899_v29 = vpop.permute.xlu0 %13898 }
0x61a4   : > { %v18793_v62 = vpop.permute.xlu0 %18792 }
0x61a5   : > { %v18795_v45 = vunpack.i.h.bf16 %v18793_v62  ;;  %v18794_v49 = vunpack.i.l.bf16 %v18793_v62 }
0x61a7   : > { %v18217_v42 = vpack.c.bf16 %v18795_v45, %v18794_v49 }
0x61a9   : > { %18218 = vmatpush3.bf16.msra.mxu0 %v18217_v42 }
0x61aa   : > { %18219 = vmatprep.subr.bf16.mxu0 %v19261_v3 }
0x61ae   : > { %18767 = vrot.lane.b32.xlu1 %v22339_v33, %s19264_s23 }
0x61b2   : > { %18777 = vrot.lane.b32.xlu1 %v22302_v15, %s19268_s17  ;;  %v18775_v15 = vunpack.i.h.bf16 %v18773_v54 }
0x61b6   : > { %18787 = vrot.lane.b32.xlu1 %v22315_v18, %s19268_s17  ;;  %v18774_v18 = vunpack.i.l.bf16 %v18773_v54 }
0x61b8   : > { %v18201_v58 = vpack.c.bf16 %v18775_v15, %v18774_v18 }
0x622a   : > { %v13721_v43 = vpop.xlane.xlu1 %13720 }
0x622b   : > { %19201 = vrcp.f32 %v13721_v43 }
0x622e   : > { %v18768_v41 = vpop.permute.xlu1 %18767 }
0x622f   : > { %v18770_v22 = vunpack.i.h.bf16 %v18768_v41  ;;  %v18769_v2 = vunpack.i.l.bf16 %v18768_v41 }
0x6231   : > { %v18198_v19 = vpack.c.bf16 %v18770_v22, %v18769_v2 }
0x6232   : > { %v18778_v17 = vpop.permute.xlu1 %18777 }
0x6233   : > { %18199 = vmatpush3.bf16.msra.mxu1 %v18198_v19  ;;  %v18780_v40 = vunpack.i.h.bf16 %v18778_v17  ;;  %v18779_v10 = vunpack.i.l.bf16 %v18778_v17 }
0x6234   : > { %17532 = vmatprep.subr.mxu1 %v19263_v11 }
0x6235   : > { %v19202_v4 = vpop.eup %19201  ;;  %v18205_v6 = vpack.c.bf16 %v18780_v40, %v18779_v10 }
0x6236   : > { %v13723_v63 = vmul.f32 %v19202_v4, %v19200_v1  ;;  %v18788_v55 = vpop.permute.xlu1 %18787 }
0x6237   : > { %v18790_v21 = vunpack.i.h.bf16 %v18788_v55  ;;  %v18789_v31 = vunpack.i.l.bf16 %v18788_v55 }
0x6238   : > { %17530 = vmatmul.mubr.msk.f32.vlgmr.msra.gmra.mrb[190].mxu1 %vm2016_vm5, %v13723_v63 }
0x6239   : > { %17533 = vmatpush3.msk.msra.mxu1 %vm2104_vm6, %v22469_v38  ;;  %17534 = vmatprep.mubr.msk.f32.mxu1 %vm19262_vm0, %v19263_v11  ;;  %v18213_v9 = vpack.c.bf16 %v18790_v21, %v18789_v31 }
0x623a   : > { %18200 = vmatprep.subr.bf16.mxu1 %v19261_v3 }
0x630b   : > { %v13817_v53 = vpop.f32.mrb[190].mxu1 }
0x630c   : > { %v17531_v51 = vpop.f32.mrb[191].mxu1  ;;  %17535 = vmatmul.mubr.msk.f32.vlgmr.msra.gmra.mrb[192].mxu1 %vm1917_vm3, %v13817_v53  ;;  %v14836_v53 = vld [vmem:[%s22569_s4 + $0x30] ss:$0 sm:$0xff] }
0x630d   : > { %18203 = vmatpush3.bf16.xpose.msk.msra.mxu1 %vm19636_vm4, %v18201_v58  ;;  %17553 = vmatprep.mubr.msk.f32.mxu1 %vm19262_vm0, %v19263_v11  ;;  %v14837_v51 = vld [vmem:[%s22569_s4 + $0x31] ss:$0 sm:$0xff] }
0x630e   : > { %18204 = vmatprep.subr.bf16.mxu1 %v19261_v3 }
0x6315   : > { %18207 = vmatpush3.bf16.xpose.msk.msra.mxu1 %vm19636_vm4, %v18205_v6 }
0x6316   : > { %18208 = vmatprep.subr.bf16.mxu1 %v19261_v3 }
0x631d   : > { %18211 = vmatpush3.bf16.xpose.msk.msra.mxu1 %vm19636_vm4, %v18209_v27 }
0x631e   : > { %18212 = vmatprep.subr.bf16.mxu1 %v19261_v3 }
0x6325   : > { %18215 = vmatpush3.bf16.xpose.msk.msra.mxu1 %vm19636_vm4, %v18213_v9 }
0x632c   : > { %17554 = vmatmul.mubr.msk.f32.vlgmr.msra.gmra.mrb[194].mxu1 %vm1917_vm3, %v13899_v29 }
0x63df   : > { %v13893_v48 = vpop.f32.mrb[192].mxu1 }
0x63e0   : > { %v13897_v24 = vadd.f32 %v13893_v48, %v22439_v13  ;;  %v17536_v56 = vpop.f32.mrb[193].mxu1 }
0x63ff   : > { %v14000_v50 = vpop.f32.mrb[194].mxu1 }
0x6400   : > { %v14004_v23 = vmul.f32 0.5, %v14000_v50  ;;  %v17555_v30 = vpop.f32.mrb[195].mxu1 }
0x6402   : > { %v14005_v25 = vsel %vm2016_vm5, %v14004_v23, -inf }
0x6403   : > { %14006 = vmax.xlane.f32.xlu1 %v14005_v25 }
0x6414   : > { %18797 = vrot.lane.b32.xlu1 %v22326_v5, %s19268_s17 }
0x6418   : > { %18802 = vrot.lane.b32.xlu1 %v22332_v7, %s19268_s17 }
0x643c   : > { %7272 = vadd.xlane.f32.xlu1 %v7271_v52 }
0x6490   : > { %v14007_v13 = vpop.xlane.xlu1 %14006 }
0x6491   : > { %v14008_v60 = vsub.f32 %v14004_v23, %v14007_v13 }
0x6493   : > { %v14009_v12 = vmul.f32 1.442695, %v14008_v60 }
0x6494   : > { %v18798_v16 = vpop.permute.xlu1 %18797 }
0x6495   : > { %19203 = vpow2.f32 %v14009_v12  ;;  %v18800_v61 = vunpack.i.h.bf16 %v18798_v16  ;;  %v18799_v20 = vunpack.i.l.bf16 %v18798_v16 }
0x6497   : > { %v18220_v37 = vpack.c.bf16 %v18800_v61, %v18799_v20 }
0x6498   : > { %v18803_v26 = vpop.permute.xlu1 %18802 }
0x6499   : > { %v18805_v47 = vunpack.i.h.bf16 %v18803_v26  ;;  %v18804_v5 = vunpack.i.l.bf16 %v18803_v26  ;;  %18221 = vmatpush3.bf16.msra.mxu0 %v18220_v37 }
0x649a   : > { %18222 = vmatprep.subr.bf16.mxu0 %v19261_v3 }
0x649b   : > { %v18223_v7 = vpack.c.bf16 %v18805_v47, %v18804_v5 }
0x649d   : > { %18224 = vmatpush3.bf16.msra.mxu0 %v18223_v7 }
0x649e   : > { %18225 = vmatprep.subr.bf16.mxu0 %v19261_v3 }
0x649f   : > { %v19204_v46 = vpop.eup %19203 }
0x64a0   : > { %v14011_v39 = vsel %vm2016_vm5, %v19204_v46, 0.0 }
0x64a1   : > { %14012 = vadd.xlane.f32.xlu0 %v14011_v39 }
0x64b7   : > { %18807 = vrot.lane.b32.xlu0 %v22339_v33, %s19268_s17 }
0x64c9   : > { %v7273_v0 = vpop.xlane.xlu1 %7272 }
0x64ca   : > { %v7274_v29 = vmul.f32 0.03125, %v7273_v0 }
0x64cc   : > { %v7275_v45 = vsub.f32 %v7268_v32, %v7274_v29 }
0x64ce   : > { %v7276_v22 = vmul.f32 %v7275_v45, %v7275_v45 }
0x64d0   : > { %v7277_v2 = vsel %vm331_vm1, %v7276_v22, 0.0 }
0x652e   : > { %v14013_v59 = vpop.xlane.xlu0 %14012 }
0x652f   : > { %19205 = vrcp.f32 %v14013_v59 }
0x6532   : > { %v18808_v36 = vpop.permute.xlu0 %18807 }
0x6533   : > { %v18810_v8 = vunpack.i.h.bf16 %v18808_v36  ;;  %v18809_v14 = vunpack.i.l.bf16 %v18808_v36 }
0x6535   : > { %v18226_v54 = vpack.c.bf16 %v18810_v8, %v18809_v14 }
0x6537   : > { %18227 = vmatpush3.bf16.msra.mxu0 %v18226_v54 }
0x6538   : > { %17575 = vmatprep.subr.mxu0 %v19263_v11 }
0x6539   : > { %v19206_v1 = vpop.eup %19205 }
0x653a   : > { %v14015_v3 = vmul.f32 %v19206_v1, %v19204_v46 }
0x653c   : > { %17573 = vmatmul.mubr.msk.f32.vlgmr.msra.gmra.mrb[198].mxu0 %vm2016_vm5, %v14015_v3 }
0x653d   : > { %17576 = vmatpush3.msk.msra.mxu0 %vm2104_vm6, %v14113_v34  ;;  %17577 = vmatprep.mubr.msk.f32.mxu0 %vm19262_vm0, %v19263_v11 }
0x660f   : > { %v14109_v33 = vpop.f32.mrb[198].mxu0 }
0x6610   : > { %v17574_v28 = vpop.f32.mrb[199].mxu0  ;;  %17578 = vmatmul.mubr.msk.f32.vlgmr.msra.gmra.mrb[200].mxu0 %vm1917_vm3, %v14109_v33 }
0x66e3   : > { %v14185_v62 = vpop.f32.mrb[200].mxu0 }
0x66e4   : > { %v14189_v49 = vadd.f32 %v14185_v62, %v13897_v24  ;;  %v17579_v42 = vpop.f32.mrb[201].mxu0 }
0x66e6   : > { %v14190_v43 = vadd.f32 %v14189_v49, %v21644_v44 }
0x66e8   : > { %v14193_v41 = vsel %vm331_vm1, %v14190_v43, 0.0 }
0x66e9   : > { %14194 = vadd.xlane.f32.xlu0 %v14193_v41 }
0x66ed   : > { %7278 = vadd.xlane.f32.xlu0 %v7277_v2 }
0x6776   : > { %v14195_v11 = vpop.xlane.xlu0 %14194 }
0x6777   : > { %v14196_v19 = vmul.f32 0.03125, %v14195_v11 }
0x6779   : > { %v14197_v4 = vsub.f32 %v14190_v43, %v14196_v19 }
0x677a   : > { %v7279_v63 = vpop.xlane.xlu0 %7278 }
0x677b   : > { %v7280_v38 = vmul.f32 0.03125, %v7279_v63  ;;  %v14198_v15 = vmul.f32 %v14197_v4, %v14197_v4 }
0x677d   : > { %v7281_v18 = vadd.f32 1e-05, %v7280_v38  ;;  %v14199_v58 = vsel %vm331_vm1, %v14198_v15, 0.0 }
0x677e   : > { %14200 = vadd.xlane.f32.xlu1 %v14199_v58 }
0x677f   : > { %19207 = vrsqrt.f32 %v7281_v18 }
0x6789   : > { %v19208_v44 = vpop.eup %19207 }
0x678a   : > { %v7283_v17 = vmul.f32 %v19208_v44, %v7275_v45 }
0x678c   : > { %v7288_v40 = vmul.f32 %v14836_v53, %v7283_v17 }
0x678e   : > { %v7293_v10 = vadd.f32 %v14837_v51, %v7288_v40 }
0x6790   : > { %7294 = vst.msk [vmem:[%s269_s15] sm:$0xff] %vm331_vm1, %v7293_v10 }
0x6797   : > { %v14260_v9 = vld [vmem:[%s269_s15] sm:$0xff] (%p19329_p4) }
0x6798   : > { %14261 = vst [vmem:[%s14230_s10] sm:$0xff] (%p19329_p4), %v14260_v9 }
0x680b   : > { %v14201_v6 = vpop.xlane.xlu1 %14200 }
0x680c   : > { %v14202_v35 = vmul.f32 0.03125, %v14201_v6 }
0x680e   : > { %v14203_v57 = vadd.f32 1e-05, %v14202_v35 }
0x6810   : > { %19209 = vrsqrt.f32 %v14203_v57 }
0x681a   : > { %v19210_v27 = vpop.eup %19209 }
0x681b   : > { %v14205_v55 = vmul.f32 %v19210_v27, %v14197_v4  ;;  %14228 = sbr.rel (!%p19329_p4) target bundleno = 26666 (0x682a), region = 44 }
0x681d   : > { %v14210_v21 = vmul.f32 %v14836_v53, %v14205_v55 }
0x681f   : > { %v14215_v31 = vadd.f32 %v14837_v51, %v14210_v21 }
0x6821   : > { %15209 = vst.msk [vmem:[%s269_s15 + $0x8] sm:$0xff] %vm331_vm1, %v14215_v31 }
0x6828   : > { %v14262_v48 = vld [vmem:[%s269_s15 + $0x8] sm:$0xff] }
0x6829   : > { %14263 = vst [vmem:[%s14230_s10 + $0x10] sm:$0xff] %v14262_v48 }
0x682a PF: > { %14269 = sbr.rel (!%p19329_p4) target bundleno = 26676 (0x6834), region = 82  ;;  %s15219_s18 = sshll.u32 (%p19329_p4), %s19317_s24, 6  ;;  %v14330_v24 = vld [vmem:[%s20666_s26] sm:$0xff] (%p19329_p4)  ;;  %v14332_v56 = vld [vmem:[%s20666_s26 + $0x8] sm:$0xff] (%p19329_p4)  ;;  %v14334_v50 = vld [vmem:[%s20666_s26 + $0x10] sm:$0xff] (%p19329_p4) }
0x682b   : > { %s14272_s30 = scalar_lea.vmem (%p19329_p4), %s22571_s6, %s15219_s18  ;;  %v14336_v23 = vld [vmem:[%s20666_s26 + $0x18] sm:$0xff] (%p19329_p4)  ;;  %v14338_v30 = vld [vmem:[%s20666_s26 + $0x20] sm:$0xff] (%p19329_p4)  ;;  %v14340_v25 = vld [vmem:[%s20666_s26 + $0x28] sm:$0xff] (%p19329_p4) }
0x682c   : > { %14331 = vst [vmem:[%s14272_s30] sm:$0xff] (%p19329_p4), %v14330_v24  ;;  %14333 = vst [vmem:[%s14272_s30 + $0x8] sm:$0xff] (%p19329_p4), %v14332_v56  ;;  %v14342_v32 = vld [vmem:[%s20666_s26 + $0x30] sm:$0xff] (%p19329_p4)  ;;  %v14344_v52 = vld [vmem:[%s20666_s26 + $0x38] sm:$0xff] (%p19329_p4) }
0x682d   : > { %14335 = vst [vmem:[%s14272_s30 + $0x10] sm:$0xff] (%p19329_p4), %v14334_v50  ;;  %14337 = vst [vmem:[%s14272_s30 + $0x18] sm:$0xff] (%p19329_p4), %v14336_v23  ;;  %v14346_v13 = vld [vmem:[%s20666_s26 + $0x40] sm:$0xff] (%p19329_p4)  ;;  %v14348_v60 = vld [vmem:[%s20666_s26 + $0x48] sm:$0xff] (%p19329_p4) }
0x682e   : > { %14339 = vst [vmem:[%s14272_s30 + $0x20] sm:$0xff] (%p19329_p4), %v14338_v30  ;;  %14341 = vst [vmem:[%s14272_s30 + $0x28] sm:$0xff] (%p19329_p4), %v14340_v25  ;;  %v14350_v12 = vld [vmem:[%s20666_s26 + $0x50] sm:$0xff] (%p19329_p4)  ;;  %v14352_v16 = vld [vmem:[%s20666_s26 + $0x58] sm:$0xff] (%p19329_p4) }
0x682f   : > { %14343 = vst [vmem:[%s14272_s30 + $0x30] sm:$0xff] (%p19329_p4), %v14342_v32  ;;  %14345 = vst [vmem:[%s14272_s30 + $0x38] sm:$0xff] (%p19329_p4), %v14344_v52  ;;  %v14354_v61 = vld [vmem:[%s20666_s26 + $0x60] sm:$0xff] (%p19329_p4)  ;;  %v14356_v20 = vld [vmem:[%s20666_s26 + $0x68] sm:$0xff] (%p19329_p4) }
0x6830   : > { %14347 = vst [vmem:[%s14272_s30 + $0x80] sm:$0xff] (%p19329_p4), %v14346_v13  ;;  %14349 = vst [vmem:[%s14272_s30 + $0x88] sm:$0xff] (%p19329_p4), %v14348_v60  ;;  %v14358_v37 = vld [vmem:[%s20666_s26 + $0x70] sm:$0xff] (%p19329_p4)  ;;  %v14360_v26 = vld [vmem:[%s20666_s26 + $0x78] sm:$0xff] (%p19329_p4) }
0x6831   : > { %14351 = vst [vmem:[%s14272_s30 + $0x90] sm:$0xff] %v14350_v12  ;;  %14353 = vst [vmem:[%s14272_s30 + $0x98] sm:$0xff] %v14352_v16 }
0x6832   : > { %14355 = vst [vmem:[%s14272_s30 + $0xa0] sm:$0xff] %v14354_v61  ;;  %14357 = vst [vmem:[%s14272_s30 + $0xa8] sm:$0xff] %v14356_v20 }
0x6833   : > { %14359 = vst [vmem:[%s14272_s30 + $0xb0] sm:$0xff] %v14358_v37  ;;  %14361 = vst [vmem:[%s14272_s30 + $0xb8] sm:$0xff] %v14360_v26 }
0x6834 PF: > { %p14_p8 = scmp.ge.s32.totalorder %s19319_s25, 4   ;;  %s22575_s21 = smov %s19255_s22 }
0x6835   : > { %s22576_s22 = smov %s19327_s28  ;;  %s22577_s23 = smov %s19319_s25 }
0x6836   :  { %16 = sbr.rel (!%p14_p8) target bundleno = 2 (0x2), region = 197 }

</bundles_post_ra>
